<compile_context>
chip_gen: v7x
topology: tpu7x:2x2x1
jax: 0.10.0
libtpu: 0.0.40
codegen_flags: <defaults>
</compile_context>

<pallas_src>
import functools

import jax
import jax.numpy as jnp
from jax.experimental import pallas as pl
from jax.experimental.pallas import tpu as pltpu


# ----------------------------- Pallas kernels ------------------------------

_SQRT_2_OVER_PI = 0.7978845608028654


def _gelu_tanh(x):
    # TODO(synk): tanh-approximate GELU (exact erf form is not reliably lowered
    # by Mosaic across jax versions); differs from F.gelu(exact) by ~1e-3 rel.
    return 0.5 * x * (1.0 + jnp.tanh(_SQRT_2_OVER_PI * (x + 0.044715 * x * x * x)))


def _make_dense_kernel(has_residual, fuse_gelu):
    """o = W @ x (+ b) (+ residual) (+ GELU); bf16 operands, f32 accumulation."""

    def kernel(*refs):
        if has_residual:
            x_ref, w_ref, b_ref, r_ref, o_ref = refs
        else:
            x_ref, w_ref, b_ref, o_ref = refs
        acc = jnp.dot(w_ref[...], x_ref[...], preferred_element_type=jnp.float32)
        acc = acc + b_ref[...]
        if has_residual:
            acc = acc + r_ref[...]
        if fuse_gelu:
            acc = _gelu_tanh(acc)
        o_ref[...] = acc.astype(o_ref.dtype)

    return kernel


def _head_kernel(x_ref, w1_ref, b1_ref, w2_ref, b2_ref, o_ref):
    """Fused fc1 -> GELU -> fc2: the (128, tm) intermediate stays in VMEM."""
    h = jnp.dot(w1_ref[...], x_ref[...], preferred_element_type=jnp.float32)
    h = _gelu_tanh(h + b1_ref[...])
    o_ref[...] = (jnp.dot(w2_ref[...], h.astype(jnp.bfloat16),
                          preferred_element_type=jnp.float32) + b2_ref[...])


def _spectral_mix_kernel(x_ref, w_ref, o_ref):
    # x: (gblk, B, K) bf16, w: (gblk, K, N) bf16 block-diag, o: (gblk, B, N) f32.
    # Static unroll over the (small) group axis; each dot is a full-depth
    # (B, K) x (K, N) MXU matmul with lane-dense N.
    for g in range(x_ref.shape[0]):
        o_ref[g, :, :] = jnp.dot(x_ref[g, :, :], w_ref[g, :, :],
                                 preferred_element_type=jnp.float32)


# ------------------------------- wrappers -----------------------------------

def _pick_tile(M, target=2048):
    """Lane tile: ~target wide (multiple of 128), even grid (v7x 2-TC split),
    ragged last block handled by Pallas masking."""
    if M <= 256:
        return M                       # single full-width block (== full dim: legal)
    g = max(2, pl.cdiv(M, target))
    if g % 2:
        g += 1
    return max(128, ((pl.cdiv(M, g) + 127) // 128) * 128)


def dense_t(x, w, b, *, residual=None, fuse_gelu=False,
            out_dtype=jnp.bfloat16, tm=None):
    """Transposed dense: y = w @ x + b (+ residual) (+ gelu).

    x: (Cin, M) bf16, w: (Cout, Cin) bf16, b: (Cout, 1) f32,
    residual: (Cout, M) f32 (straight from irfft2, no extra cast pass).
    """
    cin, M = x.shape
    cout = w.shape[0]
    if tm is None:
        tm = _pick_tile(M)
    grid_m = pl.cdiv(M, tm)

    in_specs = [
        pl.BlockSpec((cin, tm), lambda i: (0, i)),
        pl.BlockSpec((cout, cin), lambda i: (0, 0)),
        pl.BlockSpec((cout, 1), lambda i: (0, 0)),
    ]
    args = [x, w, b]
    if residual is not None:
        in_specs.append(pl.BlockSpec((cout, tm), lambda i: (0, i)))
        args.append(residual)

    return pl.pallas_call(
        _make_dense_kernel(residual is not None, fuse_gelu),
        out_shape=jax.ShapeDtypeStruct((cout, M), out_dtype),
        grid=(grid_m,),
        in_specs=in_specs,
        out_specs=pl.BlockSpec((cout, tm), lambda i: (0, i)),
        compiler_params=pltpu.CompilerParams(dimension_semantics=("parallel",)),
    )(*args)


def head_t(x, w1, b1, w2, b2, *, tm=None):
    """Fused fc1+GELU+fc2.  x: (width, M) bf16 -> (1, M) f32."""
    cin, M = x.shape
    c1 = w1.shape[0]
    if tm is None:
        tm = _pick_tile(M)
    grid_m = pl.cdiv(M, tm)
    return pl.pallas_call(
        _head_kernel,
        out_shape=jax.ShapeDtypeStruct((1, M), jnp.float32),
        grid=(grid_m,),
        in_specs=[
            pl.BlockSpec((cin, tm), lambda i: (0, i)),
            pl.BlockSpec((c1, cin), lambda i: (0, 0)),
            pl.BlockSpec((c1, 1), lambda i: (0, 0)),
            pl.BlockSpec((1, c1), lambda i: (0, 0)),
            pl.BlockSpec((1, 1), lambda i: (0, 0)),
        ],
        out_specs=pl.BlockSpec((1, tm), lambda i: (0, i)),
        compiler_params=pltpu.CompilerParams(dimension_semantics=("parallel",)),
    )(x, w1, b1, w2, b2)


def pack_spectral_weights(w1, w2, m1, m2, group=4):
    """(Cin, Cout, m1, m2) complex64 x2 -> (ngroups, G*2Cin, G*2Cout) bf16.

    Per-mode the complex channel mix is the real 2x2 block [[wr, wi], [-wi, wr]];
    G consecutive modes are packed block-diagonally so each matmul is
    (B, G*2Cin) x (G*2Cin, G*2Cout) with full MXU depth and lane-dense output.
    """
    cin, cout = w1.shape[0], w1.shape[1]

    def to_w(w):  # (Cin, Cout, m1, m2) -> (m1*m2, Cin, Cout)
        return jnp.transpose(w, (2, 3, 0, 1)).reshape(m1 * m2, cin, cout)

    w = jnp.concatenate([to_w(w1), to_w(w2)], axis=0)            # (nmode, Cin, Cout) c64
    wr, wi = jnp.real(w), jnp.imag(w)
    top = jnp.concatenate([wr, wi], axis=-1)                      # (nmode, Cin, 2Cout)
    bot = jnp.concatenate([-wi, wr], axis=-1)
    w_real = jnp.concatenate([top, bot], axis=-2)                 # (nmode, 2Cin, 2Cout)

    nmode = w_real.shape[0]
    ngroups = -(-nmode // group)
    pad = ngroups * group - nmode
    if pad:
        w_real = jnp.pad(w_real, ((0, pad), (0, 0), (0, 0)))
    w_g = w_real.reshape(ngroups, group, 2 * cin, 2 * cout)
    eye = jnp.eye(group, dtype=w_real.dtype)
    # [g, j*2Cin+i, k*2Cout+o] = w_g[g, j, i, o] * (j == k)   (block-diagonal)
    w_bd = jnp.einsum("gjio,jk->gjiko", w_g, eye)
    return w_bd.reshape(ngroups, group * 2 * cin,
                        group * 2 * cout).astype(jnp.bfloat16)


def spectral_conv2d(h, w_packed, m1, m2):
    """SpectralConv2d on channels-first h: (C, B, H, W) bf16 -> (Cout, B, H, W) f32."""
    C, B, H, W = h.shape
    ngroups, K, N = w_packed.shape
    group = K // (2 * C)
    cout = N // (2 * group)
    nmode = 2 * m1 * m2

    # TODO(synk): rfft2/irfft2 have no Pallas TPU equivalent; done with XLA FFT
    # (f32 at the FFT boundary only - pointwise layers stay bf16 in HBM).
    x_ft = jnp.fft.rfft2(h.astype(jnp.float32), axes=(-2, -1))    # (C,B,H,W//2+1) c64
    lo = x_ft[:, :, :m1, :m2]                                     # low +x frequencies
    hi = x_ft[:, :, H - m1:, :m2]                                 # negative x frequencies

    def to_modes(blk):  # (C, B, m1, m2) -> (m1*m2, B, C)
        return jnp.transpose(blk, (2, 3, 1, 0)).reshape(m1 * m2, B, C)

    modes = jnp.concatenate([to_modes(lo), to_modes(hi)], axis=0)         # (nmode,B,C) c64
    xp = jnp.concatenate([jnp.real(modes), jnp.imag(modes)], axis=-1)     # (nmode,B,2C) f32
    pad = ngroups * group - nmode
    if pad:
        xp = jnp.pad(xp, ((0, pad), (0, 0), (0, 0)))
    # Group G modes along the contraction axis: (ngroups, B, G*2C).
    xp = jnp.transpose(xp.reshape(ngroups, group, B, 2 * C),
                       (0, 2, 1, 3)).reshape(ngroups, B, K).astype(jnp.bfloat16)

    # >=2 even grid steps: keeps both v7x TensorCores busy, gives v6e pipeline
    # depth, and keeps per-step weight blocks small (VMEM: 16 MiB default on
    # v5e, 32 MiB on v6e/v7x).
    if ngroups % 4 == 0 and ngroups >= 8:
        nblk = 4
    elif ngroups % 2 == 0:
        nblk = 2
    else:
        nblk = 1
    gblk = ngroups // nblk

    out = pl.pallas_call(
        _spectral_mix_kernel,
        out_shape=jax.ShapeDtypeStruct((ngroups, B, N), jnp.float32),
        grid=(nblk,),
        in_specs=[
            pl.BlockSpec((gblk, B, K), lambda g: (g, 0, 0)),
            pl.BlockSpec((gblk, K, N), lambda g: (g, 0, 0)),
        ],
        out_specs=pl.BlockSpec((gblk, B, N), lambda g: (g, 0, 0)),
        compiler_params=pltpu.CompilerParams(dimension_semantics=("parallel",)),
    )(xp, w_packed)

    # Unpack (ngroups, B, G*2Cout) -> complex (nmode, B, Cout).
    out = jnp.transpose(out.reshape(ngroups, B, group, 2 * cout),
                        (0, 2, 1, 3)).reshape(ngroups * group, B, 2 * cout)[:nmode]
    yc = (out[..., :cout] + 1j * out[..., cout:]).astype(jnp.complex64)   # (nmode,B,cout)
    yc = jnp.transpose(yc.reshape(2, m1, m2, B, cout), (0, 4, 3, 1, 2))   # (2,cout,B,m1,m2)

    # Build out_ft by concatenating zero blocks (no scatter round trips).
    Wf = W // 2 + 1
    zmid = jnp.zeros((cout, B, H - 2 * m1, m2), jnp.complex64)
    zright = jnp.zeros((cout, B, H, Wf - m2), jnp.complex64)
    out_ft = jnp.concatenate(
        [jnp.concatenate([yc[0], zmid, yc[1]], axis=2), zright], axis=3)
    return jnp.fft.irfft2(out_ft, s=(H, W), axes=(-2, -1)).astype(jnp.float32)


def make_grid(B, Sx, Sy):
    gx = jnp.linspace(0.0, 1.0, Sx, dtype=jnp.float32).reshape(1, Sx, 1, 1)
    gx = jnp.broadcast_to(gx, (B, Sx, Sy, 1))
    gy = jnp.linspace(0.0, 1.0, Sy, dtype=jnp.float32).reshape(1, 1, Sy, 1)
    gy = jnp.broadcast_to(gy, (B, Sx, Sy, 1))
    return jnp.concatenate([gx, gy], axis=-1)


def fno_mesh2d_forward(x, params, *, modes1, modes2, width, n_layers, padding=8):
    B, Sx, Sy, _ = x.shape
    grid = make_grid(B, Sx, Sy)
    h = jnp.concatenate([x, grid], axis=-1)                       # (B, Sx, Sy, 4) f32

    # Channels-first flatten; bf16 activations in HBM from here on.
    h_cf = jnp.transpose(h, (3, 0, 1, 2)).reshape(4, B * Sx * Sy).astype(jnp.bfloat16)
    h_cf = dense_t(h_cf, params["fc0_w"], params["fc0_b"])        # (width, M0) bf16
    h = h_cf.reshape(width, B, Sx, Sy)

    h = jnp.pad(h, ((0, 0), (0, 0), (0, padding), (0, padding)))  # (width, B, H, W) bf16
    H, W = Sx + padding, Sy + padding
    M = B * H * W

    for i in range(n_layers):
        x1 = spectral_conv2d(h, params["spec_w_packed"][i], modes1, modes2)   # f32
        h = dense_t(
            h.reshape(width, M),
            params["conv1x1_w"][i],
            params["conv1x1_b"][i],
            residual=x1.reshape(width, M),
            fuse_gelu=(i < n_layers - 1),          # GELU fused into the dense kernel
        ).reshape(width, B, H, W)                  # bf16

    h = h[:, :, :Sx, :Sy]                                          # un-pad
    M2 = B * Sx * Sy
    out = head_t(h.reshape(width, M2), params["fc1_w"], params["fc1_b"],
                 params["fc2_w"], params["fc2_b"])                 # (1, M2) f32 (fused)
    return jnp.transpose(out.reshape(1, B, Sx, Sy), (1, 2, 3, 0))  # (B, Sx, Sy, 1)


def init_params(key, width, m1, m2, n_layers, group=4):
    # group=4 suits v6e/v7x (256-deep MXU); use group=2 on v5e.
    ks = list(jax.random.split(key, 6 + 6 * n_layers))
    it = iter(ks)

    def nrm(shape, scale=0.1):
        return scale * jax.random.normal(next(it), shape, dtype=jnp.float32)

    def uni(shape):
        return jax.random.uniform(next(it), shape, dtype=jnp.float32)

    p = {}
    # Weights pre-cast to bf16, biases pre-shaped to (cout, 1) f32 once at init.
    p["fc0_w"] = nrm((width, 4)).astype(jnp.bfloat16)
    p["fc0_b"] = nrm((width,)).reshape(width, 1)
    scale = 1.0 / (width * width)
    p["spec_w_packed"] = []
    p["conv1x1_w"], p["conv1x1_b"] = [], []
    for _ in range(n_layers):
        w1 = (scale * (uni((width, width, m1, m2))
                       + 1j * uni((width, width, m1, m2)))).astype(jnp.complex64)
        w2 = (scale * (uni((width, width, m1, m2))
                       + 1j * uni((width, width, m1, m2)))).astype(jnp.complex64)
        p["spec_w_packed"].append(pack_spectral_weights(w1, w2, m1, m2, group=group))
        p["conv1x1_w"].append(nrm((width, width)).astype(jnp.bfloat16))
        p["conv1x1_b"].append(nrm((width,)).reshape(width, 1))
    p["fc1_w"] = nrm((128, width)).astype(jnp.bfloat16)
    p["fc1_b"] = nrm((128,)).reshape(128, 1)
    p["fc2_w"] = nrm((1, 128)).astype(jnp.bfloat16)
    p["fc2_b"] = nrm((1,)).reshape(1, 1)
    return p


if __name__ == "__main__":
    B, Sx, Sy = 2, 16, 16
    modes1, modes2, width, n_layers = 4, 4, 32, 2

    key = jax.random.PRNGKey(0)
    kx, kp = jax.random.split(key)
    x = jax.random.normal(kx, (B, Sx, Sy, 2), dtype=jnp.float32)
    params = init_params(kp, width, modes1, modes2, n_layers, group=4)

    fwd = jax.jit(functools.partial(
        fno_mesh2d_forward, modes1=modes1, modes2=modes2, width=width,
        n_layers=n_layers, padding=8))

    out = fwd(x, params)
    jax.block_until_ready(out)
    assert out.shape == (B, Sx, Sy, 1)
    assert out.dtype == jnp.float32
    print("KERNEL_OK")
</pallas_src>

<mosaic_0001>
module attributes {stable_mosaic.version = 11 : i64} {
  func.func @kernel(%arg0: i32, %arg1: memref<4x256xbf16, #tpu.memory_space<vmem>>, %arg2: memref<32x4xbf16, #tpu.memory_space<vmem>>, %arg3: memref<32x1xf32, #tpu.memory_space<vmem>>, %arg4: memref<32x256xbf16, #tpu.memory_space<vmem>>) attributes {dimension_semantics = [#tpu.dimension_semantics<parallel>], iteration_bounds = array<i64: 2>, scalar_prefetch = 0 : i64, scratch_operands = 0 : i64, tpu.core_type = #tpu.core_type<tc>, window_params = [{transform_indices = @transform_0, window_bounds = array<i64: 4, 256>}, {pipeline_mode = #tpu.pipeline_mode<synchronous>, transform_indices = @transform_1, window_bounds = array<i64: 32, 4>}, {pipeline_mode = #tpu.pipeline_mode<synchronous>, transform_indices = @transform_2, window_bounds = array<i64: 32, 1>}, {transform_indices = @transform_3, window_bounds = array<i64: 32, 256>}]} {
    %c0 = arith.constant 0 : index
    %c0_0 = arith.constant 0 : index
    %0 = vector.load %arg2[%c0, %c0_0] : memref<32x4xbf16, #tpu.memory_space<vmem>>, vector<32x4xbf16>
    %c0_1 = arith.constant 0 : index
    %c0_2 = arith.constant 0 : index
    %1 = vector.load %arg1[%c0_1, %c0_2] : memref<4x256xbf16, #tpu.memory_space<vmem>>, vector<4x256xbf16>
    %cst = arith.constant dense<0.000000e+00> : vector<32x256xf32>
    %2 = tpu.matmul %0, %1, %cst {dimension_numbers = #tpu.dot_dimension_numbers<[1], [0], [0], [1], [0, 0, 1, 1], [], []>} : vector<32x4xbf16>, vector<4x256xbf16>, vector<32x256xf32> -> vector<32x256xf32>
    %c0_3 = arith.constant 0 : index
    %c0_4 = arith.constant 0 : index
    %3 = vector.load %arg3[%c0_3, %c0_4] : memref<32x1xf32, #tpu.memory_space<vmem>>, vector<32x1xf32>
    %4 = vector.broadcast %3 : vector<32x1xf32> to vector<32x256xf32>
    %5 = arith.addf %2, %4 : vector<32x256xf32>
    %6 = arith.truncf %5 : vector<32x256xf32> to vector<32x256xbf16>
    %c0_5 = arith.constant 0 : index
    %c0_6 = arith.constant 0 : index
    %7 = vector.load %arg4[%c0_5, %c0_6] : memref<32x256xbf16, #tpu.memory_space<vmem>>, vector<32x256xbf16>
    tpu.vector_store %arg4[%c0_5, %c0_6], %6 {strides = array<i32>} : memref<32x256xbf16, #tpu.memory_space<vmem>>, vector<32x256xbf16>,
    return
  }
  func.func @transform_0(%arg0: i32) -> (i32, i32) {
    %c0_i32 = arith.constant 0 : i32
    %c0_i32_0 = arith.constant 0 : i32
    return %c0_i32, %arg0 : i32, i32
  }
  func.func @transform_1(%arg0: i32) -> (i32, i32) {
    %c0_i32 = arith.constant 0 : i32
    %c0_i32_0 = arith.constant 0 : i32
    %c0_i32_1 = arith.constant 0 : i32
    return %c0_i32, %c0_i32_0 : i32, i32
  }
  func.func @transform_2(%arg0: i32) -> (i32, i32) {
    %c0_i32 = arith.constant 0 : i32
    %c0_i32_0 = arith.constant 0 : i32
    %c0_i32_1 = arith.constant 0 : i32
    return %c0_i32, %c0_i32_0 : i32, i32
  }
  func.func @transform_3(%arg0: i32) -> (i32, i32) {
    %c0_i32 = arith.constant 0 : i32
    %c0_i32_0 = arith.constant 0 : i32
    return %c0_i32, %arg0 : i32, i32
  }
}

module attributes {stable_mosaic.version = 11 : i64} {
  func.func @_spectral_mix_kernel(%arg0: i32, %arg1: memref<2x2x256xbf16, #tpu.memory_space<vmem>>, %arg2: memref<2x256x256xbf16, #tpu.memory_space<vmem>>, %arg3: memref<2x2x256xf32, #tpu.memory_space<vmem>>) attributes {dimension_semantics = [#tpu.dimension_semantics<parallel>], iteration_bounds = array<i64: 4>, scalar_prefetch = 0 : i64, scratch_operands = 0 : i64, tpu.core_type = #tpu.core_type<tc>, window_params = [{transform_indices = @transform_0, window_bounds = array<i64: 2, 2, 256>}, {transform_indices = @transform_1, window_bounds = array<i64: 2, 256, 256>}, {transform_indices = @transform_2, window_bounds = array<i64: 2, 2, 256>}]} {
    %c0 = arith.constant 0 : index
    %c0_0 = arith.constant 0 : index
    %c0_1 = arith.constant 0 : index
    %0 = vector.load %arg1[%c0, %c0_0, %c0_1] : memref<2x2x256xbf16, #tpu.memory_space<vmem>>, vector<1x2x256xbf16>
    %1 = vector.shape_cast %0 : vector<1x2x256xbf16> to vector<2x256xbf16>
    %c0_2 = arith.constant 0 : index
    %c0_3 = arith.constant 0 : index
    %c0_4 = arith.constant 0 : index
    %2 = vector.load %arg2[%c0_2, %c0_3, %c0_4] : memref<2x256x256xbf16, #tpu.memory_space<vmem>>, vector<1x256x256xbf16>
    %3 = vector.shape_cast %2 : vector<1x256x256xbf16> to vector<256x256xbf16>
    %cst = arith.constant dense<0.000000e+00> : vector<2x256xf32>
    %4 = tpu.matmul %1, %3, %cst {dimension_numbers = #tpu.dot_dimension_numbers<[1], [0], [0], [1], [0, 0, 1, 1], [], []>} : vector<2x256xbf16>, vector<256x256xbf16>, vector<2x256xf32> -> vector<2x256xf32>
    %c0_5 = arith.constant 0 : index
    %c0_6 = arith.constant 0 : index
    %c0_7 = arith.constant 0 : index
    %5 = vector.load %arg3[%c0_5, %c0_6, %c0_7] : memref<2x2x256xf32, #tpu.memory_space<vmem>>, vector<1x2x256xf32>
    %6 = vector.shape_cast %5 : vector<1x2x256xf32> to vector<2x256xf32>
    %7 = vector.shape_cast %4 : vector<2x256xf32> to vector<1x2x256xf32>
    tpu.vector_store %arg3[%c0_5, %c0_6, %c0_7], %7 {strides = array<i32>} : memref<2x2x256xf32, #tpu.memory_space<vmem>>, vector<1x2x256xf32>,
    %c1 = arith.constant 1 : index
    %c0_8 = arith.constant 0 : index
    %c0_9 = arith.constant 0 : index
    %8 = vector.load %arg1[%c1, %c0_8, %c0_9] : memref<2x2x256xbf16, #tpu.memory_space<vmem>>, vector<1x2x256xbf16>
    %9 = vector.shape_cast %8 : vector<1x2x256xbf16> to vector<2x256xbf16>
    %c1_10 = arith.constant 1 : index
    %c0_11 = arith.constant 0 : index
    %c0_12 = arith.constant 0 : index
    %10 = vector.load %arg2[%c1_10, %c0_11, %c0_12] : memref<2x256x256xbf16, #tpu.memory_space<vmem>>, vector<1x256x256xbf16>
    %11 = vector.shape_cast %10 : vector<1x256x256xbf16> to vector<256x256xbf16>
    %cst_13 = arith.constant dense<0.000000e+00> : vector<2x256xf32>
    %12 = tpu.matmul %9, %11, %cst_13 {dimension_numbers = #tpu.dot_dimension_numbers<[1], [0], [0], [1], [0, 0, 1, 1], [], []>} : vector<2x256xbf16>, vector<256x256xbf16>, vector<2x256xf32> -> vector<2x256xf32>
    %c1_14 = arith.constant 1 : index
    %c0_15 = arith.constant 0 : index
    %c0_16 = arith.constant 0 : index
    %13 = vector.load %arg3[%c1_14, %c0_15, %c0_16] : memref<2x2x256xf32, #tpu.memory_space<vmem>>, vector<1x2x256xf32>
    %14 = vector.shape_cast %13 : vector<1x2x256xf32> to vector<2x256xf32>
    %15 = vector.shape_cast %12 : vector<2x256xf32> to vector<1x2x256xf32>
    tpu.vector_store %arg3[%c1_14, %c0_15, %c0_16], %15 {strides = array<i32>} : memref<2x2x256xf32, #tpu.memory_space<vmem>>, vector<1x2x256xf32>,
    return
  }
  func.func @transform_0(%arg0: i32) -> (i32, i32, i32) {
    %c0_i32 = arith.constant 0 : i32
    %c0_i32_0 = arith.constant 0 : i32
    %c0_i32_1 = arith.constant 0 : i32
    return %arg0, %c0_i32, %c0_i32_0 : i32, i32, i32
  }
  func.func @transform_1(%arg0: i32) -> (i32, i32, i32) {
    %c0_i32 = arith.constant 0 : i32
    %c0_i32_0 = arith.constant 0 : i32
    %c0_i32_1 = arith.constant 0 : i32
    return %arg0, %c0_i32, %c0_i32_0 : i32, i32, i32
  }
  func.func @transform_2(%arg0: i32) -> (i32, i32, i32) {
    %c0_i32 = arith.constant 0 : i32
    %c0_i32_0 = arith.constant 0 : i32
    %c0_i32_1 = arith.constant 0 : i32
    return %arg0, %c0_i32, %c0_i32_0 : i32, i32, i32
  }
}

module attributes {stable_mosaic.version = 11 : i64} {
  func.func @kernel(%arg0: i32, %arg1: memref<32x640xbf16, #tpu.memory_space<vmem>>, %arg2: memref<32x32xbf16, #tpu.memory_space<vmem>>, %arg3: memref<32x1xf32, #tpu.memory_space<vmem>>, %arg4: memref<32x640xf32, #tpu.memory_space<vmem>>, %arg5: memref<32x640xbf16, #tpu.memory_space<vmem>>) attributes {dimension_semantics = [#tpu.dimension_semantics<parallel>], iteration_bounds = array<i64: 2>, scalar_prefetch = 0 : i64, scratch_operands = 0 : i64, tpu.core_type = #tpu.core_type<tc>, window_params = [{transform_indices = @transform_0, window_bounds = array<i64: 32, 640>}, {pipeline_mode = #tpu.pipeline_mode<synchronous>, transform_indices = @transform_1, window_bounds = array<i64: 32, 32>}, {pipeline_mode = #tpu.pipeline_mode<synchronous>, transform_indices = @transform_2, window_bounds = array<i64: 32, 1>}, {transform_indices = @transform_3, window_bounds = array<i64: 32, 640>}, {transform_indices = @transform_4, window_bounds = array<i64: 32, 640>}]} {
    %c0 = arith.constant 0 : index
    %c0_0 = arith.constant 0 : index
    %0 = vector.load %arg2[%c0, %c0_0] : memref<32x32xbf16, #tpu.memory_space<vmem>>, vector<32x32xbf16>
    %c0_1 = arith.constant 0 : index
    %c0_2 = arith.constant 0 : index
    %1 = vector.load %arg1[%c0_1, %c0_2] : memref<32x640xbf16, #tpu.memory_space<vmem>>, vector<32x640xbf16>
    %cst = arith.constant dense<0.000000e+00> : vector<32x640xf32>
    %2 = tpu.matmul %0, %1, %cst {dimension_numbers = #tpu.dot_dimension_numbers<[1], [0], [0], [1], [0, 0, 1, 1], [], []>} : vector<32x32xbf16>, vector<32x640xbf16>, vector<32x640xf32> -> vector<32x640xf32>
    %c0_3 = arith.constant 0 : index
    %c0_4 = arith.constant 0 : index
    %3 = vector.load %arg3[%c0_3, %c0_4] : memref<32x1xf32, #tpu.memory_space<vmem>>, vector<32x1xf32>
    %4 = vector.broadcast %3 : vector<32x1xf32> to vector<32x640xf32>
    %5 = arith.addf %2, %4 : vector<32x640xf32>
    %c0_5 = arith.constant 0 : index
    %c0_6 = arith.constant 0 : index
    %6 = vector.load %arg4[%c0_5, %c0_6] : memref<32x640xf32, #tpu.memory_space<vmem>>, vector<32x640xf32>
    %7 = arith.addf %5, %6 : vector<32x640xf32>
    %cst_7 = arith.constant 5.000000e-01 : f32
    %8 = vector.broadcast %cst_7 : f32 to vector<32x640xf32>
    %9 = arith.mulf %8, %7 : vector<32x640xf32>
    %cst_8 = arith.constant 4.471500e-02 : f32
    %10 = vector.broadcast %cst_8 : f32 to vector<32x640xf32>
    %11 = arith.mulf %10, %7 : vector<32x640xf32>
    %12 = arith.mulf %11, %7 : vector<32x640xf32>
    %13 = arith.mulf %12, %7 : vector<32x640xf32>
    %14 = arith.addf %7, %13 : vector<32x640xf32>
    %cst_9 = arith.constant 0.797884583 : f32
    %15 = vector.broadcast %cst_9 : f32 to vector<32x640xf32>
    %16 = arith.mulf %15, %14 : vector<32x640xf32>
    %17 = math.tanh %16 : vector<32x640xf32>
    %cst_10 = arith.constant 1.000000e+00 : f32
    %18 = vector.broadcast %cst_10 : f32 to vector<32x640xf32>
    %19 = arith.addf %18, %17 : vector<32x640xf32>
    %20 = arith.mulf %9, %19 : vector<32x640xf32>
    %21 = arith.truncf %20 : vector<32x640xf32> to vector<32x640xbf16>
    %c0_11 = arith.constant 0 : index
    %c0_12 = arith.constant 0 : index
    %22 = vector.load %arg5[%c0_11, %c0_12] : memref<32x640xbf16, #tpu.memory_space<vmem>>, vector<32x640xbf16>
    tpu.vector_store %arg5[%c0_11, %c0_12], %21 {strides = array<i32>} : memref<32x640xbf16, #tpu.memory_space<vmem>>, vector<32x640xbf16>,
    return
  }
  func.func @transform_0(%arg0: i32) -> (i32, i32) {
    %c0_i32 = arith.constant 0 : i32
    %c0_i32_0 = arith.constant 0 : i32
    return %c0_i32, %arg0 : i32, i32
  }
  func.func @transform_1(%arg0: i32) -> (i32, i32) {
    %c0_i32 = arith.constant 0 : i32
    %c0_i32_0 = arith.constant 0 : i32
    %c0_i32_1 = arith.constant 0 : i32
    return %c0_i32, %c0_i32_0 : i32, i32
  }
  func.func @transform_2(%arg0: i32) -> (i32, i32) {
    %c0_i32 = arith.constant 0 : i32
    %c0_i32_0 = arith.constant 0 : i32
    %c0_i32_1 = arith.constant 0 : i32
    return %c0_i32, %c0_i32_0 : i32, i32
  }
  func.func @transform_3(%arg0: i32) -> (i32, i32) {
    %c0_i32 = arith.constant 0 : i32
    %c0_i32_0 = arith.constant 0 : i32
    return %c0_i32, %arg0 : i32, i32
  }
  func.func @transform_4(%arg0: i32) -> (i32, i32) {
    %c0_i32 = arith.constant 0 : i32
    %c0_i32_0 = arith.constant 0 : i32
    return %c0_i32, %arg0 : i32, i32
  }
}

module attributes {stable_mosaic.version = 11 : i64} {
  func.func @kernel(%arg0: i32, %arg1: memref<32x640xbf16, #tpu.memory_space<vmem>>, %arg2: memref<32x32xbf16, #tpu.memory_space<vmem>>, %arg3: memref<32x1xf32, #tpu.memory_space<vmem>>, %arg4: memref<32x640xf32, #tpu.memory_space<vmem>>, %arg5: memref<32x640xbf16, #tpu.memory_space<vmem>>) attributes {dimension_semantics = [#tpu.dimension_semantics<parallel>], iteration_bounds = array<i64: 2>, scalar_prefetch = 0 : i64, scratch_operands = 0 : i64, tpu.core_type = #tpu.core_type<tc>, window_params = [{transform_indices = @transform_0, window_bounds = array<i64: 32, 640>}, {pipeline_mode = #tpu.pipeline_mode<synchronous>, transform_indices = @transform_1, window_bounds = array<i64: 32, 32>}, {pipeline_mode = #tpu.pipeline_mode<synchronous>, transform_indices = @transform_2, window_bounds = array<i64: 32, 1>}, {transform_indices = @transform_3, window_bounds = array<i64: 32, 640>}, {transform_indices = @transform_4, window_bounds = array<i64: 32, 640>}]} {
    %c0 = arith.constant 0 : index
    %c0_0 = arith.constant 0 : index
    %0 = vector.load %arg2[%c0, %c0_0] : memref<32x32xbf16, #tpu.memory_space<vmem>>, vector<32x32xbf16>
    %c0_1 = arith.constant 0 : index
    %c0_2 = arith.constant 0 : index
    %1 = vector.load %arg1[%c0_1, %c0_2] : memref<32x640xbf16, #tpu.memory_space<vmem>>, vector<32x640xbf16>
    %cst = arith.constant dense<0.000000e+00> : vector<32x640xf32>
    %2 = tpu.matmul %0, %1, %cst {dimension_numbers = #tpu.dot_dimension_numbers<[1], [0], [0], [1], [0, 0, 1, 1], [], []>} : vector<32x32xbf16>, vector<32x640xbf16>, vector<32x640xf32> -> vector<32x640xf32>
    %c0_3 = arith.constant 0 : index
    %c0_4 = arith.constant 0 : index
    %3 = vector.load %arg3[%c0_3, %c0_4] : memref<32x1xf32, #tpu.memory_space<vmem>>, vector<32x1xf32>
    %4 = vector.broadcast %3 : vector<32x1xf32> to vector<32x640xf32>
    %5 = arith.addf %2, %4 : vector<32x640xf32>
    %c0_5 = arith.constant 0 : index
    %c0_6 = arith.constant 0 : index
    %6 = vector.load %arg4[%c0_5, %c0_6] : memref<32x640xf32, #tpu.memory_space<vmem>>, vector<32x640xf32>
    %7 = arith.addf %5, %6 : vector<32x640xf32>
    %8 = arith.truncf %7 : vector<32x640xf32> to vector<32x640xbf16>
    %c0_7 = arith.constant 0 : index
    %c0_8 = arith.constant 0 : index
    %9 = vector.load %arg5[%c0_7, %c0_8] : memref<32x640xbf16, #tpu.memory_space<vmem>>, vector<32x640xbf16>
    tpu.vector_store %arg5[%c0_7, %c0_8], %8 {strides = array<i32>} : memref<32x640xbf16, #tpu.memory_space<vmem>>, vector<32x640xbf16>,
    return
  }
  func.func @transform_0(%arg0: i32) -> (i32, i32) {
    %c0_i32 = arith.constant 0 : i32
    %c0_i32_0 = arith.constant 0 : i32
    return %c0_i32, %arg0 : i32, i32
  }
  func.func @transform_1(%arg0: i32) -> (i32, i32) {
    %c0_i32 = arith.constant 0 : i32
    %c0_i32_0 = arith.constant 0 : i32
    %c0_i32_1 = arith.constant 0 : i32
    return %c0_i32, %c0_i32_0 : i32, i32
  }
  func.func @transform_2(%arg0: i32) -> (i32, i32) {
    %c0_i32 = arith.constant 0 : i32
    %c0_i32_0 = arith.constant 0 : i32
    %c0_i32_1 = arith.constant 0 : i32
    return %c0_i32, %c0_i32_0 : i32, i32
  }
  func.func @transform_3(%arg0: i32) -> (i32, i32) {
    %c0_i32 = arith.constant 0 : i32
    %c0_i32_0 = arith.constant 0 : i32
    return %c0_i32, %arg0 : i32, i32
  }
  func.func @transform_4(%arg0: i32) -> (i32, i32) {
    %c0_i32 = arith.constant 0 : i32
    %c0_i32_0 = arith.constant 0 : i32
    return %c0_i32, %arg0 : i32, i32
  }
}

module attributes {stable_mosaic.version = 11 : i64} {
  func.func @_head_kernel(%arg0: i32, %arg1: memref<32x256xbf16, #tpu.memory_space<vmem>>, %arg2: memref<128x32xbf16, #tpu.memory_space<vmem>>, %arg3: memref<128x1xf32, #tpu.memory_space<vmem>>, %arg4: memref<1x128xbf16, #tpu.memory_space<vmem>>, %arg5: memref<1x1xf32, #tpu.memory_space<vmem>>, %arg6: memref<1x256xf32, #tpu.memory_space<vmem>>) attributes {dimension_semantics = [#tpu.dimension_semantics<parallel>], iteration_bounds = array<i64: 2>, scalar_prefetch = 0 : i64, scratch_operands = 0 : i64, tpu.core_type = #tpu.core_type<tc>, window_params = [{transform_indices = @transform_0, window_bounds = array<i64: 32, 256>}, {pipeline_mode = #tpu.pipeline_mode<synchronous>, transform_indices = @transform_1, window_bounds = array<i64: 128, 32>}, {pipeline_mode = #tpu.pipeline_mode<synchronous>, transform_indices = @transform_2, window_bounds = array<i64: 128, 1>}, {pipeline_mode = #tpu.pipeline_mode<synchronous>, transform_indices = @transform_3, window_bounds = array<i64: 1, 128>}, {pipeline_mode = #tpu.pipeline_mode<synchronous>, transform_indices = @transform_4, window_bounds = array<i64: 1, 1>}, {transform_indices = @transform_5, window_bounds = array<i64: 1, 256>}]} {
    %c0 = arith.constant 0 : index
    %c0_0 = arith.constant 0 : index
    %0 = vector.load %arg2[%c0, %c0_0] : memref<128x32xbf16, #tpu.memory_space<vmem>>, vector<128x32xbf16>
    %c0_1 = arith.constant 0 : index
    %c0_2 = arith.constant 0 : index
    %1 = vector.load %arg1[%c0_1, %c0_2] : memref<32x256xbf16, #tpu.memory_space<vmem>>, vector<32x256xbf16>
    %cst = arith.constant dense<0.000000e+00> : vector<128x256xf32>
    %2 = tpu.matmul %0, %1, %cst {dimension_numbers = #tpu.dot_dimension_numbers<[1], [0], [0], [1], [0, 0, 1, 1], [], []>} : vector<128x32xbf16>, vector<32x256xbf16>, vector<128x256xf32> -> vector<128x256xf32>
    %c0_3 = arith.constant 0 : index
    %c0_4 = arith.constant 0 : index
    %3 = vector.load %arg3[%c0_3, %c0_4] : memref<128x1xf32, #tpu.memory_space<vmem>>, vector<128x1xf32>
    %4 = vector.broadcast %3 : vector<128x1xf32> to vector<128x256xf32>
    %5 = arith.addf %2, %4 : vector<128x256xf32>
    %cst_5 = arith.constant 5.000000e-01 : f32
    %6 = vector.broadcast %cst_5 : f32 to vector<128x256xf32>
    %7 = arith.mulf %6, %5 : vector<128x256xf32>
    %cst_6 = arith.constant 4.471500e-02 : f32
    %8 = vector.broadcast %cst_6 : f32 to vector<128x256xf32>
    %9 = arith.mulf %8, %5 : vector<128x256xf32>
    %10 = arith.mulf %9, %5 : vector<128x256xf32>
    %11 = arith.mulf %10, %5 : vector<128x256xf32>
    %12 = arith.addf %5, %11 : vector<128x256xf32>
    %cst_7 = arith.constant 0.797884583 : f32
    %13 = vector.broadcast %cst_7 : f32 to vector<128x256xf32>
    %14 = arith.mulf %13, %12 : vector<128x256xf32>
    %15 = math.tanh %14 : vector<128x256xf32>
    %cst_8 = arith.constant 1.000000e+00 : f32
    %16 = vector.broadcast %cst_8 : f32 to vector<128x256xf32>
    %17 = arith.addf %16, %15 : vector<128x256xf32>
    %18 = arith.mulf %7, %17 : vector<128x256xf32>
    %c0_9 = arith.constant 0 : index
    %c0_10 = arith.constant 0 : index
    %19 = vector.load %arg4[%c0_9, %c0_10] : memref<1x128xbf16, #tpu.memory_space<vmem>>, vector<1x128xbf16>
    %20 = arith.truncf %18 : vector<128x256xf32> to vector<128x256xbf16>
    %cst_11 = arith.constant dense<0.000000e+00> : vector<1x256xf32>
    %21 = tpu.matmul %19, %20, %cst_11 {dimension_numbers = #tpu.dot_dimension_numbers<[1], [0], [0], [1], [0, 0, 1, 1], [], []>} : vector<1x128xbf16>, vector<128x256xbf16>, vector<1x256xf32> -> vector<1x256xf32>
    %c0_12 = arith.constant 0 : index
    %c0_13 = arith.constant 0 : index
    %22 = vector.load %arg5[%c0_12, %c0_13] : memref<1x1xf32, #tpu.memory_space<vmem>>, vector<1x1xf32>
    %23 = vector.broadcast %22 : vector<1x1xf32> to vector<1x256xf32>
    %24 = arith.addf %21, %23 : vector<1x256xf32>
    %c0_14 = arith.constant 0 : index
    %c0_15 = arith.constant 0 : index
    %25 = vector.load %arg6[%c0_14, %c0_15] : memref<1x256xf32, #tpu.memory_space<vmem>>, vector<1x256xf32>
    tpu.vector_store %arg6[%c0_14, %c0_15], %24 {strides = array<i32>} : memref<1x256xf32, #tpu.memory_space<vmem>>, vector<1x256xf32>,
    return
  }
  func.func @transform_0(%arg0: i32) -> (i32, i32) {
    %c0_i32 = arith.constant 0 : i32
    %c0_i32_0 = arith.constant 0 : i32
    return %c0_i32, %arg0 : i32, i32
  }
  func.func @transform_1(%arg0: i32) -> (i32, i32) {
    %c0_i32 = arith.constant 0 : i32
    %c0_i32_0 = arith.constant 0 : i32
    %c0_i32_1 = arith.constant 0 : i32
    return %c0_i32, %c0_i32_0 : i32, i32
  }
  func.func @transform_2(%arg0: i32) -> (i32, i32) {
    %c0_i32 = arith.constant 0 : i32
    %c0_i32_0 = arith.constant 0 : i32
    %c0_i32_1 = arith.constant 0 : i32
    return %c0_i32, %c0_i32_0 : i32, i32
  }
  func.func @transform_3(%arg0: i32) -> (i32, i32) {
    %c0_i32 = arith.constant 0 : i32
    %c0_i32_0 = arith.constant 0 : i32
    %c0_i32_1 = arith.constant 0 : i32
    return %c0_i32, %c0_i32_0 : i32, i32
  }
  func.func @transform_4(%arg0: i32) -> (i32, i32) {
    %c0_i32 = arith.constant 0 : i32
    %c0_i32_0 = arith.constant 0 : i32
    %c0_i32_1 = arith.constant 0 : i32
    return %c0_i32, %c0_i32_0 : i32, i32
  }
  func.func @transform_5(%arg0: i32) -> (i32, i32) {
    %c0_i32 = arith.constant 0 : i32
    %c0_i32_0 = arith.constant 0 : i32
    return %c0_i32, %arg0 : i32, i32
  }
}

</mosaic_0001>

<bundles_post_ra>
// kernel: fno_mesh2d_forward.6
= control target key start
LH: loop header
LB: loop body
LE: loop exit
PB: predicated region body
PF: predicated region fallthrough
CT: control target
= control target key end

     0   :  { %s520_s12 = smov 0   ;;  %s522_s13 = smov 0   ;;  %s588_s0 = inlined_call_operand.vmem [shape: bf16[4,512], index: 0, kind: input, shape index: {}]   ;;  %s589_s1 = inlined_call_operand.vmem [shape: bf16[32,4], index: 1, kind: input, shape index: {}]   ;;  %s590_s2 = inlined_call_operand.vmem [shape: f32[32,1], index: 2, kind: input, shape index: {}]   ;;  %s591_s3 = inlined_call_operand.vmem [shape: bf16[32,512], index: 3, kind: output, shape index: {}]  }
   0x1   :  { %s524_s14 = smov 0  }
   0x2 LB: > { %s533_s15 = sadd.s32 4294967295, %s497_s14   ;;  %s535_s16 = sadd.s32 1, %s497_s14   ;;  %s497_s14 = sphi %s524_s14, %s595_s14   ;;  %s493_s13 = sphi %s522_s13, %s594_s13   ;;  %s489_s12 = sphi %s520_s12, %s593_s12  }
   0x3   : > { %s85_s17 = ssub.s32 %s497_s14, %s535_s16  ;;  %s88_s18 = sadd.s32 1, %s493_s13 }
   0x4   : > { %p86_p0 = scmp.eq.s32.totalorder %s85_s17, 0  ;;  %p98_p1 = scmp.ne.s32.totalorder %s493_s13, %s489_s12 }
   0x5   : > { %p99_p2 = scmp.eq.s32.totalorder %s533_s15, 1  ;;  %p420_p3 = scmp.ge.s32.totalorder %s497_s14, 1 }
   0x6   : > { %s543_s19 = scalar_select %p86_p0, %s493_s13, %s88_s18  }
   0x7   : > { %p545_p4 = por %p99_p2, %p98_p1  ;;  %p138_p5 = scmp.lt.s32.totalorder %s497_s14, 3 }
   0x9   : > { %p139_p6 = pnand %p420_p3, %p138_p5 }
   0xa   : > { %s422_s21 = sshll.u32 (!%p139_p6), %s533_s15, 1  ;;  %v499_v0 = vmov (!%p139_p6), 0   ;;  %v176_v1 = vld [vmem:[%s590_s2 + $0x10] sm:$0xff] (!%p139_p6)  ;;  %v174_v2 = vld [vmem:[%s590_s2] sm:$0xff] (!%p139_p6)  ;;  %v177_v3 = vld [vmem:[%s590_s2 + $0x18] sm:$0xff] (!%p139_p6)  ;;  %vm224_vm0 = vcmask (!%p139_p6), 1041408  }
   0xb   : > { %142 = sbr.rel (%p139_p6) target bundleno = 256 (0x100), region = 32  ;;  %p162_p7 = scmp.lt.s32.totalorder (!%p139_p6), %s422_s21, 3  ;;  %263 = vmatprep.mubr.bf16.mxu0 (!%p139_p6), %v499_v0  ;;  %273 = vmatprep.mubr.bf16.mxu1 (!%p139_p6), %v499_v0  ;;  %v175_v4 = vld [vmem:[%s590_s2 + $0x8] sm:$0xff] (!%p139_p6)  ;;  %v473_v8 = vld [vmem:[%s589_s1] sm:$0xff] (!%p139_p6)   ;;  %vm217_vm1 = vcmask (!%p139_p6), 31744  }
   0xc   : > { %472 = vset.pattern.permute.xlu1 (!%p139_p6), %v499_v0  ;;  %471 = vset.pattern.permute.xlu0 (!%p139_p6), %v499_v0  ;;  %v474_v9 = vld [vmem:[%s589_s1 + $0x8] sm:$0xff] (!%p139_p6)   ;;  %s158_s11 = sand.u32 (!%p139_p6), 1, %s489_s12  }
   0xd   : > { %190 = vperm.xlu1 (!%p139_p6), %472, %v176_v1   ;;  %180 = vperm.xlu0 (!%p139_p6), %471, %v174_v2   ;;  %s421_s14 = sshll.u32 (!%p139_p6), %s158_s11, 5 }
   0xe   : > { %s160_s12 = scalar_lea.vmem (!%p139_p6), [#allocation2], %s421_s14 }
  0x11   : > { %195 = vperm.xlu1 (!%p139_p6), %472, %v177_v3   ;;  %185 = vperm.xlu0 (!%p139_p6), %471, %v175_v4  }
  0x12   : > { %s597_s21 = smov (!%p162_p7, %s422_s21), 3  ;;  %s443_s17 = sshll.u32 (%p545_p4), %s533_s15, 3 }
  0x13   : > { %s423_s28 = sshll.u32 %s597_s21, 1  ;;  %s321_s22 = scalar_lea.vmem (%p545_p4), %s591_s3, %s443_s17 }
  0x14   : > { %s165_s6 = scalar_lea.vmem %s588_s0, %s423_s28 }
  0x15   : > { %v426_v5 = vld.sshfl [vmem:[%s165_s6] sm:$0x33 pattern:$0x76325410] }
  0x16   : > { %v216_v6 = vcombine.high %v426_v5, %v426_v5  ;;  %v226_v7 = vsel %vm224_vm0, %v426_v5, 0 }
  0x18   : > { %427 = vmatprep.subr.msk.bf16.mxu0 %vm224_vm0, %v216_v6  ;;  %444 = vmatprep.subr.msk.bf16.mxu1 %vm224_vm0, %v216_v6 }
  0x19   : > { %232 = vmatpush1.bf16.msra.mxu0 %v226_v7  ;;  %445 = vmatpush1.bf16.msra.mxu1 %v226_v7 }
  0x1c   : > { %428 = vmatmul.mubr.msk.bf16.vlgmr.msra.gmra.mrb[0].mxu0 %vm217_vm1, %v473_v8  ;;  %429 = vmatmul.mubr.msk.bf16.vlgmr.msra.gmra.mrb[0].mxu1 %vm217_vm1, %v474_v9 }
  0x8c   : > { %v191_v10 = vpop.permute.xlu1 %190  ;;  %v181_v11 = vpop.permute.xlu0 %180 }
  0x90   : > { %v196_v12 = vpop.permute.xlu1 %195  ;;  %v186_v13 = vpop.permute.xlu0 %185 }
  0xef   : > { %v265_v14 = vpop.f32.mrb[0].mxu0  ;;  %v275_v15 = vpop.f32.mrb[0].mxu1 }
  0xf0   : > { %v266_v16 = vadd.f32 %v265_v14, %v181_v11  ;;  %v276_v17 = vadd.f32 %v275_v15, %v191_v10  ;;  %v267_v18 = vpop.f32.mrb[1].mxu0  ;;  %v277_v19 = vpop.f32.mrb[1].mxu1 }
  0xf1   : > { %v268_v20 = vadd.f32 %v267_v18, %v181_v11  ;;  %v278_v21 = vadd.f32 %v277_v19, %v191_v10  ;;  %v269_v22 = vpop.f32.mrb[2].mxu0  ;;  %v279_v23 = vpop.f32.mrb[2].mxu1  ;;  %318 = sbr.rel (!%p545_p4) target bundleno = 256 (0x100), region = 36 }
  0xf2   : > { %v270_v24 = vadd.f32 %v269_v22, %v186_v13  ;;  %v280_v25 = vadd.f32 %v279_v23, %v196_v12  ;;  %v271_v26 = vpop.f32.mrb[3].mxu0  ;;  %v281_v27 = vpop.f32.mrb[3].mxu1 }
  0xf3   : > { %v439_v28 = vpack.c.bf16 %v268_v20, %v266_v16  ;;  %v441_v29 = vpack.c.bf16 %v278_v21, %v276_v17  ;;  %v272_v30 = vadd.f32 %v271_v26, %v186_v13  ;;  %v282_v31 = vadd.f32 %v281_v27, %v196_v12 }
  0xf5   : > { %308 = vst [vmem:[%s160_s12] sm:$0xff] %v439_v28  ;;  %310 = vst [vmem:[%s160_s12 + $0x10] sm:$0xff] %v441_v29  ;;  %v440_v32 = vpack.c.bf16 %v272_v30, %v270_v24  ;;  %v442_v33 = vpack.c.bf16 %v282_v31, %v280_v25 }
  0xf7   : > { %309 = vst [vmem:[%s160_s12 + $0x8] sm:$0xff] %v440_v32  ;;  %311 = vst [vmem:[%s160_s12 + $0x18] sm:$0xff] %v442_v33 }
  0xfc   : > { %v355_v34 = vld [vmem:[%s160_s12] sm:$0xff]  ;;  %v359_v36 = vld [vmem:[%s160_s12 + $0x10] sm:$0xff] }
  0xfd   : > { %356 = vst [vmem:[%s321_s22] sm:$0xff] %v355_v34  ;;  %360 = vst [vmem:[%s321_s22 + $0x20] sm:$0xff] %v359_v36 }
  0xfe   : > { %v357_v35 = vld [vmem:[%s160_s12 + $0x8] sm:$0xff]  ;;  %v361_v37 = vld [vmem:[%s160_s12 + $0x18] sm:$0xff] }
  0xff   : > { %358 = vst [vmem:[%s321_s22 + $0x10] sm:$0xff] %v357_v35  ;;  %362 = vst [vmem:[%s321_s22 + $0x30] sm:$0xff] %v361_v37 }
 0x100 PF: > { %p10_p8 = scmp.ge.s32.totalorder %s535_s16, 4   ;;  %s593_s12 = smov %s493_s13 }
 0x101   : > { %s594_s13 = smov %s543_s19  ;;  %s595_s14 = smov %s535_s16 }
 0x102   :  { %12 = sbr.rel (!%p10_p8) target bundleno = 2 (0x2), region = 100 }

// kernel: fno_mesh2d_forward.7
= control target key start
LH: loop header
LB: loop body
LE: loop exit
PB: predicated region body
PF: predicated region fallthrough
CT: control target
= control target key end

     0   :  { %s1037_s9 = smov 0   ;;  %s1128_s0 = inlined_call_operand.vmem [shape: bf16[8,2,256], index: 0, kind: input, shape index: {}]   ;;  %s1129_s1 = inlined_call_operand.vmem [shape: bf16[8,256,256], index: 1, kind: input, shape index: {}]   ;;  %s1130_s2 = inlined_call_operand.vmem [shape: f32[8,2,256], index: 2, kind: output, shape index: {}]  }
   0x1 LB: > { %s789_s10 = sadd.s32 4294967295, %s1019_s9   ;;  %p793_p0 = scmp.ge.s32.totalorder %s1019_s9, 1  ;;  %s1019_s9 = sphi %s1037_s9, %s12_s9  }
   0x2   : > { %p125_p1 = scmp.lt.s32.totalorder %s1019_s9, 5 }
   0x4   : > { %p126_p2 = pnand %p793_p0, %p125_p1 }
   0x5   : > { %s794_s11 = sshll.u32 (!%p126_p2), %s789_s10, 1  ;;  %v1021_v38 = vmov (!%p126_p2), 1966171168   ;;  %v219_v40 = vlaneseq (!%p126_p2) }
   0x6   : > { %129 = sbr.rel (%p126_p2) target bundleno = 298 (0x12a), region = 28  ;;  %p155_p3 = scmp.lt.s32.totalorder (!%p126_p2), %s794_s11, 7  ;;  %v217_v39 = vunpack.c.l.s4 (!%p126_p2), %v1021_v38 }
   0x7   : > { %v220_v46 = vshrl.u32 (!%p126_p2), %v219_v40, 7 }
   0x8   : > { %v218_v45 = vunpack.c.0.s8 (!%p126_p2), %v217_v39 }
   0xa   : > { %v221_v51 = vsub.s32 (!%p126_p2), %v218_v45, %v220_v46 }
   0xd   : > { %s1132_s11 = smov (!%p155_p3, %s794_s11), 7 }
   0xe   : > { %s905_s12 = sshll.u32 %s1132_s11, 8  ;;  %s795_s16 = sshll.u32 %s1132_s11, 1 }
   0xf   : > { %s1051_s15 = scalar_lea.vmem %s1129_s1, %s905_s12  ;;  %s158_s19 = scalar_lea.vmem %s1128_s0, %s795_s16 }
  0x10   : > { %v917_v0 = vld [vmem:[%s1051_s15 + $0x4] ss:$8 sps:$4 sm:$0xff]   ;;  %v921_v2 = vld [vmem:[%s1051_s15] ss:$8 sps:$4 sm:$0xff]   ;;  %v923_v4 = vld [vmem:[%s1051_s15 + $0x14] ss:$8 sps:$4 sm:$0xff]  }
  0x11   : > { %v919_v1 = vld [vmem:[%s1051_s15 + $0x104] ss:$8 sps:$4 sm:$0xff]   ;;  %392 = vmatprep.subr.bf16.mxu0 %v917_v0  ;;  %v922_v3 = vld [vmem:[%s1051_s15 + $0x100] ss:$8 sps:$4 sm:$0xff]   ;;  %v925_v5 = vld [vmem:[%s1051_s15 + $0x114] ss:$8 sps:$4 sm:$0xff]  }
  0x12   : > { %665 = vmatprep.subr.bf16.mxu1 %v919_v1  ;;  %393 = vmatpush1.bf16.msra.mxu0 %v921_v2  ;;  %v927_v6 = vld [vmem:[%s1051_s15 + $0x10] ss:$8 sps:$4 sm:$0xff]   ;;  %v929_v8 = vld [vmem:[%s1051_s15 + $0x24] ss:$8 sps:$4 sm:$0xff]   ;;  %v933_v10 = vld [vmem:[%s1051_s15 + $0x20] ss:$8 sps:$4 sm:$0xff]  }
  0x13   : > { %666 = vmatpush1.bf16.msra.mxu1 %v922_v3  ;;  %394 = vmatprep.subr.bf16.mxu0 %v923_v4  ;;  %v928_v7 = vld [vmem:[%s1051_s15 + $0x110] ss:$8 sps:$4 sm:$0xff]   ;;  %v931_v9 = vld [vmem:[%s1051_s15 + $0x124] ss:$8 sps:$4 sm:$0xff]   ;;  %v934_v11 = vld [vmem:[%s1051_s15 + $0x120] ss:$8 sps:$4 sm:$0xff]  }
  0x14   : > { %667 = vmatprep.subr.bf16.mxu1 %v925_v5  ;;  %v935_v12 = vld [vmem:[%s1051_s15 + $0x34] ss:$8 sps:$4 sm:$0xff]   ;;  %v939_v14 = vld [vmem:[%s1051_s15 + $0x30] ss:$8 sps:$4 sm:$0xff]   ;;  %v941_v16 = vld [vmem:[%s1051_s15 + $0x44] ss:$8 sps:$4 sm:$0xff]  }
  0x15   : > { %v937_v13 = vld [vmem:[%s1051_s15 + $0x134] ss:$8 sps:$4 sm:$0xff]   ;;  %v940_v15 = vld [vmem:[%s1051_s15 + $0x130] ss:$8 sps:$4 sm:$0xff]   ;;  %v943_v17 = vld [vmem:[%s1051_s15 + $0x144] ss:$8 sps:$4 sm:$0xff]  }
  0x16   : > { %395 = vmatpush1.bf16.msra.mxu0 %v927_v6  ;;  %v945_v18 = vld [vmem:[%s1051_s15 + $0x40] ss:$8 sps:$4 sm:$0xff]   ;;  %v947_v20 = vld [vmem:[%s1051_s15 + $0x54] ss:$8 sps:$4 sm:$0xff]   ;;  %v951_v22 = vld [vmem:[%s1051_s15 + $0x50] ss:$8 sps:$4 sm:$0xff]  }
  0x17   : > { %668 = vmatpush1.bf16.msra.mxu1 %v928_v7  ;;  %396 = vmatprep.subr.bf16.mxu0 %v929_v8  ;;  %v946_v19 = vld [vmem:[%s1051_s15 + $0x140] ss:$8 sps:$4 sm:$0xff]   ;;  %v949_v21 = vld [vmem:[%s1051_s15 + $0x154] ss:$8 sps:$4 sm:$0xff]   ;;  %v952_v23 = vld [vmem:[%s1051_s15 + $0x150] ss:$8 sps:$4 sm:$0xff]  }
  0x18   : > { %669 = vmatprep.subr.bf16.mxu1 %v931_v9  ;;  %v953_v24 = vld [vmem:[%s1051_s15 + $0x64] ss:$8 sps:$4 sm:$0xff]   ;;  %v957_v26 = vld [vmem:[%s1051_s15 + $0x60] ss:$8 sps:$4 sm:$0xff]   ;;  %v959_v28 = vld [vmem:[%s1051_s15 + $0x74] ss:$8 sps:$4 sm:$0xff]  }
  0x19   : > { %v955_v25 = vld [vmem:[%s1051_s15 + $0x164] ss:$8 sps:$4 sm:$0xff]   ;;  %v958_v27 = vld [vmem:[%s1051_s15 + $0x160] ss:$8 sps:$4 sm:$0xff]   ;;  %v961_v29 = vld [vmem:[%s1051_s15 + $0x174] ss:$8 sps:$4 sm:$0xff]  }
  0x1a   : > { %397 = vmatpush1.bf16.msra.mxu0 %v933_v10  ;;  %v963_v30 = vld [vmem:[%s1051_s15 + $0x70] ss:$8 sps:$4 sm:$0xff]   ;;  %v965_v32 = vld [vmem:[%s1051_s15 + $0x84] ss:$8 sps:$4 sm:$0xff]   ;;  %v969_v34 = vld [vmem:[%s1051_s15 + $0x80] ss:$8 sps:$4 sm:$0xff]  }
  0x1b   : > { %670 = vmatpush1.bf16.msra.mxu1 %v934_v11  ;;  %398 = vmatprep.subr.bf16.mxu0 %v935_v12  ;;  %v964_v31 = vld [vmem:[%s1051_s15 + $0x170] ss:$8 sps:$4 sm:$0xff]   ;;  %v967_v33 = vld [vmem:[%s1051_s15 + $0x184] ss:$8 sps:$4 sm:$0xff]   ;;  %v970_v35 = vld [vmem:[%s1051_s15 + $0x180] ss:$8 sps:$4 sm:$0xff]  }
  0x1c   : > { %671 = vmatprep.subr.bf16.mxu1 %v937_v13  ;;  %v971_v36 = vld [vmem:[%s1051_s15 + $0x94] ss:$8 sps:$4 sm:$0xff]   ;;  %v975_v41 = vld [vmem:[%s1051_s15 + $0x90] ss:$8 sps:$4 sm:$0xff]   ;;  %v977_v43 = vld [vmem:[%s1051_s15 + $0xa4] ss:$8 sps:$4 sm:$0xff]  }
  0x1d   : > { %v973_v37 = vld [vmem:[%s1051_s15 + $0x194] ss:$8 sps:$4 sm:$0xff]   ;;  %v976_v42 = vld [vmem:[%s1051_s15 + $0x190] ss:$8 sps:$4 sm:$0xff]   ;;  %v979_v44 = vld [vmem:[%s1051_s15 + $0x1a4] ss:$8 sps:$4 sm:$0xff]  }
  0x1e   : > { %399 = vmatpush1.bf16.msra.mxu0 %v939_v14  ;;  %v981_v47 = vld [vmem:[%s1051_s15 + $0xa0] ss:$8 sps:$4 sm:$0xff]   ;;  %v983_v49 = vld [vmem:[%s1051_s15 + $0xb4] ss:$8 sps:$4 sm:$0xff]   ;;  %v987_v52 = vld [vmem:[%s1051_s15 + $0xb0] ss:$8 sps:$4 sm:$0xff]  }
  0x1f   : > { %672 = vmatpush1.bf16.msra.mxu1 %v940_v15  ;;  %400 = vmatprep.subr.bf16.mxu0 %v941_v16  ;;  %v982_v48 = vld [vmem:[%s1051_s15 + $0x1a0] ss:$8 sps:$4 sm:$0xff]   ;;  %v985_v50 = vld [vmem:[%s1051_s15 + $0x1b4] ss:$8 sps:$4 sm:$0xff]   ;;  %v988_v54 = vld [vmem:[%s1051_s15 + $0x1b0] ss:$8 sps:$4 sm:$0xff]  }
  0x20   : > { %673 = vmatprep.subr.bf16.mxu1 %v943_v17  ;;  %v802_v53 = vld.sshfl [vmem:[%s158_s19] sm:$0x11 pattern:$0x75316420]  ;;  %v989_v57 = vld [vmem:[%s1051_s15 + $0xc4] ss:$8 sps:$4 sm:$0xff]  }
  0x21   : > { %v215_v55 = vcombine.high %v802_v53, %v802_v53  ;;  %v869_v56 = vld.sshfl [vmem:[%s158_s19 + $0x2] sm:$0x11 pattern:$0x75316420]  ;;  %v991_v58 = vld [vmem:[%s1051_s15 + $0x1c4] ss:$8 sps:$4 sm:$0xff]   ;;  %v222_v12 = vrot.slane %v802_v53, %v221_v51 }
  0x22   : > { %401 = vmatpush1.bf16.msra.mxu0 %v945_v18  ;;  %v488_v59 = vcombine.high %v869_v56, %v869_v56  ;;  %v993_v62 = vld [vmem:[%s1051_s15 + $0xc0] ss:$8 sps:$4 sm:$0xff]   ;;  %v995_v0 = vld [vmem:[%s1051_s15 + $0xd4] ss:$8 sps:$4 sm:$0xff]   ;;  %v999_v2 = vld [vmem:[%s1051_s15 + $0xd0] ss:$8 sps:$4 sm:$0xff]   ;;  %v495_v13 = vrot.slane %v869_v56, %v221_v51 }
  0x23   : > { %674 = vmatpush1.bf16.msra.mxu1 %v946_v19  ;;  %402 = vmatprep.subr.bf16.mxu0 %v947_v20  ;;  %v229_v60 = vrot.slane %v215_v55, %v221_v51  ;;  %v994_v63 = vld [vmem:[%s1051_s15 + $0x1c0] ss:$8 sps:$4 sm:$0xff]   ;;  %v997_v1 = vld [vmem:[%s1051_s15 + $0x1d4] ss:$8 sps:$4 sm:$0xff]   ;;  %v1000_v3 = vld [vmem:[%s1051_s15 + $0x1d0] ss:$8 sps:$4 sm:$0xff]  }
  0x24   : > { %675 = vmatprep.subr.bf16.mxu1 %v949_v21  ;;  %v502_v61 = vrot.slane %v488_v59, %v221_v51  ;;  %v1001_v4 = vld [vmem:[%s1051_s15 + $0xe4] ss:$8 sps:$4 sm:$0xff]   ;;  %v1005_v6 = vld [vmem:[%s1051_s15 + $0xe0] ss:$8 sps:$4 sm:$0xff]   ;;  %v1007_v8 = vld [vmem:[%s1051_s15 + $0xf4] ss:$8 sps:$4 sm:$0xff]  }
  0x25   : > { %424 = vmatprep.mubr.bf16.mxu0 %v229_v60  ;;  %v1003_v5 = vld [vmem:[%s1051_s15 + $0x1e4] ss:$8 sps:$4 sm:$0xff]   ;;  %v1006_v7 = vld [vmem:[%s1051_s15 + $0x1e0] ss:$8 sps:$4 sm:$0xff]   ;;  %v1009_v9 = vld [vmem:[%s1051_s15 + $0x1f4] ss:$8 sps:$4 sm:$0xff]  }
  0x26   : > { %403 = vmatpush1.bf16.msra.mxu0 %v951_v22  ;;  %697 = vmatprep.mubr.bf16.mxu1 %v502_v61  ;;  %v1011_v10 = vld [vmem:[%s1051_s15 + $0xf0] ss:$8 sps:$4 sm:$0xff]   ;;  %s906_s20 = sshll.u32 %s1132_s11, 2 }
  0x27   : > { %676 = vmatpush1.bf16.msra.mxu1 %v952_v23  ;;  %404 = vmatprep.subr.bf16.mxu0 %v953_v24  ;;  %v1012_v11 = vld [vmem:[%s1051_s15 + $0x1f0] ss:$8 sps:$4 sm:$0xff]   ;;  %s172_s23 = scalar_lea.vmem %s1130_s2, %s906_s20 }
  0x28   : > { %677 = vmatprep.subr.bf16.mxu1 %v955_v25 }
  0x2a   : > { %405 = vmatpush1.bf16.msra.mxu0 %v957_v26 }
  0x2b   : > { %678 = vmatpush1.bf16.msra.mxu1 %v958_v27  ;;  %406 = vmatprep.subr.bf16.mxu0 %v959_v28 }
  0x2c   : > { %679 = vmatprep.subr.bf16.mxu1 %v961_v29 }
  0x2e   : > { %407 = vmatpush1.bf16.msra.mxu0 %v963_v30 }
  0x2f   : > { %680 = vmatpush1.bf16.msra.mxu1 %v964_v31  ;;  %408 = vmatprep.subr.bf16.mxu0 %v965_v32 }
  0x30   : > { %681 = vmatprep.subr.bf16.mxu1 %v967_v33 }
  0x32   : > { %409 = vmatpush1.bf16.msra.mxu0 %v969_v34 }
  0x33   : > { %682 = vmatpush1.bf16.msra.mxu1 %v970_v35  ;;  %410 = vmatprep.subr.bf16.mxu0 %v971_v36 }
  0x34   : > { %683 = vmatprep.subr.bf16.mxu1 %v973_v37 }
  0x36   : > { %411 = vmatpush1.bf16.msra.mxu0 %v975_v41 }
  0x37   : > { %684 = vmatpush1.bf16.msra.mxu1 %v976_v42  ;;  %412 = vmatprep.subr.bf16.mxu0 %v977_v43 }
  0x38   : > { %685 = vmatprep.subr.bf16.mxu1 %v979_v44 }
  0x3a   : > { %413 = vmatpush1.bf16.msra.mxu0 %v981_v47 }
  0x3b   : > { %686 = vmatpush1.bf16.msra.mxu1 %v982_v48  ;;  %414 = vmatprep.subr.bf16.mxu0 %v983_v49 }
  0x3c   : > { %687 = vmatprep.subr.bf16.mxu1 %v985_v50 }
  0x3e   : > { %415 = vmatpush1.bf16.msra.mxu0 %v987_v52 }
  0x3f   : > { %688 = vmatpush1.bf16.msra.mxu1 %v988_v54  ;;  %416 = vmatprep.subr.bf16.mxu0 %v989_v57 }
  0x40   : > { %689 = vmatprep.subr.bf16.mxu1 %v991_v58 }
  0x42   : > { %417 = vmatpush1.bf16.msra.mxu0 %v993_v62 }
  0x43   : > { %690 = vmatpush1.bf16.msra.mxu1 %v994_v63  ;;  %418 = vmatprep.subr.bf16.mxu0 %v995_v0 }
  0x44   : > { %691 = vmatprep.subr.bf16.mxu1 %v997_v1 }
  0x46   : > { %419 = vmatpush1.bf16.msra.mxu0 %v999_v2 }
  0x47   : > { %692 = vmatpush1.bf16.msra.mxu1 %v1000_v3  ;;  %420 = vmatprep.subr.bf16.mxu0 %v1001_v4 }
  0x48   : > { %693 = vmatprep.subr.bf16.mxu1 %v1003_v5 }
  0x4a   : > { %421 = vmatpush1.bf16.msra.mxu0 %v1005_v6 }
  0x4b   : > { %694 = vmatpush1.bf16.msra.mxu1 %v1006_v7  ;;  %422 = vmatprep.subr.bf16.mxu0 %v1007_v8 }
  0x4c   : > { %695 = vmatprep.subr.bf16.mxu1 %v1009_v9 }
  0x4e   : > { %423 = vmatpush1.bf16.msra.mxu0 %v1011_v10 }
  0x4f   : > { %696 = vmatpush1.bf16.msra.mxu1 %v1012_v11 }
  0x51   : > { %425 = vmatmul.mubr.bf16.vlgmr.msra.gmra.mrb[0].mxu0 %v222_v12 }
  0x52   : > { %698 = vmatmul.mubr.bf16.vlgmr.msra.gmra.mrb[0].mxu1 %v495_v13 }
 0x124   : > { %v426_v14 = vpop.f32.mrb[0].mxu0 }
 0x125   : > { %v699_v15 = vpop.f32.mrb[0].mxu1  ;;  %v428_v16 = vpop.f32.mrb[1].mxu0 }
 0x126   : > { %v701_v17 = vpop.f32.mrb[1].mxu1  ;;  %v435_v18 = vcombine.low %v426_v14, %v428_v16  ;;  %v430_v20 = vpop.f32.mrb[2].mxu0 }
 0x127   : > { %v708_v19 = vcombine.low %v699_v15, %v701_v17  ;;  %v703_v21 = vpop.f32.mrb[2].mxu1  ;;  %v431_v22 = vpop.f32.mrb[3].mxu0 }
 0x128   : > { %v704_v23 = vpop.f32.mrb[3].mxu1  ;;  %835 = vst.sshfl [vmem:[%s172_s23] sm:$0x33 pattern:$0x76325410] %v435_v18 }
 0x129   : > { %907 = vst.sshfl [vmem:[%s172_s23 + $0x4] sm:$0x33 pattern:$0x76325410] %v708_v19 }
 0x12a PF: > { %s12_s9 = sadd.s32 1, %s1019_s9  }
 0x12b   : > { %p9_p4 = scmp.ge.s32.totalorder %s12_s9, 6  }
 0x12d   :  { %11 = sbr.rel (!%p9_p4) target bundleno = 1 (0x1), region = 64 }

// kernel: reverse.4
= control target key start
LH: loop header
LB: loop body
LE: loop exit
PB: predicated region body
PF: predicated region fallthrough
CT: control target
= control target key end

     0   :  { %s800_s0 = inlined_call_operand.vmem [shape: f32[32,2,24,11], index: 0, kind: input, shape index: {}]   ;;  %s801_s1 = inlined_call_operand.vmem [shape: f32[32,2,24,11], index: 1, kind: output, shape index: {}]  }
   0x1   :  { %v264_v0 = vld [vmem:[%s800_s0 + $0xf0] sm:$0xff]  ;;  %v265_v1 = vld [vmem:[%s800_s0 + $0x1f8] sm:$0xff]  ;;  %v269_v3 = vld [vmem:[%s800_s0 + $0x1e0] sm:$0xff] }
   0x2   :  { %v267_v2 = vld [vmem:[%s800_s0 + $0xd8] sm:$0xff]  ;;  %4 = vst [vmem:[%s801_s1] sm:$0xff] %v264_v0  ;;  %266 = vst [vmem:[%s801_s1 + $0x108] sm:$0xff] %v265_v1  ;;  %v271_v4 = vld [vmem:[%s800_s0 + $0xc0] sm:$0xff] }
   0x3   :  { %268 = vst [vmem:[%s801_s1 + $0x18] sm:$0xff] %v267_v2  ;;  %v273_v5 = vld [vmem:[%s800_s0 + $0x1c8] sm:$0xff]  ;;  %270 = vst [vmem:[%s801_s1 + $0x120] sm:$0xff] %v269_v3  ;;  %v277_v7 = vld [vmem:[%s800_s0 + $0x1b0] sm:$0xff] }
   0x4   :  { %272 = vst [vmem:[%s801_s1 + $0x30] sm:$0xff] %v271_v4  ;;  %274 = vst [vmem:[%s801_s1 + $0x138] sm:$0xff] %v273_v5  ;;  %v275_v6 = vld [vmem:[%s800_s0 + $0xa8] sm:$0xff]  ;;  %v279_v8 = vld [vmem:[%s800_s0 + $0x90] sm:$0xff] }
   0x5   :  { %276 = vst [vmem:[%s801_s1 + $0x48] sm:$0xff] %v275_v6  ;;  %278 = vst [vmem:[%s801_s1 + $0x150] sm:$0xff] %v277_v7  ;;  %v281_v9 = vld [vmem:[%s800_s0 + $0x198] sm:$0xff]  ;;  %v285_v11 = vld [vmem:[%s800_s0 + $0x180] sm:$0xff] }
   0x6   :  { %280 = vst [vmem:[%s801_s1 + $0x60] sm:$0xff] %v279_v8  ;;  %v283_v10 = vld [vmem:[%s800_s0 + $0x78] sm:$0xff]  ;;  %282 = vst [vmem:[%s801_s1 + $0x168] sm:$0xff] %v281_v9  ;;  %v287_v12 = vld [vmem:[%s800_s0 + $0x60] sm:$0xff] }
   0x7   :  { %284 = vst [vmem:[%s801_s1 + $0x78] sm:$0xff] %v283_v10  ;;  %286 = vst [vmem:[%s801_s1 + $0x180] sm:$0xff] %v285_v11  ;;  %v289_v13 = vld [vmem:[%s800_s0 + $0x168] sm:$0xff]  ;;  %v293_v15 = vld [vmem:[%s800_s0 + $0x150] sm:$0xff] }
   0x8   :  { %v291_v14 = vld [vmem:[%s800_s0 + $0x48] sm:$0xff]  ;;  %288 = vst [vmem:[%s801_s1 + $0x90] sm:$0xff] %v287_v12  ;;  %290 = vst [vmem:[%s801_s1 + $0x198] sm:$0xff] %v289_v13  ;;  %v295_v16 = vld [vmem:[%s800_s0 + $0x30] sm:$0xff] }
   0x9   :  { %292 = vst [vmem:[%s801_s1 + $0xa8] sm:$0xff] %v291_v14  ;;  %v297_v17 = vld [vmem:[%s800_s0 + $0x138] sm:$0xff]  ;;  %294 = vst [vmem:[%s801_s1 + $0x1b0] sm:$0xff] %v293_v15  ;;  %v301_v19 = vld [vmem:[%s800_s0 + $0x120] sm:$0xff] }
   0xa   :  { %296 = vst [vmem:[%s801_s1 + $0xc0] sm:$0xff] %v295_v16  ;;  %298 = vst [vmem:[%s801_s1 + $0x1c8] sm:$0xff] %v297_v17  ;;  %v299_v18 = vld [vmem:[%s800_s0 + $0x18] sm:$0xff]  ;;  %v81_v20 = vld [vmem:[%s800_s0] sm:$0xff] }
   0xb   :  { %300 = vst [vmem:[%s801_s1 + $0xd8] sm:$0xff] %v299_v18  ;;  %302 = vst [vmem:[%s801_s1 + $0x1e0] sm:$0xff] %v301_v19  ;;  %v304_v21 = vld [vmem:[%s800_s0 + $0x108] sm:$0xff]  ;;  %v306_v22 = vld [vmem:[%s800_s0 + $0xf8] sm:$0xff] }
   0xc   :  { %303 = vst [vmem:[%s801_s1 + $0xf0] sm:$0xff] %v81_v20  ;;  %v308_v23 = vld [vmem:[%s800_s0 + $0x200] sm:$0xff]  ;;  %305 = vst [vmem:[%s801_s1 + $0x1f8] sm:$0xff] %v304_v21  ;;  %v312_v25 = vld [vmem:[%s800_s0 + $0x1e8] sm:$0xff] }
   0xd   :  { %307 = vst [vmem:[%s801_s1 + $0x8] sm:$0xff] %v306_v22  ;;  %309 = vst [vmem:[%s801_s1 + $0x110] sm:$0xff] %v308_v23  ;;  %v310_v24 = vld [vmem:[%s800_s0 + $0xe0] sm:$0xff]  ;;  %v314_v26 = vld [vmem:[%s800_s0 + $0xc8] sm:$0xff] }
   0xe   :  { %311 = vst [vmem:[%s801_s1 + $0x20] sm:$0xff] %v310_v24  ;;  %313 = vst [vmem:[%s801_s1 + $0x128] sm:$0xff] %v312_v25  ;;  %v316_v27 = vld [vmem:[%s800_s0 + $0x1d0] sm:$0xff]  ;;  %v320_v29 = vld [vmem:[%s800_s0 + $0x1b8] sm:$0xff] }
   0xf   :  { %315 = vst [vmem:[%s801_s1 + $0x38] sm:$0xff] %v314_v26  ;;  %v318_v28 = vld [vmem:[%s800_s0 + $0xb0] sm:$0xff]  ;;  %317 = vst [vmem:[%s801_s1 + $0x140] sm:$0xff] %v316_v27  ;;  %v322_v30 = vld [vmem:[%s800_s0 + $0x98] sm:$0xff] }
  0x10   :  { %319 = vst [vmem:[%s801_s1 + $0x50] sm:$0xff] %v318_v28  ;;  %321 = vst [vmem:[%s801_s1 + $0x158] sm:$0xff] %v320_v29  ;;  %v324_v31 = vld [vmem:[%s800_s0 + $0x1a0] sm:$0xff]  ;;  %v328_v33 = vld [vmem:[%s800_s0 + $0x188] sm:$0xff] }
  0x11   :  { %v326_v32 = vld [vmem:[%s800_s0 + $0x80] sm:$0xff]  ;;  %323 = vst [vmem:[%s801_s1 + $0x68] sm:$0xff] %v322_v30  ;;  %325 = vst [vmem:[%s801_s1 + $0x170] sm:$0xff] %v324_v31  ;;  %v330_v34 = vld [vmem:[%s800_s0 + $0x68] sm:$0xff] }
  0x12   :  { %327 = vst [vmem:[%s801_s1 + $0x80] sm:$0xff] %v326_v32  ;;  %v332_v35 = vld [vmem:[%s800_s0 + $0x170] sm:$0xff]  ;;  %329 = vst [vmem:[%s801_s1 + $0x188] sm:$0xff] %v328_v33  ;;  %v336_v37 = vld [vmem:[%s800_s0 + $0x158] sm:$0xff] }
  0x13   :  { %331 = vst [vmem:[%s801_s1 + $0x98] sm:$0xff] %v330_v34  ;;  %333 = vst [vmem:[%s801_s1 + $0x1a0] sm:$0xff] %v332_v35  ;;  %v334_v36 = vld [vmem:[%s800_s0 + $0x50] sm:$0xff]  ;;  %v338_v38 = vld [vmem:[%s800_s0 + $0x38] sm:$0xff] }
  0x14   :  { %335 = vst [vmem:[%s801_s1 + $0xb0] sm:$0xff] %v334_v36  ;;  %337 = vst [vmem:[%s801_s1 + $0x1b8] sm:$0xff] %v336_v37  ;;  %v340_v39 = vld [vmem:[%s800_s0 + $0x140] sm:$0xff]  ;;  %v344_v41 = vld [vmem:[%s800_s0 + $0x128] sm:$0xff] }
  0x15   :  { %339 = vst [vmem:[%s801_s1 + $0xc8] sm:$0xff] %v338_v38  ;;  %v342_v40 = vld [vmem:[%s800_s0 + $0x20] sm:$0xff]  ;;  %341 = vst [vmem:[%s801_s1 + $0x1d0] sm:$0xff] %v340_v39  ;;  %v346_v42 = vld [vmem:[%s800_s0 + $0x8] sm:$0xff] }
  0x16   :  { %343 = vst [vmem:[%s801_s1 + $0xe0] sm:$0xff] %v342_v40  ;;  %345 = vst [vmem:[%s801_s1 + $0x1e8] sm:$0xff] %v344_v41  ;;  %v348_v43 = vld [vmem:[%s800_s0 + $0x110] sm:$0xff]  ;;  %v350_v44 = vld [vmem:[%s800_s0 + $0x100] sm:$0xff] }
  0x17   :  { %347 = vst [vmem:[%s801_s1 + $0xf8] sm:$0xff] %v346_v42  ;;  %349 = vst [vmem:[%s801_s1 + $0x200] sm:$0xff] %v348_v43  ;;  %v352_v45 = vld [vmem:[%s800_s0 + $0x208] sm:$0xff]  ;;  %v356_v47 = vld [vmem:[%s800_s0 + $0x1f0] sm:$0xff] }
  0x18   :  { %351 = vst [vmem:[%s801_s1 + $0x10] sm:$0xff] %v350_v44  ;;  %v354_v46 = vld [vmem:[%s800_s0 + $0xe8] sm:$0xff]  ;;  %353 = vst [vmem:[%s801_s1 + $0x118] sm:$0xff] %v352_v45  ;;  %v358_v48 = vld [vmem:[%s800_s0 + $0xd0] sm:$0xff] }
  0x19   :  { %355 = vst [vmem:[%s801_s1 + $0x28] sm:$0xff] %v354_v46  ;;  %357 = vst [vmem:[%s801_s1 + $0x130] sm:$0xff] %v356_v47  ;;  %v360_v49 = vld [vmem:[%s800_s0 + $0x1d8] sm:$0xff]  ;;  %v364_v51 = vld [vmem:[%s800_s0 + $0x1c0] sm:$0xff] }
  0x1a   :  { %v362_v50 = vld [vmem:[%s800_s0 + $0xb8] sm:$0xff]  ;;  %359 = vst [vmem:[%s801_s1 + $0x40] sm:$0xff] %v358_v48  ;;  %361 = vst [vmem:[%s801_s1 + $0x148] sm:$0xff] %v360_v49  ;;  %v366_v52 = vld [vmem:[%s800_s0 + $0xa0] sm:$0xff] }
  0x1b   :  { %363 = vst [vmem:[%s801_s1 + $0x58] sm:$0xff] %v362_v50  ;;  %v368_v53 = vld [vmem:[%s800_s0 + $0x1a8] sm:$0xff]  ;;  %365 = vst [vmem:[%s801_s1 + $0x160] sm:$0xff] %v364_v51  ;;  %v372_v55 = vld [vmem:[%s800_s0 + $0x190] sm:$0xff] }
  0x1c   :  { %367 = vst [vmem:[%s801_s1 + $0x70] sm:$0xff] %v366_v52  ;;  %369 = vst [vmem:[%s801_s1 + $0x178] sm:$0xff] %v368_v53  ;;  %v370_v54 = vld [vmem:[%s800_s0 + $0x88] sm:$0xff]  ;;  %v374_v56 = vld [vmem:[%s800_s0 + $0x70] sm:$0xff] }
  0x1d   :  { %371 = vst [vmem:[%s801_s1 + $0x88] sm:$0xff] %v370_v54  ;;  %373 = vst [vmem:[%s801_s1 + $0x190] sm:$0xff] %v372_v55  ;;  %v376_v57 = vld [vmem:[%s800_s0 + $0x178] sm:$0xff]  ;;  %v380_v59 = vld [vmem:[%s800_s0 + $0x160] sm:$0xff] }
  0x1e   :  { %375 = vst [vmem:[%s801_s1 + $0xa0] sm:$0xff] %v374_v56  ;;  %v378_v58 = vld [vmem:[%s800_s0 + $0x58] sm:$0xff]  ;;  %377 = vst [vmem:[%s801_s1 + $0x1a8] sm:$0xff] %v376_v57  ;;  %v382_v60 = vld [vmem:[%s800_s0 + $0x40] sm:$0xff] }
  0x1f   :  { %379 = vst [vmem:[%s801_s1 + $0xb8] sm:$0xff] %v378_v58  ;;  %381 = vst [vmem:[%s801_s1 + $0x1c0] sm:$0xff] %v380_v59  ;;  %v384_v61 = vld [vmem:[%s800_s0 + $0x148] sm:$0xff]  ;;  %v388_v63 = vld [vmem:[%s800_s0 + $0x130] sm:$0xff] }
  0x20   :  { %v386_v62 = vld [vmem:[%s800_s0 + $0x28] sm:$0xff]  ;;  %383 = vst [vmem:[%s801_s1 + $0xd0] sm:$0xff] %v382_v60  ;;  %385 = vst [vmem:[%s801_s1 + $0x1d8] sm:$0xff] %v384_v61  ;;  %v390_v0 = vld [vmem:[%s800_s0 + $0x10] sm:$0xff] }
  0x21   :  { %387 = vst [vmem:[%s801_s1 + $0xe8] sm:$0xff] %v386_v62  ;;  %v392_v1 = vld [vmem:[%s800_s0 + $0x118] sm:$0xff]  ;;  %389 = vst [vmem:[%s801_s1 + $0x1f0] sm:$0xff] %v388_v63 }
  0x22   :  { %391 = vst [vmem:[%s801_s1 + $0x100] sm:$0xff] %v390_v0  ;;  %393 = vst [vmem:[%s801_s1 + $0x208] sm:$0xff] %v392_v1 }

// kernel: fno_mesh2d_forward.8
= control target key start
LH: loop header
LB: loop body
LE: loop exit
PB: predicated region body
PF: predicated region fallthrough
CT: control target
= control target key end

     0   :  { %s5034_s0 = inlined_call_operand.vmem [shape: bf16[32,1152], index: 0, kind: input, shape index: {}]   ;;  %s5035_s1 = inlined_call_operand.vmem [shape: bf16[32,32], index: 1, kind: input, shape index: {}]   ;;  %s5036_s2 = inlined_call_operand.vmem [shape: f32[32,1], index: 2, kind: input, shape index: {}]   ;;  %s5037_s3 = inlined_call_operand.vmem [shape: f32[32,1152], index: 3, kind: input, shape index: {}]   ;;  %s5038_s4 = inlined_call_operand.vmem [shape: bf16[32,1152], index: 4, kind: output, shape index: {}]  }
   0x1   :  { %5039 = sst [smem:[#allocation5_spill]] %s5034_s0 }
   0x2   :  { %s3482_s15 = smov 0   ;;  %s3484_s16 = smov 0  }
   0x3   :  { %s3486_s17 = smov 0  }
   0x4 LB: > { %s3498_s18 = sadd.s32 4294967295, %s3256_s17   ;;  %s3501_s19 = sadd.s32 1, %s3256_s17   ;;  %s3256_s17 = sphi %s3486_s17, %s5095_s17   ;;  %s3252_s16 = sphi %s3484_s16, %s5094_s16   ;;  %s3248_s15 = sphi %s3482_s15, %s5093_s15  }
   0x5   : > { %s18_s20 = ssub.s32 %s3256_s17, %s3501_s19  ;;  %s21_s21 = sadd.s32 1, %s3252_s16 }
   0x6   : > { %p19_p0 = scmp.eq.s32.totalorder %s18_s20, 0  ;;  %p28_p1 = scmp.ne.s32.totalorder %s3252_s16, %s3248_s15 }
   0x7   : > { %p29_p2 = scmp.eq.s32.totalorder %s3256_s17, 0  ;;  %p126_p3 = scmp.eq.s32.totalorder %s3498_s18, 1 }
   0x8   : > { %s3511_s22 = scalar_select %p19_p0, %s3252_s16, %s21_s21  }
   0x9   : > { %p3513_p4 = por %p29_p2, %p28_p1  ;;  %p3517_p5 = por %p126_p3, %p28_p1 }
   0xa   : > { %p2417_p6 = scmp.ge.s32.totalorder %s3256_s17, 2 }
   0xc   : > { %154 = sbr.rel (%p2417_p6) target bundleno = 335 (0x14f), region = 24 }
  0x13   : > { %157 = sbr.rel (!%p3513_p4) target bundleno = 193 (0xc1), region = 28  ;;  %s159_s25 = sand.u32 (%p3513_p4), 1, %s3252_s16  }
  0x14   : > { %s162_s26 = smul.u32 (%p3513_p4), 5, %s3256_s17  ;;  %s5042_s0 = sld [smem:[#allocation5_spill]] (%p3513_p4) }
  0x15   : > { %s2565_s27 = smul.u32 (%p3513_p4), 80, %s159_s25 }
  0x16   : > { %s163_s28 = ssub.s32 (%p3513_p4), 9, %s162_s26  ;;  %s2526_s29 = smul.u32 (%p3513_p4), 20, %s3256_s17 }
  0x17   : > { %p164_p7 = scmp.lt.s32.totalorder (%p3513_p4), %s163_s28, 5  ;;  %s3534_s9 = scalar_lea.vmem (%p3513_p4), [#allocation2], %s2565_s27  }
  0x1a   : > { %s3530_s6 = scalar_lea.vmem %s5042_s0, %s2526_s29   ;;  %s5097_s28 = smov (!%p164_p7, %s163_s28), 5 }
  0x1b   : > { %s2418_s7 = sshll.u32 %s5097_s28, 8  ;;  %s3532_s8 = sshll.u32 %s5097_s28, 2 }
  0x1c   : > { %p2422_p8 = scmp.eq.s32.totalorder %s2418_s7, 0 }
  0x1d   : > { %p174_p9 = scmp.lt.u32.totalorder (!%p2422_p8), %s3532_s8, 8 }
  0x1e   : > { %173 = sbr.rel (%p2422_p8) target bundleno = 193 (0xc1), region = 32 }
  0x25   : > { %177 = sbr.rel (%p174_p9) target bundleno = 184 (0xb8), region = 36  ;;  %s3538_s10 = sand.u32 (!%p174_p9), 7, %s3532_s8  }
  0x26   : > { %p199_p10 = scmp.eq.s32.totalorder (!%p174_p9), %s3538_s10, 0  ;;  %p2423_p11 = scmp.ne.s32.totalorder (!%p174_p9), %s3538_s10, 0 }
  0x2c   : > { %202 = sbr.rel (%p2423_p11) target bundleno = 111 (0x6f), region = 51  ;;  %s203_s11 = sshrl.u32 (!%p2423_p11), %s3532_s8, 3 }
  0x2d   : > { %s3545_s12 = sshrl.u32 (!%p2423_p11), %s203_s11, 4 }
  0x2e   : > { %p2424_p12 = scmp.le.s32.totalorder (!%p2423_p11), %s3545_s12, 0 }
  0x33   : > { %2225 = sbr.rel (%p2424_p12) target bundleno = 91 (0x5b), region = 325  ;;  %s5043_s13 = smov (!%p2424_p12), %s3534_s9 }
  0x34   : > { %s5044_s14 = smov (!%p2424_p12), %s3530_s6  ;;  %s3554_s20 = smov (!%p2424_p12), 0  }
  0x35   : > { %s3556_s21 = smov (!%p2424_p12), 0  }
  0x3a LB: >> { %v228_v0 = vld [vmem:[%s3264_s14 + $0x30] sm:$0xff]  ;;  %v230_v1 = vld [vmem:[%s3264_s14 + $0x38] sm:$0xff]  ;;  %v232_v2 = vld [vmem:[%s3264_s14 + $0x40] sm:$0xff]  ;;  %s344_s25 = sadd.s32 1, %s3268_s20  ;;  %s210_s21 = sadd.s32 1, %s3272_s21   ;;  %s3272_s21 = sphi %s3556_s21, %s210_s21   ;;  %s3268_s20 = sphi %s3554_s20, %s5047_s20   ;;  %s3264_s14 = sphi %s5044_s14, %s5046_s14   ;;  %s3260_s13 = sphi %s5043_s13, %s5045_s13  }
  0x3b   : >> { %229 = vst [vmem:[%s3260_s13 + $0x30] sm:$0xff] %v228_v0  ;;  %231 = vst [vmem:[%s3260_s13 + $0x38] sm:$0xff] %v230_v1  ;;  %v3577_v3 = vld [vmem:[%s3264_s14 + $0x48] sm:$0xff]  ;;  %v3580_v4 = vld [vmem:[%s3264_s14 + $0x50] sm:$0xff]  ;;  %p345_p13 = scmp.ge.s32.totalorder %s344_s25, %s3545_s12  ;;  %p209_p0 = scmp.ge.s32.totalorder %s210_s21, %s3545_s12 }
  0x3c   : >> { %233 = vst [vmem:[%s3260_s13 + $0x40] sm:$0xff] %v232_v2  ;;  %v238_v5 = vld [vmem:[%s3264_s14 + $0x58] sm:$0xff]  ;;  %235 = vst [vmem:[%s3260_s13 + $0x48] sm:$0xff] %v3577_v3  ;;  %v240_v6 = vld [vmem:[%s3264_s14 + $0x60] sm:$0xff] }
  0x3d   : >> { %237 = vst [vmem:[%s3260_s13 + $0x50] sm:$0xff] %v3580_v4  ;;  %239 = vst [vmem:[%s3260_s13 + $0x58] sm:$0xff] %v238_v5  ;;  %v242_v7 = vld [vmem:[%s3264_s14 + $0x68] sm:$0xff]  ;;  %v244_v8 = vld [vmem:[%s3264_s14 + $0x70] sm:$0xff]  ;;  %s5099_s25 = smov (%p345_p13, %s344_s25), 0 }
  0x3e   : >> { %241 = vst [vmem:[%s3260_s13 + $0x60] sm:$0xff] %v240_v6  ;;  %243 = vst [vmem:[%s3260_s13 + $0x68] sm:$0xff] %v242_v7  ;;  %v246_v9 = vld [vmem:[%s3264_s14 + $0x78] sm:$0xff]  ;;  %v224_v10 = vld [vmem:[%s3264_s14 + $0x20] sm:$0xff]  ;;  %s2425_s26 = sshll.u32 %s5099_s25, 7  ;;  %s5047_s20 = smov %s5099_s25 }
  0x3f   : >> { %245 = vst [vmem:[%s3260_s13 + $0x70] sm:$0xff] %v244_v8  ;;  %v226_v11 = vld [vmem:[%s3264_s14 + $0x28] sm:$0xff]  ;;  %247 = vst [vmem:[%s3260_s13 + $0x78] sm:$0xff] %v246_v9  ;;  %v260_v14 = vld [vmem:[%s3264_s14 + $0x54] sm:$0xff]  ;;  %s3642_s27 = scalar_lea.vmem %s3530_s6, %s2425_s26   ;;  %s3645_s28 = scalar_lea.vmem %s3534_s9, %s2425_s26 [#allocation2]  }
  0x40   : >> { %225 = vst [vmem:[%s3260_s13 + $0x20] sm:$0xff] %v224_v10  ;;  %227 = vst [vmem:[%s3260_s13 + $0x28] sm:$0xff] %v226_v11  ;;  %v256_v12 = vld [vmem:[%s3264_s14 + $0x44] sm:$0xff]  ;;  %v258_v13 = vld [vmem:[%s3264_s14 + $0x4c] sm:$0xff] }
  0x41   : >> { %257 = vst [vmem:[%s3260_s13 + $0x34] sm:$0xff] %v256_v12  ;;  %259 = vst [vmem:[%s3260_s13 + $0x3c] sm:$0xff] %v258_v13  ;;  %v262_v15 = vld [vmem:[%s3264_s14 + $0x5c] sm:$0xff]  ;;  %v264_v16 = vld [vmem:[%s3264_s14 + $0x64] sm:$0xff] }
  0x42   : >> { %261 = vst [vmem:[%s3260_s13 + $0x44] sm:$0xff] %v260_v14  ;;  %v266_v17 = vld [vmem:[%s3264_s14 + $0x6c] sm:$0xff]  ;;  %263 = vst [vmem:[%s3260_s13 + $0x4c] sm:$0xff] %v262_v15  ;;  %v268_v18 = vld [vmem:[%s3264_s14 + $0x74] sm:$0xff] }
  0x43   : >> { %265 = vst [vmem:[%s3260_s13 + $0x54] sm:$0xff] %v264_v16  ;;  %267 = vst [vmem:[%s3260_s13 + $0x5c] sm:$0xff] %v266_v17  ;;  %v270_v19 = vld [vmem:[%s3264_s14 + $0x7c] sm:$0xff]  ;;  %v272_v20 = vld [vmem:[%s3264_s14 + $0x84] sm:$0xff] }
  0x44   : >> { %285 = vst [vmem:[%s3260_s13 + $0x38] sm:$0xff] %v238_v5  ;;  %287 = vst [vmem:[%s3260_s13 + $0x40] sm:$0xff] %v240_v6  ;;  %v274_v21 = vld [vmem:[%s3264_s14 + $0x8c] sm:$0xff]  ;;  %v276_v22 = vld [vmem:[%s3264_s14 + $0x94] sm:$0xff] }
  0x45   : >> { %269 = vst [vmem:[%s3260_s13 + $0x64] sm:$0xff] %v268_v18  ;;  %271 = vst [vmem:[%s3260_s13 + $0x6c] sm:$0xff] %v270_v19  ;;  %v278_v23 = vld [vmem:[%s3264_s14 + $0x9c] sm:$0xff]  ;;  %v220_v24 = vld [vmem:[%s3264_s14 + $0x10] sm:$0xff] }
  0x46   : >> { %273 = vst [vmem:[%s3260_s13 + $0x74] sm:$0xff] %v272_v20  ;;  %289 = vst [vmem:[%s3260_s13 + $0x48] sm:$0xff] %v242_v7  ;;  %v222_v25 = vld [vmem:[%s3264_s14 + $0x18] sm:$0xff]  ;;  %v294_v28 = vld [vmem:[%s3264_s14 + $0x80] sm:$0xff] }
  0x47   : >> { %291 = vst [vmem:[%s3260_s13 + $0x50] sm:$0xff] %v244_v8  ;;  %293 = vst [vmem:[%s3260_s13 + $0x58] sm:$0xff] %v246_v9  ;;  %v252_v26 = vld [vmem:[%s3264_s14 + $0x34] sm:$0xff]  ;;  %v254_v27 = vld [vmem:[%s3264_s14 + $0x3c] sm:$0xff] }
  0x48   : >> { %313 = vst [vmem:[%s3260_s13 + $0x3c] sm:$0xff] %v266_v17  ;;  %275 = vst [vmem:[%s3260_s13 + $0x7c] sm:$0xff] %v274_v21  ;;  %v296_v29 = vld [vmem:[%s3264_s14 + $0x88] sm:$0xff]  ;;  %v298_v30 = vld [vmem:[%s3264_s14 + $0x90] sm:$0xff] }
  0x49   : >> { %277 = vst [vmem:[%s3260_s13 + $0x84] sm:$0xff] %v276_v22  ;;  %279 = vst [vmem:[%s3260_s13 + $0x8c] sm:$0xff] %v278_v23  ;;  %v300_v31 = vld [vmem:[%s3264_s14 + $0x98] sm:$0xff]  ;;  %v302_v32 = vld [vmem:[%s3264_s14 + $0xa0] sm:$0xff] }
  0x4a   : >> { %315 = vst [vmem:[%s3260_s13 + $0x44] sm:$0xff] %v268_v18  ;;  %317 = vst [vmem:[%s3260_s13 + $0x4c] sm:$0xff] %v270_v19  ;;  %v304_v33 = vld [vmem:[%s3264_s14 + $0xa8] sm:$0xff]  ;;  %v306_v34 = vld [vmem:[%s3264_s14 + $0xb0] sm:$0xff] }
  0x4b   : >> { %319 = vst [vmem:[%s3260_s13 + $0x54] sm:$0xff] %v272_v20  ;;  %221 = vst [vmem:[%s3260_s13 + $0x10] sm:$0xff] %v220_v24  ;;  %v308_v35 = vld [vmem:[%s3264_s14 + $0xb8] sm:$0xff]  ;;  %v310_v36 = vld [vmem:[%s3264_s14 + $0xc0] sm:$0xff] }
  0x4c   : >> { %223 = vst [vmem:[%s3260_s13 + $0x18] sm:$0xff] %v222_v25  ;;  %253 = vst [vmem:[%s3260_s13 + $0x24] sm:$0xff] %v252_v26  ;;  %v216_v37 = vld [vmem:[%s3264_s14] sm:$0xff]  ;;  %v218_v38 = vld [vmem:[%s3264_s14 + $0x8] sm:$0xff] }
  0x4d   : >> { %255 = vst [vmem:[%s3260_s13 + $0x2c] sm:$0xff] %v254_v27  ;;  %295 = vst [vmem:[%s3260_s13 + $0x60] sm:$0xff] %v294_v28  ;;  %v248_v39 = vld [vmem:[%s3264_s14 + $0x24] sm:$0xff]  ;;  %v250_v40 = vld [vmem:[%s3264_s14 + $0x2c] sm:$0xff] }
  0x4e   : >> { %297 = vst [vmem:[%s3260_s13 + $0x68] sm:$0xff] %v296_v29  ;;  %299 = vst [vmem:[%s3260_s13 + $0x70] sm:$0xff] %v298_v30  ;;  %v326_v41 = vld [vmem:[%s3264_s14 + $0xa4] sm:$0xff]  ;;  %v328_v42 = vld [vmem:[%s3264_s14 + $0xac] sm:$0xff] }
  0x4f   : >> { %301 = vst [vmem:[%s3260_s13 + $0x78] sm:$0xff] %v300_v31  ;;  %303 = vst [vmem:[%s3260_s13 + $0x80] sm:$0xff] %v302_v32  ;;  %v330_v43 = vld [vmem:[%s3264_s14 + $0xb4] sm:$0xff]  ;;  %v332_v44 = vld [vmem:[%s3264_s14 + $0xbc] sm:$0xff] }
  0x50   : >> { %281 = vst [vmem:[%s3260_s13 + $0x28] sm:$0xff] %v3577_v3  ;;  %283 = vst [vmem:[%s3260_s13 + $0x30] sm:$0xff] %v3580_v4  ;;  %v334_v45 = vld [vmem:[%s3264_s14 + $0xc4] sm:$0xff]  ;;  %v336_v46 = vld [vmem:[%s3264_s14 + $0xcc] sm:$0xff] }
  0x51   : >> { %321 = vst [vmem:[%s3260_s13 + $0x5c] sm:$0xff] %v274_v21  ;;  %323 = vst [vmem:[%s3260_s13 + $0x64] sm:$0xff] %v276_v22  ;;  %v338_v47 = vld [vmem:[%s3264_s14 + $0xd4] sm:$0xff]  ;;  %v340_v48 = vld [vmem:[%s3264_s14 + $0xdc] sm:$0xff] }
  0x52   : >> { %305 = vst [vmem:[%s3260_s13 + $0x88] sm:$0xff] %v304_v33  ;;  %307 = vst [vmem:[%s3260_s13 + $0x90] sm:$0xff] %v306_v34  ;;  %v342_v49 = vld [vmem:[%s3264_s14 + $0xe4] sm:$0xff]  ;;  %s5046_s14 = smov %s3642_s27 }
  0x53   : >> { %309 = vst [vmem:[%s3260_s13 + $0x98] sm:$0xff] %v308_v35  ;;  %325 = vst [vmem:[%s3260_s13 + $0x6c] sm:$0xff] %v278_v23 }
  0x54   : >> { %311 = vst [vmem:[%s3260_s13 + $0xa0] sm:$0xff] %v310_v36  ;;  %217 = vst [vmem:[%s3260_s13] sm:$0xff] %v216_v37  ;;  %212 = sbr.rel (!%p209_p0) target bundleno = 58 (0x3a), region = 331 }
  0x55   : >> { %219 = vst [vmem:[%s3260_s13 + $0x8] sm:$0xff] %v218_v38  ;;  %249 = vst [vmem:[%s3260_s13 + $0x14] sm:$0xff] %v248_v39 }
  0x56   : >> { %251 = vst [vmem:[%s3260_s13 + $0x1c] sm:$0xff] %v250_v40  ;;  %327 = vst [vmem:[%s3260_s13 + $0x74] sm:$0xff] %v326_v41 }
  0x57   : >> { %329 = vst [vmem:[%s3260_s13 + $0x7c] sm:$0xff] %v328_v42  ;;  %331 = vst [vmem:[%s3260_s13 + $0x84] sm:$0xff] %v330_v43 }
  0x58   : >> { %333 = vst [vmem:[%s3260_s13 + $0x8c] sm:$0xff] %v332_v44  ;;  %335 = vst [vmem:[%s3260_s13 + $0x94] sm:$0xff] %v334_v45 }
  0x59   : >> { %337 = vst [vmem:[%s3260_s13 + $0x9c] sm:$0xff] %v336_v46  ;;  %339 = vst [vmem:[%s3260_s13 + $0xa4] sm:$0xff] %v338_v47 }
  0x5a   : >> { %341 = vst [vmem:[%s3260_s13 + $0xac] sm:$0xff] %v340_v48  ;;  %343 = vst [vmem:[%s3260_s13 + $0xb4] sm:$0xff] %v342_v49  ;;  %s5045_s13 = smov %s3645_s28 }
  0x5b PF: > { %s3718_s29 = sand.u32 15, %s203_s11   ;;  %s2527_s30 = sshll.u32 %s3545_s12, 11 }
  0x5c   : > { %s355_s5 = sshra.s32 %s2527_s30, 4  ;;  %p2430_p1 = scmp.le.s32.totalorder %s3718_s29, 0 }
  0x5d   : > { %s3722_s7 = scalar_lea.vmem %s3530_s6, %s355_s5   ;;  %s3725_s26 = scalar_lea.vmem %s3534_s9, %s355_s5 [#allocation2]  }
  0x5e   : > { %2239 = sbr.rel (%p2430_p1) target bundleno = 111 (0x6f), region = 336  ;;  %s5048_s13 = smov (!%p2430_p1), %s3725_s26 }
  0x5f   : > { %s5049_s14 = smov (!%p2430_p1), %s3722_s7  ;;  %s3734_s20 = smov (!%p2430_p1), 0  }
  0x60   : > { %s3286_s21 = smov (!%p2430_p1), 0  }
  0x65 LB: >> { %v371_v50 = vld [vmem:[%s3280_s14] sm:$0xff]  ;;  %v375_v52 = vld [vmem:[%s3280_s14 + $0x48] sm:$0xff]  ;;  %s379_s11 = sadd.s32 1, %s3284_s20  ;;  %s365_s21 = sadd.s32 1, %s3288_s21   ;;  %s3288_s21 = sphi %s3286_s21, %s365_s21   ;;  %s3284_s20 = sphi %s3734_s20, %s5050_s20   ;;  %s3280_s14 = sphi %s5049_s14, %s384_s14   ;;  %s3276_s13 = sphi %s5048_s13, %s385_s13  }
  0x66   : >> { %v373_v51 = vld [vmem:[%s3280_s14 + $0x24] sm:$0xff]  ;;  %372 = vst [vmem:[%s3276_s13] sm:$0xff] %v371_v50  ;;  %376 = vst [vmem:[%s3276_s13 + $0x28] sm:$0xff] %v375_v52  ;;  %v377_v53 = vld [vmem:[%s3280_s14 + $0x6c] sm:$0xff]  ;;  %p380_p2 = scmp.ge.s32.totalorder %s379_s11, %s3718_s29  ;;  %p364_p3 = scmp.ge.s32.totalorder %s365_s21, %s3718_s29 }
  0x67   : >> { %374 = vst [vmem:[%s3276_s13 + $0x14] sm:$0xff] %v373_v51  ;;  %378 = vst [vmem:[%s3276_s13 + $0x3c] sm:$0xff] %v377_v53 }
  0x68   : >> { %s5101_s11 = smov (%p380_p2, %s379_s11), 0  ;;  %367 = sbr.rel (!%p364_p3) target bundleno = 101 (0x65), region = 342 }
  0x69   : >> { %s2431_s12 = sshll.u32 %s5101_s11, 3  ;;  %s5050_s20 = smov %s5101_s11 }
  0x6a   : >> { %s384_s14 = scalar_lea.vmem %s3722_s7, %s2431_s12   ;;  %s385_s13 = scalar_lea.vmem %s3725_s26, %s2431_s12 [#allocation2]  }
  0x6f PF: > { %388 = sbr.rel (%p199_p10) target bundleno = 184 (0xb8), region = 69  ;;  %s390_s25 = ssub.s32 (!%p199_p10), %s3532_s8, %s3538_s10 }
  0x70   : > { %s394_s27 = sshrl.u32 (!%p199_p10), %s3532_s8, 3  ;;  %s3755_s28 = scalar_lea.vmem (!%p199_p10), %s3530_s6, %s390_s25 }
  0x71   : > { %s3758_s30 = scalar_lea.vmem (!%p199_p10), %s3534_s9, %s390_s25 [#allocation2]  ;;  %s3762_s5 = sshrl.u32 (!%p199_p10), %s394_s27, 4 }
  0x72   : > { %p2433_p6 = scmp.le.s32.totalorder (!%p199_p10), %s3762_s5, 0 }
  0x76   : > { %2253 = sbr.rel (%p2433_p6) target bundleno = 158 (0x9e), region = 347  ;;  %s5051_s29 = smov (!%p2433_p6), %s3534_s9 }
  0x77   : > { %s5052_s7 = smov (!%p2433_p6), %s3530_s6  ;;  %s3771_s26 = smov (!%p2433_p6), 0  }
  0x78   : > { %s3773_s13 = smov (!%p2433_p6), 0  }
  0x7d LB: >> { %v419_v54 = vld [vmem:[%s3296_s7 + $0x30] sm:$0xff]  ;;  %v421_v55 = vld [vmem:[%s3296_s7 + $0x38] sm:$0xff]  ;;  %v423_v56 = vld [vmem:[%s3296_s7 + $0x40] sm:$0xff]  ;;  %s535_s14 = sadd.s32 1, %s3300_s26  ;;  %s401_s13 = sadd.s32 1, %s3304_s13   ;;  %s3304_s13 = sphi %s3773_s13, %s401_s13   ;;  %s3300_s26 = sphi %s3771_s26, %s5055_s26   ;;  %s3296_s7 = sphi %s5052_s7, %s5054_s7   ;;  %s3292_s29 = sphi %s5051_s29, %s5053_s29  }
  0x7e   : >> { %420 = vst [vmem:[%s3292_s29 + $0x30] sm:$0xff] %v419_v54  ;;  %422 = vst [vmem:[%s3292_s29 + $0x38] sm:$0xff] %v421_v55  ;;  %v3794_v57 = vld [vmem:[%s3296_s7 + $0x48] sm:$0xff]  ;;  %v3797_v58 = vld [vmem:[%s3296_s7 + $0x50] sm:$0xff]  ;;  %p536_p7 = scmp.ge.s32.totalorder %s535_s14, %s3762_s5  ;;  %p400_p8 = scmp.ge.s32.totalorder %s401_s13, %s3762_s5 }
  0x7f   : >> { %424 = vst [vmem:[%s3292_s29 + $0x40] sm:$0xff] %v423_v56  ;;  %v429_v59 = vld [vmem:[%s3296_s7 + $0x58] sm:$0xff]  ;;  %426 = vst [vmem:[%s3292_s29 + $0x48] sm:$0xff] %v3794_v57  ;;  %v431_v60 = vld [vmem:[%s3296_s7 + $0x60] sm:$0xff] }
  0x80   : >> { %428 = vst [vmem:[%s3292_s29 + $0x50] sm:$0xff] %v3797_v58  ;;  %430 = vst [vmem:[%s3292_s29 + $0x58] sm:$0xff] %v429_v59  ;;  %v433_v61 = vld [vmem:[%s3296_s7 + $0x68] sm:$0xff]  ;;  %v435_v62 = vld [vmem:[%s3296_s7 + $0x70] sm:$0xff]  ;;  %s5103_s14 = smov (%p536_p7, %s535_s14), 0 }
  0x81   : >> { %432 = vst [vmem:[%s3292_s29 + $0x60] sm:$0xff] %v431_v60  ;;  %434 = vst [vmem:[%s3292_s29 + $0x68] sm:$0xff] %v433_v61  ;;  %v437_v63 = vld [vmem:[%s3296_s7 + $0x78] sm:$0xff]  ;;  %v415_v0 = vld [vmem:[%s3296_s7 + $0x20] sm:$0xff]  ;;  %s2434_s20 = sshll.u32 %s5103_s14, 7  ;;  %s5055_s26 = smov %s5103_s14 }
  0x82   : >> { %436 = vst [vmem:[%s3292_s29 + $0x70] sm:$0xff] %v435_v62  ;;  %v417_v1 = vld [vmem:[%s3296_s7 + $0x28] sm:$0xff]  ;;  %438 = vst [vmem:[%s3292_s29 + $0x78] sm:$0xff] %v437_v63  ;;  %v451_v4 = vld [vmem:[%s3296_s7 + $0x54] sm:$0xff]  ;;  %s3859_s21 = scalar_lea.vmem %s3530_s6, %s2434_s20   ;;  %s3862_s11 = scalar_lea.vmem %s3534_s9, %s2434_s20 [#allocation2]  }
  0x83   : >> { %416 = vst [vmem:[%s3292_s29 + $0x20] sm:$0xff] %v415_v0  ;;  %418 = vst [vmem:[%s3292_s29 + $0x28] sm:$0xff] %v417_v1  ;;  %v447_v2 = vld [vmem:[%s3296_s7 + $0x44] sm:$0xff]  ;;  %v449_v3 = vld [vmem:[%s3296_s7 + $0x4c] sm:$0xff] }
  0x84   : >> { %448 = vst [vmem:[%s3292_s29 + $0x34] sm:$0xff] %v447_v2  ;;  %450 = vst [vmem:[%s3292_s29 + $0x3c] sm:$0xff] %v449_v3  ;;  %v453_v5 = vld [vmem:[%s3296_s7 + $0x5c] sm:$0xff]  ;;  %v455_v6 = vld [vmem:[%s3296_s7 + $0x64] sm:$0xff] }
  0x85   : >> { %452 = vst [vmem:[%s3292_s29 + $0x44] sm:$0xff] %v451_v4  ;;  %v457_v7 = vld [vmem:[%s3296_s7 + $0x6c] sm:$0xff]  ;;  %454 = vst [vmem:[%s3292_s29 + $0x4c] sm:$0xff] %v453_v5  ;;  %v459_v8 = vld [vmem:[%s3296_s7 + $0x74] sm:$0xff] }
  0x86   : >> { %456 = vst [vmem:[%s3292_s29 + $0x54] sm:$0xff] %v455_v6  ;;  %458 = vst [vmem:[%s3292_s29 + $0x5c] sm:$0xff] %v457_v7  ;;  %v461_v9 = vld [vmem:[%s3296_s7 + $0x7c] sm:$0xff]  ;;  %v463_v10 = vld [vmem:[%s3296_s7 + $0x84] sm:$0xff] }
  0x87   : >> { %476 = vst [vmem:[%s3292_s29 + $0x38] sm:$0xff] %v429_v59  ;;  %478 = vst [vmem:[%s3292_s29 + $0x40] sm:$0xff] %v431_v60  ;;  %v465_v11 = vld [vmem:[%s3296_s7 + $0x8c] sm:$0xff]  ;;  %v467_v12 = vld [vmem:[%s3296_s7 + $0x94] sm:$0xff] }
  0x88   : >> { %460 = vst [vmem:[%s3292_s29 + $0x64] sm:$0xff] %v459_v8  ;;  %462 = vst [vmem:[%s3292_s29 + $0x6c] sm:$0xff] %v461_v9  ;;  %v469_v13 = vld [vmem:[%s3296_s7 + $0x9c] sm:$0xff]  ;;  %v411_v14 = vld [vmem:[%s3296_s7 + $0x10] sm:$0xff] }
  0x89   : >> { %464 = vst [vmem:[%s3292_s29 + $0x74] sm:$0xff] %v463_v10  ;;  %480 = vst [vmem:[%s3292_s29 + $0x48] sm:$0xff] %v433_v61  ;;  %v413_v15 = vld [vmem:[%s3296_s7 + $0x18] sm:$0xff]  ;;  %v485_v18 = vld [vmem:[%s3296_s7 + $0x80] sm:$0xff] }
  0x8a   : >> { %482 = vst [vmem:[%s3292_s29 + $0x50] sm:$0xff] %v435_v62  ;;  %484 = vst [vmem:[%s3292_s29 + $0x58] sm:$0xff] %v437_v63  ;;  %v443_v16 = vld [vmem:[%s3296_s7 + $0x34] sm:$0xff]  ;;  %v445_v17 = vld [vmem:[%s3296_s7 + $0x3c] sm:$0xff] }
  0x8b   : >> { %504 = vst [vmem:[%s3292_s29 + $0x3c] sm:$0xff] %v457_v7  ;;  %466 = vst [vmem:[%s3292_s29 + $0x7c] sm:$0xff] %v465_v11  ;;  %v487_v19 = vld [vmem:[%s3296_s7 + $0x88] sm:$0xff]  ;;  %v489_v20 = vld [vmem:[%s3296_s7 + $0x90] sm:$0xff] }
  0x8c   : >> { %468 = vst [vmem:[%s3292_s29 + $0x84] sm:$0xff] %v467_v12  ;;  %470 = vst [vmem:[%s3292_s29 + $0x8c] sm:$0xff] %v469_v13  ;;  %v491_v21 = vld [vmem:[%s3296_s7 + $0x98] sm:$0xff]  ;;  %v493_v22 = vld [vmem:[%s3296_s7 + $0xa0] sm:$0xff] }
  0x8d   : >> { %506 = vst [vmem:[%s3292_s29 + $0x44] sm:$0xff] %v459_v8  ;;  %508 = vst [vmem:[%s3292_s29 + $0x4c] sm:$0xff] %v461_v9  ;;  %v495_v23 = vld [vmem:[%s3296_s7 + $0xa8] sm:$0xff]  ;;  %v497_v24 = vld [vmem:[%s3296_s7 + $0xb0] sm:$0xff] }
  0x8e   : >> { %510 = vst [vmem:[%s3292_s29 + $0x54] sm:$0xff] %v463_v10  ;;  %412 = vst [vmem:[%s3292_s29 + $0x10] sm:$0xff] %v411_v14  ;;  %v499_v25 = vld [vmem:[%s3296_s7 + $0xb8] sm:$0xff]  ;;  %v501_v26 = vld [vmem:[%s3296_s7 + $0xc0] sm:$0xff] }
  0x8f   : >> { %414 = vst [vmem:[%s3292_s29 + $0x18] sm:$0xff] %v413_v15  ;;  %444 = vst [vmem:[%s3292_s29 + $0x24] sm:$0xff] %v443_v16  ;;  %v407_v27 = vld [vmem:[%s3296_s7] sm:$0xff]  ;;  %v409_v28 = vld [vmem:[%s3296_s7 + $0x8] sm:$0xff] }
  0x90   : >> { %446 = vst [vmem:[%s3292_s29 + $0x2c] sm:$0xff] %v445_v17  ;;  %486 = vst [vmem:[%s3292_s29 + $0x60] sm:$0xff] %v485_v18  ;;  %v439_v29 = vld [vmem:[%s3296_s7 + $0x24] sm:$0xff]  ;;  %v441_v30 = vld [vmem:[%s3296_s7 + $0x2c] sm:$0xff] }
  0x91   : >> { %488 = vst [vmem:[%s3292_s29 + $0x68] sm:$0xff] %v487_v19  ;;  %490 = vst [vmem:[%s3292_s29 + $0x70] sm:$0xff] %v489_v20  ;;  %v517_v31 = vld [vmem:[%s3296_s7 + $0xa4] sm:$0xff]  ;;  %v519_v32 = vld [vmem:[%s3296_s7 + $0xac] sm:$0xff] }
  0x92   : >> { %492 = vst [vmem:[%s3292_s29 + $0x78] sm:$0xff] %v491_v21  ;;  %494 = vst [vmem:[%s3292_s29 + $0x80] sm:$0xff] %v493_v22  ;;  %v521_v33 = vld [vmem:[%s3296_s7 + $0xb4] sm:$0xff]  ;;  %v523_v34 = vld [vmem:[%s3296_s7 + $0xbc] sm:$0xff] }
  0x93   : >> { %472 = vst [vmem:[%s3292_s29 + $0x28] sm:$0xff] %v3794_v57  ;;  %474 = vst [vmem:[%s3292_s29 + $0x30] sm:$0xff] %v3797_v58  ;;  %v525_v35 = vld [vmem:[%s3296_s7 + $0xc4] sm:$0xff]  ;;  %v527_v36 = vld [vmem:[%s3296_s7 + $0xcc] sm:$0xff] }
  0x94   : >> { %512 = vst [vmem:[%s3292_s29 + $0x5c] sm:$0xff] %v465_v11  ;;  %514 = vst [vmem:[%s3292_s29 + $0x64] sm:$0xff] %v467_v12  ;;  %v529_v37 = vld [vmem:[%s3296_s7 + $0xd4] sm:$0xff]  ;;  %v531_v38 = vld [vmem:[%s3296_s7 + $0xdc] sm:$0xff] }
  0x95   : >> { %496 = vst [vmem:[%s3292_s29 + $0x88] sm:$0xff] %v495_v23  ;;  %498 = vst [vmem:[%s3292_s29 + $0x90] sm:$0xff] %v497_v24  ;;  %v533_v39 = vld [vmem:[%s3296_s7 + $0xe4] sm:$0xff]  ;;  %s5054_s7 = smov %s3859_s21 }
  0x96   : >> { %500 = vst [vmem:[%s3292_s29 + $0x98] sm:$0xff] %v499_v25  ;;  %516 = vst [vmem:[%s3292_s29 + $0x6c] sm:$0xff] %v469_v13 }
  0x97   : >> { %502 = vst [vmem:[%s3292_s29 + $0xa0] sm:$0xff] %v501_v26  ;;  %408 = vst [vmem:[%s3292_s29] sm:$0xff] %v407_v27  ;;  %403 = sbr.rel (!%p400_p8) target bundleno = 125 (0x7d), region = 353 }
  0x98   : >> { %410 = vst [vmem:[%s3292_s29 + $0x8] sm:$0xff] %v409_v28  ;;  %440 = vst [vmem:[%s3292_s29 + $0x14] sm:$0xff] %v439_v29 }
  0x99   : >> { %442 = vst [vmem:[%s3292_s29 + $0x1c] sm:$0xff] %v441_v30  ;;  %518 = vst [vmem:[%s3292_s29 + $0x74] sm:$0xff] %v517_v31 }
  0x9a   : >> { %520 = vst [vmem:[%s3292_s29 + $0x7c] sm:$0xff] %v519_v32  ;;  %522 = vst [vmem:[%s3292_s29 + $0x84] sm:$0xff] %v521_v33 }
  0x9b   : >> { %524 = vst [vmem:[%s3292_s29 + $0x8c] sm:$0xff] %v523_v34  ;;  %526 = vst [vmem:[%s3292_s29 + $0x94] sm:$0xff] %v525_v35 }
  0x9c   : >> { %528 = vst [vmem:[%s3292_s29 + $0x9c] sm:$0xff] %v527_v36  ;;  %530 = vst [vmem:[%s3292_s29 + $0xa4] sm:$0xff] %v529_v37 }
  0x9d   : >> { %532 = vst [vmem:[%s3292_s29 + $0xac] sm:$0xff] %v531_v38  ;;  %534 = vst [vmem:[%s3292_s29 + $0xb4] sm:$0xff] %v533_v39  ;;  %s5053_s29 = smov %s3862_s11 }
  0x9e PF: > { %s3935_s12 = sand.u32 15, %s394_s27   ;;  %s2529_s25 = sshll.u32 %s3762_s5, 11 }
  0x9f   : > { %s546_s20 = sshra.s32 %s2529_s25, 4  ;;  %p2439_p9 = scmp.le.s32.totalorder %s3935_s12, 0 }
  0xa0   : > { %s3939_s0 = scalar_lea.vmem %s3530_s6, %s546_s20   ;;  %s3942_s11 = scalar_lea.vmem %s3534_s9, %s546_s20 [#allocation2]  }
  0xa1   : > { %2267 = sbr.rel (%p2439_p9) target bundleno = 178 (0xb2), region = 358  ;;  %s5056_s29 = smov (!%p2439_p9), %s3942_s11 }
  0xa2   : > { %s5057_s7 = smov (!%p2439_p9), %s3939_s0  ;;  %s3951_s26 = smov (!%p2439_p9), 0  }
  0xa3   : > { %s3318_s13 = smov (!%p2439_p9), 0  }
  0xa8 LB: >> { %v562_v40 = vld [vmem:[%s3312_s7] sm:$0xff]  ;;  %v566_v42 = vld [vmem:[%s3312_s7 + $0x48] sm:$0xff]  ;;  %s570_s27 = sadd.s32 1, %s3316_s26  ;;  %s556_s13 = sadd.s32 1, %s3320_s13   ;;  %s3320_s13 = sphi %s3318_s13, %s556_s13   ;;  %s3316_s26 = sphi %s3951_s26, %s5058_s26   ;;  %s3312_s7 = sphi %s5057_s7, %s575_s7   ;;  %s3308_s29 = sphi %s5056_s29, %s576_s29  }
  0xa9   : >> { %v564_v41 = vld [vmem:[%s3312_s7 + $0x24] sm:$0xff]  ;;  %563 = vst [vmem:[%s3308_s29] sm:$0xff] %v562_v40  ;;  %567 = vst [vmem:[%s3308_s29 + $0x28] sm:$0xff] %v566_v42  ;;  %v568_v43 = vld [vmem:[%s3312_s7 + $0x6c] sm:$0xff]  ;;  %p571_p10 = scmp.ge.s32.totalorder %s570_s27, %s3935_s12  ;;  %p555_p11 = scmp.ge.s32.totalorder %s556_s13, %s3935_s12 }
  0xaa   : >> { %565 = vst [vmem:[%s3308_s29 + $0x14] sm:$0xff] %v564_v41  ;;  %569 = vst [vmem:[%s3308_s29 + $0x3c] sm:$0xff] %v568_v43 }
  0xab   : >> { %s5105_s27 = smov (%p571_p10, %s570_s27), 0  ;;  %558 = sbr.rel (!%p555_p11) target bundleno = 168 (0xa8), region = 364 }
  0xac   : >> { %s2440_s5 = sshll.u32 %s5105_s27, 3  ;;  %s5058_s26 = smov %s5105_s27 }
  0xad   : >> { %s575_s7 = scalar_lea.vmem %s3939_s0, %s2440_s5   ;;  %s576_s29 = scalar_lea.vmem %s3942_s11, %s2440_s5 [#allocation2]  }
  0xb2 PF: > { %s3450_s14 = smov 0  }
  0xb3   : > { %s577_s21 = sshllo.u32 %s3450_s14, %s3538_s10 }
  0xb4   : > { %v586_v44 = vld [vmem:[%s3755_s28] sm:%s577_s21]  ;;  %v590_v46 = vld [vmem:[%s3755_s28 + $0x48] sm:%s577_s21] }
  0xb5   : > { %v588_v45 = vld [vmem:[%s3755_s28 + $0x24] sm:%s577_s21]  ;;  %587 = vst [vmem:[%s3758_s30] sm:%s577_s21] %v586_v44 }
  0xb6   : > { %589 = vst [vmem:[%s3758_s30 + $0x14] sm:%s577_s21] %v588_v45  ;;  %v592_v47 = vld [vmem:[%s3755_s28 + $0x6c] sm:%s577_s21] }
  0xb7   : > { %591 = vst [vmem:[%s3758_s30 + $0x28] sm:%s577_s21] %v590_v46  ;;  %593 = vst [vmem:[%s3758_s30 + $0x3c] sm:%s577_s21] %v592_v47 }
  0xb8 PF: > { %p2442_p12 = scmp.ge.u32.totalorder %s3532_s8, 8 }
  0xb9   : > { %s3451_s0 = smov (!%p2442_p12), 0  }
  0xba   : > { %180 = sbr.rel (%p2442_p12) target bundleno = 193 (0xc1), region = 40  ;;  %s181_s10 = sshllo.u32 (!%p2442_p12), %s3451_s0, %s3532_s8 }
  0xbb   : > { %v190_v48 = vld [vmem:[%s3530_s6] sm:%s181_s10] (!%p2442_p12)  ;;  %v194_v50 = vld [vmem:[%s3530_s6 + $0x48] sm:%s181_s10] (!%p2442_p12) }
  0xbc   : > { %v192_v49 = vld [vmem:[%s3530_s6 + $0x24] sm:%s181_s10] (!%p2442_p12)  ;;  %191 = vst [vmem:[%s3534_s9] sm:%s181_s10] (!%p2442_p12), %v190_v48 }
  0xbd   : > { %193 = vst [vmem:[%s3534_s9 + $0x14] sm:%s181_s10] (!%p2442_p12), %v192_v49  ;;  %v196_v51 = vld [vmem:[%s3530_s6 + $0x6c] sm:%s181_s10] (!%p2442_p12) }
  0xbe   : > { %195 = vst [vmem:[%s3534_s9 + $0x28] sm:%s181_s10] (!%p2442_p12), %v194_v50  ;;  %197 = vst [vmem:[%s3534_s9 + $0x3c] sm:%s181_s10] (!%p2442_p12), %v196_v51 }
  0xc1 PF: > { %597 = sbr.rel (!%p3513_p4) target bundleno = 335 (0x14f), region = 94  ;;  %s599_s28 = sand.u32 (%p3513_p4), 1, %s3252_s16  }
  0xc2   : > { %s602_s30 = smul.u32 (%p3513_p4), 5, %s3256_s17 }
  0xc3   : > { %s2566_s8 = smul.u32 (%p3513_p4), 160, %s599_s28 }
  0xc4   : > { %s603_s12 = ssub.s32 (%p3513_p4), 9, %s602_s30  ;;  %s2531_s25 = smul.u32 (%p3513_p4), 40, %s3256_s17 }
  0xc5   : > { %p604_p13 = scmp.lt.s32.totalorder (%p3513_p4), %s603_s12, 5  ;;  %s3997_s23 = scalar_lea.vmem (%p3513_p4), [#allocation3], %s2566_s8  }
  0xc6   : > { %s3993_s6 = scalar_lea.vmem (%p3513_p4), %s5037_s3, %s2531_s25  }
  0xc8   : > { %s5107_s12 = smov (!%p604_p13, %s603_s12), 5 }
  0xc9   : > { %s2443_s9 = sshll.u32 %s5107_s12, 9  ;;  %s3995_s29 = sshll.u32 %s5107_s12, 3 }
  0xca   : > { %p2447_p4 = scmp.eq.s32.totalorder %s2443_s9, 0 }
  0xcb   : > { %p614_p0 = scmp.lt.u32.totalorder (!%p2447_p4), %s3995_s29, 8 }
  0xcc   : > { %613 = sbr.rel (%p2447_p4) target bundleno = 335 (0x14f), region = 98 }
  0xd3   : > { %617 = sbr.rel (%p614_p0) target bundleno = 326 (0x146), region = 102  ;;  %s4001_s7 = sand.u32 (!%p614_p0), 7, %s3995_s29  }
  0xd4   : > { %p639_p1 = scmp.eq.s32.totalorder (!%p614_p0), %s4001_s7, 0  ;;  %p2448_p2 = scmp.ne.s32.totalorder (!%p614_p0), %s4001_s7, 0 }
  0xda   : > { %642 = sbr.rel (%p2448_p2) target bundleno = 269 (0x10d), region = 117  ;;  %s643_s26 = sshrl.u32 (!%p2448_p2), %s3995_s29, 3 }
  0xdb   : > { %s4008_s13 = sshrl.u32 (!%p2448_p2), %s643_s26, 4 }
  0xdc   : > { %p2449_p3 = scmp.le.s32.totalorder (!%p2448_p2), %s4008_s13, 0 }
  0xe1   : > { %2281 = sbr.rel (%p2449_p3) target bundleno = 249 (0xf9), region = 369  ;;  %s5059_s27 = smov (!%p2449_p3), %s3997_s23 }
  0xe2   : > { %s5060_s5 = smov (!%p2449_p3), %s3993_s6  ;;  %s4017_s14 = smov (!%p2449_p3), 0  }
  0xe3   : > { %s4019_s21 = smov (!%p2449_p3), 0  }
  0xe8 LB: >> { %v674_v52 = vld [vmem:[%s3328_s5 + $0x48] sm:$0xff]  ;;  %v706_v53 = vld [vmem:[%s3328_s5 + $0x90] sm:$0xff]  ;;  %v738_v54 = vld [vmem:[%s3328_s5 + $0xd8] sm:$0xff]  ;;  %s784_s0 = sadd.s32 1, %s3332_s14  ;;  %s650_s21 = sadd.s32 1, %s3336_s21   ;;  %s3336_s21 = sphi %s4019_s21, %s650_s21   ;;  %s3332_s14 = sphi %s4017_s14, %s5063_s14   ;;  %s3328_s5 = sphi %s5060_s5, %s5062_s5   ;;  %s3324_s27 = sphi %s5059_s27, %s5061_s27  }
  0xe9   : >> { %v740_v55 = vld [vmem:[%s3328_s5 + $0xe0] sm:$0xff]  ;;  %v742_v56 = vld [vmem:[%s3328_s5 + $0xe8] sm:$0xff]  ;;  %v744_v57 = vld [vmem:[%s3328_s5 + $0xf0] sm:$0xff]  ;;  %689 = vst [vmem:[%s3324_s27 + $0x28] sm:$0xff] %v674_v52  ;;  %p785_p6 = scmp.ge.s32.totalorder %s784_s0, %s4008_s13  ;;  %p649_p7 = scmp.ge.s32.totalorder %s650_s21, %s4008_s13 }
  0xea   : >> { %721 = vst [vmem:[%s3324_s27 + $0x50] sm:$0xff] %v706_v53  ;;  %753 = vst [vmem:[%s3324_s27 + $0x78] sm:$0xff] %v738_v54  ;;  %v746_v58 = vld [vmem:[%s3328_s5 + $0xf8] sm:$0xff]  ;;  %v748_v59 = vld [vmem:[%s3328_s5 + $0x100] sm:$0xff] }
  0xeb   : >> { %v750_v60 = vld [vmem:[%s3328_s5 + $0x108] sm:$0xff]  ;;  %755 = vst [vmem:[%s3324_s27 + $0x80] sm:$0xff] %v740_v55  ;;  %757 = vst [vmem:[%s3324_s27 + $0x88] sm:$0xff] %v742_v56  ;;  %v656_v61 = vld [vmem:[%s3328_s5] sm:$0xff]  ;;  %s5109_s0 = smov (%p785_p6, %s784_s0), 0 }
  0xec   : >> { %759 = vst [vmem:[%s3324_s27 + $0x90] sm:$0xff] %v744_v57  ;;  %v658_v62 = vld [vmem:[%s3328_s5 + $0x8] sm:$0xff]  ;;  %v660_v63 = vld [vmem:[%s3328_s5 + $0x10] sm:$0xff]  ;;  %761 = vst [vmem:[%s3324_s27 + $0x98] sm:$0xff] %v746_v58  ;;  %s2450_s10 = sshll.u32 %s5109_s0, 7  ;;  %s5063_s14 = smov %s5109_s0 }
  0xed   : >> { %763 = vst [vmem:[%s3324_s27 + $0xa0] sm:$0xff] %v748_v59  ;;  %765 = vst [vmem:[%s3324_s27 + $0xa8] sm:$0xff] %v750_v60  ;;  %v662_v0 = vld [vmem:[%s3328_s5 + $0x18] sm:$0xff]  ;;  %v664_v1 = vld [vmem:[%s3328_s5 + $0x20] sm:$0xff]  ;;  %s789_s28 = scalar_lea.vmem %s3993_s6, %s2450_s10   ;;  %s790_s30 = scalar_lea.vmem %s3997_s23, %s2450_s10 [#allocation3]  }
  0xee   : >> { %657 = vst [vmem:[%s3324_s27] sm:$0xff] %v656_v61  ;;  %659 = vst [vmem:[%s3324_s27 + $0x8] sm:$0xff] %v658_v62  ;;  %v690_v2 = vld [vmem:[%s3328_s5 + $0x50] sm:$0xff]  ;;  %v692_v3 = vld [vmem:[%s3328_s5 + $0x58] sm:$0xff] }
  0xef   : >> { %661 = vst [vmem:[%s3324_s27 + $0x10] sm:$0xff] %v660_v63  ;;  %663 = vst [vmem:[%s3324_s27 + $0x18] sm:$0xff] %v662_v0  ;;  %v694_v4 = vld [vmem:[%s3328_s5 + $0x60] sm:$0xff]  ;;  %v696_v5 = vld [vmem:[%s3328_s5 + $0x68] sm:$0xff] }
  0xf0   : >> { %665 = vst [vmem:[%s3324_s27 + $0x20] sm:$0xff] %v664_v1  ;;  %691 = vst [vmem:[%s3324_s27 + $0x30] sm:$0xff] %v690_v2  ;;  %v722_v6 = vld [vmem:[%s3328_s5 + $0x98] sm:$0xff]  ;;  %v724_v7 = vld [vmem:[%s3328_s5 + $0xa0] sm:$0xff] }
  0xf1   : >> { %693 = vst [vmem:[%s3324_s27 + $0x38] sm:$0xff] %v692_v3  ;;  %695 = vst [vmem:[%s3324_s27 + $0x40] sm:$0xff] %v694_v4  ;;  %v726_v8 = vld [vmem:[%s3328_s5 + $0xa8] sm:$0xff]  ;;  %v728_v9 = vld [vmem:[%s3328_s5 + $0xb0] sm:$0xff] }
  0xf2   : >> { %697 = vst [vmem:[%s3324_s27 + $0x48] sm:$0xff] %v696_v5  ;;  %723 = vst [vmem:[%s3324_s27 + $0x58] sm:$0xff] %v722_v6  ;;  %v766_v10 = vld [vmem:[%s3328_s5 + $0x110] sm:$0xff]  ;;  %v768_v11 = vld [vmem:[%s3328_s5 + $0x118] sm:$0xff]  ;;  %652 = sbr.rel (!%p649_p7) target bundleno = 232 (0xe8), region = 375 }
  0xf3   : >> { %725 = vst [vmem:[%s3324_s27 + $0x60] sm:$0xff] %v724_v7  ;;  %727 = vst [vmem:[%s3324_s27 + $0x68] sm:$0xff] %v726_v8  ;;  %v770_v12 = vld [vmem:[%s3328_s5 + $0x120] sm:$0xff]  ;;  %v772_v13 = vld [vmem:[%s3328_s5 + $0x128] sm:$0xff] }
  0xf4   : >> { %729 = vst [vmem:[%s3324_s27 + $0x70] sm:$0xff] %v728_v9  ;;  %767 = vst [vmem:[%s3324_s27 + $0xb0] sm:$0xff] %v766_v10  ;;  %v774_v14 = vld [vmem:[%s3328_s5 + $0x130] sm:$0xff]  ;;  %v776_v15 = vld [vmem:[%s3328_s5 + $0x138] sm:$0xff] }
  0xf5   : >> { %769 = vst [vmem:[%s3324_s27 + $0xb8] sm:$0xff] %v768_v11  ;;  %771 = vst [vmem:[%s3324_s27 + $0xc0] sm:$0xff] %v770_v12  ;;  %v778_v16 = vld [vmem:[%s3328_s5 + $0x140] sm:$0xff]  ;;  %v780_v17 = vld [vmem:[%s3328_s5 + $0x148] sm:$0xff] }
  0xf6   : >> { %773 = vst [vmem:[%s3324_s27 + $0xc8] sm:$0xff] %v772_v13  ;;  %775 = vst [vmem:[%s3324_s27 + $0xd0] sm:$0xff] %v774_v14  ;;  %v782_v18 = vld [vmem:[%s3328_s5 + $0x150] sm:$0xff]  ;;  %s5062_s5 = smov %s789_s28 }
  0xf7   : >> { %777 = vst [vmem:[%s3324_s27 + $0xd8] sm:$0xff] %v776_v15  ;;  %779 = vst [vmem:[%s3324_s27 + $0xe0] sm:$0xff] %v778_v16 }
  0xf8   : >> { %781 = vst [vmem:[%s3324_s27 + $0xe8] sm:$0xff] %v780_v17  ;;  %783 = vst [vmem:[%s3324_s27 + $0xf0] sm:$0xff] %v782_v18  ;;  %s5061_s27 = smov %s790_s30 }
  0xf9 PF: > { %s4115_s8 = sand.u32 15, %s643_s26   ;;  %s2532_s12 = sshll.u32 %s4008_s13, 11 }
  0xfa   : > { %s795_s25 = sshra.s32 %s2532_s12, 4  ;;  %p2455_p8 = scmp.le.s32.totalorder %s4115_s8, 0 }
  0xfb   : > { %s4119_s20 = scalar_lea.vmem %s3993_s6, %s795_s25   ;;  %s4122_s11 = scalar_lea.vmem %s3997_s23, %s795_s25 [#allocation3]  }
  0xfc   : > { %2295 = sbr.rel (%p2455_p8) target bundleno = 269 (0x10d), region = 380  ;;  %s5064_s9 = smov (!%p2455_p8), %s4122_s11 }
  0xfd   : > { %s5065_s27 = smov (!%p2455_p8), %s4119_s20  ;;  %s4131_s5 = smov (!%p2455_p8), 0  }
  0xfe   : > { %s3350_s14 = smov (!%p2455_p8), 0  }
 0x103 LB: >> { %v811_v19 = vld [vmem:[%s3344_s27] sm:$0xff]  ;;  %v813_v20 = vld [vmem:[%s3344_s27 + $0x48] sm:$0xff]  ;;  %v815_v21 = vld [vmem:[%s3344_s27 + $0x90] sm:$0xff]  ;;  %s819_s26 = sadd.s32 1, %s3348_s5  ;;  %s805_s14 = sadd.s32 1, %s3352_s14   ;;  %s3352_s14 = sphi %s3350_s14, %s805_s14   ;;  %s3348_s5 = sphi %s4131_s5, %s5066_s5   ;;  %s3344_s27 = sphi %s5065_s27, %s824_s27   ;;  %s3340_s9 = sphi %s5064_s9, %s825_s9  }
 0x104   : >> { %812 = vst [vmem:[%s3340_s9] sm:$0xff] %v811_v19  ;;  %814 = vst [vmem:[%s3340_s9 + $0x28] sm:$0xff] %v813_v20  ;;  %v817_v22 = vld [vmem:[%s3344_s27 + $0xd8] sm:$0xff]  ;;  %p820_p9 = scmp.ge.s32.totalorder %s819_s26, %s4115_s8  ;;  %p804_p10 = scmp.ge.s32.totalorder %s805_s14, %s4115_s8 }
 0x105   : >> { %816 = vst [vmem:[%s3340_s9 + $0x50] sm:$0xff] %v815_v21  ;;  %818 = vst [vmem:[%s3340_s9 + $0x78] sm:$0xff] %v817_v22 }
 0x106   : >> { %s5111_s26 = smov (%p820_p9, %s819_s26), 0  ;;  %807 = sbr.rel (!%p804_p10) target bundleno = 259 (0x103), region = 386 }
 0x107   : >> { %s2456_s13 = sshll.u32 %s5111_s26, 3  ;;  %s5066_s5 = smov %s5111_s26 }
 0x108   : >> { %s824_s27 = scalar_lea.vmem %s4119_s20, %s2456_s13   ;;  %s825_s9 = scalar_lea.vmem %s4122_s11, %s2456_s13 [#allocation3]  }
 0x10d PF: > { %828 = sbr.rel (%p639_p1) target bundleno = 326 (0x146), region = 135  ;;  %s830_s21 = ssub.s32 (!%p639_p1), %s3995_s29, %s4001_s7 }
 0x10e   : > { %s834_s0 = sshrl.u32 (!%p639_p1), %s3995_s29, 3  ;;  %s4152_s10 = scalar_lea.vmem (!%p639_p1), %s3993_s6, %s830_s21 }
 0x10f   : > { %s4155_s28 = scalar_lea.vmem (!%p639_p1), %s3997_s23, %s830_s21 [#allocation3]  ;;  %s4159_s30 = sshrl.u32 (!%p639_p1), %s834_s0, 4 }
 0x110   : > { %p2458_p11 = scmp.le.s32.totalorder (!%p639_p1), %s4159_s30, 0 }
 0x114   : > { %2309 = sbr.rel (%p2458_p11) target bundleno = 300 (0x12c), region = 391  ;;  %s5067_s8 = smov (!%p2458_p11), %s3997_s23 }
 0x115   : > { %s5068_s12 = smov (!%p2458_p11), %s3993_s6  ;;  %s4168_s25 = smov (!%p2458_p11), 0  }
 0x116   : > { %s4170_s20 = smov (!%p2458_p11), 0  }
 0x11b LB: >> { %v865_v23 = vld [vmem:[%s3360_s12 + $0x48] sm:$0xff]  ;;  %v897_v24 = vld [vmem:[%s3360_s12 + $0x90] sm:$0xff]  ;;  %v929_v25 = vld [vmem:[%s3360_s12 + $0xd8] sm:$0xff]  ;;  %s975_s11 = sadd.s32 1, %s3364_s25  ;;  %s841_s20 = sadd.s32 1, %s3368_s20   ;;  %s3368_s20 = sphi %s4170_s20, %s841_s20   ;;  %s3364_s25 = sphi %s4168_s25, %s5071_s25   ;;  %s3360_s12 = sphi %s5068_s12, %s5070_s12   ;;  %s3356_s8 = sphi %s5067_s8, %s5069_s8  }
 0x11c   : >> { %v931_v26 = vld [vmem:[%s3360_s12 + $0xe0] sm:$0xff]  ;;  %v933_v27 = vld [vmem:[%s3360_s12 + $0xe8] sm:$0xff]  ;;  %v935_v28 = vld [vmem:[%s3360_s12 + $0xf0] sm:$0xff]  ;;  %880 = vst [vmem:[%s3356_s8 + $0x28] sm:$0xff] %v865_v23  ;;  %p976_p12 = scmp.ge.s32.totalorder %s975_s11, %s4159_s30  ;;  %p840_p13 = scmp.ge.s32.totalorder %s841_s20, %s4159_s30 }
 0x11d   : >> { %912 = vst [vmem:[%s3356_s8 + $0x50] sm:$0xff] %v897_v24  ;;  %944 = vst [vmem:[%s3356_s8 + $0x78] sm:$0xff] %v929_v25  ;;  %v937_v29 = vld [vmem:[%s3360_s12 + $0xf8] sm:$0xff]  ;;  %v939_v30 = vld [vmem:[%s3360_s12 + $0x100] sm:$0xff] }
 0x11e   : >> { %v941_v31 = vld [vmem:[%s3360_s12 + $0x108] sm:$0xff]  ;;  %946 = vst [vmem:[%s3356_s8 + $0x80] sm:$0xff] %v931_v26  ;;  %948 = vst [vmem:[%s3356_s8 + $0x88] sm:$0xff] %v933_v27  ;;  %v847_v32 = vld [vmem:[%s3360_s12] sm:$0xff]  ;;  %s5113_s11 = smov (%p976_p12, %s975_s11), 0 }
 0x11f   : >> { %950 = vst [vmem:[%s3356_s8 + $0x90] sm:$0xff] %v935_v28  ;;  %v849_v33 = vld [vmem:[%s3360_s12 + $0x8] sm:$0xff]  ;;  %v851_v34 = vld [vmem:[%s3360_s12 + $0x10] sm:$0xff]  ;;  %952 = vst [vmem:[%s3356_s8 + $0x98] sm:$0xff] %v937_v29  ;;  %s2459_s9 = sshll.u32 %s5113_s11, 7  ;;  %s5071_s25 = smov %s5113_s11 }
 0x120   : >> { %954 = vst [vmem:[%s3356_s8 + $0xa0] sm:$0xff] %v939_v30  ;;  %956 = vst [vmem:[%s3356_s8 + $0xa8] sm:$0xff] %v941_v31  ;;  %v853_v35 = vld [vmem:[%s3360_s12 + $0x18] sm:$0xff]  ;;  %v855_v36 = vld [vmem:[%s3360_s12 + $0x20] sm:$0xff]  ;;  %s980_s27 = scalar_lea.vmem %s3993_s6, %s2459_s9   ;;  %s981_s5 = scalar_lea.vmem %s3997_s23, %s2459_s9 [#allocation3]  }
 0x121   : >> { %848 = vst [vmem:[%s3356_s8] sm:$0xff] %v847_v32  ;;  %850 = vst [vmem:[%s3356_s8 + $0x8] sm:$0xff] %v849_v33  ;;  %v881_v37 = vld [vmem:[%s3360_s12 + $0x50] sm:$0xff]  ;;  %v883_v38 = vld [vmem:[%s3360_s12 + $0x58] sm:$0xff] }
 0x122   : >> { %852 = vst [vmem:[%s3356_s8 + $0x10] sm:$0xff] %v851_v34  ;;  %854 = vst [vmem:[%s3356_s8 + $0x18] sm:$0xff] %v853_v35  ;;  %v885_v39 = vld [vmem:[%s3360_s12 + $0x60] sm:$0xff]  ;;  %v887_v40 = vld [vmem:[%s3360_s12 + $0x68] sm:$0xff] }
 0x123   : >> { %856 = vst [vmem:[%s3356_s8 + $0x20] sm:$0xff] %v855_v36  ;;  %882 = vst [vmem:[%s3356_s8 + $0x30] sm:$0xff] %v881_v37  ;;  %v913_v41 = vld [vmem:[%s3360_s12 + $0x98] sm:$0xff]  ;;  %v915_v42 = vld [vmem:[%s3360_s12 + $0xa0] sm:$0xff] }
 0x124   : >> { %884 = vst [vmem:[%s3356_s8 + $0x38] sm:$0xff] %v883_v38  ;;  %886 = vst [vmem:[%s3356_s8 + $0x40] sm:$0xff] %v885_v39  ;;  %v917_v43 = vld [vmem:[%s3360_s12 + $0xa8] sm:$0xff]  ;;  %v919_v44 = vld [vmem:[%s3360_s12 + $0xb0] sm:$0xff] }
 0x125   : >> { %888 = vst [vmem:[%s3356_s8 + $0x48] sm:$0xff] %v887_v40  ;;  %914 = vst [vmem:[%s3356_s8 + $0x58] sm:$0xff] %v913_v41  ;;  %v957_v45 = vld [vmem:[%s3360_s12 + $0x110] sm:$0xff]  ;;  %v959_v46 = vld [vmem:[%s3360_s12 + $0x118] sm:$0xff]  ;;  %843 = sbr.rel (!%p840_p13) target bundleno = 283 (0x11b), region = 397 }
 0x126   : >> { %916 = vst [vmem:[%s3356_s8 + $0x60] sm:$0xff] %v915_v42  ;;  %918 = vst [vmem:[%s3356_s8 + $0x68] sm:$0xff] %v917_v43  ;;  %v961_v47 = vld [vmem:[%s3360_s12 + $0x120] sm:$0xff]  ;;  %v963_v48 = vld [vmem:[%s3360_s12 + $0x128] sm:$0xff] }
 0x127   : >> { %920 = vst [vmem:[%s3356_s8 + $0x70] sm:$0xff] %v919_v44  ;;  %958 = vst [vmem:[%s3356_s8 + $0xb0] sm:$0xff] %v957_v45  ;;  %v965_v49 = vld [vmem:[%s3360_s12 + $0x130] sm:$0xff]  ;;  %v967_v50 = vld [vmem:[%s3360_s12 + $0x138] sm:$0xff] }
 0x128   : >> { %960 = vst [vmem:[%s3356_s8 + $0xb8] sm:$0xff] %v959_v46  ;;  %962 = vst [vmem:[%s3356_s8 + $0xc0] sm:$0xff] %v961_v47  ;;  %v969_v51 = vld [vmem:[%s3360_s12 + $0x140] sm:$0xff]  ;;  %v971_v52 = vld [vmem:[%s3360_s12 + $0x148] sm:$0xff] }
 0x129   : >> { %964 = vst [vmem:[%s3356_s8 + $0xc8] sm:$0xff] %v963_v48  ;;  %966 = vst [vmem:[%s3356_s8 + $0xd0] sm:$0xff] %v965_v49  ;;  %v973_v53 = vld [vmem:[%s3360_s12 + $0x150] sm:$0xff]  ;;  %s5070_s12 = smov %s980_s27 }
 0x12a   : >> { %968 = vst [vmem:[%s3356_s8 + $0xd8] sm:$0xff] %v967_v50  ;;  %970 = vst [vmem:[%s3356_s8 + $0xe0] sm:$0xff] %v969_v51 }
 0x12b   : >> { %972 = vst [vmem:[%s3356_s8 + $0xe8] sm:$0xff] %v971_v52  ;;  %974 = vst [vmem:[%s3356_s8 + $0xf0] sm:$0xff] %v973_v53  ;;  %s5069_s8 = smov %s981_s5 }
 0x12c PF: > { %s4266_s14 = sand.u32 15, %s834_s0   ;;  %s2534_s26 = sshll.u32 %s4159_s30, 11 }
 0x12d   : > { %s986_s13 = sshra.s32 %s2534_s26, 4  ;;  %p2464_p4 = scmp.le.s32.totalorder %s4266_s14, 0 }
 0x12e   : > { %s4270_s21 = scalar_lea.vmem %s3993_s6, %s986_s13   ;;  %s4273_s9 = scalar_lea.vmem %s3997_s23, %s986_s13 [#allocation3]  }
 0x12f   : > { %2323 = sbr.rel (%p2464_p4) target bundleno = 320 (0x140), region = 402  ;;  %s5072_s8 = smov (!%p2464_p4), %s4273_s9 }
 0x130   : > { %s5073_s12 = smov (!%p2464_p4), %s4270_s21  ;;  %s4282_s25 = smov (!%p2464_p4), 0  }
 0x131   : > { %s3382_s20 = smov (!%p2464_p4), 0  }
 0x136 LB: >> { %v1002_v54 = vld [vmem:[%s3376_s12] sm:$0xff]  ;;  %v1004_v55 = vld [vmem:[%s3376_s12 + $0x48] sm:$0xff]  ;;  %v1006_v56 = vld [vmem:[%s3376_s12 + $0x90] sm:$0xff]  ;;  %s1010_s0 = sadd.s32 1, %s3380_s25  ;;  %s996_s20 = sadd.s32 1, %s3384_s20   ;;  %s3384_s20 = sphi %s3382_s20, %s996_s20   ;;  %s3380_s25 = sphi %s4282_s25, %s5074_s25   ;;  %s3376_s12 = sphi %s5073_s12, %s1015_s12   ;;  %s3372_s8 = sphi %s5072_s8, %s1016_s8  }
 0x137   : >> { %1003 = vst [vmem:[%s3372_s8] sm:$0xff] %v1002_v54  ;;  %1005 = vst [vmem:[%s3372_s8 + $0x28] sm:$0xff] %v1004_v55  ;;  %v1008_v57 = vld [vmem:[%s3376_s12 + $0xd8] sm:$0xff]  ;;  %p1011_p0 = scmp.ge.s32.totalorder %s1010_s0, %s4266_s14  ;;  %p995_p1 = scmp.ge.s32.totalorder %s996_s20, %s4266_s14 }
 0x138   : >> { %1007 = vst [vmem:[%s3372_s8 + $0x50] sm:$0xff] %v1006_v56  ;;  %1009 = vst [vmem:[%s3372_s8 + $0x78] sm:$0xff] %v1008_v57 }
 0x139   : >> { %s5115_s0 = smov (%p1011_p0, %s1010_s0), 0  ;;  %998 = sbr.rel (!%p995_p1) target bundleno = 310 (0x136), region = 408 }
 0x13a   : >> { %s2465_s30 = sshll.u32 %s5115_s0, 3  ;;  %s5074_s25 = smov %s5115_s0 }
 0x13b   : >> { %s1015_s12 = scalar_lea.vmem %s4270_s21, %s2465_s30   ;;  %s1016_s8 = scalar_lea.vmem %s4273_s9, %s2465_s30 [#allocation3]  }
 0x140 PF: > { %s3452_s11 = smov 0  }
 0x141   : > { %s1017_s27 = sshllo.u32 %s3452_s11, %s4001_s7 }
 0x142   : > { %v1026_v58 = vld [vmem:[%s4152_s10] sm:%s1017_s27]  ;;  %v1028_v59 = vld [vmem:[%s4152_s10 + $0x48] sm:%s1017_s27] }
 0x143   : > { %1027 = vst [vmem:[%s4155_s28] sm:%s1017_s27] %v1026_v58  ;;  %1029 = vst [vmem:[%s4155_s28 + $0x28] sm:%s1017_s27] %v1028_v59 }
 0x144   : > { %v1030_v60 = vld [vmem:[%s4152_s10 + $0x90] sm:%s1017_s27]  ;;  %v1032_v61 = vld [vmem:[%s4152_s10 + $0xd8] sm:%s1017_s27] }
 0x145   : > { %1031 = vst [vmem:[%s4155_s28 + $0x50] sm:%s1017_s27] %v1030_v60  ;;  %1033 = vst [vmem:[%s4155_s28 + $0x78] sm:%s1017_s27] %v1032_v61 }
 0x146 PF: > { %p2467_p2 = scmp.ge.u32.totalorder %s3995_s29, 8 }
 0x147   : > { %s3453_s5 = smov (!%p2467_p2), 0  }
 0x148   : > { %620 = sbr.rel (%p2467_p2) target bundleno = 335 (0x14f), region = 106  ;;  %s621_s7 = sshllo.u32 (!%p2467_p2), %s3453_s5, %s3995_s29 }
 0x149   : > { %v630_v62 = vld [vmem:[%s3993_s6] sm:%s621_s7] (!%p2467_p2)  ;;  %v632_v63 = vld [vmem:[%s3993_s6 + $0x48] sm:%s621_s7] (!%p2467_p2) }
 0x14a   : > { %631 = vst [vmem:[%s3997_s23] sm:%s621_s7] (!%p2467_p2), %v630_v62  ;;  %633 = vst [vmem:[%s3997_s23 + $0x28] sm:%s621_s7] (!%p2467_p2), %v632_v63 }
 0x14b   : > { %v634_v0 = vld [vmem:[%s3993_s6 + $0x90] sm:%s621_s7] (!%p2467_p2)  ;;  %v636_v1 = vld [vmem:[%s3993_s6 + $0xd8] sm:%s621_s7] (!%p2467_p2) }
 0x14c   : > { %635 = vst [vmem:[%s3997_s23 + $0x50] sm:%s621_s7] (!%p2467_p2), %v634_v0  ;;  %637 = vst [vmem:[%s3997_s23 + $0x78] sm:%s621_s7] (!%p2467_p2), %v636_v1 }
 0x14f PF: > { %p2468_p3 = scmp.ge.s32.totalorder %s3256_s17, 1  ;;  %p1036_p6 = scmp.lt.s32.totalorder %s3256_s17, 3 }
 0x151   : > { %p1037_p7 = pnand %p2468_p3, %p1036_p6 }
 0x152   : > { %s1043_s29 = sand.u32 (!%p1037_p7), 1, %s3248_s15   ;;  %v3454_v2 = vmov (!%p1037_p7), 0   ;;  %v1110_v3 = vld [vmem:[%s5036_s2] sm:$0xff] (!%p1037_p7)  ;;  %v1111_v4 = vld [vmem:[%s5036_s2 + $0x8] sm:$0xff] (!%p1037_p7)  ;;  %v1112_v5 = vld [vmem:[%s5036_s2 + $0x10] sm:$0xff] (!%p1037_p7)  ;;  %vm1196_vm0 = vcmask (!%p1037_p7), 261120  }
 0x153   : > { %1040 = sbr.rel (%p1037_p7) target bundleno = 806 (0x326), region = 160  ;;  %1235 = vmatprep.mubr.bf16.mxu0 (!%p1037_p7), %v3454_v2  ;;  %1288 = vmatprep.mubr.bf16.mxu1 (!%p1037_p7), %v3454_v2  ;;  %v1113_v7 = vld [vmem:[%s5036_s2 + $0x18] sm:$0xff] (!%p1037_p7)  ;;  %v2998_v16 = vld [vmem:[%s5035_s1] sm:$0xff] (!%p1037_p7)   ;;  %v3000_v18 = vld [vmem:[%s5035_s1 + $0x8] sm:$0xff] (!%p1037_p7)  }
 0x154   : > { %s4321_s10 = smul.u32 (!%p1037_p7), 80, %s1043_s29  ;;  %2984 = vset.pattern.permute.xlu0 (!%p1037_p7), %v3454_v2  ;;  %2985 = vset.pattern.permute.xlu1 (!%p1037_p7), %v3454_v2 }
 0x155   : > { %1116 = vperm.xlu0 (!%p1037_p7), %2984, %v1110_v3   ;;  %1126 = vperm.xlu1 (!%p1037_p7), %2985, %v1112_v5   ;;  %s2568_s0 = smul.u32 (!%p1037_p7), 160, %s1043_s29 }
 0x156   : > { %s1045_s13 = scalar_lea.vmem (!%p1037_p7), [#allocation2], %s4321_s10  ;;  %s4475_s15 = scalar_lea.vmem (!%p1037_p7), [#allocation4], %s4321_s10  }
 0x157   : > { %v2986_v6 = vld [vmem:[%s1045_s13 + $0x4] ss:$20 sps:$4 sm:$0xff] (!%p1037_p7)   ;;  %v2988_v8 = vld [vmem:[%s1045_s13 + $0xc] ss:$20 sps:$4 sm:$0xff] (!%p1037_p7)   ;;  %v2991_v10 = vld [vmem:[%s1045_s13 + $0x8] ss:$20 sps:$4 sm:$0xff] (!%p1037_p7)  }
 0x158   : > { %1203 = vmatprep.subr.bf16.mxu0 (!%p1037_p7), %v2986_v6  ;;  %v2990_v9 = vld [vmem:[%s1045_s13] ss:$20 sps:$4 sm:$0xff] (!%p1037_p7)   ;;  %1256 = vmatprep.subr.bf16.mxu1 (!%p1037_p7), %v2988_v8  ;;  %v2996_v13 = vld [vmem:[%s1045_s13 + $0x28] ss:$20 sps:$4 sm:$0xff] (!%p1037_p7)   ;;  %v2997_v14 = vld [vmem:[%s1045_s13 + $0x30] ss:$20 sps:$4 sm:$0xff] (!%p1037_p7)  }
 0x159   : > { %v2992_v11 = vld [vmem:[%s1045_s13 + $0x2c] ss:$20 sps:$4 sm:$0xff] (!%p1037_p7)   ;;  %1121 = vperm.xlu0 (!%p1037_p7), %2984, %v1111_v4   ;;  %1204 = vmatpush1.bf16.msra.mxu0 (!%p1037_p7), %v2990_v9  ;;  %v2994_v12 = vld [vmem:[%s1045_s13 + $0x34] ss:$20 sps:$4 sm:$0xff] (!%p1037_p7)   ;;  %v2999_v15 = vld [vmem:[%s1045_s13 + $0x10] ss:$20 sps:$4 sm:$0xff] (!%p1037_p7)  }
 0x15a   : > { %1257 = vmatpush1.bf16.msra.mxu1 %v2991_v10  ;;  %1205 = vmatprep.subr.bf16.mxu0 %v2992_v11  ;;  %v3001_v17 = vld [vmem:[%s1045_s13 + $0x38] ss:$20 sps:$4 sm:$0xff]   ;;  %s4348_s30 = scalar_lea.vmem [#allocation3], %s2568_s0  ;;  %s1661_s11 = smul.u32 (%p3517_p5), 5, %s3498_s18 }
 0x15b   : > { %1131 = vperm.xlu1 %2985, %v1113_v7   ;;  %1258 = vmatprep.subr.bf16.mxu1 %v2994_v12  ;;  %v1358_v22 = vld [vmem:[%s4348_s30] sm:$0xff]  ;;  %v1360_v24 = vld [vmem:[%s4348_s30 + $0x10] sm:$0xff]  ;;  %v1359_v28 = vld [vmem:[%s4348_s30 + $0x8] sm:$0xff]  ;;  %s2548_s27 = smul.u32 (%p3517_p5), 20, %s3498_s18 }
 0x15c   : > { %v1361_v30 = vld [vmem:[%s4348_s30 + $0x18] sm:$0xff]  ;;  %v1363_v43 = vld [vmem:[%s4348_s30 + $0x28] sm:$0xff]  ;;  %v1364_v49 = vld [vmem:[%s4348_s30 + $0x30] sm:$0xff]  ;;  %s1662_s5 = ssub.s32 (%p3517_p5), 9, %s1661_s11 }
 0x15d   : > { %1206 = vmatpush1.bf16.msra.mxu0 %v2996_v13  ;;  %v1365_v44 = vld [vmem:[%s4348_s30 + $0x38] sm:$0xff]  ;;  %v1366_v50 = vld [vmem:[%s4348_s30 + $0x40] sm:$0xff]  ;;  %p1663_p8 = scmp.lt.s32.totalorder (%p3517_p5), %s1662_s5, 5  ;;  %s4559_s10 = scalar_lea.vmem (%p3517_p5), %s5038_s4, %s2548_s27  }
 0x15e   : > { %1259 = vmatpush1.bf16.msra.mxu1 %v2997_v14  ;;  %2557 = vmatprep.subr.bf16.mxu0 %v2999_v15 }
 0x160   : > { %2481 = vmatmul.mubr.msk.bf16.vlgmr.msra.gmra.mrb[0].mxu0 %vm1196_vm0, %v2998_v16 }
 0x161   : > { %2483 = vmatmul.mubr.msk.bf16.vlgmr.msra.gmra.mrb[0].mxu1 %vm1196_vm0, %v2998_v16  ;;  %2558 = vmatpush3.bf16.msra.mxu0 %v2999_v15 }
 0x162   : > { %1245 = vmatprep.mubr.bf16.mxu0 %v3454_v2  ;;  %1298 = vmatprep.mubr.bf16.mxu1 %v3454_v2 }
 0x163   : > { %2559 = vmatprep.subr.bf16.mxu0 %v3001_v17 }
 0x165   : > { %2560 = vmatpush3.bf16.msra.mxu0 %v3001_v17 }
 0x168   : > { %2482 = vmatmul.mubr.msk.bf16.gmra.mrb[4].mxu0 %vm1196_vm0, %v3000_v18 }
 0x169   : > { %2484 = vmatmul.mubr.msk.bf16.gmra.mrb[4].mxu1 %vm1196_vm0, %v3000_v18  ;;  %2561 = vmatprep.mubr.msk.bf16.mxu0 %vm1196_vm0, %v2998_v16 }
 0x170   : > { %2562 = vmatmul.mubr.msk.bf16.vlgmr.msra.gmra.mrb[8].mxu0 %vm1196_vm0, %v3000_v18 }
 0x1d4   : > { %v4344_v19 = vpop.permute.xlu0 %1116 }
 0x1d8   : > { %v4346_v20 = vpop.permute.xlu0 %1121 }
 0x233   : > { %v1237_v21 = vpop.f32.mrb[0].mxu0 }
 0x234   : > { %v1290_v23 = vpop.f32.mrb[0].mxu1  ;;  %v1238_v25 = vadd.f32 %v1237_v21, %v4344_v19  ;;  %v1239_v27 = vpop.f32.mrb[1].mxu0 }
 0x235   : > { %v1291_v26 = vadd.f32 %v1290_v23, %v4344_v19  ;;  %v1292_v29 = vpop.f32.mrb[1].mxu1  ;;  %v1240_v31 = vadd.f32 %v1239_v27, %v4344_v19  ;;  %v1241_v33 = vpop.f32.mrb[2].mxu0 }
 0x236   : > { %v1293_v32 = vadd.f32 %v1292_v29, %v4344_v19  ;;  %v1294_v34 = vpop.f32.mrb[2].mxu1  ;;  %v1378_v35 = vadd.f32 %v1358_v22, %v1238_v25  ;;  %v1242_v37 = vadd.f32 %v1241_v33, %v4346_v20  ;;  %v1243_v39 = vpop.f32.mrb[3].mxu0 }
 0x237   : > { %v1380_v36 = vadd.f32 %v1360_v24, %v1291_v26  ;;  %v1295_v38 = vadd.f32 %v1294_v34, %v4346_v20  ;;  %v1296_v40 = vpop.f32.mrb[3].mxu1  ;;  %v4360_v41 = vadd.f32 %v1359_v28, %v1240_v31  ;;  %v1244_v45 = vadd.f32 %v1243_v39, %v4346_v20  ;;  %v4400_v25 = vpop.permute.xlu1 %1126  ;;  %v1370_v34 = vld [vmem:[%s4348_s30 + $0x60] sm:$0xff] }
 0x238   : > { %v4362_v42 = vadd.f32 %v1361_v30, %v1293_v32  ;;  %v1297_v46 = vadd.f32 %v1296_v40, %v4346_v20  ;;  %v1418_v47 = vmul.f32 0.044715, %v1378_v35  ;;  %v4372_v55 = vadd.f32 %v1363_v43, %v1242_v37  ;;  %v1368_v30 = vld [vmem:[%s4348_s30 + $0x50] sm:$0xff] }
 0x239   : > { %v1420_v48 = vmul.f32 0.044715, %v1380_v36  ;;  %v1419_v51 = vmul.f32 0.044715, %v4360_v41  ;;  %v4374_v56 = vadd.f32 %v1365_v44, %v1295_v38  ;;  %v4378_v59 = vadd.f32 %v1364_v49, %v1244_v45 }
 0x23a   : > { %v1421_v52 = vmul.f32 0.044715, %v4362_v42  ;;  %v1438_v53 = vmul.f32 %v1418_v47, %v1378_v35  ;;  %v4380_v60 = vadd.f32 %v1366_v50, %v1297_v46  ;;  %v1423_v1 = vmul.f32 0.044715, %v4372_v55 }
 0x23b   : > { %v1440_v54 = vmul.f32 %v1420_v48, %v1380_v36  ;;  %v1439_v57 = vmul.f32 %v1419_v51, %v4360_v41  ;;  %v1247_v61 = vpop.f32.mrb[4].mxu0  ;;  %v1425_v6 = vmul.f32 0.044715, %v4374_v56  ;;  %v4386_v9 = vmul.f32 0.5, %v1378_v35 }
 0x23c   : > { %v1441_v58 = vmul.f32 %v1421_v52, %v4362_v42  ;;  %v1300_v62 = vpop.f32.mrb[4].mxu1  ;;  %v1458_v63 = vmul.f32 %v1438_v53, %v1378_v35  ;;  %v1249_v2 = vpop.f32.mrb[5].mxu0  ;;  %v1443_v12 = vmul.f32 %v1423_v1, %v4372_v55  ;;  %v1424_v18 = vmul.f32 0.044715, %v4378_v59  ;;  %v1369_v52 = vld [vmem:[%s4348_s30 + $0x58] sm:$0xff] }
 0x23d   : > { %v1460_v0 = vmul.f32 %v1440_v54, %v1380_v36  ;;  %v1302_v3 = vpop.f32.mrb[5].mxu1  ;;  %v1459_v4 = vmul.f32 %v1439_v57, %v4360_v41  ;;  %v1251_v7 = vpop.f32.mrb[6].mxu0  ;;  %v1445_v17 = vmul.f32 %v1425_v6, %v4374_v56  ;;  %v4397_v22 = vmul.f32 0.5, %v1380_v36 }
 0x23e   : > { %v1461_v5 = vmul.f32 %v1441_v58, %v4362_v42  ;;  %v1304_v8 = vpop.f32.mrb[6].mxu1  ;;  %v1478_v10 = vadd.f32 %v1458_v63, %v1378_v35  ;;  %v4389_v13 = vpop.f32.mrb[7].mxu0  ;;  %v1463_v24 = vmul.f32 %v1443_v12, %v4372_v55  ;;  %v1444_v29 = vmul.f32 %v1424_v18, %v4378_v59 }
 0x23f   : > { %v1480_v11 = vadd.f32 %v1460_v0, %v1380_v36  ;;  %v4391_v14 = vpop.f32.mrb[7].mxu1  ;;  %v1479_v15 = vadd.f32 %v1459_v4, %v4360_v41  ;;  %v1465_v28 = vmul.f32 %v1445_v17, %v4374_v56  ;;  %v1426_v32 = vmul.f32 0.044715, %v4380_v60  ;;  %v4428_v53 = vpop.permute.xlu1 %1131  ;;  %v1373_v4 = vld [vmem:[%s4348_s30 + $0x78] sm:$0xff] }
 0x240   : > { %v1481_v16 = vadd.f32 %v1461_v5, %v4362_v42  ;;  %v1498_v21 = vmul.f32 0.7978846, %v1478_v10  ;;  %v1483_v31 = vadd.f32 %v1463_v24, %v4372_v55  ;;  %v1248_v33 = vadd.f32 %v1247_v61, %v4400_v25  ;;  %v1375_v5 = vld [vmem:[%s4348_s30 + $0x88] sm:$0xff] }
 0x241   : > { %v1500_v23 = vmul.f32 0.7978846, %v1480_v11  ;;  %v1499_v26 = vmul.f32 0.7978846, %v1479_v15  ;;  %v1485_v35 = vadd.f32 %v1465_v28, %v4374_v56  ;;  %v1464_v36 = vmul.f32 %v1444_v29, %v4378_v59 }
 0x242   : > { %v1501_v27 = vmul.f32 0.7978846, %v1481_v16  ;;  %3002 = vtanh.f32 %v1498_v21  ;;  %v1301_v37 = vadd.f32 %v1300_v62, %v4400_v25  ;;  %v1503_v39 = vmul.f32 0.7978846, %v1483_v31  ;;  %v1371_v62 = vld [vmem:[%s4348_s30 + $0x68] sm:$0xff] }
 0x243   : > { %3004 = vtanh.f32 %v1500_v23  ;;  %v4412_v38 = vpop.f32.mrb[8].mxu0  ;;  %v1446_v40 = vmul.f32 %v1426_v32, %v4380_v60  ;;  %v4415_v43 = vadd.f32 %v1368_v30, %v1248_v33  ;;  %v1505_v45 = vmul.f32 0.7978846, %v1485_v35 }
 0x244   : > { %3006 = vtanh.f32 %v1499_v26  ;;  %v4417_v44 = vpop.f32.mrb[9].mxu0  ;;  %v1484_v46 = vadd.f32 %v1464_v36, %v4378_v59  ;;  %v4420_v47 = vadd.f32 %v1370_v34, %v1301_v37  ;;  %v1399_v49 = vmul.f32 0.5, %v4360_v41 }
 0x245   : > { %3008 = vtanh.f32 %v1501_v27  ;;  %v4422_v48 = vpop.f32.mrb[10].mxu0  ;;  %v1466_v50 = vmul.f32 %v1446_v40, %v4380_v60  ;;  %v1428_v51 = vmul.f32 0.044715, %v4415_v43  ;;  %v1401_v57 = vmul.f32 0.5, %v4362_v42 }
 0x246   : > { %3010 = vtanh.f32 %v1503_v39  ;;  %v4430_v54 = vpop.f32.mrb[11].mxu0  ;;  %v1504_v58 = vmul.f32 0.7978846, %v1484_v46  ;;  %v1430_v61 = vmul.f32 0.044715, %v4420_v47  ;;  %v1250_v0 = vadd.f32 %v1249_v2, %v4400_v25 }
 0x247   : > { %3012 = vtanh.f32 %v1505_v45  ;;  %v1486_v41 = vadd.f32 %v1466_v50, %v4380_v60  ;;  %v1448_v63 = vmul.f32 %v1428_v51, %v4415_v43  ;;  %v1303_v1 = vadd.f32 %v1302_v3, %v4400_v25 }
 0x248   : > { %3014 = vtanh.f32 %v1504_v58  ;;  %v1450_v6 = vmul.f32 %v1430_v61, %v4420_v47  ;;  %v1252_v42 = vadd.f32 %v1251_v7, %v4428_v53  ;;  %v1305_v10 = vadd.f32 %v1304_v8, %v4428_v53 }
 0x249   : > { %v1506_v11 = vmul.f32 0.7978846, %v1486_v41  ;;  %v1468_v12 = vmul.f32 %v1448_v63, %v4415_v43  ;;  %v4445_v15 = vadd.f32 %v1369_v52, %v1250_v0  ;;  %v4447_v16 = vadd.f32 %v1371_v62, %v1303_v1  ;;  %v1374_v62 = vld [vmem:[%s4348_s30 + $0x80] sm:$0xff] }
 0x24a   : > { %v1403_v2 = vmul.f32 0.5, %v4372_v55  ;;  %v1470_v3 = vmul.f32 %v1450_v6, %v4420_v47  ;;  %v4451_v17 = vadd.f32 %v1373_v4, %v1252_v42  ;;  %v4453_v18 = vadd.f32 %v1375_v5, %v1305_v10 }
 0x24b   : > { %v1405_v7 = vmul.f32 0.5, %v4374_v56  ;;  %3016 = vtanh.f32 %v1506_v11  ;;  %v1488_v8 = vadd.f32 %v1468_v12, %v4415_v43  ;;  %v1429_v23 = vmul.f32 0.044715, %v4445_v15 }
 0x24c   : > { %v3003_v21 = vpop.eup %3002  ;;  %v1404_v27 = vmul.f32 0.5, %v4378_v59  ;;  %v1490_v55 = vadd.f32 %v1470_v3, %v4420_v47  ;;  %v1431_v28 = vmul.f32 0.044715, %v4447_v16  ;;  %v1254_v56 = vadd.f32 %v4389_v13, %v4428_v53 }
 0x24d   : > { %v3005_v24 = vpop.eup %3004  ;;  %v1538_v26 = vadd.f32 1.0, %v3003_v21  ;;  %v1508_v31 = vmul.f32 0.7978846, %v1488_v8  ;;  %v1449_v32 = vmul.f32 %v1429_v23, %v4445_v15  ;;  %v1433_v61 = vmul.f32 0.044715, %v4451_v17 }
 0x24e   : > { %v3007_v29 = vpop.eup %3006  ;;  %v1540_v30 = vadd.f32 1.0, %v3005_v24  ;;  %v1510_v36 = vmul.f32 0.7978846, %v1490_v55  ;;  %v1451_v59 = vmul.f32 %v1431_v28, %v4447_v16  ;;  %v1406_v0 = vmul.f32 0.5, %v4380_v60  ;;  %v1376_v60 = vld [vmem:[%s4348_s30 + $0x90] sm:$0xff] }
 0x24f   : > { %v3009_v33 = vpop.eup %3008  ;;  %v1558_v34 = vmul.f32 %v1538_v26, %v4386_v9  ;;  %v1539_v35 = vadd.f32 1.0, %v3007_v29  ;;  %3018 = vtanh.f32 %v1508_v31  ;;  %v1469_v45 = vmul.f32 %v1449_v32, %v4445_v15 }
 0x250   : > { %v3011_v37 = vpop.eup %3010  ;;  %v1560_v39 = vmul.f32 %v1540_v30, %v4397_v22  ;;  %v1541_v40 = vadd.f32 1.0, %v3009_v33  ;;  %3020 = vtanh.f32 %v1510_v36  ;;  %v1471_v13 = vmul.f32 %v1451_v59, %v4447_v16 }
 0x251   : > { %v3013_v46 = vpop.eup %3012  ;;  %v1559_v50 = vmul.f32 %v1539_v35, %v1399_v49  ;;  %v1543_v51 = vadd.f32 1.0, %v3011_v37  ;;  %v1489_v58 = vadd.f32 %v1469_v45, %v4445_v15  ;;  %v1453_v42 = vmul.f32 %v1433_v61, %v4451_v17  ;;  %v1362_v37 = vld [vmem:[%s4348_s30 + $0x20] sm:$0xff] }
 0x252   : > { %v1561_v9 = vmul.f32 %v1541_v40, %v1401_v57  ;;  %v1545_v52 = vadd.f32 1.0, %v3013_v46  ;;  %v3015_v22 = vpop.eup %3014  ;;  %v1491_v49 = vadd.f32 %v1471_v13, %v4447_v16  ;;  %v1435_v10 = vmul.f32 0.044715, %v4453_v18 }
 0x253   : > { %v2536_v41 = vpack.c.bf16 %v1559_v50, %v1558_v34  ;;  %v1563_v63 = vmul.f32 %v1543_v51, %v1403_v2  ;;  %v1544_v5 = vadd.f32 1.0, %v3015_v22  ;;  %v1509_v6 = vmul.f32 0.7978846, %v1489_v58 }
 0x254   : > { %v2537_v1 = vpack.c.bf16 %v1561_v9, %v1560_v39  ;;  %v1565_v4 = vmul.f32 %v1545_v52, %v1405_v7  ;;  %v1511_v57 = vmul.f32 0.7978846, %v1491_v49  ;;  %v4480_v11 = vadd.f32 %v1374_v62, %v1254_v56  ;;  %v1372_v7 = vld [vmem:[%s4348_s30 + $0x70] sm:$0xff]  ;;  %v1377_v52 = vld [vmem:[%s4348_s30 + $0x98] sm:$0xff] }
 0x255   : > { %1642 = vst [vmem:[%s4475_s15] sm:$0xff] %v2536_v41  ;;  %v3017_v12 = vpop.eup %3016  ;;  %v1564_v2 = vmul.f32 %v1544_v5, %v1404_v27  ;;  %3022 = vtanh.f32 %v1509_v6  ;;  %v1307_v3 = vadd.f32 %v4391_v14, %v4428_v53  ;;  %v1352_v21 = vadd.f32 %v4412_v38, %v4400_v25 }
 0x256   : > { %1643 = vst [vmem:[%s4475_s15 + $0x8] sm:$0xff] %v2537_v1  ;;  %v1546_v8 = vadd.f32 1.0, %v3017_v12  ;;  %3024 = vtanh.f32 %v1511_v57  ;;  %v1473_v23 = vmul.f32 %v1453_v42, %v4451_v17  ;;  %v1455_v24 = vmul.f32 %v1435_v10, %v4453_v18 }
 0x257   : > { %v2539_v26 = vpack.c.bf16 %v1564_v2, %v1563_v63  ;;  %v1408_v55 = vmul.f32 0.5, %v4415_v43  ;;  %v1434_v27 = vmul.f32 0.044715, %v4480_v11  ;;  %v4493_v28 = vadd.f32 %v1376_v60, %v1307_v3 }
 0x258   : > { %v1566_v14 = vmul.f32 %v1546_v8, %v1406_v0  ;;  %v1493_v29 = vadd.f32 %v1473_v23, %v4451_v17  ;;  %v1475_v25 = vmul.f32 %v1455_v24, %v4453_v18  ;;  %v4497_v38 = vadd.f32 %v1372_v7, %v1352_v21 }
 0x259   : > { %v3019_v30 = vpop.eup %3018  ;;  %1645 = vst [vmem:[%s4475_s15 + $0x14] sm:$0xff] %v2539_v26  ;;  %v1410_v31 = vmul.f32 0.5, %v4420_v47  ;;  %v1454_v32 = vmul.f32 %v1434_v27, %v4480_v11  ;;  %v1436_v43 = vmul.f32 0.044715, %v4493_v28  ;;  %v1344_v56 = vadd.f32 %v4417_v44, %v4344_v19 }
 0x25a   : > { %v3021_v33 = vpop.eup %3020  ;;  %v2540_v34 = vpack.c.bf16 %v1566_v14, %v1565_v4  ;;  %v1548_v35 = vadd.f32 1.0, %v3019_v30  ;;  %v1513_v36 = vmul.f32 0.7978846, %v1493_v29  ;;  %v1495_v59 = vadd.f32 %v1475_v25, %v4453_v18 }
 0x25b   : > { %v1550_v39 = vadd.f32 1.0, %v3021_v33  ;;  %v1409_v40 = vmul.f32 0.5, %v4445_v15  ;;  %v1474_v47 = vmul.f32 %v1454_v32, %v4480_v11  ;;  %v1456_v45 = vmul.f32 %v1436_v43, %v4493_v28  ;;  %v1367_v15 = vld [vmem:[%s4348_s30 + $0x48] sm:$0xff] }
 0x25c   : > { %1646 = vst [vmem:[%s4475_s15 + $0x1c] sm:$0xff] %v2540_v34  ;;  %v1411_v46 = vmul.f32 0.5, %v4447_v16  ;;  %3026 = vtanh.f32 %v1513_v36  ;;  %v1515_v19 = vmul.f32 0.7978846, %v1495_v59  ;;  %v1432_v44 = vmul.f32 0.044715, %v4497_v38 }
 0x25d   : > { %v1568_v50 = vmul.f32 %v1548_v35, %v1408_v55  ;;  %v1494_v51 = vadd.f32 %v1474_v47, %v4480_v11  ;;  %v1476_v13 = vmul.f32 %v1456_v45, %v4493_v28  ;;  %v4515_v9 = vadd.f32 %v1362_v37, %v1344_v56 }
 0x25e   : > { %3028 = vtanh.f32 %v1515_v19  ;;  %v1452_v58 = vmul.f32 %v1432_v44, %v4497_v38  ;;  %v1355_v61 = vadd.f32 %v4422_v48, %v4428_v53  ;;  %v1347_v16 = vadd.f32 %v4430_v54, %v4346_v20 }
 0x25f   : > { %v3023_v62 = vpop.eup %3022  ;;  %v1570_v22 = vmul.f32 %v1550_v39, %v1410_v31  ;;  %v1514_v41 = vmul.f32 0.7978846, %v1494_v51  ;;  %v1496_v63 = vadd.f32 %v1476_v13, %v4493_v28  ;;  %v1422_v0 = vmul.f32 0.044715, %v4515_v9 }
 0x260   : > { %v3025_v49 = vpop.eup %3024  ;;  %v1549_v1 = vadd.f32 1.0, %v3023_v62  ;;  %v1472_v4 = vmul.f32 %v1452_v58, %v4497_v38  ;;  %v1397_v5 = vadd.f32 %v1377_v52, %v1355_v61  ;;  %v4527_v6 = vadd.f32 %v1367_v15, %v1347_v16 }
 0x261   : > { %v1551_v57 = vadd.f32 1.0, %v3025_v49  ;;  %3030 = vtanh.f32 %v1514_v41  ;;  %v1516_v48 = vmul.f32 0.7978846, %v1496_v63  ;;  %v1442_v20 = vmul.f32 %v1422_v0, %v4515_v9 }
 0x262   : > { %v1569_v53 = vmul.f32 %v1549_v1, %v1409_v40  ;;  %v1492_v54 = vadd.f32 %v1472_v4, %v4497_v38  ;;  %v1437_v42 = vmul.f32 0.044715, %v1397_v5  ;;  %v1427_v21 = vmul.f32 0.044715, %v4527_v6 }
 0x263   : > { %v1571_v10 = vmul.f32 %v1551_v57, %v1411_v46  ;;  %3032 = vtanh.f32 %v1516_v48  ;;  %v1462_v60 = vmul.f32 %v1442_v20, %v4515_v9  ;;  %v1413_v30 = vmul.f32 0.5, %v4451_v17 }
 0x264   : > { %v2542_v12 = vpack.c.bf16 %v1569_v53, %v1568_v50  ;;  %v1512_v2 = vmul.f32 0.7978846, %v1492_v54  ;;  %v1457_v3 = vmul.f32 %v1437_v42, %v1397_v5  ;;  %v1447_v26 = vmul.f32 %v1427_v21, %v4527_v6 }
 0x265   : > { %v2543_v7 = vpack.c.bf16 %v1571_v10, %v1570_v22  ;;  %v1482_v8 = vadd.f32 %v1462_v60, %v4515_v9  ;;  %v1415_v33 = vmul.f32 0.5, %v4453_v18  ;;  %v1414_v34 = vmul.f32 0.5, %v4480_v11 }
 0x266   : > { %v3027_v23 = vpop.eup %3026  ;;  %1648 = vst [vmem:[%s4475_s15 + $0x28] sm:$0xff] %v2542_v12  ;;  %3034 = vtanh.f32 %v1512_v2  ;;  %v1477_v24 = vmul.f32 %v1457_v3, %v1397_v5  ;;  %v1467_v25 = vmul.f32 %v1447_v26, %v4527_v6  ;;  %v1416_v39 = vmul.f32 0.5, %v4493_v28 }
 0x267   : > { %1649 = vst [vmem:[%s4475_s15 + $0x30] sm:$0xff] %v2543_v7  ;;  %v1502_v55 = vmul.f32 0.7978846, %v1482_v8  ;;  %v1553_v14 = vadd.f32 1.0, %v3027_v23  ;;  %v1412_v18 = vmul.f32 0.5, %v4497_v38  ;;  %v1402_v13 = vmul.f32 0.5, %v4515_v9 }
 0x268   : > { %v3029_v27 = vpop.eup %3028  ;;  %v1497_v29 = vadd.f32 %v1477_v24, %v1397_v5  ;;  %v1487_v43 = vadd.f32 %v1467_v25, %v4527_v6  ;;  %v1417_v61 = vmul.f32 0.5, %v1397_v5  ;;  %v1407_v41 = vmul.f32 0.5, %v4527_v6 }
 0x269   : > { %3036 = vtanh.f32 %v1502_v55  ;;  %v1555_v31 = vadd.f32 1.0, %v3029_v27  ;;  %v1573_v35 = vmul.f32 %v1553_v14, %v1413_v30 }
 0x26a   : > { %v1517_v32 = vmul.f32 0.7978846, %v1497_v29  ;;  %v1507_v59 = vmul.f32 0.7978846, %v1487_v43 }
 0x26b   : > { %v3031_v56 = vpop.eup %3030  ;;  %v1575_v40 = vmul.f32 %v1555_v31, %v1415_v33 }
 0x26c   : > { %v1554_v36 = vadd.f32 1.0, %v3031_v56  ;;  %3038 = vtanh.f32 %v1517_v32 }
 0x26d   : > { %v3033_v37 = vpop.eup %3032  ;;  %3040 = vtanh.f32 %v1507_v59 }
 0x26e   : > { %v1574_v17 = vmul.f32 %v1554_v36, %v1414_v34  ;;  %v1556_v47 = vadd.f32 1.0, %v3033_v37 }
 0x270   : > { %v3035_v45 = vpop.eup %3034  ;;  %v2545_v46 = vpack.c.bf16 %v1574_v17, %v1573_v35  ;;  %v1576_v19 = vmul.f32 %v1556_v47, %v1416_v39 }
 0x271   : > { %v1552_v11 = vadd.f32 1.0, %v3035_v45 }
 0x272   : > { %1651 = vst [vmem:[%s4475_s15 + $0x3c] sm:$0xff] %v2545_v46  ;;  %v2546_v44 = vpack.c.bf16 %v1576_v19, %v1575_v40 }
 0x273   : > { %v3037_v50 = vpop.eup %3036  ;;  %v1572_v51 = vmul.f32 %v1552_v11, %v1412_v18 }
 0x274   : > { %1652 = vst [vmem:[%s4475_s15 + $0x44] sm:$0xff] %v2546_v44  ;;  %v1542_v28 = vadd.f32 1.0, %v3037_v50 }
 0x275   : > { %v2544_v52 = vpack.c.bf16 %v1572_v51, %v1572_v51 }
 0x276   : > { %v3039_v15 = vpop.eup %3038  ;;  %v1562_v58 = vmul.f32 %v1542_v28, %v1402_v13 }
 0x277   : > { %1650 = vst [vmem:[%s4475_s15 + $0x38] sm:$0xf] %v2544_v52  ;;  %v1557_v16 = vadd.f32 1.0, %v3039_v15  ;;  %v3041_v62 = vpop.eup %3040 }
 0x278   : > { %v2538_v38 = vpack.c.bf16 %v1562_v58, %v1562_v58  ;;  %v1547_v63 = vadd.f32 1.0, %v3041_v62  ;;  %1660 = sbr.rel (!%p3517_p5) target bundleno = 806 (0x326), region = 172 }
 0x279   : > { %v1577_v22 = vmul.f32 %v1557_v16, %v1417_v61 }
 0x27a   : > { %1644 = vst [vmem:[%s4475_s15 + $0x10] sm:$0xf] %v2538_v38  ;;  %v1567_v49 = vmul.f32 %v1547_v63, %v1407_v41 }
 0x27b   : > { %v2547_v0 = vpack.c.bf16 %v1577_v22, %v1577_v22 }
 0x27c   : > { %v2541_v9 = vpack.c.bf16 %v1567_v49, %v1567_v49 }
 0x27d   : > { %1653 = vst [vmem:[%s4475_s15 + $0x4c] sm:$0xf] %v2547_v0 }
 0x27e   : > { %1647 = vst [vmem:[%s4475_s15 + $0x24] sm:$0xf] %v2541_v9 }
 0x27f   : > { %s5117_s5 = smov (!%p1663_p8, %s1662_s5), 5 }
 0x280   : > { %s2499_s6 = sshll.u32 %s5117_s5, 8  ;;  %s4561_s23 = sshll.u32 %s5117_s5, 2 }
 0x281   : > { %p2503_p9 = scmp.eq.s32.totalorder %s2499_s6, 0 }
 0x282   : > { %p1673_p10 = scmp.lt.u32.totalorder (!%p2503_p9), %s4561_s23, 8 }
 0x283   : > { %1672 = sbr.rel (%p2503_p9) target bundleno = 806 (0x326), region = 176 }
 0x28a   : > { %1676 = sbr.rel (%p1673_p10) target bundleno = 797 (0x31d), region = 180  ;;  %s4565_s24 = sand.u32 (!%p1673_p10), 7, %s4561_s23  }
 0x28b   : > { %p1698_p5 = scmp.eq.s32.totalorder (!%p1673_p10), %s4565_s24, 0  ;;  %p2504_p11 = scmp.ne.s32.totalorder (!%p1673_p10), %s4565_s24, 0 }
 0x291   : > { %1701 = sbr.rel (%p2504_p11) target bundleno = 724 (0x2d4), region = 195  ;;  %s1702_s18 = sshrl.u32 (!%p2504_p11), %s4561_s23, 3 }
 0x292   : > { %s4572_s17 = sshrl.u32 (!%p2504_p11), %s1702_s18, 4 }
 0x293   : > { %p2505_p12 = scmp.le.s32.totalorder (!%p2504_p11), %s4572_s17, 0 }
 0x298   : > { %2337 = sbr.rel (%p2505_p12) target bundleno = 704 (0x2c0), region = 413  ;;  %s5075_s28 = smov (!%p2505_p12), %s4559_s10 }
 0x299   : > { %s5076_s14 = smov (!%p2505_p12), %s4475_s15  ;;  %s4581_s26 = smov (!%p2505_p12), 0  }
 0x29a   : > { %s4583_s13 = smov (!%p2505_p12), 0  }
 0x29f LB: >> { %v1739_v1 = vld [vmem:[%s3392_s14 + $0x60] sm:$0xff]  ;;  %v1741_v4 = vld [vmem:[%s3392_s14 + $0x68] sm:$0xff]  ;;  %v1743_v5 = vld [vmem:[%s3392_s14 + $0x70] sm:$0xff]  ;;  %s1843_s21 = sadd.s32 1, %s3396_s26  ;;  %s1709_s13 = sadd.s32 1, %s3400_s13   ;;  %s3400_s13 = sphi %s4583_s13, %s1709_s13   ;;  %s3396_s26 = sphi %s4581_s26, %s5080_s26   ;;  %s3392_s14 = sphi %s5076_s14, %s5079_s14   ;;  %s3388_s28 = sphi %s5075_s28, %s5078_s28  }
 0x2a0   : >> { %1740 = vst [vmem:[%s3388_s28 + $0x60] sm:$0xff] %v1739_v1  ;;  %1742 = vst [vmem:[%s3388_s28 + $0x68] sm:$0xff] %v1741_v4  ;;  %v1745_v6 = vld [vmem:[%s3392_s14 + $0x78] sm:$0xff]  ;;  %v4605_v57 = vld [vmem:[%s3392_s14 + $0x40] sm:$0xff]  ;;  %p4625_p13 = scmp.ge.s32.totalorder %s1843_s21, %s4572_s17  ;;  %p1708_p4 = scmp.ge.s32.totalorder %s1709_s13, %s4572_s17 }
 0x2a1   : >> { %1744 = vst [vmem:[%s3388_s28 + $0x70] sm:$0xff] %v1743_v5  ;;  %v1733_v48 = vld [vmem:[%s3392_s14 + $0x48] sm:$0xff]  ;;  %1746 = vst [vmem:[%s3388_s28 + $0x78] sm:$0xff] %v1745_v6  ;;  %v1735_v20 = vld [vmem:[%s3392_s14 + $0x50] sm:$0xff] }
 0x2a2   : >> { %1732 = vst [vmem:[%s3388_s28 + $0x40] sm:$0xff] %v4605_v57  ;;  %1734 = vst [vmem:[%s3388_s28 + $0x48] sm:$0xff] %v1733_v48  ;;  %v1737_v53 = vld [vmem:[%s3392_s14 + $0x58] sm:$0xff]  ;;  %v1767_v10 = vld [vmem:[%s3392_s14 + $0x64] sm:$0xff]  ;;  %s5119_s21 = smov (%p4625_p13, %s1843_s21), 0 }
 0x2a3   : >> { %v1763_v54 = vld [vmem:[%s3392_s14 + $0x54] sm:$0xff]  ;;  %1736 = vst [vmem:[%s3388_s28 + $0x50] sm:$0xff] %v1735_v20  ;;  %1738 = vst [vmem:[%s3388_s28 + $0x58] sm:$0xff] %v1737_v53  ;;  %v1765_v42 = vld [vmem:[%s3392_s14 + $0x5c] sm:$0xff]  ;;  %s2506_s8 = sshll.u32 %s5119_s21, 7  ;;  %s5080_s26 = smov %s5119_s21 }
 0x2a4   : >> { %1764 = vst [vmem:[%s3388_s28 + $0x64] sm:$0xff] %v1763_v54  ;;  %v4622_v60 = vld [vmem:[%s3392_s14 + $0x6c] sm:$0xff]  ;;  %1766 = vst [vmem:[%s3388_s28 + $0x6c] sm:$0xff] %v1765_v42  ;;  %v1771_v12 = vld [vmem:[%s3392_s14 + $0x74] sm:$0xff]  ;;  %s4685_s12 = scalar_lea.vmem %s4475_s15, %s2506_s8 [#allocation4]   ;;  %s4688_s25 = scalar_lea.vmem %s4559_s10, %s2506_s8  }
 0x2a5   : >> { %1768 = vst [vmem:[%s3388_s28 + $0x74] sm:$0xff] %v1767_v10  ;;  %1770 = vst [vmem:[%s3388_s28 + $0x7c] sm:$0xff] %v4622_v60  ;;  %v1773_v2 = vld [vmem:[%s3392_s14 + $0x7c] sm:$0xff]  ;;  %v4636_v3 = vld [vmem:[%s3392_s14 + $0x84] sm:$0xff] }
 0x2a6   : >> { %1772 = vst [vmem:[%s3388_s28 + $0x84] sm:$0xff] %v1771_v12  ;;  %1774 = vst [vmem:[%s3388_s28 + $0x8c] sm:$0xff] %v1773_v2  ;;  %v4643_v21 = vld [vmem:[%s3392_s14 + $0x8c] sm:$0xff]  ;;  %v1723_v7 = vld [vmem:[%s3392_s14 + $0x20] sm:$0xff] }
 0x2a7   : >> { %1776 = vst [vmem:[%s3388_s28 + $0x94] sm:$0xff] %v4636_v3  ;;  %v1725_v8 = vld [vmem:[%s3392_s14 + $0x28] sm:$0xff]  ;;  %1788 = vst [vmem:[%s3388_s28 + $0x68] sm:$0xff] %v1733_v48  ;;  %v1727_v23 = vld [vmem:[%s3392_s14 + $0x30] sm:$0xff] }
 0x2a8   : >> { %1790 = vst [vmem:[%s3388_s28 + $0x70] sm:$0xff] %v1735_v20  ;;  %1792 = vst [vmem:[%s3388_s28 + $0x78] sm:$0xff] %v1737_v53  ;;  %v1729_v24 = vld [vmem:[%s3392_s14 + $0x38] sm:$0xff]  ;;  %v1759_v27 = vld [vmem:[%s3392_s14 + $0x44] sm:$0xff] }
 0x2a9   : >> { %1778 = vst [vmem:[%s3388_s28 + $0x9c] sm:$0xff] %v4643_v21  ;;  %1724 = vst [vmem:[%s3388_s28 + $0x20] sm:$0xff] %v1723_v7  ;;  %v1755_v26 = vld [vmem:[%s3392_s14 + $0x34] sm:$0xff]  ;;  %v1757_v55 = vld [vmem:[%s3392_s14 + $0x3c] sm:$0xff] }
 0x2aa   : >> { %1726 = vst [vmem:[%s3388_s28 + $0x28] sm:$0xff] %v1725_v8  ;;  %1794 = vst [vmem:[%s3388_s28 + $0x80] sm:$0xff] %v1739_v1  ;;  %v1761_v14 = vld [vmem:[%s3392_s14 + $0x4c] sm:$0xff]  ;;  %v1801_v29 = vld [vmem:[%s3392_s14 + $0x80] sm:$0xff] }
 0x2ab   : >> { %1796 = vst [vmem:[%s3388_s28 + $0x88] sm:$0xff] %v1741_v4  ;;  %1798 = vst [vmem:[%s3388_s28 + $0x90] sm:$0xff] %v1743_v5  ;;  %v1803_v25 = vld [vmem:[%s3392_s14 + $0x88] sm:$0xff]  ;;  %v1805_v30 = vld [vmem:[%s3392_s14 + $0x90] sm:$0xff] }
 0x2ac   : >> { %1728 = vst [vmem:[%s3388_s28 + $0x30] sm:$0xff] %v1727_v23  ;;  %1730 = vst [vmem:[%s3388_s28 + $0x38] sm:$0xff] %v1729_v24  ;;  %v1807_v31 = vld [vmem:[%s3392_s14 + $0x98] sm:$0xff]  ;;  %v1809_v32 = vld [vmem:[%s3392_s14 + $0xa0] sm:$0xff] }
 0x2ad   : >> { %1756 = vst [vmem:[%s3388_s28 + $0x44] sm:$0xff] %v1755_v26  ;;  %1800 = vst [vmem:[%s3388_s28 + $0x98] sm:$0xff] %v1745_v6  ;;  %v1715_v43 = vld [vmem:[%s3392_s14] sm:$0xff]  ;;  %v1717_v56 = vld [vmem:[%s3392_s14 + $0x8] sm:$0xff] }
 0x2ae   : >> { %1818 = vst [vmem:[%s3388_s28 + $0x84] sm:$0xff] %v1763_v54  ;;  %1820 = vst [vmem:[%s3388_s28 + $0x8c] sm:$0xff] %v1765_v42  ;;  %v1719_v33 = vld [vmem:[%s3392_s14 + $0x10] sm:$0xff]  ;;  %v1721_v34 = vld [vmem:[%s3392_s14 + $0x18] sm:$0xff] }
 0x2af   : >> { %1758 = vst [vmem:[%s3388_s28 + $0x4c] sm:$0xff] %v1757_v55  ;;  %1760 = vst [vmem:[%s3388_s28 + $0x54] sm:$0xff] %v1759_v27  ;;  %v1747_v35 = vld [vmem:[%s3392_s14 + $0x14] sm:$0xff]  ;;  %v1749_v36 = vld [vmem:[%s3392_s14 + $0x1c] sm:$0xff] }
 0x2b0   : >> { %1762 = vst [vmem:[%s3388_s28 + $0x5c] sm:$0xff] %v1761_v14  ;;  %1812 = vst [vmem:[%s3388_s28 + $0x6c] sm:$0xff] %v1757_v55  ;;  %v1751_v59 = vld [vmem:[%s3392_s14 + $0x24] sm:$0xff]  ;;  %v1753_v37 = vld [vmem:[%s3392_s14 + $0x2c] sm:$0xff] }
 0x2b1   : >> { %1814 = vst [vmem:[%s3388_s28 + $0x74] sm:$0xff] %v1759_v27  ;;  %1816 = vst [vmem:[%s3388_s28 + $0x7c] sm:$0xff] %v1761_v14  ;;  %v1833_v39 = vld [vmem:[%s3392_s14 + $0x94] sm:$0xff]  ;;  %v1835_v40 = vld [vmem:[%s3392_s14 + $0x9c] sm:$0xff] }
 0x2b2   : >> { %1822 = vst [vmem:[%s3388_s28 + $0x94] sm:$0xff] %v1767_v10  ;;  %1802 = vst [vmem:[%s3388_s28 + $0xa0] sm:$0xff] %v1801_v29  ;;  %v1837_v17 = vld [vmem:[%s3392_s14 + $0xa4] sm:$0xff]  ;;  %v1839_v47 = vld [vmem:[%s3392_s14 + $0xac] sm:$0xff] }
 0x2b3   : >> { %1804 = vst [vmem:[%s3388_s28 + $0xa8] sm:$0xff] %v1803_v25  ;;  %1806 = vst [vmem:[%s3388_s28 + $0xb0] sm:$0xff] %v1805_v30  ;;  %v1841_v45 = vld [vmem:[%s3392_s14 + $0xb4] sm:$0xff]  ;;  %s5079_s14 = smov %s4685_s12 }
 0x2b4   : >> { %1780 = vst [vmem:[%s3388_s28 + $0x48] sm:$0xff] %v1725_v8  ;;  %1782 = vst [vmem:[%s3388_s28 + $0x50] sm:$0xff] %v1727_v23 }
 0x2b5   : >> { %1784 = vst [vmem:[%s3388_s28 + $0x58] sm:$0xff] %v1729_v24  ;;  %1786 = vst [vmem:[%s3388_s28 + $0x60] sm:$0xff] %v4605_v57 }
 0x2b6   : >> { %1808 = vst [vmem:[%s3388_s28 + $0xb8] sm:$0xff] %v1807_v31  ;;  %1810 = vst [vmem:[%s3388_s28 + $0xc0] sm:$0xff] %v1809_v32 }
 0x2b7   : >> { %1716 = vst [vmem:[%s3388_s28] sm:$0xff] %v1715_v43  ;;  %1824 = vst [vmem:[%s3388_s28 + $0x9c] sm:$0xff] %v4622_v60 }
 0x2b8   : >> { %1826 = vst [vmem:[%s3388_s28 + $0xa4] sm:$0xff] %v1771_v12  ;;  %1828 = vst [vmem:[%s3388_s28 + $0xac] sm:$0xff] %v1773_v2 }
 0x2b9   : >> { %1718 = vst [vmem:[%s3388_s28 + $0x8] sm:$0xff] %v1717_v56  ;;  %1720 = vst [vmem:[%s3388_s28 + $0x10] sm:$0xff] %v1719_v33  ;;  %1711 = sbr.rel (!%p1708_p4) target bundleno = 671 (0x29f), region = 419 }
 0x2ba   : >> { %1722 = vst [vmem:[%s3388_s28 + $0x18] sm:$0xff] %v1721_v34  ;;  %1830 = vst [vmem:[%s3388_s28 + $0xb4] sm:$0xff] %v4636_v3 }
 0x2bb   : >> { %1832 = vst [vmem:[%s3388_s28 + $0xbc] sm:$0xff] %v4643_v21  ;;  %1748 = vst [vmem:[%s3388_s28 + $0x24] sm:$0xff] %v1747_v35 }
 0x2bc   : >> { %1750 = vst [vmem:[%s3388_s28 + $0x2c] sm:$0xff] %v1749_v36  ;;  %1752 = vst [vmem:[%s3388_s28 + $0x34] sm:$0xff] %v1751_v59 }
 0x2bd   : >> { %1754 = vst [vmem:[%s3388_s28 + $0x3c] sm:$0xff] %v1753_v37  ;;  %1834 = vst [vmem:[%s3388_s28 + $0xc4] sm:$0xff] %v1833_v39 }
 0x2be   : >> { %1836 = vst [vmem:[%s3388_s28 + $0xcc] sm:$0xff] %v1835_v40  ;;  %1838 = vst [vmem:[%s3388_s28 + $0xd4] sm:$0xff] %v1837_v17 }
 0x2bf   : >> { %1840 = vst [vmem:[%s3388_s28 + $0xdc] sm:$0xff] %v1839_v47  ;;  %1842 = vst [vmem:[%s3388_s28 + $0xe4] sm:$0xff] %v1841_v45  ;;  %s5078_s28 = smov %s4688_s25 }
 0x2c0 PF: > { %s4751_s20 = sand.u32 15, %s1702_s18   ;;  %s2549_s0 = sshll.u32 %s4572_s17, 11 }
 0x2c1   : > { %s1854_s30 = sshra.s32 %s2549_s0, 4  ;;  %p2511_p0 = scmp.le.s32.totalorder %s4751_s20, 0 }
 0x2c2   : > { %s4755_s11 = scalar_lea.vmem %s4475_s15, %s1854_s30 [#allocation4]   ;;  %s4758_s27 = scalar_lea.vmem %s4559_s10, %s1854_s30  }
 0x2c3   : > { %2351 = sbr.rel (%p2511_p0) target bundleno = 724 (0x2d4), region = 424  ;;  %s5081_s5 = smov (!%p2511_p0), %s4758_s27 }
 0x2c4   : > { %s5082_s7 = smov (!%p2511_p0), %s4755_s11  ;;  %s4767_s29 = smov (!%p2511_p0), 0  }
 0x2c5   : > { %s3414_s6 = smov (!%p2511_p0), 0  }
 0x2ca LB: >> { %v1870_v46 = vld [vmem:[%s3408_s7] sm:$0xff]  ;;  %v1872_v19 = vld [vmem:[%s3408_s7 + $0x14] sm:$0xff]  ;;  %v1874_v18 = vld [vmem:[%s3408_s7 + $0x28] sm:$0xff]  ;;  %s1878_s18 = sadd.s32 1, %s3412_s29  ;;  %s1864_s6 = sadd.s32 1, %s3416_s6   ;;  %s3416_s6 = sphi %s3414_s6, %s1864_s6   ;;  %s3412_s29 = sphi %s4767_s29, %s5083_s29   ;;  %s3408_s7 = sphi %s5082_s7, %s1883_s7   ;;  %s3404_s5 = sphi %s5081_s5, %s1884_s5  }
 0x2cb   : >> { %1871 = vst [vmem:[%s3404_s5] sm:$0xff] %v1870_v46  ;;  %1873 = vst [vmem:[%s3404_s5 + $0x24] sm:$0xff] %v1872_v19  ;;  %v1876_v11 = vld [vmem:[%s3408_s7 + $0x3c] sm:$0xff]  ;;  %p1879_p1 = scmp.ge.s32.totalorder %s1878_s18, %s4751_s20  ;;  %p1863_p2 = scmp.ge.s32.totalorder %s1864_s6, %s4751_s20 }
 0x2cc   : >> { %1875 = vst [vmem:[%s3404_s5 + $0x48] sm:$0xff] %v1874_v18  ;;  %1877 = vst [vmem:[%s3404_s5 + $0x6c] sm:$0xff] %v1876_v11 }
 0x2cd   : >> { %s5121_s18 = smov (%p1879_p1, %s1878_s18), 0  ;;  %1866 = sbr.rel (!%p1863_p2) target bundleno = 714 (0x2ca), region = 430 }
 0x2ce   : >> { %s2512_s17 = sshll.u32 %s5121_s18, 3  ;;  %s5083_s29 = smov %s5121_s18 }
 0x2cf   : >> { %s1883_s7 = scalar_lea.vmem %s4755_s11, %s2512_s17 [#allocation4]   ;;  %s1884_s5 = scalar_lea.vmem %s4758_s27, %s2512_s17  }
 0x2d4 PF: > { %1887 = sbr.rel (%p1698_p5) target bundleno = 797 (0x31d), region = 213  ;;  %s1889_s28 = ssub.s32 (!%p1698_p5), %s4561_s23, %s4565_s24 }
 0x2d5   : > { %s1893_s14 = sshrl.u32 (!%p1698_p5), %s4561_s23, 3  ;;  %s4788_s26 = scalar_lea.vmem (!%p1698_p5), %s4475_s15, %s1889_s28 [#allocation4] }
 0x2d6   : > { %s4791_s13 = scalar_lea.vmem (!%p1698_p5), %s4559_s10, %s1889_s28  ;;  %s4795_s21 = sshrl.u32 (!%p1698_p5), %s1893_s14, 4 }
 0x2d7   : > { %p2514_p3 = scmp.le.s32.totalorder (!%p1698_p5), %s4795_s21, 0 }
 0x2db   : > { %2365 = sbr.rel (%p2514_p3) target bundleno = 771 (0x303), region = 435  ;;  %s5084_s9 = smov (!%p2514_p3), %s4559_s10 }
 0x2dc   : > { %s5085_s8 = smov (!%p2514_p3), %s4475_s15  ;;  %s4804_s12 = smov (!%p2514_p3), 0  }
 0x2dd   : > { %s4806_s25 = smov (!%p2514_p3), 0  }
 0x2e2 LB: >> { %v1930_v44 = vld [vmem:[%s3424_s8 + $0x60] sm:$0xff]  ;;  %v1932_v50 = vld [vmem:[%s3424_s8 + $0x68] sm:$0xff]  ;;  %v1934_v51 = vld [vmem:[%s3424_s8 + $0x70] sm:$0xff]  ;;  %s2034_s20 = sadd.s32 1, %s3428_s12  ;;  %s1900_s25 = sadd.s32 1, %s3432_s25   ;;  %s3432_s25 = sphi %s4806_s25, %s1900_s25   ;;  %s3428_s12 = sphi %s4804_s12, %s5089_s12   ;;  %s3424_s8 = sphi %s5085_s8, %s5088_s8   ;;  %s3420_s9 = sphi %s5084_s9, %s5087_s9  }
 0x2e3   : >> { %1931 = vst [vmem:[%s3420_s9 + $0x60] sm:$0xff] %v1930_v44  ;;  %1933 = vst [vmem:[%s3420_s9 + $0x68] sm:$0xff] %v1932_v50  ;;  %v1936_v13 = vld [vmem:[%s3424_s8 + $0x78] sm:$0xff]  ;;  %v4828_v28 = vld [vmem:[%s3424_s8 + $0x40] sm:$0xff]  ;;  %p4848_p6 = scmp.ge.s32.totalorder %s2034_s20, %s4795_s21  ;;  %p1899_p7 = scmp.ge.s32.totalorder %s1900_s25, %s4795_s21 }
 0x2e4   : >> { %1935 = vst [vmem:[%s3420_s9 + $0x70] sm:$0xff] %v1934_v51  ;;  %v1924_v52 = vld [vmem:[%s3424_s8 + $0x48] sm:$0xff]  ;;  %1937 = vst [vmem:[%s3420_s9 + $0x78] sm:$0xff] %v1936_v13  ;;  %v1926_v15 = vld [vmem:[%s3424_s8 + $0x50] sm:$0xff] }
 0x2e5   : >> { %1923 = vst [vmem:[%s3420_s9 + $0x40] sm:$0xff] %v4828_v28  ;;  %1925 = vst [vmem:[%s3420_s9 + $0x48] sm:$0xff] %v1924_v52  ;;  %v1928_v58 = vld [vmem:[%s3424_s8 + $0x58] sm:$0xff]  ;;  %v1958_v62 = vld [vmem:[%s3424_s8 + $0x64] sm:$0xff]  ;;  %s5123_s20 = smov (%p4848_p6, %s2034_s20), 0 }
 0x2e6   : >> { %v1954_v61 = vld [vmem:[%s3424_s8 + $0x54] sm:$0xff]  ;;  %1927 = vst [vmem:[%s3420_s9 + $0x50] sm:$0xff] %v1926_v15  ;;  %1929 = vst [vmem:[%s3420_s9 + $0x58] sm:$0xff] %v1928_v58  ;;  %v1956_v16 = vld [vmem:[%s3424_s8 + $0x5c] sm:$0xff]  ;;  %s2515_s30 = sshll.u32 %s5123_s20, 7  ;;  %s5089_s12 = smov %s5123_s20 }
 0x2e7   : >> { %1955 = vst [vmem:[%s3420_s9 + $0x64] sm:$0xff] %v1954_v61  ;;  %v4845_v38 = vld [vmem:[%s3424_s8 + $0x6c] sm:$0xff]  ;;  %1957 = vst [vmem:[%s3420_s9 + $0x6c] sm:$0xff] %v1956_v16  ;;  %v1962_v22 = vld [vmem:[%s3424_s8 + $0x74] sm:$0xff]  ;;  %s4908_s11 = scalar_lea.vmem %s4475_s15, %s2515_s30 [#allocation4]   ;;  %s4911_s27 = scalar_lea.vmem %s4559_s10, %s2515_s30  }
 0x2e8   : >> { %1959 = vst [vmem:[%s3420_s9 + $0x74] sm:$0xff] %v1958_v62  ;;  %1961 = vst [vmem:[%s3420_s9 + $0x7c] sm:$0xff] %v4845_v38  ;;  %v1964_v41 = vld [vmem:[%s3424_s8 + $0x7c] sm:$0xff]  ;;  %v4859_v63 = vld [vmem:[%s3424_s8 + $0x84] sm:$0xff] }
 0x2e9   : >> { %1963 = vst [vmem:[%s3420_s9 + $0x84] sm:$0xff] %v1962_v22  ;;  %1965 = vst [vmem:[%s3420_s9 + $0x8c] sm:$0xff] %v1964_v41  ;;  %v4866_v0 = vld [vmem:[%s3424_s8 + $0x8c] sm:$0xff]  ;;  %v1914_v49 = vld [vmem:[%s3424_s8 + $0x20] sm:$0xff] }
 0x2ea   : >> { %1967 = vst [vmem:[%s3420_s9 + $0x94] sm:$0xff] %v4859_v63  ;;  %v1916_v9 = vld [vmem:[%s3424_s8 + $0x28] sm:$0xff]  ;;  %1979 = vst [vmem:[%s3420_s9 + $0x68] sm:$0xff] %v1924_v52  ;;  %v1918_v1 = vld [vmem:[%s3424_s8 + $0x30] sm:$0xff] }
 0x2eb   : >> { %1981 = vst [vmem:[%s3420_s9 + $0x70] sm:$0xff] %v1926_v15  ;;  %1983 = vst [vmem:[%s3420_s9 + $0x78] sm:$0xff] %v1928_v58  ;;  %v1920_v4 = vld [vmem:[%s3424_s8 + $0x38] sm:$0xff]  ;;  %v1950_v57 = vld [vmem:[%s3424_s8 + $0x44] sm:$0xff] }
 0x2ec   : >> { %1969 = vst [vmem:[%s3420_s9 + $0x9c] sm:$0xff] %v4866_v0  ;;  %1915 = vst [vmem:[%s3420_s9 + $0x20] sm:$0xff] %v1914_v49  ;;  %v1946_v5 = vld [vmem:[%s3424_s8 + $0x34] sm:$0xff]  ;;  %v1948_v6 = vld [vmem:[%s3424_s8 + $0x3c] sm:$0xff] }
 0x2ed   : >> { %1917 = vst [vmem:[%s3420_s9 + $0x28] sm:$0xff] %v1916_v9  ;;  %1985 = vst [vmem:[%s3420_s9 + $0x80] sm:$0xff] %v1930_v44  ;;  %v1952_v48 = vld [vmem:[%s3424_s8 + $0x4c] sm:$0xff]  ;;  %v1992_v20 = vld [vmem:[%s3424_s8 + $0x80] sm:$0xff] }
 0x2ee   : >> { %1987 = vst [vmem:[%s3420_s9 + $0x88] sm:$0xff] %v1932_v50  ;;  %1989 = vst [vmem:[%s3420_s9 + $0x90] sm:$0xff] %v1934_v51  ;;  %v1994_v53 = vld [vmem:[%s3424_s8 + $0x88] sm:$0xff]  ;;  %v1996_v54 = vld [vmem:[%s3424_s8 + $0x90] sm:$0xff] }
 0x2ef   : >> { %1919 = vst [vmem:[%s3420_s9 + $0x30] sm:$0xff] %v1918_v1  ;;  %1921 = vst [vmem:[%s3420_s9 + $0x38] sm:$0xff] %v1920_v4  ;;  %v1998_v42 = vld [vmem:[%s3424_s8 + $0x98] sm:$0xff]  ;;  %v2000_v10 = vld [vmem:[%s3424_s8 + $0xa0] sm:$0xff] }
 0x2f0   : >> { %1947 = vst [vmem:[%s3420_s9 + $0x44] sm:$0xff] %v1946_v5  ;;  %1991 = vst [vmem:[%s3420_s9 + $0x98] sm:$0xff] %v1936_v13  ;;  %v1906_v60 = vld [vmem:[%s3424_s8] sm:$0xff]  ;;  %v1908_v12 = vld [vmem:[%s3424_s8 + $0x8] sm:$0xff] }
 0x2f1   : >> { %2009 = vst [vmem:[%s3420_s9 + $0x84] sm:$0xff] %v1954_v61  ;;  %2011 = vst [vmem:[%s3420_s9 + $0x8c] sm:$0xff] %v1956_v16  ;;  %v1910_v2 = vld [vmem:[%s3424_s8 + $0x10] sm:$0xff]  ;;  %v1912_v3 = vld [vmem:[%s3424_s8 + $0x18] sm:$0xff] }
 0x2f2   : >> { %1949 = vst [vmem:[%s3420_s9 + $0x4c] sm:$0xff] %v1948_v6  ;;  %1951 = vst [vmem:[%s3420_s9 + $0x54] sm:$0xff] %v1950_v57  ;;  %v1938_v21 = vld [vmem:[%s3424_s8 + $0x14] sm:$0xff]  ;;  %v1940_v7 = vld [vmem:[%s3424_s8 + $0x1c] sm:$0xff] }
 0x2f3   : >> { %1953 = vst [vmem:[%s3420_s9 + $0x5c] sm:$0xff] %v1952_v48  ;;  %2003 = vst [vmem:[%s3420_s9 + $0x6c] sm:$0xff] %v1948_v6  ;;  %v1942_v8 = vld [vmem:[%s3424_s8 + $0x24] sm:$0xff]  ;;  %v1944_v23 = vld [vmem:[%s3424_s8 + $0x2c] sm:$0xff] }
 0x2f4   : >> { %2005 = vst [vmem:[%s3420_s9 + $0x74] sm:$0xff] %v1950_v57  ;;  %2007 = vst [vmem:[%s3420_s9 + $0x7c] sm:$0xff] %v1952_v48  ;;  %v2024_v24 = vld [vmem:[%s3424_s8 + $0x94] sm:$0xff]  ;;  %v2026_v26 = vld [vmem:[%s3424_s8 + $0x9c] sm:$0xff] }
 0x2f5   : >> { %2013 = vst [vmem:[%s3420_s9 + $0x94] sm:$0xff] %v1958_v62  ;;  %1993 = vst [vmem:[%s3420_s9 + $0xa0] sm:$0xff] %v1992_v20  ;;  %v2028_v55 = vld [vmem:[%s3424_s8 + $0xa4] sm:$0xff]  ;;  %v2030_v27 = vld [vmem:[%s3424_s8 + $0xac] sm:$0xff] }
 0x2f6   : >> { %1995 = vst [vmem:[%s3420_s9 + $0xa8] sm:$0xff] %v1994_v53  ;;  %1997 = vst [vmem:[%s3420_s9 + $0xb0] sm:$0xff] %v1996_v54  ;;  %v2032_v14 = vld [vmem:[%s3424_s8 + $0xb4] sm:$0xff]  ;;  %s5088_s8 = smov %s4908_s11 }
 0x2f7   : >> { %1971 = vst [vmem:[%s3420_s9 + $0x48] sm:$0xff] %v1916_v9  ;;  %1973 = vst [vmem:[%s3420_s9 + $0x50] sm:$0xff] %v1918_v1 }
 0x2f8   : >> { %1975 = vst [vmem:[%s3420_s9 + $0x58] sm:$0xff] %v1920_v4  ;;  %1977 = vst [vmem:[%s3420_s9 + $0x60] sm:$0xff] %v4828_v28 }
 0x2f9   : >> { %1999 = vst [vmem:[%s3420_s9 + $0xb8] sm:$0xff] %v1998_v42  ;;  %2001 = vst [vmem:[%s3420_s9 + $0xc0] sm:$0xff] %v2000_v10 }
 0x2fa   : >> { %1907 = vst [vmem:[%s3420_s9] sm:$0xff] %v1906_v60  ;;  %2015 = vst [vmem:[%s3420_s9 + $0x9c] sm:$0xff] %v4845_v38 }
 0x2fb   : >> { %2017 = vst [vmem:[%s3420_s9 + $0xa4] sm:$0xff] %v1962_v22  ;;  %2019 = vst [vmem:[%s3420_s9 + $0xac] sm:$0xff] %v1964_v41 }
 0x2fc   : >> { %1909 = vst [vmem:[%s3420_s9 + $0x8] sm:$0xff] %v1908_v12  ;;  %1911 = vst [vmem:[%s3420_s9 + $0x10] sm:$0xff] %v1910_v2  ;;  %1902 = sbr.rel (!%p1899_p7) target bundleno = 738 (0x2e2), region = 441 }
 0x2fd   : >> { %1913 = vst [vmem:[%s3420_s9 + $0x18] sm:$0xff] %v1912_v3  ;;  %2021 = vst [vmem:[%s3420_s9 + $0xb4] sm:$0xff] %v4859_v63 }
 0x2fe   : >> { %2023 = vst [vmem:[%s3420_s9 + $0xbc] sm:$0xff] %v4866_v0  ;;  %1939 = vst [vmem:[%s3420_s9 + $0x24] sm:$0xff] %v1938_v21 }
 0x2ff   : >> { %1941 = vst [vmem:[%s3420_s9 + $0x2c] sm:$0xff] %v1940_v7  ;;  %1943 = vst [vmem:[%s3420_s9 + $0x34] sm:$0xff] %v1942_v8 }
 0x300   : >> { %1945 = vst [vmem:[%s3420_s9 + $0x3c] sm:$0xff] %v1944_v23  ;;  %2025 = vst [vmem:[%s3420_s9 + $0xc4] sm:$0xff] %v2024_v24 }
 0x301   : >> { %2027 = vst [vmem:[%s3420_s9 + $0xcc] sm:$0xff] %v2026_v26  ;;  %2029 = vst [vmem:[%s3420_s9 + $0xd4] sm:$0xff] %v2028_v55 }
 0x302   : >> { %2031 = vst [vmem:[%s3420_s9 + $0xdc] sm:$0xff] %v2030_v27  ;;  %2033 = vst [vmem:[%s3420_s9 + $0xe4] sm:$0xff] %v2032_v14  ;;  %s5087_s9 = smov %s4911_s27 }
 0x303 PF: > { %s4974_s5 = sand.u32 15, %s1893_s14   ;;  %s2551_s7 = sshll.u32 %s4795_s21, 11 }
 0x304   : > { %s2045_s29 = sshra.s32 %s2551_s7, 4  ;;  %p2520_p8 = scmp.le.s32.totalorder %s4974_s5, 0 }
 0x305   : > { %s4978_s6 = scalar_lea.vmem %s4475_s15, %s2045_s29 [#allocation4]   ;;  %s4981_s18 = scalar_lea.vmem %s4559_s10, %s2045_s29  }
 0x306   : > { %2379 = sbr.rel (%p2520_p8) target bundleno = 791 (0x317), region = 446  ;;  %s5090_s17 = smov (!%p2520_p8), %s4981_s18 }
 0x307   : > { %s5091_s28 = smov (!%p2520_p8), %s4978_s6  ;;  %s4990_s9 = smov (!%p2520_p8), 0  }
 0x308   : > { %s3446_s8 = smov (!%p2520_p8), 0  }
 0x30d LB: >> { %v2061_v29 = vld [vmem:[%s3440_s28] sm:$0xff]  ;;  %v2063_v25 = vld [vmem:[%s3440_s28 + $0x14] sm:$0xff]  ;;  %v2065_v30 = vld [vmem:[%s3440_s28 + $0x28] sm:$0xff]  ;;  %s2069_s14 = sadd.s32 1, %s3444_s9  ;;  %s2055_s8 = sadd.s32 1, %s3448_s8   ;;  %s3448_s8 = sphi %s3446_s8, %s2055_s8   ;;  %s3444_s9 = sphi %s4990_s9, %s5092_s9   ;;  %s3440_s28 = sphi %s5091_s28, %s2074_s28   ;;  %s3436_s17 = sphi %s5090_s17, %s2075_s17  }
 0x30e   : >> { %2062 = vst [vmem:[%s3436_s17] sm:$0xff] %v2061_v29  ;;  %2064 = vst [vmem:[%s3436_s17 + $0x24] sm:$0xff] %v2063_v25  ;;  %v2067_v31 = vld [vmem:[%s3440_s28 + $0x3c] sm:$0xff]  ;;  %p2070_p9 = scmp.ge.s32.totalorder %s2069_s14, %s4974_s5  ;;  %p2054_p10 = scmp.ge.s32.totalorder %s2055_s8, %s4974_s5 }
 0x30f   : >> { %2066 = vst [vmem:[%s3436_s17 + $0x48] sm:$0xff] %v2065_v30  ;;  %2068 = vst [vmem:[%s3436_s17 + $0x6c] sm:$0xff] %v2067_v31 }
 0x310   : >> { %s5125_s14 = smov (%p2070_p9, %s2069_s14), 0  ;;  %2057 = sbr.rel (!%p2054_p10) target bundleno = 781 (0x30d), region = 452 }
 0x311   : >> { %s2521_s21 = sshll.u32 %s5125_s14, 3  ;;  %s5092_s9 = smov %s5125_s14 }
 0x312   : >> { %s2074_s28 = scalar_lea.vmem %s4978_s6, %s2521_s21 [#allocation4]   ;;  %s2075_s17 = scalar_lea.vmem %s4981_s18, %s2521_s21  }
 0x317 PF: > { %s3455_s12 = smov 0  }
 0x318   : > { %s2076_s25 = sshllo.u32 %s3455_s12, %s4565_s24 }
 0x319   : > { %v2085_v32 = vld [vmem:[%s4788_s26] sm:%s2076_s25]  ;;  %v2087_v43 = vld [vmem:[%s4788_s26 + $0x14] sm:%s2076_s25] }
 0x31a   : > { %2086 = vst [vmem:[%s4791_s13] sm:%s2076_s25] %v2085_v32  ;;  %2088 = vst [vmem:[%s4791_s13 + $0x24] sm:%s2076_s25] %v2087_v43 }
 0x31b   : > { %v2089_v56 = vld [vmem:[%s4788_s26 + $0x28] sm:%s2076_s25]  ;;  %v2091_v33 = vld [vmem:[%s4788_s26 + $0x3c] sm:%s2076_s25] }
 0x31c   : > { %2090 = vst [vmem:[%s4791_s13 + $0x48] sm:%s2076_s25] %v2089_v56  ;;  %2092 = vst [vmem:[%s4791_s13 + $0x6c] sm:%s2076_s25] %v2091_v33 }
 0x31d PF: > { %p2523_p5 = scmp.ge.u32.totalorder %s4561_s23, 8 }
 0x31e   : > { %s3456_s20 = smov (!%p2523_p5), 0  }
 0x31f   : > { %1679 = sbr.rel (%p2523_p5) target bundleno = 806 (0x326), region = 184  ;;  %s1680_s24 = sshllo.u32 (!%p2523_p5), %s3456_s20, %s4561_s23 }
 0x320   : > { %v1689_v34 = vld [vmem:[%s4475_s15] sm:%s1680_s24] (!%p2523_p5)  ;;  %v1691_v35 = vld [vmem:[%s4475_s15 + $0x14] sm:%s1680_s24] (!%p2523_p5) }
 0x321   : > { %1690 = vst [vmem:[%s4559_s10] sm:%s1680_s24] (!%p2523_p5), %v1689_v34  ;;  %1692 = vst [vmem:[%s4559_s10 + $0x24] sm:%s1680_s24] (!%p2523_p5), %v1691_v35 }
 0x322   : > { %v1693_v36 = vld [vmem:[%s4475_s15 + $0x28] sm:%s1680_s24] (!%p2523_p5)  ;;  %v1695_v59 = vld [vmem:[%s4475_s15 + $0x3c] sm:%s1680_s24] (!%p2523_p5) }
 0x323   : > { %1694 = vst [vmem:[%s4559_s10 + $0x48] sm:%s1680_s24] (!%p2523_p5), %v1693_v36  ;;  %1696 = vst [vmem:[%s4559_s10 + $0x6c] sm:%s1680_s24] (!%p2523_p5), %v1695_v59 }
 0x326 PF: > { %p11_p11 = scmp.ge.s32.totalorder %s3501_s19, 4   ;;  %s5093_s15 = smov %s3252_s16 }
 0x327   : > { %s5094_s16 = smov %s3511_s22  ;;  %s5095_s17 = smov %s3501_s19 }
 0x328   :  { %13 = sbr.rel (!%p11_p11) target bundleno = 4 (0x4), region = 463 }

// kernel: fno_mesh2d_forward.10
= control target key start
LH: loop header
LB: loop body
LE: loop exit
PB: predicated region body
PF: predicated region fallthrough
CT: control target
= control target key end

     0   :  { %s4670_s0 = inlined_call_operand.vmem [shape: bf16[32,1152], index: 0, kind: input, shape index: {}]   ;;  %s4671_s1 = inlined_call_operand.vmem [shape: bf16[32,32], index: 1, kind: input, shape index: {}]   ;;  %s4672_s2 = inlined_call_operand.vmem [shape: f32[32,1], index: 2, kind: input, shape index: {}]   ;;  %s4673_s3 = inlined_call_operand.vmem [shape: f32[32,1152], index: 3, kind: input, shape index: {}]   ;;  %s4674_s4 = inlined_call_operand.vmem [shape: bf16[32,1152], index: 4, kind: output, shape index: {}]  }
   0x1   :  { %4675 = sst [smem:[#allocation5_spill]] %s4670_s0 }
   0x2   :  { %s3262_s15 = smov 0   ;;  %s3264_s16 = smov 0  }
   0x3   :  { %s3266_s17 = smov 0  }
   0x4 LB: > { %s3278_s18 = sadd.s32 4294967295, %s3036_s17   ;;  %s3281_s19 = sadd.s32 1, %s3036_s17   ;;  %s3036_s17 = sphi %s3266_s17, %s4731_s17   ;;  %s3032_s16 = sphi %s3264_s16, %s4730_s16   ;;  %s3028_s15 = sphi %s3262_s15, %s4729_s15  }
   0x5   : > { %s18_s20 = ssub.s32 %s3036_s17, %s3281_s19  ;;  %s21_s21 = sadd.s32 1, %s3032_s16 }
   0x6   : > { %p19_p0 = scmp.eq.s32.totalorder %s18_s20, 0  ;;  %p28_p1 = scmp.ne.s32.totalorder %s3032_s16, %s3028_s15 }
   0x7   : > { %p29_p2 = scmp.eq.s32.totalorder %s3036_s17, 0  ;;  %p126_p3 = scmp.eq.s32.totalorder %s3278_s18, 1 }
   0x8   : > { %s3291_s22 = scalar_select %p19_p0, %s3032_s16, %s21_s21  }
   0x9   : > { %p3293_p4 = por %p29_p2, %p28_p1  ;;  %p3297_p5 = por %p126_p3, %p28_p1 }
   0xa   : > { %p2237_p6 = scmp.ge.s32.totalorder %s3036_s17, 2 }
   0xc   : > { %154 = sbr.rel (%p2237_p6) target bundleno = 335 (0x14f), region = 24 }
  0x13   : > { %157 = sbr.rel (!%p3293_p4) target bundleno = 193 (0xc1), region = 28  ;;  %s159_s25 = sand.u32 (%p3293_p4), 1, %s3032_s16  }
  0x14   : > { %s162_s26 = smul.u32 (%p3293_p4), 5, %s3036_s17  ;;  %s4678_s0 = sld [smem:[#allocation5_spill]] (%p3293_p4) }
  0x15   : > { %s2385_s27 = smul.u32 (%p3293_p4), 80, %s159_s25 }
  0x16   : > { %s163_s28 = ssub.s32 (%p3293_p4), 9, %s162_s26  ;;  %s2346_s29 = smul.u32 (%p3293_p4), 20, %s3036_s17 }
  0x17   : > { %p164_p7 = scmp.lt.s32.totalorder (%p3293_p4), %s163_s28, 5  ;;  %s3314_s9 = scalar_lea.vmem (%p3293_p4), [#allocation2], %s2385_s27  }
  0x1a   : > { %s3310_s6 = scalar_lea.vmem %s4678_s0, %s2346_s29   ;;  %s4733_s28 = smov (!%p164_p7, %s163_s28), 5 }
  0x1b   : > { %s2238_s7 = sshll.u32 %s4733_s28, 8  ;;  %s3312_s8 = sshll.u32 %s4733_s28, 2 }
  0x1c   : > { %p2242_p8 = scmp.eq.s32.totalorder %s2238_s7, 0 }
  0x1d   : > { %p174_p9 = scmp.lt.u32.totalorder (!%p2242_p8), %s3312_s8, 8 }
  0x1e   : > { %173 = sbr.rel (%p2242_p8) target bundleno = 193 (0xc1), region = 32 }
  0x25   : > { %177 = sbr.rel (%p174_p9) target bundleno = 184 (0xb8), region = 36  ;;  %s3318_s10 = sand.u32 (!%p174_p9), 7, %s3312_s8  }
  0x26   : > { %p199_p10 = scmp.eq.s32.totalorder (!%p174_p9), %s3318_s10, 0  ;;  %p2243_p11 = scmp.ne.s32.totalorder (!%p174_p9), %s3318_s10, 0 }
  0x2c   : > { %202 = sbr.rel (%p2243_p11) target bundleno = 111 (0x6f), region = 51  ;;  %s203_s11 = sshrl.u32 (!%p2243_p11), %s3312_s8, 3 }
  0x2d   : > { %s3325_s12 = sshrl.u32 (!%p2243_p11), %s203_s11, 4 }
  0x2e   : > { %p2244_p12 = scmp.le.s32.totalorder (!%p2243_p11), %s3325_s12, 0 }
  0x33   : > { %2045 = sbr.rel (%p2244_p12) target bundleno = 91 (0x5b), region = 325  ;;  %s4679_s13 = smov (!%p2244_p12), %s3314_s9 }
  0x34   : > { %s4680_s14 = smov (!%p2244_p12), %s3310_s6  ;;  %s3334_s20 = smov (!%p2244_p12), 0  }
  0x35   : > { %s3336_s21 = smov (!%p2244_p12), 0  }
  0x3a LB: >> { %v228_v0 = vld [vmem:[%s3044_s14 + $0x30] sm:$0xff]  ;;  %v230_v1 = vld [vmem:[%s3044_s14 + $0x38] sm:$0xff]  ;;  %v232_v2 = vld [vmem:[%s3044_s14 + $0x40] sm:$0xff]  ;;  %s344_s25 = sadd.s32 1, %s3048_s20  ;;  %s210_s21 = sadd.s32 1, %s3052_s21   ;;  %s3052_s21 = sphi %s3336_s21, %s210_s21   ;;  %s3048_s20 = sphi %s3334_s20, %s4683_s20   ;;  %s3044_s14 = sphi %s4680_s14, %s4682_s14   ;;  %s3040_s13 = sphi %s4679_s13, %s4681_s13  }
  0x3b   : >> { %229 = vst [vmem:[%s3040_s13 + $0x30] sm:$0xff] %v228_v0  ;;  %231 = vst [vmem:[%s3040_s13 + $0x38] sm:$0xff] %v230_v1  ;;  %v3357_v3 = vld [vmem:[%s3044_s14 + $0x48] sm:$0xff]  ;;  %v3360_v4 = vld [vmem:[%s3044_s14 + $0x50] sm:$0xff]  ;;  %p345_p13 = scmp.ge.s32.totalorder %s344_s25, %s3325_s12  ;;  %p209_p0 = scmp.ge.s32.totalorder %s210_s21, %s3325_s12 }
  0x3c   : >> { %233 = vst [vmem:[%s3040_s13 + $0x40] sm:$0xff] %v232_v2  ;;  %v238_v5 = vld [vmem:[%s3044_s14 + $0x58] sm:$0xff]  ;;  %235 = vst [vmem:[%s3040_s13 + $0x48] sm:$0xff] %v3357_v3  ;;  %v240_v6 = vld [vmem:[%s3044_s14 + $0x60] sm:$0xff] }
  0x3d   : >> { %237 = vst [vmem:[%s3040_s13 + $0x50] sm:$0xff] %v3360_v4  ;;  %239 = vst [vmem:[%s3040_s13 + $0x58] sm:$0xff] %v238_v5  ;;  %v242_v7 = vld [vmem:[%s3044_s14 + $0x68] sm:$0xff]  ;;  %v244_v8 = vld [vmem:[%s3044_s14 + $0x70] sm:$0xff]  ;;  %s4735_s25 = smov (%p345_p13, %s344_s25), 0 }
  0x3e   : >> { %241 = vst [vmem:[%s3040_s13 + $0x60] sm:$0xff] %v240_v6  ;;  %243 = vst [vmem:[%s3040_s13 + $0x68] sm:$0xff] %v242_v7  ;;  %v246_v9 = vld [vmem:[%s3044_s14 + $0x78] sm:$0xff]  ;;  %v224_v10 = vld [vmem:[%s3044_s14 + $0x20] sm:$0xff]  ;;  %s2245_s26 = sshll.u32 %s4735_s25, 7  ;;  %s4683_s20 = smov %s4735_s25 }
  0x3f   : >> { %245 = vst [vmem:[%s3040_s13 + $0x70] sm:$0xff] %v244_v8  ;;  %v226_v11 = vld [vmem:[%s3044_s14 + $0x28] sm:$0xff]  ;;  %247 = vst [vmem:[%s3040_s13 + $0x78] sm:$0xff] %v246_v9  ;;  %v260_v14 = vld [vmem:[%s3044_s14 + $0x54] sm:$0xff]  ;;  %s3422_s27 = scalar_lea.vmem %s3310_s6, %s2245_s26   ;;  %s3425_s28 = scalar_lea.vmem %s3314_s9, %s2245_s26 [#allocation2]  }
  0x40   : >> { %225 = vst [vmem:[%s3040_s13 + $0x20] sm:$0xff] %v224_v10  ;;  %227 = vst [vmem:[%s3040_s13 + $0x28] sm:$0xff] %v226_v11  ;;  %v256_v12 = vld [vmem:[%s3044_s14 + $0x44] sm:$0xff]  ;;  %v258_v13 = vld [vmem:[%s3044_s14 + $0x4c] sm:$0xff] }
  0x41   : >> { %257 = vst [vmem:[%s3040_s13 + $0x34] sm:$0xff] %v256_v12  ;;  %259 = vst [vmem:[%s3040_s13 + $0x3c] sm:$0xff] %v258_v13  ;;  %v262_v15 = vld [vmem:[%s3044_s14 + $0x5c] sm:$0xff]  ;;  %v264_v16 = vld [vmem:[%s3044_s14 + $0x64] sm:$0xff] }
  0x42   : >> { %261 = vst [vmem:[%s3040_s13 + $0x44] sm:$0xff] %v260_v14  ;;  %v266_v17 = vld [vmem:[%s3044_s14 + $0x6c] sm:$0xff]  ;;  %263 = vst [vmem:[%s3040_s13 + $0x4c] sm:$0xff] %v262_v15  ;;  %v268_v18 = vld [vmem:[%s3044_s14 + $0x74] sm:$0xff] }
  0x43   : >> { %265 = vst [vmem:[%s3040_s13 + $0x54] sm:$0xff] %v264_v16  ;;  %267 = vst [vmem:[%s3040_s13 + $0x5c] sm:$0xff] %v266_v17  ;;  %v270_v19 = vld [vmem:[%s3044_s14 + $0x7c] sm:$0xff]  ;;  %v272_v20 = vld [vmem:[%s3044_s14 + $0x84] sm:$0xff] }
  0x44   : >> { %285 = vst [vmem:[%s3040_s13 + $0x38] sm:$0xff] %v238_v5  ;;  %287 = vst [vmem:[%s3040_s13 + $0x40] sm:$0xff] %v240_v6  ;;  %v274_v21 = vld [vmem:[%s3044_s14 + $0x8c] sm:$0xff]  ;;  %v276_v22 = vld [vmem:[%s3044_s14 + $0x94] sm:$0xff] }
  0x45   : >> { %269 = vst [vmem:[%s3040_s13 + $0x64] sm:$0xff] %v268_v18  ;;  %271 = vst [vmem:[%s3040_s13 + $0x6c] sm:$0xff] %v270_v19  ;;  %v278_v23 = vld [vmem:[%s3044_s14 + $0x9c] sm:$0xff]  ;;  %v220_v24 = vld [vmem:[%s3044_s14 + $0x10] sm:$0xff] }
  0x46   : >> { %273 = vst [vmem:[%s3040_s13 + $0x74] sm:$0xff] %v272_v20  ;;  %289 = vst [vmem:[%s3040_s13 + $0x48] sm:$0xff] %v242_v7  ;;  %v222_v25 = vld [vmem:[%s3044_s14 + $0x18] sm:$0xff]  ;;  %v294_v28 = vld [vmem:[%s3044_s14 + $0x80] sm:$0xff] }
  0x47   : >> { %291 = vst [vmem:[%s3040_s13 + $0x50] sm:$0xff] %v244_v8  ;;  %293 = vst [vmem:[%s3040_s13 + $0x58] sm:$0xff] %v246_v9  ;;  %v252_v26 = vld [vmem:[%s3044_s14 + $0x34] sm:$0xff]  ;;  %v254_v27 = vld [vmem:[%s3044_s14 + $0x3c] sm:$0xff] }
  0x48   : >> { %313 = vst [vmem:[%s3040_s13 + $0x3c] sm:$0xff] %v266_v17  ;;  %275 = vst [vmem:[%s3040_s13 + $0x7c] sm:$0xff] %v274_v21  ;;  %v296_v29 = vld [vmem:[%s3044_s14 + $0x88] sm:$0xff]  ;;  %v298_v30 = vld [vmem:[%s3044_s14 + $0x90] sm:$0xff] }
  0x49   : >> { %277 = vst [vmem:[%s3040_s13 + $0x84] sm:$0xff] %v276_v22  ;;  %279 = vst [vmem:[%s3040_s13 + $0x8c] sm:$0xff] %v278_v23  ;;  %v300_v31 = vld [vmem:[%s3044_s14 + $0x98] sm:$0xff]  ;;  %v302_v32 = vld [vmem:[%s3044_s14 + $0xa0] sm:$0xff] }
  0x4a   : >> { %315 = vst [vmem:[%s3040_s13 + $0x44] sm:$0xff] %v268_v18  ;;  %317 = vst [vmem:[%s3040_s13 + $0x4c] sm:$0xff] %v270_v19  ;;  %v304_v33 = vld [vmem:[%s3044_s14 + $0xa8] sm:$0xff]  ;;  %v306_v34 = vld [vmem:[%s3044_s14 + $0xb0] sm:$0xff] }
  0x4b   : >> { %319 = vst [vmem:[%s3040_s13 + $0x54] sm:$0xff] %v272_v20  ;;  %221 = vst [vmem:[%s3040_s13 + $0x10] sm:$0xff] %v220_v24  ;;  %v308_v35 = vld [vmem:[%s3044_s14 + $0xb8] sm:$0xff]  ;;  %v310_v36 = vld [vmem:[%s3044_s14 + $0xc0] sm:$0xff] }
  0x4c   : >> { %223 = vst [vmem:[%s3040_s13 + $0x18] sm:$0xff] %v222_v25  ;;  %253 = vst [vmem:[%s3040_s13 + $0x24] sm:$0xff] %v252_v26  ;;  %v216_v37 = vld [vmem:[%s3044_s14] sm:$0xff]  ;;  %v218_v38 = vld [vmem:[%s3044_s14 + $0x8] sm:$0xff] }
  0x4d   : >> { %255 = vst [vmem:[%s3040_s13 + $0x2c] sm:$0xff] %v254_v27  ;;  %295 = vst [vmem:[%s3040_s13 + $0x60] sm:$0xff] %v294_v28  ;;  %v248_v39 = vld [vmem:[%s3044_s14 + $0x24] sm:$0xff]  ;;  %v250_v40 = vld [vmem:[%s3044_s14 + $0x2c] sm:$0xff] }
  0x4e   : >> { %297 = vst [vmem:[%s3040_s13 + $0x68] sm:$0xff] %v296_v29  ;;  %299 = vst [vmem:[%s3040_s13 + $0x70] sm:$0xff] %v298_v30  ;;  %v326_v41 = vld [vmem:[%s3044_s14 + $0xa4] sm:$0xff]  ;;  %v328_v42 = vld [vmem:[%s3044_s14 + $0xac] sm:$0xff] }
  0x4f   : >> { %301 = vst [vmem:[%s3040_s13 + $0x78] sm:$0xff] %v300_v31  ;;  %303 = vst [vmem:[%s3040_s13 + $0x80] sm:$0xff] %v302_v32  ;;  %v330_v43 = vld [vmem:[%s3044_s14 + $0xb4] sm:$0xff]  ;;  %v332_v44 = vld [vmem:[%s3044_s14 + $0xbc] sm:$0xff] }
  0x50   : >> { %281 = vst [vmem:[%s3040_s13 + $0x28] sm:$0xff] %v3357_v3  ;;  %283 = vst [vmem:[%s3040_s13 + $0x30] sm:$0xff] %v3360_v4  ;;  %v334_v45 = vld [vmem:[%s3044_s14 + $0xc4] sm:$0xff]  ;;  %v336_v46 = vld [vmem:[%s3044_s14 + $0xcc] sm:$0xff] }
  0x51   : >> { %321 = vst [vmem:[%s3040_s13 + $0x5c] sm:$0xff] %v274_v21  ;;  %323 = vst [vmem:[%s3040_s13 + $0x64] sm:$0xff] %v276_v22  ;;  %v338_v47 = vld [vmem:[%s3044_s14 + $0xd4] sm:$0xff]  ;;  %v340_v48 = vld [vmem:[%s3044_s14 + $0xdc] sm:$0xff] }
  0x52   : >> { %305 = vst [vmem:[%s3040_s13 + $0x88] sm:$0xff] %v304_v33  ;;  %307 = vst [vmem:[%s3040_s13 + $0x90] sm:$0xff] %v306_v34  ;;  %v342_v49 = vld [vmem:[%s3044_s14 + $0xe4] sm:$0xff]  ;;  %s4682_s14 = smov %s3422_s27 }
  0x53   : >> { %309 = vst [vmem:[%s3040_s13 + $0x98] sm:$0xff] %v308_v35  ;;  %325 = vst [vmem:[%s3040_s13 + $0x6c] sm:$0xff] %v278_v23 }
  0x54   : >> { %311 = vst [vmem:[%s3040_s13 + $0xa0] sm:$0xff] %v310_v36  ;;  %217 = vst [vmem:[%s3040_s13] sm:$0xff] %v216_v37  ;;  %212 = sbr.rel (!%p209_p0) target bundleno = 58 (0x3a), region = 331 }
  0x55   : >> { %219 = vst [vmem:[%s3040_s13 + $0x8] sm:$0xff] %v218_v38  ;;  %249 = vst [vmem:[%s3040_s13 + $0x14] sm:$0xff] %v248_v39 }
  0x56   : >> { %251 = vst [vmem:[%s3040_s13 + $0x1c] sm:$0xff] %v250_v40  ;;  %327 = vst [vmem:[%s3040_s13 + $0x74] sm:$0xff] %v326_v41 }
  0x57   : >> { %329 = vst [vmem:[%s3040_s13 + $0x7c] sm:$0xff] %v328_v42  ;;  %331 = vst [vmem:[%s3040_s13 + $0x84] sm:$0xff] %v330_v43 }
  0x58   : >> { %333 = vst [vmem:[%s3040_s13 + $0x8c] sm:$0xff] %v332_v44  ;;  %335 = vst [vmem:[%s3040_s13 + $0x94] sm:$0xff] %v334_v45 }
  0x59   : >> { %337 = vst [vmem:[%s3040_s13 + $0x9c] sm:$0xff] %v336_v46  ;;  %339 = vst [vmem:[%s3040_s13 + $0xa4] sm:$0xff] %v338_v47 }
  0x5a   : >> { %341 = vst [vmem:[%s3040_s13 + $0xac] sm:$0xff] %v340_v48  ;;  %343 = vst [vmem:[%s3040_s13 + $0xb4] sm:$0xff] %v342_v49  ;;  %s4681_s13 = smov %s3425_s28 }
  0x5b PF: > { %s3498_s29 = sand.u32 15, %s203_s11   ;;  %s2347_s30 = sshll.u32 %s3325_s12, 11 }
  0x5c   : > { %s355_s5 = sshra.s32 %s2347_s30, 4  ;;  %p2250_p1 = scmp.le.s32.totalorder %s3498_s29, 0 }
  0x5d   : > { %s3502_s7 = scalar_lea.vmem %s3310_s6, %s355_s5   ;;  %s3505_s26 = scalar_lea.vmem %s3314_s9, %s355_s5 [#allocation2]  }
  0x5e   : > { %2059 = sbr.rel (%p2250_p1) target bundleno = 111 (0x6f), region = 336  ;;  %s4684_s13 = smov (!%p2250_p1), %s3505_s26 }
  0x5f   : > { %s4685_s14 = smov (!%p2250_p1), %s3502_s7  ;;  %s3514_s20 = smov (!%p2250_p1), 0  }
  0x60   : > { %s3066_s21 = smov (!%p2250_p1), 0  }
  0x65 LB: >> { %v371_v50 = vld [vmem:[%s3060_s14] sm:$0xff]  ;;  %v375_v52 = vld [vmem:[%s3060_s14 + $0x48] sm:$0xff]  ;;  %s379_s11 = sadd.s32 1, %s3064_s20  ;;  %s365_s21 = sadd.s32 1, %s3068_s21   ;;  %s3068_s21 = sphi %s3066_s21, %s365_s21   ;;  %s3064_s20 = sphi %s3514_s20, %s4686_s20   ;;  %s3060_s14 = sphi %s4685_s14, %s384_s14   ;;  %s3056_s13 = sphi %s4684_s13, %s385_s13  }
  0x66   : >> { %v373_v51 = vld [vmem:[%s3060_s14 + $0x24] sm:$0xff]  ;;  %372 = vst [vmem:[%s3056_s13] sm:$0xff] %v371_v50  ;;  %376 = vst [vmem:[%s3056_s13 + $0x28] sm:$0xff] %v375_v52  ;;  %v377_v53 = vld [vmem:[%s3060_s14 + $0x6c] sm:$0xff]  ;;  %p380_p2 = scmp.ge.s32.totalorder %s379_s11, %s3498_s29  ;;  %p364_p3 = scmp.ge.s32.totalorder %s365_s21, %s3498_s29 }
  0x67   : >> { %374 = vst [vmem:[%s3056_s13 + $0x14] sm:$0xff] %v373_v51  ;;  %378 = vst [vmem:[%s3056_s13 + $0x3c] sm:$0xff] %v377_v53 }
  0x68   : >> { %s4737_s11 = smov (%p380_p2, %s379_s11), 0  ;;  %367 = sbr.rel (!%p364_p3) target bundleno = 101 (0x65), region = 342 }
  0x69   : >> { %s2251_s12 = sshll.u32 %s4737_s11, 3  ;;  %s4686_s20 = smov %s4737_s11 }
  0x6a   : >> { %s384_s14 = scalar_lea.vmem %s3502_s7, %s2251_s12   ;;  %s385_s13 = scalar_lea.vmem %s3505_s26, %s2251_s12 [#allocation2]  }
  0x6f PF: > { %388 = sbr.rel (%p199_p10) target bundleno = 184 (0xb8), region = 69  ;;  %s390_s25 = ssub.s32 (!%p199_p10), %s3312_s8, %s3318_s10 }
  0x70   : > { %s394_s27 = sshrl.u32 (!%p199_p10), %s3312_s8, 3  ;;  %s3535_s28 = scalar_lea.vmem (!%p199_p10), %s3310_s6, %s390_s25 }
  0x71   : > { %s3538_s30 = scalar_lea.vmem (!%p199_p10), %s3314_s9, %s390_s25 [#allocation2]  ;;  %s3542_s5 = sshrl.u32 (!%p199_p10), %s394_s27, 4 }
  0x72   : > { %p2253_p6 = scmp.le.s32.totalorder (!%p199_p10), %s3542_s5, 0 }
  0x76   : > { %2073 = sbr.rel (%p2253_p6) target bundleno = 158 (0x9e), region = 347  ;;  %s4687_s29 = smov (!%p2253_p6), %s3314_s9 }
  0x77   : > { %s4688_s7 = smov (!%p2253_p6), %s3310_s6  ;;  %s3551_s26 = smov (!%p2253_p6), 0  }
  0x78   : > { %s3553_s13 = smov (!%p2253_p6), 0  }
  0x7d LB: >> { %v419_v54 = vld [vmem:[%s3076_s7 + $0x30] sm:$0xff]  ;;  %v421_v55 = vld [vmem:[%s3076_s7 + $0x38] sm:$0xff]  ;;  %v423_v56 = vld [vmem:[%s3076_s7 + $0x40] sm:$0xff]  ;;  %s535_s14 = sadd.s32 1, %s3080_s26  ;;  %s401_s13 = sadd.s32 1, %s3084_s13   ;;  %s3084_s13 = sphi %s3553_s13, %s401_s13   ;;  %s3080_s26 = sphi %s3551_s26, %s4691_s26   ;;  %s3076_s7 = sphi %s4688_s7, %s4690_s7   ;;  %s3072_s29 = sphi %s4687_s29, %s4689_s29  }
  0x7e   : >> { %420 = vst [vmem:[%s3072_s29 + $0x30] sm:$0xff] %v419_v54  ;;  %422 = vst [vmem:[%s3072_s29 + $0x38] sm:$0xff] %v421_v55  ;;  %v3574_v57 = vld [vmem:[%s3076_s7 + $0x48] sm:$0xff]  ;;  %v3577_v58 = vld [vmem:[%s3076_s7 + $0x50] sm:$0xff]  ;;  %p536_p7 = scmp.ge.s32.totalorder %s535_s14, %s3542_s5  ;;  %p400_p8 = scmp.ge.s32.totalorder %s401_s13, %s3542_s5 }
  0x7f   : >> { %424 = vst [vmem:[%s3072_s29 + $0x40] sm:$0xff] %v423_v56  ;;  %v429_v59 = vld [vmem:[%s3076_s7 + $0x58] sm:$0xff]  ;;  %426 = vst [vmem:[%s3072_s29 + $0x48] sm:$0xff] %v3574_v57  ;;  %v431_v60 = vld [vmem:[%s3076_s7 + $0x60] sm:$0xff] }
  0x80   : >> { %428 = vst [vmem:[%s3072_s29 + $0x50] sm:$0xff] %v3577_v58  ;;  %430 = vst [vmem:[%s3072_s29 + $0x58] sm:$0xff] %v429_v59  ;;  %v433_v61 = vld [vmem:[%s3076_s7 + $0x68] sm:$0xff]  ;;  %v435_v62 = vld [vmem:[%s3076_s7 + $0x70] sm:$0xff]  ;;  %s4739_s14 = smov (%p536_p7, %s535_s14), 0 }
  0x81   : >> { %432 = vst [vmem:[%s3072_s29 + $0x60] sm:$0xff] %v431_v60  ;;  %434 = vst [vmem:[%s3072_s29 + $0x68] sm:$0xff] %v433_v61  ;;  %v437_v63 = vld [vmem:[%s3076_s7 + $0x78] sm:$0xff]  ;;  %v415_v0 = vld [vmem:[%s3076_s7 + $0x20] sm:$0xff]  ;;  %s2254_s20 = sshll.u32 %s4739_s14, 7  ;;  %s4691_s26 = smov %s4739_s14 }
  0x82   : >> { %436 = vst [vmem:[%s3072_s29 + $0x70] sm:$0xff] %v435_v62  ;;  %v417_v1 = vld [vmem:[%s3076_s7 + $0x28] sm:$0xff]  ;;  %438 = vst [vmem:[%s3072_s29 + $0x78] sm:$0xff] %v437_v63  ;;  %v451_v4 = vld [vmem:[%s3076_s7 + $0x54] sm:$0xff]  ;;  %s3639_s21 = scalar_lea.vmem %s3310_s6, %s2254_s20   ;;  %s3642_s11 = scalar_lea.vmem %s3314_s9, %s2254_s20 [#allocation2]  }
  0x83   : >> { %416 = vst [vmem:[%s3072_s29 + $0x20] sm:$0xff] %v415_v0  ;;  %418 = vst [vmem:[%s3072_s29 + $0x28] sm:$0xff] %v417_v1  ;;  %v447_v2 = vld [vmem:[%s3076_s7 + $0x44] sm:$0xff]  ;;  %v449_v3 = vld [vmem:[%s3076_s7 + $0x4c] sm:$0xff] }
  0x84   : >> { %448 = vst [vmem:[%s3072_s29 + $0x34] sm:$0xff] %v447_v2  ;;  %450 = vst [vmem:[%s3072_s29 + $0x3c] sm:$0xff] %v449_v3  ;;  %v453_v5 = vld [vmem:[%s3076_s7 + $0x5c] sm:$0xff]  ;;  %v455_v6 = vld [vmem:[%s3076_s7 + $0x64] sm:$0xff] }
  0x85   : >> { %452 = vst [vmem:[%s3072_s29 + $0x44] sm:$0xff] %v451_v4  ;;  %v457_v7 = vld [vmem:[%s3076_s7 + $0x6c] sm:$0xff]  ;;  %454 = vst [vmem:[%s3072_s29 + $0x4c] sm:$0xff] %v453_v5  ;;  %v459_v8 = vld [vmem:[%s3076_s7 + $0x74] sm:$0xff] }
  0x86   : >> { %456 = vst [vmem:[%s3072_s29 + $0x54] sm:$0xff] %v455_v6  ;;  %458 = vst [vmem:[%s3072_s29 + $0x5c] sm:$0xff] %v457_v7  ;;  %v461_v9 = vld [vmem:[%s3076_s7 + $0x7c] sm:$0xff]  ;;  %v463_v10 = vld [vmem:[%s3076_s7 + $0x84] sm:$0xff] }
  0x87   : >> { %476 = vst [vmem:[%s3072_s29 + $0x38] sm:$0xff] %v429_v59  ;;  %478 = vst [vmem:[%s3072_s29 + $0x40] sm:$0xff] %v431_v60  ;;  %v465_v11 = vld [vmem:[%s3076_s7 + $0x8c] sm:$0xff]  ;;  %v467_v12 = vld [vmem:[%s3076_s7 + $0x94] sm:$0xff] }
  0x88   : >> { %460 = vst [vmem:[%s3072_s29 + $0x64] sm:$0xff] %v459_v8  ;;  %462 = vst [vmem:[%s3072_s29 + $0x6c] sm:$0xff] %v461_v9  ;;  %v469_v13 = vld [vmem:[%s3076_s7 + $0x9c] sm:$0xff]  ;;  %v411_v14 = vld [vmem:[%s3076_s7 + $0x10] sm:$0xff] }
  0x89   : >> { %464 = vst [vmem:[%s3072_s29 + $0x74] sm:$0xff] %v463_v10  ;;  %480 = vst [vmem:[%s3072_s29 + $0x48] sm:$0xff] %v433_v61  ;;  %v413_v15 = vld [vmem:[%s3076_s7 + $0x18] sm:$0xff]  ;;  %v485_v18 = vld [vmem:[%s3076_s7 + $0x80] sm:$0xff] }
  0x8a   : >> { %482 = vst [vmem:[%s3072_s29 + $0x50] sm:$0xff] %v435_v62  ;;  %484 = vst [vmem:[%s3072_s29 + $0x58] sm:$0xff] %v437_v63  ;;  %v443_v16 = vld [vmem:[%s3076_s7 + $0x34] sm:$0xff]  ;;  %v445_v17 = vld [vmem:[%s3076_s7 + $0x3c] sm:$0xff] }
  0x8b   : >> { %504 = vst [vmem:[%s3072_s29 + $0x3c] sm:$0xff] %v457_v7  ;;  %466 = vst [vmem:[%s3072_s29 + $0x7c] sm:$0xff] %v465_v11  ;;  %v487_v19 = vld [vmem:[%s3076_s7 + $0x88] sm:$0xff]  ;;  %v489_v20 = vld [vmem:[%s3076_s7 + $0x90] sm:$0xff] }
  0x8c   : >> { %468 = vst [vmem:[%s3072_s29 + $0x84] sm:$0xff] %v467_v12  ;;  %470 = vst [vmem:[%s3072_s29 + $0x8c] sm:$0xff] %v469_v13  ;;  %v491_v21 = vld [vmem:[%s3076_s7 + $0x98] sm:$0xff]  ;;  %v493_v22 = vld [vmem:[%s3076_s7 + $0xa0] sm:$0xff] }
  0x8d   : >> { %506 = vst [vmem:[%s3072_s29 + $0x44] sm:$0xff] %v459_v8  ;;  %508 = vst [vmem:[%s3072_s29 + $0x4c] sm:$0xff] %v461_v9  ;;  %v495_v23 = vld [vmem:[%s3076_s7 + $0xa8] sm:$0xff]  ;;  %v497_v24 = vld [vmem:[%s3076_s7 + $0xb0] sm:$0xff] }
  0x8e   : >> { %510 = vst [vmem:[%s3072_s29 + $0x54] sm:$0xff] %v463_v10  ;;  %412 = vst [vmem:[%s3072_s29 + $0x10] sm:$0xff] %v411_v14  ;;  %v499_v25 = vld [vmem:[%s3076_s7 + $0xb8] sm:$0xff]  ;;  %v501_v26 = vld [vmem:[%s3076_s7 + $0xc0] sm:$0xff] }
  0x8f   : >> { %414 = vst [vmem:[%s3072_s29 + $0x18] sm:$0xff] %v413_v15  ;;  %444 = vst [vmem:[%s3072_s29 + $0x24] sm:$0xff] %v443_v16  ;;  %v407_v27 = vld [vmem:[%s3076_s7] sm:$0xff]  ;;  %v409_v28 = vld [vmem:[%s3076_s7 + $0x8] sm:$0xff] }
  0x90   : >> { %446 = vst [vmem:[%s3072_s29 + $0x2c] sm:$0xff] %v445_v17  ;;  %486 = vst [vmem:[%s3072_s29 + $0x60] sm:$0xff] %v485_v18  ;;  %v439_v29 = vld [vmem:[%s3076_s7 + $0x24] sm:$0xff]  ;;  %v441_v30 = vld [vmem:[%s3076_s7 + $0x2c] sm:$0xff] }
  0x91   : >> { %488 = vst [vmem:[%s3072_s29 + $0x68] sm:$0xff] %v487_v19  ;;  %490 = vst [vmem:[%s3072_s29 + $0x70] sm:$0xff] %v489_v20  ;;  %v517_v31 = vld [vmem:[%s3076_s7 + $0xa4] sm:$0xff]  ;;  %v519_v32 = vld [vmem:[%s3076_s7 + $0xac] sm:$0xff] }
  0x92   : >> { %492 = vst [vmem:[%s3072_s29 + $0x78] sm:$0xff] %v491_v21  ;;  %494 = vst [vmem:[%s3072_s29 + $0x80] sm:$0xff] %v493_v22  ;;  %v521_v33 = vld [vmem:[%s3076_s7 + $0xb4] sm:$0xff]  ;;  %v523_v34 = vld [vmem:[%s3076_s7 + $0xbc] sm:$0xff] }
  0x93   : >> { %472 = vst [vmem:[%s3072_s29 + $0x28] sm:$0xff] %v3574_v57  ;;  %474 = vst [vmem:[%s3072_s29 + $0x30] sm:$0xff] %v3577_v58  ;;  %v525_v35 = vld [vmem:[%s3076_s7 + $0xc4] sm:$0xff]  ;;  %v527_v36 = vld [vmem:[%s3076_s7 + $0xcc] sm:$0xff] }
  0x94   : >> { %512 = vst [vmem:[%s3072_s29 + $0x5c] sm:$0xff] %v465_v11  ;;  %514 = vst [vmem:[%s3072_s29 + $0x64] sm:$0xff] %v467_v12  ;;  %v529_v37 = vld [vmem:[%s3076_s7 + $0xd4] sm:$0xff]  ;;  %v531_v38 = vld [vmem:[%s3076_s7 + $0xdc] sm:$0xff] }
  0x95   : >> { %496 = vst [vmem:[%s3072_s29 + $0x88] sm:$0xff] %v495_v23  ;;  %498 = vst [vmem:[%s3072_s29 + $0x90] sm:$0xff] %v497_v24  ;;  %v533_v39 = vld [vmem:[%s3076_s7 + $0xe4] sm:$0xff]  ;;  %s4690_s7 = smov %s3639_s21 }
  0x96   : >> { %500 = vst [vmem:[%s3072_s29 + $0x98] sm:$0xff] %v499_v25  ;;  %516 = vst [vmem:[%s3072_s29 + $0x6c] sm:$0xff] %v469_v13 }
  0x97   : >> { %502 = vst [vmem:[%s3072_s29 + $0xa0] sm:$0xff] %v501_v26  ;;  %408 = vst [vmem:[%s3072_s29] sm:$0xff] %v407_v27  ;;  %403 = sbr.rel (!%p400_p8) target bundleno = 125 (0x7d), region = 353 }
  0x98   : >> { %410 = vst [vmem:[%s3072_s29 + $0x8] sm:$0xff] %v409_v28  ;;  %440 = vst [vmem:[%s3072_s29 + $0x14] sm:$0xff] %v439_v29 }
  0x99   : >> { %442 = vst [vmem:[%s3072_s29 + $0x1c] sm:$0xff] %v441_v30  ;;  %518 = vst [vmem:[%s3072_s29 + $0x74] sm:$0xff] %v517_v31 }
  0x9a   : >> { %520 = vst [vmem:[%s3072_s29 + $0x7c] sm:$0xff] %v519_v32  ;;  %522 = vst [vmem:[%s3072_s29 + $0x84] sm:$0xff] %v521_v33 }
  0x9b   : >> { %524 = vst [vmem:[%s3072_s29 + $0x8c] sm:$0xff] %v523_v34  ;;  %526 = vst [vmem:[%s3072_s29 + $0x94] sm:$0xff] %v525_v35 }
  0x9c   : >> { %528 = vst [vmem:[%s3072_s29 + $0x9c] sm:$0xff] %v527_v36  ;;  %530 = vst [vmem:[%s3072_s29 + $0xa4] sm:$0xff] %v529_v37 }
  0x9d   : >> { %532 = vst [vmem:[%s3072_s29 + $0xac] sm:$0xff] %v531_v38  ;;  %534 = vst [vmem:[%s3072_s29 + $0xb4] sm:$0xff] %v533_v39  ;;  %s4689_s29 = smov %s3642_s11 }
  0x9e PF: > { %s3715_s12 = sand.u32 15, %s394_s27   ;;  %s2349_s25 = sshll.u32 %s3542_s5, 11 }
  0x9f   : > { %s546_s20 = sshra.s32 %s2349_s25, 4  ;;  %p2259_p9 = scmp.le.s32.totalorder %s3715_s12, 0 }
  0xa0   : > { %s3719_s0 = scalar_lea.vmem %s3310_s6, %s546_s20   ;;  %s3722_s11 = scalar_lea.vmem %s3314_s9, %s546_s20 [#allocation2]  }
  0xa1   : > { %2087 = sbr.rel (%p2259_p9) target bundleno = 178 (0xb2), region = 358  ;;  %s4692_s29 = smov (!%p2259_p9), %s3722_s11 }
  0xa2   : > { %s4693_s7 = smov (!%p2259_p9), %s3719_s0  ;;  %s3731_s26 = smov (!%p2259_p9), 0  }
  0xa3   : > { %s3098_s13 = smov (!%p2259_p9), 0  }
  0xa8 LB: >> { %v562_v40 = vld [vmem:[%s3092_s7] sm:$0xff]  ;;  %v566_v42 = vld [vmem:[%s3092_s7 + $0x48] sm:$0xff]  ;;  %s570_s27 = sadd.s32 1, %s3096_s26  ;;  %s556_s13 = sadd.s32 1, %s3100_s13   ;;  %s3100_s13 = sphi %s3098_s13, %s556_s13   ;;  %s3096_s26 = sphi %s3731_s26, %s4694_s26   ;;  %s3092_s7 = sphi %s4693_s7, %s575_s7   ;;  %s3088_s29 = sphi %s4692_s29, %s576_s29  }
  0xa9   : >> { %v564_v41 = vld [vmem:[%s3092_s7 + $0x24] sm:$0xff]  ;;  %563 = vst [vmem:[%s3088_s29] sm:$0xff] %v562_v40  ;;  %567 = vst [vmem:[%s3088_s29 + $0x28] sm:$0xff] %v566_v42  ;;  %v568_v43 = vld [vmem:[%s3092_s7 + $0x6c] sm:$0xff]  ;;  %p571_p10 = scmp.ge.s32.totalorder %s570_s27, %s3715_s12  ;;  %p555_p11 = scmp.ge.s32.totalorder %s556_s13, %s3715_s12 }
  0xaa   : >> { %565 = vst [vmem:[%s3088_s29 + $0x14] sm:$0xff] %v564_v41  ;;  %569 = vst [vmem:[%s3088_s29 + $0x3c] sm:$0xff] %v568_v43 }
  0xab   : >> { %s4741_s27 = smov (%p571_p10, %s570_s27), 0  ;;  %558 = sbr.rel (!%p555_p11) target bundleno = 168 (0xa8), region = 364 }
  0xac   : >> { %s2260_s5 = sshll.u32 %s4741_s27, 3  ;;  %s4694_s26 = smov %s4741_s27 }
  0xad   : >> { %s575_s7 = scalar_lea.vmem %s3719_s0, %s2260_s5   ;;  %s576_s29 = scalar_lea.vmem %s3722_s11, %s2260_s5 [#allocation2]  }
  0xb2 PF: > { %s3230_s14 = smov 0  }
  0xb3   : > { %s577_s21 = sshllo.u32 %s3230_s14, %s3318_s10 }
  0xb4   : > { %v586_v44 = vld [vmem:[%s3535_s28] sm:%s577_s21]  ;;  %v590_v46 = vld [vmem:[%s3535_s28 + $0x48] sm:%s577_s21] }
  0xb5   : > { %v588_v45 = vld [vmem:[%s3535_s28 + $0x24] sm:%s577_s21]  ;;  %587 = vst [vmem:[%s3538_s30] sm:%s577_s21] %v586_v44 }
  0xb6   : > { %589 = vst [vmem:[%s3538_s30 + $0x14] sm:%s577_s21] %v588_v45  ;;  %v592_v47 = vld [vmem:[%s3535_s28 + $0x6c] sm:%s577_s21] }
  0xb7   : > { %591 = vst [vmem:[%s3538_s30 + $0x28] sm:%s577_s21] %v590_v46  ;;  %593 = vst [vmem:[%s3538_s30 + $0x3c] sm:%s577_s21] %v592_v47 }
  0xb8 PF: > { %p2262_p12 = scmp.ge.u32.totalorder %s3312_s8, 8 }
  0xb9   : > { %s3231_s0 = smov (!%p2262_p12), 0  }
  0xba   : > { %180 = sbr.rel (%p2262_p12) target bundleno = 193 (0xc1), region = 40  ;;  %s181_s10 = sshllo.u32 (!%p2262_p12), %s3231_s0, %s3312_s8 }
  0xbb   : > { %v190_v48 = vld [vmem:[%s3310_s6] sm:%s181_s10] (!%p2262_p12)  ;;  %v194_v50 = vld [vmem:[%s3310_s6 + $0x48] sm:%s181_s10] (!%p2262_p12) }
  0xbc   : > { %v192_v49 = vld [vmem:[%s3310_s6 + $0x24] sm:%s181_s10] (!%p2262_p12)  ;;  %191 = vst [vmem:[%s3314_s9] sm:%s181_s10] (!%p2262_p12), %v190_v48 }
  0xbd   : > { %193 = vst [vmem:[%s3314_s9 + $0x14] sm:%s181_s10] (!%p2262_p12), %v192_v49  ;;  %v196_v51 = vld [vmem:[%s3310_s6 + $0x6c] sm:%s181_s10] (!%p2262_p12) }
  0xbe   : > { %195 = vst [vmem:[%s3314_s9 + $0x28] sm:%s181_s10] (!%p2262_p12), %v194_v50  ;;  %197 = vst [vmem:[%s3314_s9 + $0x3c] sm:%s181_s10] (!%p2262_p12), %v196_v51 }
  0xc1 PF: > { %597 = sbr.rel (!%p3293_p4) target bundleno = 335 (0x14f), region = 94  ;;  %s599_s28 = sand.u32 (%p3293_p4), 1, %s3032_s16  }
  0xc2   : > { %s602_s30 = smul.u32 (%p3293_p4), 5, %s3036_s17 }
  0xc3   : > { %s2386_s8 = smul.u32 (%p3293_p4), 160, %s599_s28 }
  0xc4   : > { %s603_s12 = ssub.s32 (%p3293_p4), 9, %s602_s30  ;;  %s2351_s25 = smul.u32 (%p3293_p4), 40, %s3036_s17 }
  0xc5   : > { %p604_p13 = scmp.lt.s32.totalorder (%p3293_p4), %s603_s12, 5  ;;  %s3777_s23 = scalar_lea.vmem (%p3293_p4), [#allocation3], %s2386_s8  }
  0xc6   : > { %s3773_s6 = scalar_lea.vmem (%p3293_p4), %s4673_s3, %s2351_s25  }
  0xc8   : > { %s4743_s12 = smov (!%p604_p13, %s603_s12), 5 }
  0xc9   : > { %s2263_s9 = sshll.u32 %s4743_s12, 9  ;;  %s3775_s29 = sshll.u32 %s4743_s12, 3 }
  0xca   : > { %p2267_p4 = scmp.eq.s32.totalorder %s2263_s9, 0 }
  0xcb   : > { %p614_p0 = scmp.lt.u32.totalorder (!%p2267_p4), %s3775_s29, 8 }
  0xcc   : > { %613 = sbr.rel (%p2267_p4) target bundleno = 335 (0x14f), region = 98 }
  0xd3   : > { %617 = sbr.rel (%p614_p0) target bundleno = 326 (0x146), region = 102  ;;  %s3781_s7 = sand.u32 (!%p614_p0), 7, %s3775_s29  }
  0xd4   : > { %p639_p1 = scmp.eq.s32.totalorder (!%p614_p0), %s3781_s7, 0  ;;  %p2268_p2 = scmp.ne.s32.totalorder (!%p614_p0), %s3781_s7, 0 }
  0xda   : > { %642 = sbr.rel (%p2268_p2) target bundleno = 269 (0x10d), region = 117  ;;  %s643_s26 = sshrl.u32 (!%p2268_p2), %s3775_s29, 3 }
  0xdb   : > { %s3788_s13 = sshrl.u32 (!%p2268_p2), %s643_s26, 4 }
  0xdc   : > { %p2269_p3 = scmp.le.s32.totalorder (!%p2268_p2), %s3788_s13, 0 }
  0xe1   : > { %2101 = sbr.rel (%p2269_p3) target bundleno = 249 (0xf9), region = 369  ;;  %s4695_s27 = smov (!%p2269_p3), %s3777_s23 }
  0xe2   : > { %s4696_s5 = smov (!%p2269_p3), %s3773_s6  ;;  %s3797_s14 = smov (!%p2269_p3), 0  }
  0xe3   : > { %s3799_s21 = smov (!%p2269_p3), 0  }
  0xe8 LB: >> { %v674_v52 = vld [vmem:[%s3108_s5 + $0x48] sm:$0xff]  ;;  %v706_v53 = vld [vmem:[%s3108_s5 + $0x90] sm:$0xff]  ;;  %v738_v54 = vld [vmem:[%s3108_s5 + $0xd8] sm:$0xff]  ;;  %s784_s0 = sadd.s32 1, %s3112_s14  ;;  %s650_s21 = sadd.s32 1, %s3116_s21   ;;  %s3116_s21 = sphi %s3799_s21, %s650_s21   ;;  %s3112_s14 = sphi %s3797_s14, %s4699_s14   ;;  %s3108_s5 = sphi %s4696_s5, %s4698_s5   ;;  %s3104_s27 = sphi %s4695_s27, %s4697_s27  }
  0xe9   : >> { %v740_v55 = vld [vmem:[%s3108_s5 + $0xe0] sm:$0xff]  ;;  %v742_v56 = vld [vmem:[%s3108_s5 + $0xe8] sm:$0xff]  ;;  %v744_v57 = vld [vmem:[%s3108_s5 + $0xf0] sm:$0xff]  ;;  %689 = vst [vmem:[%s3104_s27 + $0x28] sm:$0xff] %v674_v52  ;;  %p785_p6 = scmp.ge.s32.totalorder %s784_s0, %s3788_s13  ;;  %p649_p7 = scmp.ge.s32.totalorder %s650_s21, %s3788_s13 }
  0xea   : >> { %721 = vst [vmem:[%s3104_s27 + $0x50] sm:$0xff] %v706_v53  ;;  %753 = vst [vmem:[%s3104_s27 + $0x78] sm:$0xff] %v738_v54  ;;  %v746_v58 = vld [vmem:[%s3108_s5 + $0xf8] sm:$0xff]  ;;  %v748_v59 = vld [vmem:[%s3108_s5 + $0x100] sm:$0xff] }
  0xeb   : >> { %v750_v60 = vld [vmem:[%s3108_s5 + $0x108] sm:$0xff]  ;;  %755 = vst [vmem:[%s3104_s27 + $0x80] sm:$0xff] %v740_v55  ;;  %757 = vst [vmem:[%s3104_s27 + $0x88] sm:$0xff] %v742_v56  ;;  %v656_v61 = vld [vmem:[%s3108_s5] sm:$0xff]  ;;  %s4745_s0 = smov (%p785_p6, %s784_s0), 0 }
  0xec   : >> { %759 = vst [vmem:[%s3104_s27 + $0x90] sm:$0xff] %v744_v57  ;;  %v658_v62 = vld [vmem:[%s3108_s5 + $0x8] sm:$0xff]  ;;  %v660_v63 = vld [vmem:[%s3108_s5 + $0x10] sm:$0xff]  ;;  %761 = vst [vmem:[%s3104_s27 + $0x98] sm:$0xff] %v746_v58  ;;  %s2270_s10 = sshll.u32 %s4745_s0, 7  ;;  %s4699_s14 = smov %s4745_s0 }
  0xed   : >> { %763 = vst [vmem:[%s3104_s27 + $0xa0] sm:$0xff] %v748_v59  ;;  %765 = vst [vmem:[%s3104_s27 + $0xa8] sm:$0xff] %v750_v60  ;;  %v662_v0 = vld [vmem:[%s3108_s5 + $0x18] sm:$0xff]  ;;  %v664_v1 = vld [vmem:[%s3108_s5 + $0x20] sm:$0xff]  ;;  %s789_s28 = scalar_lea.vmem %s3773_s6, %s2270_s10   ;;  %s790_s30 = scalar_lea.vmem %s3777_s23, %s2270_s10 [#allocation3]  }
  0xee   : >> { %657 = vst [vmem:[%s3104_s27] sm:$0xff] %v656_v61  ;;  %659 = vst [vmem:[%s3104_s27 + $0x8] sm:$0xff] %v658_v62  ;;  %v690_v2 = vld [vmem:[%s3108_s5 + $0x50] sm:$0xff]  ;;  %v692_v3 = vld [vmem:[%s3108_s5 + $0x58] sm:$0xff] }
  0xef   : >> { %661 = vst [vmem:[%s3104_s27 + $0x10] sm:$0xff] %v660_v63  ;;  %663 = vst [vmem:[%s3104_s27 + $0x18] sm:$0xff] %v662_v0  ;;  %v694_v4 = vld [vmem:[%s3108_s5 + $0x60] sm:$0xff]  ;;  %v696_v5 = vld [vmem:[%s3108_s5 + $0x68] sm:$0xff] }
  0xf0   : >> { %665 = vst [vmem:[%s3104_s27 + $0x20] sm:$0xff] %v664_v1  ;;  %691 = vst [vmem:[%s3104_s27 + $0x30] sm:$0xff] %v690_v2  ;;  %v722_v6 = vld [vmem:[%s3108_s5 + $0x98] sm:$0xff]  ;;  %v724_v7 = vld [vmem:[%s3108_s5 + $0xa0] sm:$0xff] }
  0xf1   : >> { %693 = vst [vmem:[%s3104_s27 + $0x38] sm:$0xff] %v692_v3  ;;  %695 = vst [vmem:[%s3104_s27 + $0x40] sm:$0xff] %v694_v4  ;;  %v726_v8 = vld [vmem:[%s3108_s5 + $0xa8] sm:$0xff]  ;;  %v728_v9 = vld [vmem:[%s3108_s5 + $0xb0] sm:$0xff] }
  0xf2   : >> { %697 = vst [vmem:[%s3104_s27 + $0x48] sm:$0xff] %v696_v5  ;;  %723 = vst [vmem:[%s3104_s27 + $0x58] sm:$0xff] %v722_v6  ;;  %v766_v10 = vld [vmem:[%s3108_s5 + $0x110] sm:$0xff]  ;;  %v768_v11 = vld [vmem:[%s3108_s5 + $0x118] sm:$0xff]  ;;  %652 = sbr.rel (!%p649_p7) target bundleno = 232 (0xe8), region = 375 }
  0xf3   : >> { %725 = vst [vmem:[%s3104_s27 + $0x60] sm:$0xff] %v724_v7  ;;  %727 = vst [vmem:[%s3104_s27 + $0x68] sm:$0xff] %v726_v8  ;;  %v770_v12 = vld [vmem:[%s3108_s5 + $0x120] sm:$0xff]  ;;  %v772_v13 = vld [vmem:[%s3108_s5 + $0x128] sm:$0xff] }
  0xf4   : >> { %729 = vst [vmem:[%s3104_s27 + $0x70] sm:$0xff] %v728_v9  ;;  %767 = vst [vmem:[%s3104_s27 + $0xb0] sm:$0xff] %v766_v10  ;;  %v774_v14 = vld [vmem:[%s3108_s5 + $0x130] sm:$0xff]  ;;  %v776_v15 = vld [vmem:[%s3108_s5 + $0x138] sm:$0xff] }
  0xf5   : >> { %769 = vst [vmem:[%s3104_s27 + $0xb8] sm:$0xff] %v768_v11  ;;  %771 = vst [vmem:[%s3104_s27 + $0xc0] sm:$0xff] %v770_v12  ;;  %v778_v16 = vld [vmem:[%s3108_s5 + $0x140] sm:$0xff]  ;;  %v780_v17 = vld [vmem:[%s3108_s5 + $0x148] sm:$0xff] }
  0xf6   : >> { %773 = vst [vmem:[%s3104_s27 + $0xc8] sm:$0xff] %v772_v13  ;;  %775 = vst [vmem:[%s3104_s27 + $0xd0] sm:$0xff] %v774_v14  ;;  %v782_v18 = vld [vmem:[%s3108_s5 + $0x150] sm:$0xff]  ;;  %s4698_s5 = smov %s789_s28 }
  0xf7   : >> { %777 = vst [vmem:[%s3104_s27 + $0xd8] sm:$0xff] %v776_v15  ;;  %779 = vst [vmem:[%s3104_s27 + $0xe0] sm:$0xff] %v778_v16 }
  0xf8   : >> { %781 = vst [vmem:[%s3104_s27 + $0xe8] sm:$0xff] %v780_v17  ;;  %783 = vst [vmem:[%s3104_s27 + $0xf0] sm:$0xff] %v782_v18  ;;  %s4697_s27 = smov %s790_s30 }
  0xf9 PF: > { %s3895_s8 = sand.u32 15, %s643_s26   ;;  %s2352_s12 = sshll.u32 %s3788_s13, 11 }
  0xfa   : > { %s795_s25 = sshra.s32 %s2352_s12, 4  ;;  %p2275_p8 = scmp.le.s32.totalorder %s3895_s8, 0 }
  0xfb   : > { %s3899_s20 = scalar_lea.vmem %s3773_s6, %s795_s25   ;;  %s3902_s11 = scalar_lea.vmem %s3777_s23, %s795_s25 [#allocation3]  }
  0xfc   : > { %2115 = sbr.rel (%p2275_p8) target bundleno = 269 (0x10d), region = 380  ;;  %s4700_s9 = smov (!%p2275_p8), %s3902_s11 }
  0xfd   : > { %s4701_s27 = smov (!%p2275_p8), %s3899_s20  ;;  %s3911_s5 = smov (!%p2275_p8), 0  }
  0xfe   : > { %s3130_s14 = smov (!%p2275_p8), 0  }
 0x103 LB: >> { %v811_v19 = vld [vmem:[%s3124_s27] sm:$0xff]  ;;  %v813_v20 = vld [vmem:[%s3124_s27 + $0x48] sm:$0xff]  ;;  %v815_v21 = vld [vmem:[%s3124_s27 + $0x90] sm:$0xff]  ;;  %s819_s26 = sadd.s32 1, %s3128_s5  ;;  %s805_s14 = sadd.s32 1, %s3132_s14   ;;  %s3132_s14 = sphi %s3130_s14, %s805_s14   ;;  %s3128_s5 = sphi %s3911_s5, %s4702_s5   ;;  %s3124_s27 = sphi %s4701_s27, %s824_s27   ;;  %s3120_s9 = sphi %s4700_s9, %s825_s9  }
 0x104   : >> { %812 = vst [vmem:[%s3120_s9] sm:$0xff] %v811_v19  ;;  %814 = vst [vmem:[%s3120_s9 + $0x28] sm:$0xff] %v813_v20  ;;  %v817_v22 = vld [vmem:[%s3124_s27 + $0xd8] sm:$0xff]  ;;  %p820_p9 = scmp.ge.s32.totalorder %s819_s26, %s3895_s8  ;;  %p804_p10 = scmp.ge.s32.totalorder %s805_s14, %s3895_s8 }
 0x105   : >> { %816 = vst [vmem:[%s3120_s9 + $0x50] sm:$0xff] %v815_v21  ;;  %818 = vst [vmem:[%s3120_s9 + $0x78] sm:$0xff] %v817_v22 }
 0x106   : >> { %s4747_s26 = smov (%p820_p9, %s819_s26), 0  ;;  %807 = sbr.rel (!%p804_p10) target bundleno = 259 (0x103), region = 386 }
 0x107   : >> { %s2276_s13 = sshll.u32 %s4747_s26, 3  ;;  %s4702_s5 = smov %s4747_s26 }
 0x108   : >> { %s824_s27 = scalar_lea.vmem %s3899_s20, %s2276_s13   ;;  %s825_s9 = scalar_lea.vmem %s3902_s11, %s2276_s13 [#allocation3]  }
 0x10d PF: > { %828 = sbr.rel (%p639_p1) target bundleno = 326 (0x146), region = 135  ;;  %s830_s21 = ssub.s32 (!%p639_p1), %s3775_s29, %s3781_s7 }
 0x10e   : > { %s834_s0 = sshrl.u32 (!%p639_p1), %s3775_s29, 3  ;;  %s3932_s10 = scalar_lea.vmem (!%p639_p1), %s3773_s6, %s830_s21 }
 0x10f   : > { %s3935_s28 = scalar_lea.vmem (!%p639_p1), %s3777_s23, %s830_s21 [#allocation3]  ;;  %s3939_s30 = sshrl.u32 (!%p639_p1), %s834_s0, 4 }
 0x110   : > { %p2278_p11 = scmp.le.s32.totalorder (!%p639_p1), %s3939_s30, 0 }
 0x114   : > { %2129 = sbr.rel (%p2278_p11) target bundleno = 300 (0x12c), region = 391  ;;  %s4703_s8 = smov (!%p2278_p11), %s3777_s23 }
 0x115   : > { %s4704_s12 = smov (!%p2278_p11), %s3773_s6  ;;  %s3948_s25 = smov (!%p2278_p11), 0  }
 0x116   : > { %s3950_s20 = smov (!%p2278_p11), 0  }
 0x11b LB: >> { %v865_v23 = vld [vmem:[%s3140_s12 + $0x48] sm:$0xff]  ;;  %v897_v24 = vld [vmem:[%s3140_s12 + $0x90] sm:$0xff]  ;;  %v929_v25 = vld [vmem:[%s3140_s12 + $0xd8] sm:$0xff]  ;;  %s975_s11 = sadd.s32 1, %s3144_s25  ;;  %s841_s20 = sadd.s32 1, %s3148_s20   ;;  %s3148_s20 = sphi %s3950_s20, %s841_s20   ;;  %s3144_s25 = sphi %s3948_s25, %s4707_s25   ;;  %s3140_s12 = sphi %s4704_s12, %s4706_s12   ;;  %s3136_s8 = sphi %s4703_s8, %s4705_s8  }
 0x11c   : >> { %v931_v26 = vld [vmem:[%s3140_s12 + $0xe0] sm:$0xff]  ;;  %v933_v27 = vld [vmem:[%s3140_s12 + $0xe8] sm:$0xff]  ;;  %v935_v28 = vld [vmem:[%s3140_s12 + $0xf0] sm:$0xff]  ;;  %880 = vst [vmem:[%s3136_s8 + $0x28] sm:$0xff] %v865_v23  ;;  %p976_p12 = scmp.ge.s32.totalorder %s975_s11, %s3939_s30  ;;  %p840_p13 = scmp.ge.s32.totalorder %s841_s20, %s3939_s30 }
 0x11d   : >> { %912 = vst [vmem:[%s3136_s8 + $0x50] sm:$0xff] %v897_v24  ;;  %944 = vst [vmem:[%s3136_s8 + $0x78] sm:$0xff] %v929_v25  ;;  %v937_v29 = vld [vmem:[%s3140_s12 + $0xf8] sm:$0xff]  ;;  %v939_v30 = vld [vmem:[%s3140_s12 + $0x100] sm:$0xff] }
 0x11e   : >> { %v941_v31 = vld [vmem:[%s3140_s12 + $0x108] sm:$0xff]  ;;  %946 = vst [vmem:[%s3136_s8 + $0x80] sm:$0xff] %v931_v26  ;;  %948 = vst [vmem:[%s3136_s8 + $0x88] sm:$0xff] %v933_v27  ;;  %v847_v32 = vld [vmem:[%s3140_s12] sm:$0xff]  ;;  %s4749_s11 = smov (%p976_p12, %s975_s11), 0 }
 0x11f   : >> { %950 = vst [vmem:[%s3136_s8 + $0x90] sm:$0xff] %v935_v28  ;;  %v849_v33 = vld [vmem:[%s3140_s12 + $0x8] sm:$0xff]  ;;  %v851_v34 = vld [vmem:[%s3140_s12 + $0x10] sm:$0xff]  ;;  %952 = vst [vmem:[%s3136_s8 + $0x98] sm:$0xff] %v937_v29  ;;  %s2279_s9 = sshll.u32 %s4749_s11, 7  ;;  %s4707_s25 = smov %s4749_s11 }
 0x120   : >> { %954 = vst [vmem:[%s3136_s8 + $0xa0] sm:$0xff] %v939_v30  ;;  %956 = vst [vmem:[%s3136_s8 + $0xa8] sm:$0xff] %v941_v31  ;;  %v853_v35 = vld [vmem:[%s3140_s12 + $0x18] sm:$0xff]  ;;  %v855_v36 = vld [vmem:[%s3140_s12 + $0x20] sm:$0xff]  ;;  %s980_s27 = scalar_lea.vmem %s3773_s6, %s2279_s9   ;;  %s981_s5 = scalar_lea.vmem %s3777_s23, %s2279_s9 [#allocation3]  }
 0x121   : >> { %848 = vst [vmem:[%s3136_s8] sm:$0xff] %v847_v32  ;;  %850 = vst [vmem:[%s3136_s8 + $0x8] sm:$0xff] %v849_v33  ;;  %v881_v37 = vld [vmem:[%s3140_s12 + $0x50] sm:$0xff]  ;;  %v883_v38 = vld [vmem:[%s3140_s12 + $0x58] sm:$0xff] }
 0x122   : >> { %852 = vst [vmem:[%s3136_s8 + $0x10] sm:$0xff] %v851_v34  ;;  %854 = vst [vmem:[%s3136_s8 + $0x18] sm:$0xff] %v853_v35  ;;  %v885_v39 = vld [vmem:[%s3140_s12 + $0x60] sm:$0xff]  ;;  %v887_v40 = vld [vmem:[%s3140_s12 + $0x68] sm:$0xff] }
 0x123   : >> { %856 = vst [vmem:[%s3136_s8 + $0x20] sm:$0xff] %v855_v36  ;;  %882 = vst [vmem:[%s3136_s8 + $0x30] sm:$0xff] %v881_v37  ;;  %v913_v41 = vld [vmem:[%s3140_s12 + $0x98] sm:$0xff]  ;;  %v915_v42 = vld [vmem:[%s3140_s12 + $0xa0] sm:$0xff] }
 0x124   : >> { %884 = vst [vmem:[%s3136_s8 + $0x38] sm:$0xff] %v883_v38  ;;  %886 = vst [vmem:[%s3136_s8 + $0x40] sm:$0xff] %v885_v39  ;;  %v917_v43 = vld [vmem:[%s3140_s12 + $0xa8] sm:$0xff]  ;;  %v919_v44 = vld [vmem:[%s3140_s12 + $0xb0] sm:$0xff] }
 0x125   : >> { %888 = vst [vmem:[%s3136_s8 + $0x48] sm:$0xff] %v887_v40  ;;  %914 = vst [vmem:[%s3136_s8 + $0x58] sm:$0xff] %v913_v41  ;;  %v957_v45 = vld [vmem:[%s3140_s12 + $0x110] sm:$0xff]  ;;  %v959_v46 = vld [vmem:[%s3140_s12 + $0x118] sm:$0xff]  ;;  %843 = sbr.rel (!%p840_p13) target bundleno = 283 (0x11b), region = 397 }
 0x126   : >> { %916 = vst [vmem:[%s3136_s8 + $0x60] sm:$0xff] %v915_v42  ;;  %918 = vst [vmem:[%s3136_s8 + $0x68] sm:$0xff] %v917_v43  ;;  %v961_v47 = vld [vmem:[%s3140_s12 + $0x120] sm:$0xff]  ;;  %v963_v48 = vld [vmem:[%s3140_s12 + $0x128] sm:$0xff] }
 0x127   : >> { %920 = vst [vmem:[%s3136_s8 + $0x70] sm:$0xff] %v919_v44  ;;  %958 = vst [vmem:[%s3136_s8 + $0xb0] sm:$0xff] %v957_v45  ;;  %v965_v49 = vld [vmem:[%s3140_s12 + $0x130] sm:$0xff]  ;;  %v967_v50 = vld [vmem:[%s3140_s12 + $0x138] sm:$0xff] }
 0x128   : >> { %960 = vst [vmem:[%s3136_s8 + $0xb8] sm:$0xff] %v959_v46  ;;  %962 = vst [vmem:[%s3136_s8 + $0xc0] sm:$0xff] %v961_v47  ;;  %v969_v51 = vld [vmem:[%s3140_s12 + $0x140] sm:$0xff]  ;;  %v971_v52 = vld [vmem:[%s3140_s12 + $0x148] sm:$0xff] }
 0x129   : >> { %964 = vst [vmem:[%s3136_s8 + $0xc8] sm:$0xff] %v963_v48  ;;  %966 = vst [vmem:[%s3136_s8 + $0xd0] sm:$0xff] %v965_v49  ;;  %v973_v53 = vld [vmem:[%s3140_s12 + $0x150] sm:$0xff]  ;;  %s4706_s12 = smov %s980_s27 }
 0x12a   : >> { %968 = vst [vmem:[%s3136_s8 + $0xd8] sm:$0xff] %v967_v50  ;;  %970 = vst [vmem:[%s3136_s8 + $0xe0] sm:$0xff] %v969_v51 }
 0x12b   : >> { %972 = vst [vmem:[%s3136_s8 + $0xe8] sm:$0xff] %v971_v52  ;;  %974 = vst [vmem:[%s3136_s8 + $0xf0] sm:$0xff] %v973_v53  ;;  %s4705_s8 = smov %s981_s5 }
 0x12c PF: > { %s4046_s14 = sand.u32 15, %s834_s0   ;;  %s2354_s26 = sshll.u32 %s3939_s30, 11 }
 0x12d   : > { %s986_s13 = sshra.s32 %s2354_s26, 4  ;;  %p2284_p4 = scmp.le.s32.totalorder %s4046_s14, 0 }
 0x12e   : > { %s4050_s21 = scalar_lea.vmem %s3773_s6, %s986_s13   ;;  %s4053_s9 = scalar_lea.vmem %s3777_s23, %s986_s13 [#allocation3]  }
 0x12f   : > { %2143 = sbr.rel (%p2284_p4) target bundleno = 320 (0x140), region = 402  ;;  %s4708_s8 = smov (!%p2284_p4), %s4053_s9 }
 0x130   : > { %s4709_s12 = smov (!%p2284_p4), %s4050_s21  ;;  %s4062_s25 = smov (!%p2284_p4), 0  }
 0x131   : > { %s3162_s20 = smov (!%p2284_p4), 0  }
 0x136 LB: >> { %v1002_v54 = vld [vmem:[%s3156_s12] sm:$0xff]  ;;  %v1004_v55 = vld [vmem:[%s3156_s12 + $0x48] sm:$0xff]  ;;  %v1006_v56 = vld [vmem:[%s3156_s12 + $0x90] sm:$0xff]  ;;  %s1010_s0 = sadd.s32 1, %s3160_s25  ;;  %s996_s20 = sadd.s32 1, %s3164_s20   ;;  %s3164_s20 = sphi %s3162_s20, %s996_s20   ;;  %s3160_s25 = sphi %s4062_s25, %s4710_s25   ;;  %s3156_s12 = sphi %s4709_s12, %s1015_s12   ;;  %s3152_s8 = sphi %s4708_s8, %s1016_s8  }
 0x137   : >> { %1003 = vst [vmem:[%s3152_s8] sm:$0xff] %v1002_v54  ;;  %1005 = vst [vmem:[%s3152_s8 + $0x28] sm:$0xff] %v1004_v55  ;;  %v1008_v57 = vld [vmem:[%s3156_s12 + $0xd8] sm:$0xff]  ;;  %p1011_p0 = scmp.ge.s32.totalorder %s1010_s0, %s4046_s14  ;;  %p995_p1 = scmp.ge.s32.totalorder %s996_s20, %s4046_s14 }
 0x138   : >> { %1007 = vst [vmem:[%s3152_s8 + $0x50] sm:$0xff] %v1006_v56  ;;  %1009 = vst [vmem:[%s3152_s8 + $0x78] sm:$0xff] %v1008_v57 }
 0x139   : >> { %s4751_s0 = smov (%p1011_p0, %s1010_s0), 0  ;;  %998 = sbr.rel (!%p995_p1) target bundleno = 310 (0x136), region = 408 }
 0x13a   : >> { %s2285_s30 = sshll.u32 %s4751_s0, 3  ;;  %s4710_s25 = smov %s4751_s0 }
 0x13b   : >> { %s1015_s12 = scalar_lea.vmem %s4050_s21, %s2285_s30   ;;  %s1016_s8 = scalar_lea.vmem %s4053_s9, %s2285_s30 [#allocation3]  }
 0x140 PF: > { %s3232_s11 = smov 0  }
 0x141   : > { %s1017_s27 = sshllo.u32 %s3232_s11, %s3781_s7 }
 0x142   : > { %v1026_v58 = vld [vmem:[%s3932_s10] sm:%s1017_s27]  ;;  %v1028_v59 = vld [vmem:[%s3932_s10 + $0x48] sm:%s1017_s27] }
 0x143   : > { %1027 = vst [vmem:[%s3935_s28] sm:%s1017_s27] %v1026_v58  ;;  %1029 = vst [vmem:[%s3935_s28 + $0x28] sm:%s1017_s27] %v1028_v59 }
 0x144   : > { %v1030_v60 = vld [vmem:[%s3932_s10 + $0x90] sm:%s1017_s27]  ;;  %v1032_v61 = vld [vmem:[%s3932_s10 + $0xd8] sm:%s1017_s27] }
 0x145   : > { %1031 = vst [vmem:[%s3935_s28 + $0x50] sm:%s1017_s27] %v1030_v60  ;;  %1033 = vst [vmem:[%s3935_s28 + $0x78] sm:%s1017_s27] %v1032_v61 }
 0x146 PF: > { %p2287_p2 = scmp.ge.u32.totalorder %s3775_s29, 8 }
 0x147   : > { %s3233_s5 = smov (!%p2287_p2), 0  }
 0x148   : > { %620 = sbr.rel (%p2287_p2) target bundleno = 335 (0x14f), region = 106  ;;  %s621_s7 = sshllo.u32 (!%p2287_p2), %s3233_s5, %s3775_s29 }
 0x149   : > { %v630_v62 = vld [vmem:[%s3773_s6] sm:%s621_s7] (!%p2287_p2)  ;;  %v632_v63 = vld [vmem:[%s3773_s6 + $0x48] sm:%s621_s7] (!%p2287_p2) }
 0x14a   : > { %631 = vst [vmem:[%s3777_s23] sm:%s621_s7] (!%p2287_p2), %v630_v62  ;;  %633 = vst [vmem:[%s3777_s23 + $0x28] sm:%s621_s7] (!%p2287_p2), %v632_v63 }
 0x14b   : > { %v634_v0 = vld [vmem:[%s3773_s6 + $0x90] sm:%s621_s7] (!%p2287_p2)  ;;  %v636_v1 = vld [vmem:[%s3773_s6 + $0xd8] sm:%s621_s7] (!%p2287_p2) }
 0x14c   : > { %635 = vst [vmem:[%s3777_s23 + $0x50] sm:%s621_s7] (!%p2287_p2), %v634_v0  ;;  %637 = vst [vmem:[%s3777_s23 + $0x78] sm:%s621_s7] (!%p2287_p2), %v636_v1 }
 0x14f PF: > { %p2288_p3 = scmp.ge.s32.totalorder %s3036_s17, 1  ;;  %p1036_p6 = scmp.lt.s32.totalorder %s3036_s17, 3 }
 0x151   : > { %p1037_p7 = pnand %p2288_p3, %p1036_p6 }
 0x152   : > { %s1043_s29 = sand.u32 (!%p1037_p7), 1, %s3028_s15   ;;  %v3234_v2 = vmov (!%p1037_p7), 0   ;;  %v1110_v3 = vld [vmem:[%s4672_s2] sm:$0xff] (!%p1037_p7)  ;;  %v1111_v4 = vld [vmem:[%s4672_s2 + $0x8] sm:$0xff] (!%p1037_p7)  ;;  %v1112_v5 = vld [vmem:[%s4672_s2 + $0x10] sm:$0xff] (!%p1037_p7)  ;;  %vm1196_vm0 = vcmask (!%p1037_p7), 261120  }
 0x153   : > { %1040 = sbr.rel (%p1037_p7) target bundleno = 757 (0x2f5), region = 160  ;;  %1235 = vmatprep.mubr.bf16.mxu0 (!%p1037_p7), %v3234_v2  ;;  %1288 = vmatprep.mubr.bf16.mxu1 (!%p1037_p7), %v3234_v2  ;;  %v1113_v6 = vld [vmem:[%s4672_s2 + $0x18] sm:$0xff] (!%p1037_p7)  ;;  %v2815_v13 = vld [vmem:[%s4671_s1] sm:$0xff] (!%p1037_p7)   ;;  %v2820_v18 = vld [vmem:[%s4671_s1 + $0x8] sm:$0xff] (!%p1037_p7)  }
 0x154   : > { %s4101_s10 = smul.u32 (!%p1037_p7), 80, %s1043_s29  ;;  %2804 = vset.pattern.permute.xlu0 (!%p1037_p7), %v3234_v2  ;;  %2805 = vset.pattern.permute.xlu1 (!%p1037_p7), %v3234_v2 }
 0x155   : > { %1116 = vperm.xlu0 (!%p1037_p7), %2804, %v1110_v3   ;;  %1126 = vperm.xlu1 (!%p1037_p7), %2805, %v1112_v5   ;;  %s2388_s0 = smul.u32 (!%p1037_p7), 160, %s1043_s29 }
 0x156   : > { %s1045_s9 = scalar_lea.vmem (!%p1037_p7), [#allocation2], %s4101_s10  ;;  %s4155_s15 = scalar_lea.vmem (!%p1037_p7), [#allocation4], %s4101_s10  }
 0x157   : > { %v2806_v7 = vld [vmem:[%s1045_s9 + $0x4] ss:$20 sps:$4 sm:$0xff] (!%p1037_p7)   ;;  %v2808_v8 = vld [vmem:[%s1045_s9] ss:$20 sps:$4 sm:$0xff] (!%p1037_p7)   ;;  %v2811_v10 = vld [vmem:[%s1045_s9 + $0x28] ss:$20 sps:$4 sm:$0xff] (!%p1037_p7)  }
 0x158   : > { %1203 = vmatprep.subr.bf16.mxu0 (!%p1037_p7), %v2806_v7  ;;  %v2809_v9 = vld [vmem:[%s1045_s9 + $0x2c] ss:$20 sps:$4 sm:$0xff] (!%p1037_p7)   ;;  %v2814_v12 = vld [vmem:[%s1045_s9 + $0x8] ss:$20 sps:$4 sm:$0xff] (!%p1037_p7)   ;;  %v2816_v14 = vld [vmem:[%s1045_s9 + $0x10] ss:$20 sps:$4 sm:$0xff] (!%p1037_p7)  }
 0x159   : > { %1204 = vmatpush1.bf16.msra.mxu0 (!%p1037_p7), %v2808_v8  ;;  %v2812_v11 = vld [vmem:[%s1045_s9 + $0xc] ss:$20 sps:$4 sm:$0xff] (!%p1037_p7)   ;;  %1121 = vperm.xlu0 (!%p1037_p7), %2804, %v1111_v4   ;;  %v2817_v15 = vld [vmem:[%s1045_s9 + $0x34] ss:$20 sps:$4 sm:$0xff] (!%p1037_p7)   ;;  %v2819_v16 = vld [vmem:[%s1045_s9 + $0x30] ss:$20 sps:$4 sm:$0xff] (!%p1037_p7)  }
 0x15a   : > { %1205 = vmatprep.subr.bf16.mxu0 %v2809_v9  ;;  %1131 = vperm.xlu1 %2805, %v1113_v6   ;;  %v2821_v17 = vld [vmem:[%s1045_s9 + $0x38] ss:$20 sps:$4 sm:$0xff]   ;;  %s4132_s30 = scalar_lea.vmem [#allocation3], %s2388_s0  ;;  %s1481_s11 = smul.u32 (%p3297_p5), 5, %s3278_s18 }
 0x15b   : > { %1256 = vmatprep.subr.bf16.mxu1 %v2812_v11  ;;  %v1358_v21 = vld [vmem:[%s4132_s30] sm:$0xff]  ;;  %v1359_v25 = vld [vmem:[%s4132_s30 + $0x8] sm:$0xff]  ;;  %v1364_v33 = vld [vmem:[%s4132_s30 + $0x30] sm:$0xff]  ;;  %s2368_s27 = smul.u32 (%p3297_p5), 20, %s3278_s18 }
 0x15c   : > { %1257 = vmatpush1.bf16.msra.mxu1 %v2814_v12  ;;  %v1363_v28 = vld [vmem:[%s4132_s30 + $0x28] sm:$0xff]  ;;  %v1360_v35 = vld [vmem:[%s4132_s30 + $0x10] sm:$0xff]  ;;  %v1361_v40 = vld [vmem:[%s4132_s30 + $0x18] sm:$0xff]  ;;  %s1482_s5 = ssub.s32 (%p3297_p5), 9, %s1481_s11 }
 0x15d   : > { %1206 = vmatpush1.bf16.msra.mxu0 %v2811_v10  ;;  %1258 = vmatprep.subr.bf16.mxu1 %v2817_v15  ;;  %v1365_v44 = vld [vmem:[%s4132_s30 + $0x38] sm:$0xff]  ;;  %v1366_v50 = vld [vmem:[%s4132_s30 + $0x40] sm:$0xff]  ;;  %v1368_v55 = vld [vmem:[%s4132_s30 + $0x50] sm:$0xff]  ;;  %p1483_p8 = scmp.lt.s32.totalorder (%p3297_p5), %s1482_s5, 5  ;;  %s4195_s10 = scalar_lea.vmem (%p3297_p5), %s4674_s4, %s2368_s27  }
 0x15e   : > { %2377 = vmatprep.subr.bf16.mxu0 %v2816_v14  ;;  %v1369_v61 = vld [vmem:[%s4132_s30 + $0x58] sm:$0xff]  ;;  %v1374_v6 = vld [vmem:[%s4132_s30 + $0x80] sm:$0xff] }
 0x15f   : > { %v1373_v1 = vld [vmem:[%s4132_s30 + $0x78] sm:$0xff]  ;;  %v1370_v8 = vld [vmem:[%s4132_s30 + $0x60] sm:$0xff] }
 0x160   : > { %2301 = vmatmul.mubr.msk.bf16.vlgmr.msra.gmra.mrb[0].mxu0 %vm1196_vm0, %v2815_v13  ;;  %1259 = vmatpush1.bf16.msra.mxu1 %v2819_v16 }
 0x161   : > { %2378 = vmatpush3.bf16.msra.mxu0 %v2816_v14  ;;  %1245 = vmatprep.mubr.bf16.mxu0 %v3234_v2 }
 0x162   : > { %2379 = vmatprep.subr.bf16.mxu0 %v2821_v17 }
 0x163   : > { %2303 = vmatmul.mubr.msk.bf16.vlgmr.msra.gmra.mrb[0].mxu1 %vm1196_vm0, %v2815_v13 }
 0x164   : > { %1298 = vmatprep.mubr.bf16.mxu1 %v3234_v2 }
 0x165   : > { %2380 = vmatpush3.bf16.msra.mxu0 %v2821_v17  ;;  %v1375_v17 = vld [vmem:[%s4132_s30 + $0x88] sm:$0xff] }
 0x168   : > { %2302 = vmatmul.mubr.msk.bf16.gmra.mrb[4].mxu0 %vm1196_vm0, %v2820_v18 }
 0x169   : > { %2381 = vmatprep.mubr.msk.bf16.mxu0 %vm1196_vm0, %v2815_v13  ;;  %v1371_v13 = vld [vmem:[%s4132_s30 + $0x68] sm:$0xff] }
 0x16b   : > { %2304 = vmatmul.mubr.msk.bf16.gmra.mrb[4].mxu1 %vm1196_vm0, %v2820_v18 }
 0x170   : > { %2382 = vmatmul.mubr.msk.bf16.vlgmr.msra.gmra.mrb[8].mxu0 %vm1196_vm0, %v2820_v18 }
 0x1d4   : > { %v4130_v19 = vpop.permute.xlu0 %1116  ;;  %v4141_v29 = vpop.permute.xlu1 %1126 }
 0x1d8   : > { %v4135_v22 = vpop.permute.xlu0 %1121 }
 0x1d9   : > { %v1132_v57 = vpop.permute.xlu1 %1131 }
 0x233   : > { %v1237_v20 = vpop.f32.mrb[0].mxu0 }
 0x234   : > { %v1238_v23 = vadd.f32 %v1237_v20, %v4130_v19  ;;  %v1239_v24 = vpop.f32.mrb[1].mxu0 }
 0x235   : > { %v1240_v26 = vadd.f32 %v1239_v24, %v4130_v19  ;;  %v1241_v27 = vpop.f32.mrb[2].mxu0 }
 0x236   : > { %v1378_v30 = vadd.f32 %v1358_v21, %v1238_v23  ;;  %v1242_v31 = vadd.f32 %v1241_v27, %v4135_v22  ;;  %v1243_v32 = vpop.f32.mrb[3].mxu0  ;;  %v1290_v34 = vpop.f32.mrb[0].mxu1 }
 0x237   : > { %v1379_v36 = vadd.f32 %v1359_v25, %v1240_v26  ;;  %v1244_v37 = vadd.f32 %v1243_v32, %v4135_v22  ;;  %v1291_v38 = vadd.f32 %v1290_v34, %v4130_v19  ;;  %v1292_v39 = vpop.f32.mrb[1].mxu1  ;;  %v1376_v25 = vld [vmem:[%s4132_s30 + $0x90] sm:$0xff] }
 0x238   : > { %v1383_v41 = vadd.f32 %v1363_v28, %v1242_v31  ;;  %v1293_v42 = vadd.f32 %v1292_v39, %v4130_v19  ;;  %v1294_v43 = vpop.f32.mrb[2].mxu1  ;;  %v1372_v32 = vld [vmem:[%s4132_s30 + $0x70] sm:$0xff] }
 0x239   : > { %v2356_v45 = vpack.c.bf16 %v1379_v36, %v1378_v30  ;;  %v1384_v46 = vadd.f32 %v1364_v33, %v1244_v37  ;;  %v1380_v47 = vadd.f32 %v1360_v35, %v1291_v38  ;;  %v1295_v48 = vadd.f32 %v1294_v43, %v4135_v22  ;;  %v1296_v49 = vpop.f32.mrb[3].mxu1  ;;  %v1362_v37 = vld [vmem:[%s4132_s30 + $0x20] sm:$0xff] }
 0x23a   : > { %v1381_v51 = vadd.f32 %v1361_v40, %v1293_v42  ;;  %v1297_v52 = vadd.f32 %v1296_v49, %v4135_v22  ;;  %v1377_v40 = vld [vmem:[%s4132_s30 + $0x98] sm:$0xff] }
 0x23b   : > { %1462 = vst [vmem:[%s4155_s15] sm:$0xff] %v2356_v45  ;;  %v2359_v53 = vpack.c.bf16 %v1384_v46, %v1383_v41  ;;  %v1247_v54 = vpop.f32.mrb[4].mxu0  ;;  %v1385_v56 = vadd.f32 %v1365_v44, %v1295_v48  ;;  %v1367_v45 = vld [vmem:[%s4132_s30 + $0x48] sm:$0xff] }
 0x23c   : > { %v2357_v58 = vpack.c.bf16 %v1381_v51, %v1380_v47  ;;  %v1248_v59 = vadd.f32 %v1247_v54, %v4141_v29  ;;  %v1249_v60 = vpop.f32.mrb[5].mxu0  ;;  %v1386_v62 = vadd.f32 %v1366_v50, %v1297_v52 }
 0x23d   : > { %1465 = vst [vmem:[%s4155_s15 + $0x14] sm:$0xff] %v2359_v53  ;;  %v1250_v63 = vadd.f32 %v1249_v60, %v4141_v29  ;;  %v1251_v0 = vpop.f32.mrb[6].mxu0 }
 0x23e   : > { %1463 = vst [vmem:[%s4155_s15 + $0x8] sm:$0xff] %v2357_v58  ;;  %v1388_v2 = vadd.f32 %v1368_v55, %v1248_v59  ;;  %v2360_v3 = vpack.c.bf16 %v1386_v62, %v1385_v56  ;;  %v1252_v4 = vadd.f32 %v1251_v0, %v1132_v57  ;;  %v1253_v5 = vpop.f32.mrb[7].mxu0  ;;  %v1300_v7 = vpop.f32.mrb[4].mxu1 }
 0x23f   : > { %v1389_v9 = vadd.f32 %v1369_v61, %v1250_v63  ;;  %v1254_v10 = vadd.f32 %v1253_v5, %v1132_v57  ;;  %v1301_v11 = vadd.f32 %v1300_v7, %v4141_v29  ;;  %v1302_v12 = vpop.f32.mrb[5].mxu1 }
 0x240   : > { %1466 = vst [vmem:[%s4155_s15 + $0x1c] sm:$0xff] %v2360_v3  ;;  %v1393_v14 = vadd.f32 %v1373_v1, %v1252_v4  ;;  %v1303_v15 = vadd.f32 %v1302_v12, %v4141_v29  ;;  %v1304_v16 = vpop.f32.mrb[6].mxu1 }
 0x241   : > { %v2362_v18 = vpack.c.bf16 %v1389_v9, %v1388_v2  ;;  %v1394_v20 = vadd.f32 %v1374_v6, %v1254_v10  ;;  %v1390_v21 = vadd.f32 %v1370_v8, %v1301_v11  ;;  %v1305_v23 = vadd.f32 %v1304_v16, %v1132_v57  ;;  %v1306_v24 = vpop.f32.mrb[7].mxu1 }
 0x242   : > { %v1391_v26 = vadd.f32 %v1371_v13, %v1303_v15  ;;  %v1307_v27 = vadd.f32 %v1306_v24, %v1132_v57 }
 0x243   : > { %1468 = vst [vmem:[%s4155_s15 + $0x28] sm:$0xff] %v2362_v18  ;;  %v2365_v28 = vpack.c.bf16 %v1394_v20, %v1393_v14  ;;  %v1395_v30 = vadd.f32 %v1375_v17, %v1305_v23  ;;  %v2383_v31 = vpop.f32.mrb[8].mxu0 }
 0x244   : > { %v2363_v33 = vpack.c.bf16 %v1391_v26, %v1390_v21  ;;  %v1396_v34 = vadd.f32 %v1376_v25, %v1307_v27  ;;  %v1352_v35 = vadd.f32 %v2383_v31, %v4141_v29  ;;  %v1343_v36 = vpop.f32.mrb[9].mxu0 }
 0x245   : > { %1471 = vst [vmem:[%s4155_s15 + $0x3c] sm:$0xff] %v2365_v28  ;;  %v1344_v38 = vadd.f32 %v1343_v36, %v4130_v19  ;;  %v2384_v39 = vpop.f32.mrb[10].mxu0 }
 0x246   : > { %1469 = vst [vmem:[%s4155_s15 + $0x30] sm:$0xff] %v2363_v33  ;;  %v2366_v41 = vpack.c.bf16 %v1396_v34, %v1395_v30  ;;  %v1392_v42 = vadd.f32 %v1372_v32, %v1352_v35  ;;  %v1355_v43 = vadd.f32 %v2384_v39, %v1132_v57  ;;  %v1346_v44 = vpop.f32.mrb[11].mxu0 }
 0x247   : > { %v1382_v46 = vadd.f32 %v1362_v37, %v1344_v38  ;;  %v1347_v29 = vadd.f32 %v1346_v44, %v4135_v22  ;;  %1480 = sbr.rel (!%p3297_p5) target bundleno = 757 (0x2f5), region = 172 }
 0x248   : > { %1472 = vst [vmem:[%s4155_s15 + $0x44] sm:$0xff] %v2366_v41  ;;  %v2364_v47 = vpack.c.bf16 %v1392_v42, %v1392_v42  ;;  %v1397_v48 = vadd.f32 %v1377_v40, %v1355_v43 }
 0x249   : > { %v2358_v49 = vpack.c.bf16 %v1382_v46, %v1382_v46  ;;  %v1387_v19 = vadd.f32 %v1367_v45, %v1347_v29 }
 0x24a   : > { %1470 = vst [vmem:[%s4155_s15 + $0x38] sm:$0xf] %v2364_v47  ;;  %v2367_v50 = vpack.c.bf16 %v1397_v48, %v1397_v48 }
 0x24b   : > { %1464 = vst [vmem:[%s4155_s15 + $0x10] sm:$0xf] %v2358_v49  ;;  %v2361_v51 = vpack.c.bf16 %v1387_v19, %v1387_v19 }
 0x24c   : > { %1473 = vst [vmem:[%s4155_s15 + $0x4c] sm:$0xf] %v2367_v50 }
 0x24d   : > { %1467 = vst [vmem:[%s4155_s15 + $0x24] sm:$0xf] %v2361_v51 }
 0x24e   : > { %s4753_s5 = smov (!%p1483_p8, %s1482_s5), 5 }
 0x24f   : > { %s2319_s6 = sshll.u32 %s4753_s5, 8  ;;  %s4197_s23 = sshll.u32 %s4753_s5, 2 }
 0x250   : > { %p2323_p9 = scmp.eq.s32.totalorder %s2319_s6, 0 }
 0x251   : > { %p1493_p10 = scmp.lt.u32.totalorder (!%p2323_p9), %s4197_s23, 8 }
 0x252   : > { %1492 = sbr.rel (%p2323_p9) target bundleno = 757 (0x2f5), region = 176 }
 0x259   : > { %1496 = sbr.rel (%p1493_p10) target bundleno = 748 (0x2ec), region = 180  ;;  %s4201_s24 = sand.u32 (!%p1493_p10), 7, %s4197_s23  }
 0x25a   : > { %p1518_p5 = scmp.eq.s32.totalorder (!%p1493_p10), %s4201_s24, 0  ;;  %p2324_p11 = scmp.ne.s32.totalorder (!%p1493_p10), %s4201_s24, 0 }
 0x260   : > { %1521 = sbr.rel (%p2324_p11) target bundleno = 675 (0x2a3), region = 195  ;;  %s1522_s18 = sshrl.u32 (!%p2324_p11), %s4197_s23, 3 }
 0x261   : > { %s4208_s17 = sshrl.u32 (!%p2324_p11), %s1522_s18, 4 }
 0x262   : > { %p2325_p12 = scmp.le.s32.totalorder (!%p2324_p11), %s4208_s17, 0 }
 0x267   : > { %2157 = sbr.rel (%p2325_p12) target bundleno = 655 (0x28f), region = 413  ;;  %s4711_s28 = smov (!%p2325_p12), %s4195_s10 }
 0x268   : > { %s4712_s14 = smov (!%p2325_p12), %s4155_s15  ;;  %s4217_s26 = smov (!%p2325_p12), 0  }
 0x269   : > { %s4219_s13 = smov (!%p2325_p12), 0  }
 0x26e LB: >> { %v1559_v22 = vld [vmem:[%s3172_s14 + $0x60] sm:$0xff]  ;;  %v1561_v52 = vld [vmem:[%s3172_s14 + $0x68] sm:$0xff]  ;;  %v1563_v53 = vld [vmem:[%s3172_s14 + $0x70] sm:$0xff]  ;;  %s1663_s21 = sadd.s32 1, %s3176_s26  ;;  %s1529_s13 = sadd.s32 1, %s3180_s13   ;;  %s3180_s13 = sphi %s4219_s13, %s1529_s13   ;;  %s3176_s26 = sphi %s4217_s26, %s4716_s26   ;;  %s3172_s14 = sphi %s4712_s14, %s4715_s14   ;;  %s3168_s28 = sphi %s4711_s28, %s4714_s28  }
 0x26f   : >> { %1560 = vst [vmem:[%s3168_s28 + $0x60] sm:$0xff] %v1559_v22  ;;  %1562 = vst [vmem:[%s3168_s28 + $0x68] sm:$0xff] %v1561_v52  ;;  %v1565_v54 = vld [vmem:[%s3172_s14 + $0x78] sm:$0xff]  ;;  %v4241_v55 = vld [vmem:[%s3172_s14 + $0x40] sm:$0xff]  ;;  %p4261_p13 = scmp.ge.s32.totalorder %s1663_s21, %s4208_s17  ;;  %p1528_p4 = scmp.ge.s32.totalorder %s1529_s13, %s4208_s17 }
 0x270   : >> { %1564 = vst [vmem:[%s3168_s28 + $0x70] sm:$0xff] %v1563_v53  ;;  %v1553_v56 = vld [vmem:[%s3172_s14 + $0x48] sm:$0xff]  ;;  %1566 = vst [vmem:[%s3168_s28 + $0x78] sm:$0xff] %v1565_v54  ;;  %v1555_v57 = vld [vmem:[%s3172_s14 + $0x50] sm:$0xff] }
 0x271   : >> { %1552 = vst [vmem:[%s3168_s28 + $0x40] sm:$0xff] %v4241_v55  ;;  %1554 = vst [vmem:[%s3168_s28 + $0x48] sm:$0xff] %v1553_v56  ;;  %v1557_v58 = vld [vmem:[%s3172_s14 + $0x58] sm:$0xff]  ;;  %v1587_v61 = vld [vmem:[%s3172_s14 + $0x64] sm:$0xff]  ;;  %s4755_s21 = smov (%p4261_p13, %s1663_s21), 0 }
 0x272   : >> { %v1583_v59 = vld [vmem:[%s3172_s14 + $0x54] sm:$0xff]  ;;  %1556 = vst [vmem:[%s3168_s28 + $0x50] sm:$0xff] %v1555_v57  ;;  %1558 = vst [vmem:[%s3168_s28 + $0x58] sm:$0xff] %v1557_v58  ;;  %v1585_v60 = vld [vmem:[%s3172_s14 + $0x5c] sm:$0xff]  ;;  %s2326_s8 = sshll.u32 %s4755_s21, 7  ;;  %s4716_s26 = smov %s4755_s21 }
 0x273   : >> { %1584 = vst [vmem:[%s3168_s28 + $0x64] sm:$0xff] %v1583_v59  ;;  %v4258_v62 = vld [vmem:[%s3172_s14 + $0x6c] sm:$0xff]  ;;  %1586 = vst [vmem:[%s3168_s28 + $0x6c] sm:$0xff] %v1585_v60  ;;  %v1591_v63 = vld [vmem:[%s3172_s14 + $0x74] sm:$0xff]  ;;  %s4321_s12 = scalar_lea.vmem %s4155_s15, %s2326_s8 [#allocation4]   ;;  %s4324_s25 = scalar_lea.vmem %s4195_s10, %s2326_s8  }
 0x274   : >> { %1588 = vst [vmem:[%s3168_s28 + $0x74] sm:$0xff] %v1587_v61  ;;  %1590 = vst [vmem:[%s3168_s28 + $0x7c] sm:$0xff] %v4258_v62  ;;  %v1593_v0 = vld [vmem:[%s3172_s14 + $0x7c] sm:$0xff]  ;;  %v4272_v1 = vld [vmem:[%s3172_s14 + $0x84] sm:$0xff] }
 0x275   : >> { %1592 = vst [vmem:[%s3168_s28 + $0x84] sm:$0xff] %v1591_v63  ;;  %1594 = vst [vmem:[%s3168_s28 + $0x8c] sm:$0xff] %v1593_v0  ;;  %v4279_v2 = vld [vmem:[%s3172_s14 + $0x8c] sm:$0xff]  ;;  %v1543_v3 = vld [vmem:[%s3172_s14 + $0x20] sm:$0xff] }
 0x276   : >> { %1596 = vst [vmem:[%s3168_s28 + $0x94] sm:$0xff] %v4272_v1  ;;  %v1545_v4 = vld [vmem:[%s3172_s14 + $0x28] sm:$0xff]  ;;  %1608 = vst [vmem:[%s3168_s28 + $0x68] sm:$0xff] %v1553_v56  ;;  %v1547_v5 = vld [vmem:[%s3172_s14 + $0x30] sm:$0xff] }
 0x277   : >> { %1610 = vst [vmem:[%s3168_s28 + $0x70] sm:$0xff] %v1555_v57  ;;  %1612 = vst [vmem:[%s3168_s28 + $0x78] sm:$0xff] %v1557_v58  ;;  %v1549_v6 = vld [vmem:[%s3172_s14 + $0x38] sm:$0xff]  ;;  %v1579_v9 = vld [vmem:[%s3172_s14 + $0x44] sm:$0xff] }
 0x278   : >> { %1598 = vst [vmem:[%s3168_s28 + $0x9c] sm:$0xff] %v4279_v2  ;;  %1544 = vst [vmem:[%s3168_s28 + $0x20] sm:$0xff] %v1543_v3  ;;  %v1575_v7 = vld [vmem:[%s3172_s14 + $0x34] sm:$0xff]  ;;  %v1577_v8 = vld [vmem:[%s3172_s14 + $0x3c] sm:$0xff] }
 0x279   : >> { %1546 = vst [vmem:[%s3168_s28 + $0x28] sm:$0xff] %v1545_v4  ;;  %1614 = vst [vmem:[%s3168_s28 + $0x80] sm:$0xff] %v1559_v22  ;;  %v1581_v10 = vld [vmem:[%s3172_s14 + $0x4c] sm:$0xff]  ;;  %v1621_v11 = vld [vmem:[%s3172_s14 + $0x80] sm:$0xff] }
 0x27a   : >> { %1616 = vst [vmem:[%s3168_s28 + $0x88] sm:$0xff] %v1561_v52  ;;  %1618 = vst [vmem:[%s3168_s28 + $0x90] sm:$0xff] %v1563_v53  ;;  %v1623_v12 = vld [vmem:[%s3172_s14 + $0x88] sm:$0xff]  ;;  %v1625_v13 = vld [vmem:[%s3172_s14 + $0x90] sm:$0xff] }
 0x27b   : >> { %1548 = vst [vmem:[%s3168_s28 + $0x30] sm:$0xff] %v1547_v5  ;;  %1550 = vst [vmem:[%s3168_s28 + $0x38] sm:$0xff] %v1549_v6  ;;  %v1627_v14 = vld [vmem:[%s3172_s14 + $0x98] sm:$0xff]  ;;  %v1629_v15 = vld [vmem:[%s3172_s14 + $0xa0] sm:$0xff] }
 0x27c   : >> { %1576 = vst [vmem:[%s3168_s28 + $0x44] sm:$0xff] %v1575_v7  ;;  %1620 = vst [vmem:[%s3168_s28 + $0x98] sm:$0xff] %v1565_v54  ;;  %v1535_v16 = vld [vmem:[%s3172_s14] sm:$0xff]  ;;  %v1537_v17 = vld [vmem:[%s3172_s14 + $0x8] sm:$0xff] }
 0x27d   : >> { %1638 = vst [vmem:[%s3168_s28 + $0x84] sm:$0xff] %v1583_v59  ;;  %1640 = vst [vmem:[%s3168_s28 + $0x8c] sm:$0xff] %v1585_v60  ;;  %v1539_v18 = vld [vmem:[%s3172_s14 + $0x10] sm:$0xff]  ;;  %v1541_v20 = vld [vmem:[%s3172_s14 + $0x18] sm:$0xff] }
 0x27e   : >> { %1578 = vst [vmem:[%s3168_s28 + $0x4c] sm:$0xff] %v1577_v8  ;;  %1580 = vst [vmem:[%s3168_s28 + $0x54] sm:$0xff] %v1579_v9  ;;  %v1567_v21 = vld [vmem:[%s3172_s14 + $0x14] sm:$0xff]  ;;  %v1569_v23 = vld [vmem:[%s3172_s14 + $0x1c] sm:$0xff] }
 0x27f   : >> { %1582 = vst [vmem:[%s3168_s28 + $0x5c] sm:$0xff] %v1581_v10  ;;  %1632 = vst [vmem:[%s3168_s28 + $0x6c] sm:$0xff] %v1577_v8  ;;  %v1571_v24 = vld [vmem:[%s3172_s14 + $0x24] sm:$0xff]  ;;  %v1573_v25 = vld [vmem:[%s3172_s14 + $0x2c] sm:$0xff] }
 0x280   : >> { %1634 = vst [vmem:[%s3168_s28 + $0x74] sm:$0xff] %v1579_v9  ;;  %1636 = vst [vmem:[%s3168_s28 + $0x7c] sm:$0xff] %v1581_v10  ;;  %v1653_v26 = vld [vmem:[%s3172_s14 + $0x94] sm:$0xff]  ;;  %v1655_v27 = vld [vmem:[%s3172_s14 + $0x9c] sm:$0xff] }
 0x281   : >> { %1642 = vst [vmem:[%s3168_s28 + $0x94] sm:$0xff] %v1587_v61  ;;  %1622 = vst [vmem:[%s3168_s28 + $0xa0] sm:$0xff] %v1621_v11  ;;  %v1657_v28 = vld [vmem:[%s3172_s14 + $0xa4] sm:$0xff]  ;;  %v1659_v30 = vld [vmem:[%s3172_s14 + $0xac] sm:$0xff] }
 0x282   : >> { %1624 = vst [vmem:[%s3168_s28 + $0xa8] sm:$0xff] %v1623_v12  ;;  %1626 = vst [vmem:[%s3168_s28 + $0xb0] sm:$0xff] %v1625_v13  ;;  %v1661_v31 = vld [vmem:[%s3172_s14 + $0xb4] sm:$0xff]  ;;  %s4715_s14 = smov %s4321_s12 }
 0x283   : >> { %1600 = vst [vmem:[%s3168_s28 + $0x48] sm:$0xff] %v1545_v4  ;;  %1602 = vst [vmem:[%s3168_s28 + $0x50] sm:$0xff] %v1547_v5 }
 0x284   : >> { %1604 = vst [vmem:[%s3168_s28 + $0x58] sm:$0xff] %v1549_v6  ;;  %1606 = vst [vmem:[%s3168_s28 + $0x60] sm:$0xff] %v4241_v55 }
 0x285   : >> { %1628 = vst [vmem:[%s3168_s28 + $0xb8] sm:$0xff] %v1627_v14  ;;  %1630 = vst [vmem:[%s3168_s28 + $0xc0] sm:$0xff] %v1629_v15 }
 0x286   : >> { %1536 = vst [vmem:[%s3168_s28] sm:$0xff] %v1535_v16  ;;  %1644 = vst [vmem:[%s3168_s28 + $0x9c] sm:$0xff] %v4258_v62 }
 0x287   : >> { %1646 = vst [vmem:[%s3168_s28 + $0xa4] sm:$0xff] %v1591_v63  ;;  %1648 = vst [vmem:[%s3168_s28 + $0xac] sm:$0xff] %v1593_v0 }
 0x288   : >> { %1538 = vst [vmem:[%s3168_s28 + $0x8] sm:$0xff] %v1537_v17  ;;  %1540 = vst [vmem:[%s3168_s28 + $0x10] sm:$0xff] %v1539_v18  ;;  %1531 = sbr.rel (!%p1528_p4) target bundleno = 622 (0x26e), region = 419 }
 0x289   : >> { %1542 = vst [vmem:[%s3168_s28 + $0x18] sm:$0xff] %v1541_v20  ;;  %1650 = vst [vmem:[%s3168_s28 + $0xb4] sm:$0xff] %v4272_v1 }
 0x28a   : >> { %1652 = vst [vmem:[%s3168_s28 + $0xbc] sm:$0xff] %v4279_v2  ;;  %1568 = vst [vmem:[%s3168_s28 + $0x24] sm:$0xff] %v1567_v21 }
 0x28b   : >> { %1570 = vst [vmem:[%s3168_s28 + $0x2c] sm:$0xff] %v1569_v23  ;;  %1572 = vst [vmem:[%s3168_s28 + $0x34] sm:$0xff] %v1571_v24 }
 0x28c   : >> { %1574 = vst [vmem:[%s3168_s28 + $0x3c] sm:$0xff] %v1573_v25  ;;  %1654 = vst [vmem:[%s3168_s28 + $0xc4] sm:$0xff] %v1653_v26 }
 0x28d   : >> { %1656 = vst [vmem:[%s3168_s28 + $0xcc] sm:$0xff] %v1655_v27  ;;  %1658 = vst [vmem:[%s3168_s28 + $0xd4] sm:$0xff] %v1657_v28 }
 0x28e   : >> { %1660 = vst [vmem:[%s3168_s28 + $0xdc] sm:$0xff] %v1659_v30  ;;  %1662 = vst [vmem:[%s3168_s28 + $0xe4] sm:$0xff] %v1661_v31  ;;  %s4714_s28 = smov %s4324_s25 }
 0x28f PF: > { %s4387_s20 = sand.u32 15, %s1522_s18   ;;  %s2369_s0 = sshll.u32 %s4208_s17, 11 }
 0x290   : > { %s1674_s30 = sshra.s32 %s2369_s0, 4  ;;  %p2331_p0 = scmp.le.s32.totalorder %s4387_s20, 0 }
 0x291   : > { %s4391_s11 = scalar_lea.vmem %s4155_s15, %s1674_s30 [#allocation4]   ;;  %s4394_s27 = scalar_lea.vmem %s4195_s10, %s1674_s30  }
 0x292   : > { %2171 = sbr.rel (%p2331_p0) target bundleno = 675 (0x2a3), region = 424  ;;  %s4717_s5 = smov (!%p2331_p0), %s4394_s27 }
 0x293   : > { %s4718_s7 = smov (!%p2331_p0), %s4391_s11  ;;  %s4403_s29 = smov (!%p2331_p0), 0  }
 0x294   : > { %s3194_s6 = smov (!%p2331_p0), 0  }
 0x299 LB: >> { %v1690_v32 = vld [vmem:[%s3188_s7] sm:$0xff]  ;;  %v1692_v33 = vld [vmem:[%s3188_s7 + $0x14] sm:$0xff]  ;;  %v1694_v34 = vld [vmem:[%s3188_s7 + $0x28] sm:$0xff]  ;;  %s1698_s18 = sadd.s32 1, %s3192_s29  ;;  %s1684_s6 = sadd.s32 1, %s3196_s6   ;;  %s3196_s6 = sphi %s3194_s6, %s1684_s6   ;;  %s3192_s29 = sphi %s4403_s29, %s4719_s29   ;;  %s3188_s7 = sphi %s4718_s7, %s1703_s7   ;;  %s3184_s5 = sphi %s4717_s5, %s1704_s5  }
 0x29a   : >> { %1691 = vst [vmem:[%s3184_s5] sm:$0xff] %v1690_v32  ;;  %1693 = vst [vmem:[%s3184_s5 + $0x24] sm:$0xff] %v1692_v33  ;;  %v1696_v35 = vld [vmem:[%s3188_s7 + $0x3c] sm:$0xff]  ;;  %p1699_p1 = scmp.ge.s32.totalorder %s1698_s18, %s4387_s20  ;;  %p1683_p2 = scmp.ge.s32.totalorder %s1684_s6, %s4387_s20 }
 0x29b   : >> { %1695 = vst [vmem:[%s3184_s5 + $0x48] sm:$0xff] %v1694_v34  ;;  %1697 = vst [vmem:[%s3184_s5 + $0x6c] sm:$0xff] %v1696_v35 }
 0x29c   : >> { %s4757_s18 = smov (%p1699_p1, %s1698_s18), 0  ;;  %1686 = sbr.rel (!%p1683_p2) target bundleno = 665 (0x299), region = 430 }
 0x29d   : >> { %s2332_s17 = sshll.u32 %s4757_s18, 3  ;;  %s4719_s29 = smov %s4757_s18 }
 0x29e   : >> { %s1703_s7 = scalar_lea.vmem %s4391_s11, %s2332_s17 [#allocation4]   ;;  %s1704_s5 = scalar_lea.vmem %s4394_s27, %s2332_s17  }
 0x2a3 PF: > { %1707 = sbr.rel (%p1518_p5) target bundleno = 748 (0x2ec), region = 213  ;;  %s1709_s28 = ssub.s32 (!%p1518_p5), %s4197_s23, %s4201_s24 }
 0x2a4   : > { %s1713_s14 = sshrl.u32 (!%p1518_p5), %s4197_s23, 3  ;;  %s4424_s26 = scalar_lea.vmem (!%p1518_p5), %s4155_s15, %s1709_s28 [#allocation4] }
 0x2a5   : > { %s4427_s13 = scalar_lea.vmem (!%p1518_p5), %s4195_s10, %s1709_s28  ;;  %s4431_s21 = sshrl.u32 (!%p1518_p5), %s1713_s14, 4 }
 0x2a6   : > { %p2334_p3 = scmp.le.s32.totalorder (!%p1518_p5), %s4431_s21, 0 }
 0x2aa   : > { %2185 = sbr.rel (%p2334_p3) target bundleno = 722 (0x2d2), region = 435  ;;  %s4720_s9 = smov (!%p2334_p3), %s4195_s10 }
 0x2ab   : > { %s4721_s8 = smov (!%p2334_p3), %s4155_s15  ;;  %s4440_s12 = smov (!%p2334_p3), 0  }
 0x2ac   : > { %s4442_s25 = smov (!%p2334_p3), 0  }
 0x2b1 LB: >> { %v1750_v36 = vld [vmem:[%s3204_s8 + $0x60] sm:$0xff]  ;;  %v1752_v37 = vld [vmem:[%s3204_s8 + $0x68] sm:$0xff]  ;;  %v1754_v38 = vld [vmem:[%s3204_s8 + $0x70] sm:$0xff]  ;;  %s1854_s20 = sadd.s32 1, %s3208_s12  ;;  %s1720_s25 = sadd.s32 1, %s3212_s25   ;;  %s3212_s25 = sphi %s4442_s25, %s1720_s25   ;;  %s3208_s12 = sphi %s4440_s12, %s4725_s12   ;;  %s3204_s8 = sphi %s4721_s8, %s4724_s8   ;;  %s3200_s9 = sphi %s4720_s9, %s4723_s9  }
 0x2b2   : >> { %1751 = vst [vmem:[%s3200_s9 + $0x60] sm:$0xff] %v1750_v36  ;;  %1753 = vst [vmem:[%s3200_s9 + $0x68] sm:$0xff] %v1752_v37  ;;  %v1756_v39 = vld [vmem:[%s3204_s8 + $0x78] sm:$0xff]  ;;  %v4464_v40 = vld [vmem:[%s3204_s8 + $0x40] sm:$0xff]  ;;  %p4484_p6 = scmp.ge.s32.totalorder %s1854_s20, %s4431_s21  ;;  %p1719_p7 = scmp.ge.s32.totalorder %s1720_s25, %s4431_s21 }
 0x2b3   : >> { %1755 = vst [vmem:[%s3200_s9 + $0x70] sm:$0xff] %v1754_v38  ;;  %v1744_v41 = vld [vmem:[%s3204_s8 + $0x48] sm:$0xff]  ;;  %1757 = vst [vmem:[%s3200_s9 + $0x78] sm:$0xff] %v1756_v39  ;;  %v1746_v42 = vld [vmem:[%s3204_s8 + $0x50] sm:$0xff] }
 0x2b4   : >> { %1743 = vst [vmem:[%s3200_s9 + $0x40] sm:$0xff] %v4464_v40  ;;  %1745 = vst [vmem:[%s3200_s9 + $0x48] sm:$0xff] %v1744_v41  ;;  %v1748_v43 = vld [vmem:[%s3204_s8 + $0x58] sm:$0xff]  ;;  %v1778_v46 = vld [vmem:[%s3204_s8 + $0x64] sm:$0xff]  ;;  %s4759_s20 = smov (%p4484_p6, %s1854_s20), 0 }
 0x2b5   : >> { %v1774_v44 = vld [vmem:[%s3204_s8 + $0x54] sm:$0xff]  ;;  %1747 = vst [vmem:[%s3200_s9 + $0x50] sm:$0xff] %v1746_v42  ;;  %1749 = vst [vmem:[%s3200_s9 + $0x58] sm:$0xff] %v1748_v43  ;;  %v1776_v45 = vld [vmem:[%s3204_s8 + $0x5c] sm:$0xff]  ;;  %s2335_s30 = sshll.u32 %s4759_s20, 7  ;;  %s4725_s12 = smov %s4759_s20 }
 0x2b6   : >> { %1775 = vst [vmem:[%s3200_s9 + $0x64] sm:$0xff] %v1774_v44  ;;  %v4481_v29 = vld [vmem:[%s3204_s8 + $0x6c] sm:$0xff]  ;;  %1777 = vst [vmem:[%s3200_s9 + $0x6c] sm:$0xff] %v1776_v45  ;;  %v1782_v47 = vld [vmem:[%s3204_s8 + $0x74] sm:$0xff]  ;;  %s4544_s11 = scalar_lea.vmem %s4155_s15, %s2335_s30 [#allocation4]   ;;  %s4547_s27 = scalar_lea.vmem %s4195_s10, %s2335_s30  }
 0x2b7   : >> { %1779 = vst [vmem:[%s3200_s9 + $0x74] sm:$0xff] %v1778_v46  ;;  %1781 = vst [vmem:[%s3200_s9 + $0x7c] sm:$0xff] %v4481_v29  ;;  %v1784_v48 = vld [vmem:[%s3204_s8 + $0x7c] sm:$0xff]  ;;  %v4495_v49 = vld [vmem:[%s3204_s8 + $0x84] sm:$0xff] }
 0x2b8   : >> { %1783 = vst [vmem:[%s3200_s9 + $0x84] sm:$0xff] %v1782_v47  ;;  %1785 = vst [vmem:[%s3200_s9 + $0x8c] sm:$0xff] %v1784_v48  ;;  %v4502_v19 = vld [vmem:[%s3204_s8 + $0x8c] sm:$0xff]  ;;  %v1734_v50 = vld [vmem:[%s3204_s8 + $0x20] sm:$0xff] }
 0x2b9   : >> { %1787 = vst [vmem:[%s3200_s9 + $0x94] sm:$0xff] %v4495_v49  ;;  %v1736_v51 = vld [vmem:[%s3204_s8 + $0x28] sm:$0xff]  ;;  %1799 = vst [vmem:[%s3200_s9 + $0x68] sm:$0xff] %v1744_v41  ;;  %v1738_v22 = vld [vmem:[%s3204_s8 + $0x30] sm:$0xff] }
 0x2ba   : >> { %1801 = vst [vmem:[%s3200_s9 + $0x70] sm:$0xff] %v1746_v42  ;;  %1803 = vst [vmem:[%s3200_s9 + $0x78] sm:$0xff] %v1748_v43  ;;  %v1740_v52 = vld [vmem:[%s3204_s8 + $0x38] sm:$0xff]  ;;  %v1770_v55 = vld [vmem:[%s3204_s8 + $0x44] sm:$0xff] }
 0x2bb   : >> { %1789 = vst [vmem:[%s3200_s9 + $0x9c] sm:$0xff] %v4502_v19  ;;  %1735 = vst [vmem:[%s3200_s9 + $0x20] sm:$0xff] %v1734_v50  ;;  %v1766_v53 = vld [vmem:[%s3204_s8 + $0x34] sm:$0xff]  ;;  %v1768_v54 = vld [vmem:[%s3204_s8 + $0x3c] sm:$0xff] }
 0x2bc   : >> { %1737 = vst [vmem:[%s3200_s9 + $0x28] sm:$0xff] %v1736_v51  ;;  %1805 = vst [vmem:[%s3200_s9 + $0x80] sm:$0xff] %v1750_v36  ;;  %v1772_v56 = vld [vmem:[%s3204_s8 + $0x4c] sm:$0xff]  ;;  %v1812_v57 = vld [vmem:[%s3204_s8 + $0x80] sm:$0xff] }
 0x2bd   : >> { %1807 = vst [vmem:[%s3200_s9 + $0x88] sm:$0xff] %v1752_v37  ;;  %1809 = vst [vmem:[%s3200_s9 + $0x90] sm:$0xff] %v1754_v38  ;;  %v1814_v58 = vld [vmem:[%s3204_s8 + $0x88] sm:$0xff]  ;;  %v1816_v59 = vld [vmem:[%s3204_s8 + $0x90] sm:$0xff] }
 0x2be   : >> { %1739 = vst [vmem:[%s3200_s9 + $0x30] sm:$0xff] %v1738_v22  ;;  %1741 = vst [vmem:[%s3200_s9 + $0x38] sm:$0xff] %v1740_v52  ;;  %v1818_v60 = vld [vmem:[%s3204_s8 + $0x98] sm:$0xff]  ;;  %v1820_v61 = vld [vmem:[%s3204_s8 + $0xa0] sm:$0xff] }
 0x2bf   : >> { %1767 = vst [vmem:[%s3200_s9 + $0x44] sm:$0xff] %v1766_v53  ;;  %1811 = vst [vmem:[%s3200_s9 + $0x98] sm:$0xff] %v1756_v39  ;;  %v1726_v62 = vld [vmem:[%s3204_s8] sm:$0xff]  ;;  %v1728_v63 = vld [vmem:[%s3204_s8 + $0x8] sm:$0xff] }
 0x2c0   : >> { %1829 = vst [vmem:[%s3200_s9 + $0x84] sm:$0xff] %v1774_v44  ;;  %1831 = vst [vmem:[%s3200_s9 + $0x8c] sm:$0xff] %v1776_v45  ;;  %v1730_v0 = vld [vmem:[%s3204_s8 + $0x10] sm:$0xff]  ;;  %v1732_v1 = vld [vmem:[%s3204_s8 + $0x18] sm:$0xff] }
 0x2c1   : >> { %1769 = vst [vmem:[%s3200_s9 + $0x4c] sm:$0xff] %v1768_v54  ;;  %1771 = vst [vmem:[%s3200_s9 + $0x54] sm:$0xff] %v1770_v55  ;;  %v1758_v2 = vld [vmem:[%s3204_s8 + $0x14] sm:$0xff]  ;;  %v1760_v3 = vld [vmem:[%s3204_s8 + $0x1c] sm:$0xff] }
 0x2c2   : >> { %1773 = vst [vmem:[%s3200_s9 + $0x5c] sm:$0xff] %v1772_v56  ;;  %1823 = vst [vmem:[%s3200_s9 + $0x6c] sm:$0xff] %v1768_v54  ;;  %v1762_v4 = vld [vmem:[%s3204_s8 + $0x24] sm:$0xff]  ;;  %v1764_v5 = vld [vmem:[%s3204_s8 + $0x2c] sm:$0xff] }
 0x2c3   : >> { %1825 = vst [vmem:[%s3200_s9 + $0x74] sm:$0xff] %v1770_v55  ;;  %1827 = vst [vmem:[%s3200_s9 + $0x7c] sm:$0xff] %v1772_v56  ;;  %v1844_v6 = vld [vmem:[%s3204_s8 + $0x94] sm:$0xff]  ;;  %v1846_v7 = vld [vmem:[%s3204_s8 + $0x9c] sm:$0xff] }
 0x2c4   : >> { %1833 = vst [vmem:[%s3200_s9 + $0x94] sm:$0xff] %v1778_v46  ;;  %1813 = vst [vmem:[%s3200_s9 + $0xa0] sm:$0xff] %v1812_v57  ;;  %v1848_v8 = vld [vmem:[%s3204_s8 + $0xa4] sm:$0xff]  ;;  %v1850_v9 = vld [vmem:[%s3204_s8 + $0xac] sm:$0xff] }
 0x2c5   : >> { %1815 = vst [vmem:[%s3200_s9 + $0xa8] sm:$0xff] %v1814_v58  ;;  %1817 = vst [vmem:[%s3200_s9 + $0xb0] sm:$0xff] %v1816_v59  ;;  %v1852_v10 = vld [vmem:[%s3204_s8 + $0xb4] sm:$0xff]  ;;  %s4724_s8 = smov %s4544_s11 }
 0x2c6   : >> { %1791 = vst [vmem:[%s3200_s9 + $0x48] sm:$0xff] %v1736_v51  ;;  %1793 = vst [vmem:[%s3200_s9 + $0x50] sm:$0xff] %v1738_v22 }
 0x2c7   : >> { %1795 = vst [vmem:[%s3200_s9 + $0x58] sm:$0xff] %v1740_v52  ;;  %1797 = vst [vmem:[%s3200_s9 + $0x60] sm:$0xff] %v4464_v40 }
 0x2c8   : >> { %1819 = vst [vmem:[%s3200_s9 + $0xb8] sm:$0xff] %v1818_v60  ;;  %1821 = vst [vmem:[%s3200_s9 + $0xc0] sm:$0xff] %v1820_v61 }
 0x2c9   : >> { %1727 = vst [vmem:[%s3200_s9] sm:$0xff] %v1726_v62  ;;  %1835 = vst [vmem:[%s3200_s9 + $0x9c] sm:$0xff] %v4481_v29 }
 0x2ca   : >> { %1837 = vst [vmem:[%s3200_s9 + $0xa4] sm:$0xff] %v1782_v47  ;;  %1839 = vst [vmem:[%s3200_s9 + $0xac] sm:$0xff] %v1784_v48 }
 0x2cb   : >> { %1729 = vst [vmem:[%s3200_s9 + $0x8] sm:$0xff] %v1728_v63  ;;  %1731 = vst [vmem:[%s3200_s9 + $0x10] sm:$0xff] %v1730_v0  ;;  %1722 = sbr.rel (!%p1719_p7) target bundleno = 689 (0x2b1), region = 441 }
 0x2cc   : >> { %1733 = vst [vmem:[%s3200_s9 + $0x18] sm:$0xff] %v1732_v1  ;;  %1841 = vst [vmem:[%s3200_s9 + $0xb4] sm:$0xff] %v4495_v49 }
 0x2cd   : >> { %1843 = vst [vmem:[%s3200_s9 + $0xbc] sm:$0xff] %v4502_v19  ;;  %1759 = vst [vmem:[%s3200_s9 + $0x24] sm:$0xff] %v1758_v2 }
 0x2ce   : >> { %1761 = vst [vmem:[%s3200_s9 + $0x2c] sm:$0xff] %v1760_v3  ;;  %1763 = vst [vmem:[%s3200_s9 + $0x34] sm:$0xff] %v1762_v4 }
 0x2cf   : >> { %1765 = vst [vmem:[%s3200_s9 + $0x3c] sm:$0xff] %v1764_v5  ;;  %1845 = vst [vmem:[%s3200_s9 + $0xc4] sm:$0xff] %v1844_v6 }
 0x2d0   : >> { %1847 = vst [vmem:[%s3200_s9 + $0xcc] sm:$0xff] %v1846_v7  ;;  %1849 = vst [vmem:[%s3200_s9 + $0xd4] sm:$0xff] %v1848_v8 }
 0x2d1   : >> { %1851 = vst [vmem:[%s3200_s9 + $0xdc] sm:$0xff] %v1850_v9  ;;  %1853 = vst [vmem:[%s3200_s9 + $0xe4] sm:$0xff] %v1852_v10  ;;  %s4723_s9 = smov %s4547_s27 }
 0x2d2 PF: > { %s4610_s5 = sand.u32 15, %s1713_s14   ;;  %s2371_s7 = sshll.u32 %s4431_s21, 11 }
 0x2d3   : > { %s1865_s29 = sshra.s32 %s2371_s7, 4  ;;  %p2340_p8 = scmp.le.s32.totalorder %s4610_s5, 0 }
 0x2d4   : > { %s4614_s6 = scalar_lea.vmem %s4155_s15, %s1865_s29 [#allocation4]   ;;  %s4617_s18 = scalar_lea.vmem %s4195_s10, %s1865_s29  }
 0x2d5   : > { %2199 = sbr.rel (%p2340_p8) target bundleno = 742 (0x2e6), region = 446  ;;  %s4726_s17 = smov (!%p2340_p8), %s4617_s18 }
 0x2d6   : > { %s4727_s28 = smov (!%p2340_p8), %s4614_s6  ;;  %s4626_s9 = smov (!%p2340_p8), 0  }
 0x2d7   : > { %s3226_s8 = smov (!%p2340_p8), 0  }
 0x2dc LB: >> { %v1881_v11 = vld [vmem:[%s3220_s28] sm:$0xff]  ;;  %v1883_v12 = vld [vmem:[%s3220_s28 + $0x14] sm:$0xff]  ;;  %v1885_v13 = vld [vmem:[%s3220_s28 + $0x28] sm:$0xff]  ;;  %s1889_s14 = sadd.s32 1, %s3224_s9  ;;  %s1875_s8 = sadd.s32 1, %s3228_s8   ;;  %s3228_s8 = sphi %s3226_s8, %s1875_s8   ;;  %s3224_s9 = sphi %s4626_s9, %s4728_s9   ;;  %s3220_s28 = sphi %s4727_s28, %s1894_s28   ;;  %s3216_s17 = sphi %s4726_s17, %s1895_s17  }
 0x2dd   : >> { %1882 = vst [vmem:[%s3216_s17] sm:$0xff] %v1881_v11  ;;  %1884 = vst [vmem:[%s3216_s17 + $0x24] sm:$0xff] %v1883_v12  ;;  %v1887_v14 = vld [vmem:[%s3220_s28 + $0x3c] sm:$0xff]  ;;  %p1890_p9 = scmp.ge.s32.totalorder %s1889_s14, %s4610_s5  ;;  %p1874_p10 = scmp.ge.s32.totalorder %s1875_s8, %s4610_s5 }
 0x2de   : >> { %1886 = vst [vmem:[%s3216_s17 + $0x48] sm:$0xff] %v1885_v13  ;;  %1888 = vst [vmem:[%s3216_s17 + $0x6c] sm:$0xff] %v1887_v14 }
 0x2df   : >> { %s4761_s14 = smov (%p1890_p9, %s1889_s14), 0  ;;  %1877 = sbr.rel (!%p1874_p10) target bundleno = 732 (0x2dc), region = 452 }
 0x2e0   : >> { %s2341_s21 = sshll.u32 %s4761_s14, 3  ;;  %s4728_s9 = smov %s4761_s14 }
 0x2e1   : >> { %s1894_s28 = scalar_lea.vmem %s4614_s6, %s2341_s21 [#allocation4]   ;;  %s1895_s17 = scalar_lea.vmem %s4617_s18, %s2341_s21  }
 0x2e6 PF: > { %s3235_s12 = smov 0  }
 0x2e7   : > { %s1896_s25 = sshllo.u32 %s3235_s12, %s4201_s24 }
 0x2e8   : > { %v1905_v15 = vld [vmem:[%s4424_s26] sm:%s1896_s25]  ;;  %v1907_v16 = vld [vmem:[%s4424_s26 + $0x14] sm:%s1896_s25] }
 0x2e9   : > { %1906 = vst [vmem:[%s4427_s13] sm:%s1896_s25] %v1905_v15  ;;  %1908 = vst [vmem:[%s4427_s13 + $0x24] sm:%s1896_s25] %v1907_v16 }
 0x2ea   : > { %v1909_v17 = vld [vmem:[%s4424_s26 + $0x28] sm:%s1896_s25]  ;;  %v1911_v18 = vld [vmem:[%s4424_s26 + $0x3c] sm:%s1896_s25] }
 0x2eb   : > { %1910 = vst [vmem:[%s4427_s13 + $0x48] sm:%s1896_s25] %v1909_v17  ;;  %1912 = vst [vmem:[%s4427_s13 + $0x6c] sm:%s1896_s25] %v1911_v18 }
 0x2ec PF: > { %p2343_p5 = scmp.ge.u32.totalorder %s4197_s23, 8 }
 0x2ed   : > { %s3236_s20 = smov (!%p2343_p5), 0  }
 0x2ee   : > { %1499 = sbr.rel (%p2343_p5) target bundleno = 757 (0x2f5), region = 184  ;;  %s1500_s24 = sshllo.u32 (!%p2343_p5), %s3236_s20, %s4197_s23 }
 0x2ef   : > { %v1509_v20 = vld [vmem:[%s4155_s15] sm:%s1500_s24] (!%p2343_p5)  ;;  %v1511_v21 = vld [vmem:[%s4155_s15 + $0x14] sm:%s1500_s24] (!%p2343_p5) }
 0x2f0   : > { %1510 = vst [vmem:[%s4195_s10] sm:%s1500_s24] (!%p2343_p5), %v1509_v20  ;;  %1512 = vst [vmem:[%s4195_s10 + $0x24] sm:%s1500_s24] (!%p2343_p5), %v1511_v21 }
 0x2f1   : > { %v1513_v23 = vld [vmem:[%s4155_s15 + $0x28] sm:%s1500_s24] (!%p2343_p5)  ;;  %v1515_v24 = vld [vmem:[%s4155_s15 + $0x3c] sm:%s1500_s24] (!%p2343_p5) }
 0x2f2   : > { %1514 = vst [vmem:[%s4195_s10 + $0x48] sm:%s1500_s24] (!%p2343_p5), %v1513_v23  ;;  %1516 = vst [vmem:[%s4195_s10 + $0x6c] sm:%s1500_s24] (!%p2343_p5), %v1515_v24 }
 0x2f5 PF: > { %p11_p11 = scmp.ge.s32.totalorder %s3281_s19, 4   ;;  %s4729_s15 = smov %s3032_s16 }
 0x2f6   : > { %s4730_s16 = smov %s3291_s22  ;;  %s4731_s17 = smov %s3281_s19 }
 0x2f7   :  { %13 = sbr.rel (!%p11_p11) target bundleno = 4 (0x4), region = 463 }

// kernel: fno_mesh2d_forward.11
= control target key start
LH: loop header
LB: loop body
LE: loop exit
PB: predicated region body
PF: predicated region fallthrough
CT: control target
= control target key end

     0   :  { %s1624_s0 = inlined_call_operand.vmem [shape: bf16[32,512], index: 0, kind: input, shape index: {}]   ;;  %s1625_s1 = inlined_call_operand.vmem [shape: bf16[128,32], index: 1, kind: input, shape index: {}]   ;;  %s1626_s2 = inlined_call_operand.vmem [shape: f32[128,1], index: 2, kind: input, shape index: {}]   ;;  %s1627_s3 = inlined_call_operand.vmem [shape: bf16[1,128], index: 3, kind: input, shape index: {}]   ;;  %s1628_s4 = inlined_call_operand.<no memory space> [shape: f32[1,1], index: 4, kind: input, shape index: {}]   ;;  %s1629_s5 = inlined_call_operand.vmem [shape: f32[1,512], index: 5, kind: output, shape index: {}]  }
   0x1   :  { %v10_v0 = vstv %s1628_s4 }
   0x2   :  { %11 = vst [vmem:[#allocation2] sm:$0x1] %v10_v0 }
   0x3   :  { %s1222_s20 = smov 0   ;;  %s1224_s21 = smov 0  }
   0x4   :  { %s1226_s22 = smov 0  }
   0x5 LB: > { %s1024_s4 = sadd.s32 4294967295, %s1185_s22   ;;  %s1239_s23 = sadd.s32 1, %s1185_s22   ;;  %s1185_s22 = sphi %s1226_s22, %s1632_s22   ;;  %s1181_s21 = sphi %s1224_s21, %s1631_s21   ;;  %s1177_s20 = sphi %s1222_s20, %s1630_s20  }
   0x6   : > { %s21_s24 = ssub.s32 %s1185_s22, %s1239_s23  ;;  %s24_s25 = sadd.s32 1, %s1181_s21 }
   0x7   : > { %p22_p0 = scmp.eq.s32.totalorder %s21_s24, 0  ;;  %p31_p1 = scmp.ne.s32.totalorder %s1181_s21, %s1177_s20 }
   0x8   : > { %p32_p2 = scmp.eq.s32.totalorder %s1185_s22, 0  ;;  %p1027_p4 = scmp.ge.s32.totalorder %s1185_s22, 2 }
   0x9   : > { %s1248_s26 = scalar_select %p22_p0, %s1181_s21, %s24_s25  }
   0xa   : > { %p33_p3 = por %p32_p2, %p31_p1  ;;  %179 = sbr.rel (%p1027_p4) target bundleno = 24 (0x18), region = 32 }
  0x11   : > { %182 = sbr.rel (!%p33_p3) target bundleno = 24 (0x18), region = 36  ;;  %s184_s27 = sand.u32 (%p33_p3), 1, %s1181_s21  }
  0x12   : > { %s1056_s28 = sshll.u32 (%p33_p3), %s1185_s22, 3  ;;  %s1028_s29 = sshll.u32 (%p33_p3), %s184_s27, 5 }
  0x13   : > { %s189_s7 = scalar_lea.vmem (%p33_p3), %s1624_s0, %s1056_s28  ;;  %s186_s8 = scalar_lea.vmem (%p33_p3), [#allocation3], %s1028_s29 }
  0x14   : > { %v223_v1 = vld [vmem:[%s189_s7] sm:$0xff] (%p33_p3)  ;;  %v225_v2 = vld [vmem:[%s189_s7 + $0x10] sm:$0xff] (%p33_p3) }
  0x15   : > { %v227_v3 = vld [vmem:[%s189_s7 + $0x20] sm:$0xff] (%p33_p3)  ;;  %224 = vst [vmem:[%s186_s8] sm:$0xff] (%p33_p3), %v223_v1  ;;  %226 = vst [vmem:[%s186_s8 + $0x8] sm:$0xff] (%p33_p3), %v225_v2  ;;  %v229_v4 = vld [vmem:[%s189_s7 + $0x30] sm:$0xff] (%p33_p3) }
  0x16   : > { %228 = vst [vmem:[%s186_s8 + $0x10] sm:$0xff] (%p33_p3), %v227_v3  ;;  %230 = vst [vmem:[%s186_s8 + $0x18] sm:$0xff] (%p33_p3), %v229_v4 }
  0x18 PF: > { %p1031_p5 = scmp.ge.s32.totalorder %s1185_s22, 1  ;;  %p235_p6 = scmp.lt.s32.totalorder %s1185_s22, 3 }
  0x1a   : > { %p236_p7 = pnand %p1031_p5, %p235_p6 }
  0x1b   : > { %s242_s9 = sand.u32 (!%p236_p7), 1, %s1177_s20   ;;  %v1187_v5 = vmov (!%p236_p7), 0   ;;  %v1091_v10 = vld [vmem:[%s1625_s1] sm:$0xff] (!%p236_p7)   ;;  %vm451_vm0 = vcmask (!%p236_p7), 261120   ;;  %v297_v12 = vld [vmem:[%s1626_s2 + $0x10] sm:$0xff] (!%p236_p7)  ;;  %v296_v13 = vld [vmem:[%s1626_s2 + $0x8] sm:$0xff] (!%p236_p7) }
  0x1c   : > { %239 = sbr.rel (%p236_p7) target bundleno = 572 (0x23c), region = 74  ;;  %s1032_s10 = sshll.u32 (!%p236_p7), %s242_s9, 5  ;;  %508 = vmatprep.mubr.bf16.mxu0 (!%p236_p7), %v1187_v5  ;;  %1083 = vset.pattern.permute.xlu0 (!%p236_p7), %v1187_v5  ;;  %v295_v11 = vld [vmem:[%s1626_s2] sm:$0xff] (!%p236_p7)  ;;  %v298_v14 = vld [vmem:[%s1626_s2 + $0x18] sm:$0xff] (!%p236_p7)  ;;  %v1092_v15 = vld [vmem:[%s1625_s1 + $0x8] sm:$0xff] (!%p236_p7)  }
  0x1d   : > { %1084 = vset.pattern.permute.xlu1 (!%p236_p7), %v1187_v5  ;;  %936 = vmatprep.mubr.bf16.mxu1 (!%p236_p7), %v1187_v5  ;;  %s244_s11 = scalar_lea.vmem (!%p236_p7), [#allocation3], %s1032_s10  ;;  %v299_v16 = vld [vmem:[%s1626_s2 + $0x20] sm:$0xff] (!%p236_p7)  ;;  %v300_v17 = vld [vmem:[%s1626_s2 + $0x28] sm:$0xff] (!%p236_p7)  ;;  %v301_v18 = vld [vmem:[%s1626_s2 + $0x30] sm:$0xff] (!%p236_p7)  ;;  %s1033_s20 = sshll.u32 (!%p236_p7), %s1024_s4, 1 }
  0x1e   : > { %v1085_v6 = vld [vmem:[%s244_s11 + $0x4] ss:$8 sps:$4 sm:$0xff] (!%p236_p7)   ;;  %v1087_v7 = vld [vmem:[%s244_s11] ss:$8 sps:$4 sm:$0xff] (!%p236_p7)   ;;  %v1088_v8 = vld [vmem:[%s244_s11 + $0x14] ss:$8 sps:$4 sm:$0xff] (!%p236_p7)   ;;  %313 = vperm.xlu0 (!%p236_p7), %1083, %v295_v11   ;;  %323 = vperm.xlu1 (!%p236_p7), %1084, %v297_v12  }
  0x1f   : > { %476 = vmatprep.subr.bf16.mxu0 (!%p236_p7), %v1085_v6  ;;  %v1090_v9 = vld [vmem:[%s244_s11 + $0x10] ss:$8 sps:$4 sm:$0xff] (!%p236_p7)   ;;  %v303_v21 = vld [vmem:[%s1626_s2 + $0x40] sm:$0xff] (!%p236_p7)  ;;  %v304_v22 = vld [vmem:[%s1626_s2 + $0x48] sm:$0xff] (!%p236_p7)  ;;  %p270_p8 = scmp.lt.s32.totalorder (!%p236_p7), %s1033_s20, 3 }
  0x20   : > { %477 = vmatpush1.bf16.msra.mxu0 (!%p236_p7), %v1087_v7  ;;  %v302_v19 = vld [vmem:[%s1626_s2 + $0x38] sm:$0xff] (!%p236_p7)  ;;  %v1093_v20 = vld [vmem:[%s1625_s1 + $0x10] sm:$0xff] (!%p236_p7)   ;;  %v307_v26 = vld [vmem:[%s1626_s2 + $0x60] sm:$0xff] (!%p236_p7) }
  0x21   : > { %478 = vmatprep.subr.bf16.mxu0 (!%p236_p7), %v1088_v8  ;;  %v305_v23 = vld [vmem:[%s1626_s2 + $0x50] sm:$0xff] (!%p236_p7)  ;;  %v306_v24 = vld [vmem:[%s1626_s2 + $0x58] sm:$0xff] (!%p236_p7)  ;;  %v308_v27 = vld [vmem:[%s1626_s2 + $0x68] sm:$0xff] (!%p236_p7) }
  0x22   : > { %318 = vperm.xlu0 (!%p236_p7), %1083, %v296_v13   ;;  %328 = vperm.xlu1 (!%p236_p7), %1084, %v298_v14   ;;  %v1094_v25 = vld [vmem:[%s1625_s1 + $0x18] sm:$0xff] (!%p236_p7)   ;;  %v309_v28 = vld [vmem:[%s1626_s2 + $0x70] sm:$0xff] (!%p236_p7)  ;;  %v1095_v30 = vld [vmem:[%s1625_s1 + $0x20] sm:$0xff] (!%p236_p7)  }
  0x23   : > { %v310_v29 = vld [vmem:[%s1626_s2 + $0x78] sm:$0xff]  ;;  %v894_v31 = vld [vmem:[#allocation2] sm:$0x1]  ;;  %v1096_v32 = vld [vmem:[%s1625_s1 + $0x28] sm:$0xff]   ;;  %s1634_s20 = smov (!%p270_p8, %s1033_s20), 3 }
  0x24   : > { %479 = vmatpush1.bf16.msra.mxu0 %v1090_v9  ;;  %v1097_v33 = vld [vmem:[%s1625_s1 + $0x30] sm:$0xff]   ;;  %v1098_v34 = vld [vmem:[%s1625_s1 + $0x38] sm:$0xff]   ;;  %s272_s27 = scalar_lea.vmem %s1629_s5, %s1634_s20 }
  0x26   : > { %333 = vperm.xlu0 %1083, %v299_v16   ;;  %338 = vperm.xlu1 %1084, %v300_v17  }
  0x27   : > { %1046 = vmatmul.mubr.msk.bf16.vlgmr.msra.gmra.mrb[0].mxu0 %vm451_vm0, %v1091_v10 }
  0x28   : > { %518 = vmatprep.mubr.bf16.mxu0 %v1187_v5 }
  0x2a   : > { %343 = vperm.xlu0 %1083, %v301_v18   ;;  %348 = vperm.xlu1 %1084, %v302_v19  }
  0x2e   : > { %353 = vperm.xlu0 %1083, %v303_v21   ;;  %358 = vperm.xlu1 %1084, %v304_v22  }
  0x2f   : > { %1047 = vmatmul.mubr.msk.bf16.gmra.mrb[4].mxu0 %vm451_vm0, %v1092_v15 }
  0x30   : > { %528 = vmatprep.mubr.bf16.mxu0 %v1187_v5 }
  0x32   : > { %363 = vperm.xlu0 %1083, %v305_v23   ;;  %368 = vperm.xlu1 %1084, %v306_v24  }
  0x36   : > { %373 = vperm.xlu0 %1083, %v307_v26   ;;  %378 = vperm.xlu1 %1084, %v308_v27  }
  0x37   : > { %1048 = vmatmul.mubr.msk.bf16.gmra.mrb[8].mxu0 %vm451_vm0, %v1093_v20 }
  0x38   : > { %538 = vmatprep.mubr.bf16.mxu0 %v1187_v5 }
  0x3a   : > { %383 = vperm.xlu0 %1083, %v309_v28   ;;  %388 = vperm.xlu1 %1084, %v310_v29  }
  0x3e   : > { %897 = vperm.xlu0 %1083, %v894_v31  }
  0x3f   : > { %1049 = vmatmul.mubr.msk.bf16.gmra.mrb[12].mxu0 %vm451_vm0, %v1094_v25 }
  0x40   : > { %548 = vmatprep.mubr.bf16.mxu0 %v1187_v5 }
  0x47   : > { %1050 = vmatmul.mubr.msk.bf16.gmra.mrb[16].mxu0 %vm451_vm0, %v1095_v30 }
  0x48   : > { %558 = vmatprep.mubr.bf16.mxu0 %v1187_v5 }
  0x4f   : > { %1051 = vmatmul.mubr.msk.bf16.gmra.mrb[20].mxu0 %vm451_vm0, %v1096_v32 }
  0x50   : > { %568 = vmatprep.mubr.bf16.mxu0 %v1187_v5 }
  0x57   : > { %1052 = vmatmul.mubr.msk.bf16.gmra.mrb[24].mxu0 %vm451_vm0, %v1097_v33 }
  0x58   : > { %578 = vmatprep.mubr.bf16.mxu0 %v1187_v5 }
  0x5f   : > { %1053 = vmatmul.mubr.msk.bf16.gmra.mrb[28].mxu0 %vm451_vm0, %v1098_v34 }
  0x9d   : > { %v314_v35 = vpop.permute.xlu0 %313  ;;  %v324_v46 = vpop.permute.xlu1 %323 }
  0xa1   : > { %v319_v39 = vpop.permute.xlu0 %318  ;;  %v329_v61 = vpop.permute.xlu1 %328 }
  0xa5   : > { %v334_v22 = vpop.permute.xlu0 %333  ;;  %v339_v30 = vpop.permute.xlu1 %338 }
  0xfa   : > { %v510_v36 = vpop.f32.mrb[0].mxu0 }
  0xfb   : > { %v1350_v37 = vadd.f32 %v510_v36, %v314_v35  ;;  %v512_v38 = vpop.f32.mrb[1].mxu0 }
  0xfc   : > { %v1352_v40 = vadd.f32 %v512_v38, %v314_v35  ;;  %v514_v41 = vpop.f32.mrb[2].mxu0 }
  0xfd   : > { %v621_v42 = vmul.f32 0.044715, %v1350_v37  ;;  %v1355_v43 = vadd.f32 %v514_v41, %v319_v39  ;;  %v516_v44 = vpop.f32.mrb[3].mxu0  ;;  %v589_v33 = vmul.f32 0.5, %v1350_v37 }
  0xfe   : > { %v622_v45 = vmul.f32 0.044715, %v1352_v40  ;;  %v1358_v47 = vadd.f32 %v516_v44, %v319_v39 }
  0xff   : > { %v653_v48 = vmul.f32 %v621_v42, %v1350_v37  ;;  %v623_v49 = vmul.f32 0.044715, %v1355_v43  ;;  %v590_v42 = vmul.f32 0.5, %v1352_v40 }
 0x100   : > { %v624_v50 = vmul.f32 0.044715, %v1358_v47  ;;  %v654_v51 = vmul.f32 %v622_v45, %v1352_v40 }
 0x101   : > { %v655_v52 = vmul.f32 %v623_v49, %v1355_v43  ;;  %v685_v53 = vmul.f32 %v653_v48, %v1350_v37 }
 0x102   : > { %v520_v54 = vpop.f32.mrb[4].mxu0  ;;  %v656_v55 = vmul.f32 %v624_v50, %v1358_v47  ;;  %v686_v56 = vmul.f32 %v654_v51, %v1352_v40  ;;  %v592_v50 = vmul.f32 0.5, %v1358_v47  ;;  %v591_v51 = vmul.f32 0.5, %v1355_v43 }
 0x103   : > { %v1368_v57 = vadd.f32 %v520_v54, %v324_v46  ;;  %v522_v58 = vpop.f32.mrb[5].mxu0  ;;  %v687_v59 = vmul.f32 %v655_v52, %v1355_v43  ;;  %v717_v60 = vadd.f32 %v685_v53, %v1350_v37 }
 0x104   : > { %v523_v62 = vadd.f32 %v522_v58, %v324_v46  ;;  %v524_v63 = vpop.f32.mrb[6].mxu0  ;;  %v688_v0 = vmul.f32 %v656_v55, %v1358_v47  ;;  %v718_v1 = vadd.f32 %v686_v56, %v1352_v40 }
 0x105   : > { %v625_v2 = vmul.f32 0.044715, %v1368_v57  ;;  %v1375_v3 = vadd.f32 %v524_v63, %v329_v61  ;;  %v526_v4 = vpop.f32.mrb[7].mxu0  ;;  %v719_v5 = vadd.f32 %v687_v59, %v1355_v43  ;;  %v749_v6 = vmul.f32 0.7978846, %v717_v60  ;;  %v344_v59 = vpop.permute.xlu0 %343 }
 0x106   : > { %v626_v7 = vmul.f32 0.044715, %v523_v62  ;;  %v1378_v8 = vadd.f32 %v526_v4, %v329_v61  ;;  %v720_v9 = vadd.f32 %v688_v0, %v1358_v47  ;;  %v750_v10 = vmul.f32 0.7978846, %v718_v1 }
 0x107   : > { %v657_v11 = vmul.f32 %v625_v2, %v1368_v57  ;;  %v627_v12 = vmul.f32 0.044715, %v1375_v3  ;;  %v751_v13 = vmul.f32 0.7978846, %v719_v5  ;;  %1099 = vtanh.f32 %v749_v6  ;;  %v349_v5 = vpop.permute.xlu1 %348 }
 0x108   : > { %v658_v14 = vmul.f32 %v626_v7, %v523_v62  ;;  %v628_v15 = vmul.f32 0.044715, %v1378_v8  ;;  %v752_v16 = vmul.f32 0.7978846, %v720_v9  ;;  %1101 = vtanh.f32 %v750_v10 }
 0x109   : > { %v689_v17 = vmul.f32 %v657_v11, %v1368_v57  ;;  %v659_v18 = vmul.f32 %v627_v12, %v1375_v3  ;;  %1103 = vtanh.f32 %v751_v13  ;;  %v1407_v52 = vmul.f32 0.5, %v523_v62 }
 0x10a   : > { %v690_v19 = vmul.f32 %v658_v14, %v523_v62  ;;  %v660_v20 = vmul.f32 %v628_v15, %v1378_v8  ;;  %v530_v21 = vpop.f32.mrb[8].mxu0  ;;  %1105 = vtanh.f32 %v752_v16  ;;  %v596_v4 = vmul.f32 0.5, %v1378_v8 }
 0x10b   : > { %v691_v23 = vmul.f32 %v659_v18, %v1375_v3  ;;  %v532_v24 = vpop.f32.mrb[9].mxu0  ;;  %v721_v29 = vadd.f32 %v689_v17, %v1368_v57  ;;  %v1392_v31 = vadd.f32 %v530_v21, %v334_v22  ;;  %v593_v10 = vmul.f32 0.5, %v1368_v57 }
 0x10c   : > { %v692_v25 = vmul.f32 %v660_v20, %v1378_v8  ;;  %v1389_v26 = vadd.f32 %v532_v24, %v334_v22  ;;  %v534_v27 = vpop.f32.mrb[10].mxu0  ;;  %v722_v28 = vadd.f32 %v690_v19, %v523_v62  ;;  %v595_v11 = vmul.f32 0.5, %v1375_v3 }
 0x10d   : > { %v536_v32 = vpop.f32.mrb[11].mxu0  ;;  %v723_v34 = vadd.f32 %v691_v23, %v1375_v3  ;;  %v1400_v41 = vadd.f32 %v534_v27, %v339_v30  ;;  %v753_v44 = vmul.f32 0.7978846, %v721_v29  ;;  %v629_v54 = vmul.f32 0.044715, %v1392_v31  ;;  %v354_v27 = vpop.permute.xlu0 %353 }
 0x10e   : > { %v630_v35 = vmul.f32 0.044715, %v1389_v26  ;;  %v1397_v36 = vadd.f32 %v536_v32, %v339_v30  ;;  %v724_v38 = vadd.f32 %v692_v25, %v1378_v8  ;;  %v754_v39 = vmul.f32 0.7978846, %v722_v28 }
 0x10f   : > { %v755_v45 = vmul.f32 0.7978846, %v723_v34  ;;  %v631_v61 = vmul.f32 0.044715, %v1400_v41  ;;  %v661_v12 = vmul.f32 %v629_v54, %v1392_v31  ;;  %v1429_v57 = vmul.f32 0.5, %v1392_v31 }
 0x110   : > { %v662_v46 = vmul.f32 %v630_v35, %v1389_v26  ;;  %v632_v48 = vmul.f32 0.044715, %v1397_v36  ;;  %v756_v37 = vmul.f32 0.7978846, %v724_v38  ;;  %1107 = vtanh.f32 %v754_v39 }
 0x111   : > { %v1100_v49 = vpop.eup %1099  ;;  %1109 = vtanh.f32 %v753_v44  ;;  %v663_v16 = vmul.f32 %v631_v61, %v1400_v41  ;;  %v693_v28 = vmul.f32 %v661_v12, %v1392_v31  ;;  %v1437_v32 = vmul.f32 0.5, %v1389_v26  ;;  %v364_v12 = vpop.permute.xlu0 %363 }
 0x112   : > { %v1102_v53 = vpop.eup %1101  ;;  %v664_v40 = vmul.f32 %v632_v48, %v1397_v36  ;;  %v540_v55 = vpop.f32.mrb[12].mxu0  ;;  %v813_v56 = vadd.f32 1.0, %v1100_v49  ;;  %1111 = vtanh.f32 %v756_v37  ;;  %v694_v60 = vmul.f32 %v662_v46, %v1389_v26 }
 0x113   : > { %v1104_v58 = vpop.eup %1103  ;;  %v542_v47 = vpop.f32.mrb[13].mxu0  ;;  %v814_v63 = vadd.f32 1.0, %v1102_v53  ;;  %1113 = vtanh.f32 %v755_v45  ;;  %v1414_v0 = vadd.f32 %v540_v55, %v344_v59  ;;  %v695_v35 = vmul.f32 %v663_v16, %v1400_v41 }
 0x114   : > { %v1106_v43 = vpop.eup %1105  ;;  %v696_v62 = vmul.f32 %v664_v40, %v1397_v36  ;;  %v544_v1 = vpop.f32.mrb[14].mxu0  ;;  %v815_v2 = vadd.f32 1.0, %v1104_v58  ;;  %v1417_v6 = vadd.f32 %v542_v47, %v344_v59  ;;  %v845_v14 = vmul.f32 %v813_v56, %v589_v33 }
 0x115   : > { %v546_v7 = vpop.f32.mrb[15].mxu0  ;;  %v816_v9 = vadd.f32 1.0, %v1106_v43  ;;  %v846_v17 = vmul.f32 %v814_v63, %v590_v42  ;;  %v726_v8 = vadd.f32 %v694_v60, %v1389_v26  ;;  %v633_v19 = vmul.f32 0.044715, %v1414_v0  ;;  %v359_v49 = vpop.permute.xlu1 %358 }
 0x116   : > { %v1422_v13 = vadd.f32 %v546_v7, %v349_v5  ;;  %v847_v15 = vmul.f32 %v815_v2, %v591_v51  ;;  %v728_v21 = vadd.f32 %v696_v62, %v1397_v36  ;;  %v634_v3 = vmul.f32 0.044715, %v1417_v6 }
 0x117   : > { %v848_v18 = vmul.f32 %v816_v9, %v592_v50  ;;  %v758_v24 = vmul.f32 0.7978846, %v726_v8  ;;  %v1434_v29 = vadd.f32 %v544_v1, %v349_v5  ;;  %v1445_v37 = vmul.f32 0.5, %v1397_v36 }
 0x118   : > { %v878_v20 = vpack.c.bf16 %v847_v15, %v845_v14  ;;  %v636_v22 = vmul.f32 0.044715, %v1422_v13  ;;  %v760_v33 = vmul.f32 0.7978846, %v728_v21  ;;  %v665_v50 = vmul.f32 %v633_v19, %v1414_v0 }
 0x119   : > { %v879_v23 = vpack.c.bf16 %v848_v18, %v846_v17  ;;  %1115 = vtanh.f32 %v758_v24  ;;  %v666_v51 = vmul.f32 %v634_v3, %v1417_v6  ;;  %v635_v55 = vmul.f32 0.044715, %v1434_v29  ;;  %v369_v18 = vpop.permute.xlu1 %368 }
 0x11a   : > { %v1108_v25 = vpop.eup %1107  ;;  %v550_v30 = vpop.f32.mrb[16].mxu0  ;;  %1117 = vtanh.f32 %v760_v33  ;;  %v668_v53 = vmul.f32 %v636_v22, %v1422_v13  ;;  %v725_v47 = vadd.f32 %v693_v28, %v1392_v31  ;;  %v727_v1 = vadd.f32 %v695_v35, %v1400_v41 }
 0x11b   : > { %v1110_v34 = vpop.eup %1109  ;;  %v1440_v38 = vadd.f32 %v550_v30, %v354_v27  ;;  %v552_v39 = vpop.f32.mrb[17].mxu0  ;;  %904 = vmatprep.subr.bf16.mxu1 %v879_v23  ;;  %v818_v42 = vadd.f32 1.0, %v1108_v25  ;;  %v698_v2 = vmul.f32 %v666_v51, %v1417_v6  ;;  %v667_v14 = vmul.f32 %v635_v55, %v1434_v29 }
 0x11c   : > { %v1112_v44 = vpop.eup %1111  ;;  %v1442_v45 = vadd.f32 %v552_v39, %v354_v27  ;;  %v554_v46 = vpop.f32.mrb[18].mxu0  ;;  %905 = vmatpush1.bf16.msra.mxu1 %v878_v20  ;;  %v817_v48 = vadd.f32 1.0, %v1110_v34  ;;  %v700_v5 = vmul.f32 %v668_v53, %v1422_v13  ;;  %v757_v9 = vmul.f32 0.7978846, %v725_v47 }
 0x11d   : > { %v1114_v26 = vpop.eup %1113  ;;  %v556_v54 = vpop.f32.mrb[19].mxu0  ;;  %v820_v40 = vadd.f32 1.0, %v1112_v44  ;;  %v637_v56 = vmul.f32 0.044715, %v1440_v38  ;;  %v1452_v58 = vadd.f32 %v554_v46, %v359_v49  ;;  %v850_v60 = vmul.f32 %v818_v42, %v1407_v52 }
 0x11e   : > { %v819_v59 = vadd.f32 1.0, %v1114_v26  ;;  %v1454_v36 = vadd.f32 %v556_v54, %v359_v49  ;;  %v638_v63 = vmul.f32 0.044715, %v1442_v45  ;;  %v849_v43 = vmul.f32 %v817_v48, %v593_v10 }
 0x11f   : > { %v852_v61 = vmul.f32 %v820_v40, %v596_v4  ;;  %v639_v52 = vmul.f32 0.044715, %v1452_v58  ;;  %v759_v31 = vmul.f32 0.7978846, %v727_v1  ;;  %v697_v16 = vmul.f32 %v665_v50, %v1414_v0 }
 0x120   : > { %v851_v62 = vmul.f32 %v819_v59, %v595_v11  ;;  %v640_v10 = vmul.f32 0.044715, %v1454_v36  ;;  %1119 = vtanh.f32 %v757_v9  ;;  %v669_v8 = vmul.f32 %v637_v56, %v1440_v38  ;;  %v374_v59 = vpop.permute.xlu0 %373 }
 0x121   : > { %v881_v7 = vpack.c.bf16 %v852_v61, %v850_v60  ;;  %v670_v19 = vmul.f32 %v638_v63, %v1442_v45  ;;  %1121 = vtanh.f32 %v759_v31  ;;  %v599_v24 = vmul.f32 0.5, %v1400_v41 }
 0x122   : > { %v560_v4 = vpop.f32.mrb[20].mxu0  ;;  %v880_v15 = vpack.c.bf16 %v851_v62, %v849_v43  ;;  %v730_v25 = vadd.f32 %v698_v2, %v1417_v6  ;;  %v732_v27 = vadd.f32 %v700_v5, %v1422_v13  ;;  %v699_v30 = vmul.f32 %v667_v14, %v1434_v29  ;;  %v379_v5 = vpop.permute.xlu1 %378 }
 0x123   : > { %v1466_v11 = vadd.f32 %v560_v4, %v364_v12  ;;  %v562_v17 = vpop.f32.mrb[21].mxu0  ;;  %906 = vmatprep.subr.bf16.mxu1 %v881_v7  ;;  %v1116_v3 = vpop.eup %1115  ;;  %v671_v33 = vmul.f32 %v639_v52, %v1452_v58  ;;  %v672_v39 = vmul.f32 %v640_v10, %v1454_v36  ;;  %v1484_v41 = vmul.f32 %v669_v8, %v1440_v38 }
 0x124   : > { %v1470_v20 = vadd.f32 %v562_v17, %v364_v12  ;;  %v564_v21 = vpop.f32.mrb[22].mxu0  ;;  %907 = vmatpush1.bf16.msra.mxu1 %v880_v15  ;;  %v1118_v28 = vpop.eup %1117  ;;  %v822_v35 = vadd.f32 1.0, %v1116_v3  ;;  %v762_v46 = vmul.f32 0.7978846, %v730_v25  ;;  %v702_v48 = vmul.f32 %v670_v19, %v1442_v45 }
 0x125   : > { %v1472_v22 = vadd.f32 %v564_v21, %v369_v18  ;;  %v566_v23 = vpop.f32.mrb[23].mxu0  ;;  %v641_v42 = vmul.f32 0.044715, %v1466_v11  ;;  %v824_v44 = vadd.f32 1.0, %v1118_v28  ;;  %v764_v49 = vmul.f32 0.7978846, %v732_v27 }
 0x126   : > { %v1479_v34 = vadd.f32 %v566_v23, %v369_v18  ;;  %v642_v26 = vmul.f32 0.044715, %v1470_v20  ;;  %v854_v51 = vmul.f32 %v822_v35, %v1437_v32  ;;  %1123 = vtanh.f32 %v762_v46 }
 0x127   : > { %v643_v50 = vmul.f32 0.044715, %v1472_v22  ;;  %v856_v53 = vmul.f32 %v824_v44, %v1445_v37  ;;  %v1492_v54 = vmul.f32 %v671_v33, %v1452_v58  ;;  %v1496_v56 = vmul.f32 0.5, %v1417_v6 }
 0x128   : > { %v644_v40 = vmul.f32 0.044715, %v1479_v34  ;;  %1125 = vtanh.f32 %v764_v49  ;;  %v704_v60 = vmul.f32 %v672_v39, %v1454_v36  ;;  %v673_v61 = vmul.f32 %v641_v42, %v1466_v11  ;;  %v384_v39 = vpop.permute.xlu0 %383 }
 0x129   : > { %v883_v32 = vpack.c.bf16 %v856_v53, %v854_v51  ;;  %v729_v37 = vadd.f32 %v697_v16, %v1414_v0  ;;  %v674_v63 = vmul.f32 %v642_v26, %v1470_v20  ;;  %v604_v1 = vmul.f32 0.5, %v1422_v13 }
 0x12a   : > { %v570_v55 = vpop.f32.mrb[24].mxu0  ;;  %v731_v6 = vadd.f32 %v699_v30, %v1434_v29  ;;  %v1120_v2 = vpop.eup %1119  ;;  %v675_v7 = vmul.f32 %v643_v50, %v1472_v22  ;;  %v1510_v14 = vmul.f32 0.5, %v1414_v0  ;;  %v676_v15 = vmul.f32 %v644_v40, %v1479_v34 }
 0x12b   : > { %v572_v47 = vpop.f32.mrb[25].mxu0  ;;  %v1502_v43 = vadd.f32 %v570_v55, %v374_v59  ;;  %908 = vmatprep.subr.bf16.mxu1 %v883_v32  ;;  %v761_v52 = vmul.f32 0.7978846, %v729_v37  ;;  %v1122_v4 = vpop.eup %1121  ;;  %v821_v13 = vadd.f32 1.0, %v1120_v2  ;;  %v1516_v10 = vmul.f32 %v673_v61, %v1466_v11 }
 0x12c   : > { %v574_v62 = vpop.f32.mrb[26].mxu0  ;;  %v1507_v9 = vadd.f32 %v572_v47, %v374_v59  ;;  %v763_v16 = vmul.f32 0.7978846, %v731_v6  ;;  %v823_v17 = vadd.f32 1.0, %v1122_v4  ;;  %v1521_v8 = vmul.f32 %v674_v63, %v1470_v20  ;;  %v389_v40 = vpop.permute.xlu1 %388 }
 0x12d   : > { %v576_v12 = vpop.f32.mrb[27].mxu0  ;;  %v1513_v31 = vadd.f32 %v574_v62, %v379_v5  ;;  %1127 = vtanh.f32 %v761_v52  ;;  %v645_v0 = vmul.f32 0.044715, %v1502_v43  ;;  %v1525_v19 = vmul.f32 0.5, %v1434_v29 }
 0x12e   : > { %v1518_v18 = vadd.f32 %v576_v12, %v379_v5  ;;  %1129 = vtanh.f32 %v763_v16  ;;  %v646_v21 = vmul.f32 0.044715, %v1507_v9  ;;  %v853_v3 = vmul.f32 %v821_v13, %v1429_v57 }
 0x12f   : > { %v855_v23 = vmul.f32 %v823_v17, %v599_v24  ;;  %v734_v25 = vadd.f32 %v702_v48, %v1442_v45  ;;  %v1531_v27 = vmul.f32 %v675_v7, %v1472_v22  ;;  %v708_v28 = vmul.f32 %v676_v15, %v1479_v34 }
 0x130   : > { %v647_v30 = vmul.f32 0.044715, %v1513_v31  ;;  %v736_v35 = vadd.f32 %v704_v60, %v1454_v36  ;;  %v1124_v29 = vpop.eup %1123  ;;  %v648_v44 = vmul.f32 0.044715, %v1518_v18  ;;  %v1538_v57 = vmul.f32 0.5, %v1442_v45 }
 0x131   : > { %v882_v42 = vpack.c.bf16 %v855_v23, %v853_v3  ;;  %v766_v24 = vmul.f32 0.7978846, %v734_v25  ;;  %v826_v50 = vadd.f32 1.0, %v1124_v29  ;;  %v677_v55 = vmul.f32 %v645_v0, %v1502_v43 }
 0x132   : > { %v580_v33 = vpop.f32.mrb[28].mxu0  ;;  %v1126_v48 = vpop.eup %1125  ;;  %v768_v53 = vmul.f32 0.7978846, %v736_v35  ;;  %v678_v59 = vmul.f32 %v646_v21, %v1507_v9  ;;  %v679_v45 = vmul.f32 %v647_v30, %v1513_v31  ;;  %v680_v37 = vmul.f32 %v648_v44, %v1518_v18 }
 0x133   : > { %v582_v46 = vpop.f32.mrb[29].mxu0  ;;  %v1540_v26 = vadd.f32 %v580_v33, %v384_v39  ;;  %909 = vmatpush1.bf16.msra.mxu1 %v882_v42  ;;  %v828_v60 = vadd.f32 1.0, %v1126_v48  ;;  %1131 = vtanh.f32 %v766_v24  ;;  %v858_v62 = vmul.f32 %v826_v50, %v1496_v56 }
 0x134   : > { %v1542_v49 = vadd.f32 %v582_v46, %v384_v39  ;;  %v584_v51 = vpop.f32.mrb[30].mxu0  ;;  %1133 = vtanh.f32 %v768_v53  ;;  %v733_v7 = vadd.f32 %v1484_v41, %v1440_v38  ;;  %v735_v12 = vadd.f32 %v1492_v54, %v1452_v58 }
 0x135   : > { %v586_v61 = vpop.f32.mrb[31].mxu0  ;;  %v1547_v47 = vadd.f32 %v584_v51, %v389_v40  ;;  %v860_v6 = vmul.f32 %v828_v60, %v604_v1  ;;  %v649_v2 = vmul.f32 0.044715, %v1540_v26  ;;  %v709_v4 = vmul.f32 %v677_v55, %v1502_v43 }
 0x136   : > { %v1549_v32 = vadd.f32 %v586_v61, %v389_v40  ;;  %v650_v63 = vmul.f32 0.044715, %v1542_v49  ;;  %v710_v15 = vmul.f32 %v678_v59, %v1507_v9  ;;  %v608_v16 = vmul.f32 0.5, %v1454_v36 }
 0x137   : > { %v1128_v52 = vpop.eup %1127  ;;  %v885_v13 = vpack.c.bf16 %v860_v6, %v858_v62  ;;  %v711_v1 = vmul.f32 %v679_v45, %v1513_v31  ;;  %v651_v17 = vmul.f32 0.044715, %v1547_v47  ;;  %v765_v21 = vmul.f32 0.7978846, %v733_v7 }
 0x138   : > { %v652_v5 = vmul.f32 0.044715, %v1549_v32  ;;  %v1130_v56 = vpop.eup %1129  ;;  %v825_v0 = vadd.f32 1.0, %v1128_v52  ;;  %v682_v41 = vmul.f32 %v650_v63, %v1542_v49  ;;  %v767_v23 = vmul.f32 0.7978846, %v735_v12 }
 0x139   : > { %910 = vmatprep.subr.bf16.mxu1 %v885_v13  ;;  %v827_v3 = vadd.f32 1.0, %v1130_v56  ;;  %v712_v25 = vmul.f32 %v680_v37, %v1518_v18  ;;  %v681_v30 = vmul.f32 %v649_v2, %v1540_v26  ;;  %1135 = vtanh.f32 %v765_v21 }
 0x13a   : > { %v684_v54 = vmul.f32 %v652_v5, %v1549_v32  ;;  %v738_v36 = vadd.f32 %v1521_v8, %v1470_v20  ;;  %v857_v33 = vmul.f32 %v825_v0, %v1510_v14  ;;  %1137 = vtanh.f32 %v767_v23 }
 0x13b   : > { %v859_v35 = vmul.f32 %v827_v3, %v1525_v19  ;;  %v740_v29 = vadd.f32 %v708_v28, %v1479_v34  ;;  %v683_v39 = vmul.f32 %v651_v17, %v1547_v47  ;;  %v737_v44 = vadd.f32 %v1516_v10, %v1466_v11 }
 0x13c   : > { %v770_v42 = vmul.f32 0.7978846, %v738_v36  ;;  %v739_v46 = vadd.f32 %v1531_v27, %v1472_v22  ;;  %v714_v48 = vmul.f32 %v682_v41, %v1542_v49  ;;  %v716_v14 = vmul.f32 %v684_v54, %v1549_v32 }
 0x13d   : > { %v1132_v24 = vpop.eup %1131  ;;  %v884_v8 = vpack.c.bf16 %v859_v35, %v857_v33  ;;  %v772_v50 = vmul.f32 0.7978846, %v740_v29  ;;  %v769_v28 = vmul.f32 0.7978846, %v737_v44  ;;  %v742_v10 = vadd.f32 %v710_v15, %v1507_v9 }
 0x13e   : > { %v1134_v19 = vpop.eup %1133  ;;  %v830_v51 = vadd.f32 1.0, %v1132_v24  ;;  %1139 = vtanh.f32 %v770_v42  ;;  %v771_v53 = vmul.f32 0.7978846, %v739_v46  ;;  %v744_v55 = vadd.f32 %v712_v25, %v1518_v18 }
 0x13f   : > { %911 = vmatpush1.bf16.msra.mxu1 %v884_v8  ;;  %v832_v40 = vadd.f32 1.0, %v1134_v19  ;;  %1141 = vtanh.f32 %v772_v50  ;;  %v774_v60 = vmul.f32 0.7978846, %v742_v10  ;;  %v713_v45 = vmul.f32 %v681_v30, %v1540_v26 }
 0x140   : > { %v862_v27 = vmul.f32 %v830_v51, %v1538_v57  ;;  %1143 = vtanh.f32 %v769_v28  ;;  %v776_v61 = vmul.f32 0.7978846, %v744_v55  ;;  %v715_v37 = vmul.f32 %v683_v39, %v1547_v47 }
 0x141   : > { %v864_v59 = vmul.f32 %v832_v40, %v608_v16  ;;  %1145 = vtanh.f32 %v771_v53  ;;  %v741_v63 = vadd.f32 %v709_v4, %v1502_v43  ;;  %v743_v62 = vadd.f32 %v711_v1, %v1513_v31 }
 0x142   : > { %1147 = vtanh.f32 %v774_v60  ;;  %v746_v2 = vadd.f32 %v714_v48, %v1542_v49  ;;  %v748_v5 = vadd.f32 %v716_v14, %v1549_v32  ;;  %v605_v7 = vmul.f32 0.5, %v1440_v38 }
 0x143   : > { %v887_v6 = vpack.c.bf16 %v864_v59, %v862_v27  ;;  %v1136_v57 = vpop.eup %1135  ;;  %1149 = vtanh.f32 %v776_v61  ;;  %v773_v12 = vmul.f32 0.7978846, %v741_v63  ;;  %v775_v52 = vmul.f32 0.7978846, %v743_v62 }
 0x144   : > { %v1138_v15 = vpop.eup %1137  ;;  %v607_v13 = vmul.f32 0.5, %v1452_v58  ;;  %v829_v16 = vadd.f32 1.0, %v1136_v57  ;;  %v778_v4 = vmul.f32 0.7978846, %v746_v2  ;;  %v780_v56 = vmul.f32 0.7978846, %v748_v5 }
 0x145   : > { %912 = vmatprep.subr.bf16.mxu1 %v887_v6  ;;  %v831_v1 = vadd.f32 1.0, %v1138_v15  ;;  %1151 = vtanh.f32 %v773_v12  ;;  %v745_v17 = vadd.f32 %v713_v45, %v1540_v26  ;;  %v747_v0 = vadd.f32 %v715_v37, %v1547_v47 }
 0x146   : > { %v861_v21 = vmul.f32 %v829_v16, %v605_v7  ;;  %1153 = vtanh.f32 %v775_v52  ;;  %v610_v25 = vmul.f32 0.5, %v1470_v20  ;;  %v612_v33 = vmul.f32 0.5, %v1479_v34 }
 0x147   : > { %v863_v38 = vmul.f32 %v831_v1, %v607_v13  ;;  %1155 = vtanh.f32 %v778_v4  ;;  %v777_v3 = vmul.f32 0.7978846, %v745_v17  ;;  %v779_v54 = vmul.f32 0.7978846, %v747_v0 }
 0x148   : > { %v1140_v41 = vpop.eup %1139  ;;  %1157 = vtanh.f32 %v780_v56  ;;  %v609_v39 = vmul.f32 0.5, %v1466_v11  ;;  %v611_v24 = vmul.f32 0.5, %v1472_v22  ;;  %v614_v34 = vmul.f32 0.5, %v1507_v9 }
 0x149   : > { %v1142_v23 = vpop.eup %1141  ;;  %v834_v58 = vadd.f32 1.0, %v1140_v41  ;;  %v886_v36 = vpack.c.bf16 %v863_v38, %v861_v21  ;;  %1159 = vtanh.f32 %v777_v3  ;;  %v616_v28 = vmul.f32 0.5, %v1518_v18  ;;  %v898_v41 = vpop.permute.xlu0 %897 }
 0x14a   : > { %v1144_v30 = vpop.eup %1143  ;;  %v836_v35 = vadd.f32 1.0, %v1142_v23  ;;  %1161 = vtanh.f32 %v779_v54  ;;  %v613_v60 = vmul.f32 0.5, %v1502_v43  ;;  %v615_v61 = vmul.f32 0.5, %v1513_v31 }
 0x14b   : > { %v1146_v29 = vpop.eup %1145  ;;  %v833_v42 = vadd.f32 1.0, %v1144_v30  ;;  %913 = vmatpush1.bf16.msra.mxu1 %v886_v36  ;;  %v866_v44 = vmul.f32 %v834_v58, %v610_v25  ;;  %v618_v9 = vmul.f32 0.5, %v1542_v49  ;;  %v620_v5 = vmul.f32 0.5, %v1549_v32  ;;  %v877_v32 = vld [vmem:[%s1627_s3] sm:$0x1] }
 0x14c   : > { %v868_v46 = vmul.f32 %v836_v35, %v612_v33  ;;  %v835_v48 = vadd.f32 1.0, %v1146_v29  ;;  %v1148_v20 = vpop.eup %1147  ;;  %v617_v12 = vmul.f32 0.5, %v1540_v26  ;;  %v619_v43 = vmul.f32 0.5, %v1547_v47 }
 0x14d   : > { %v1150_v8 = vpop.eup %1149  ;;  %v865_v50 = vmul.f32 %v833_v42, %v609_v39  ;;  %v838_v51 = vadd.f32 1.0, %v1148_v20  ;;  %v900_v26 = vlaneseq  ;;  %v1188_v17 = vmov 1966171168  }
 0x14e   : > { %v889_v14 = vpack.c.bf16 %v868_v46, %v866_v44  ;;  %v867_v19 = vmul.f32 %v835_v48, %v611_v24  ;;  %v840_v53 = vadd.f32 1.0, %v1150_v8  ;;  %v949_v0 = vunpack.c.l.s4 %v1188_v17 }
 0x14f   : > { %v1152_v11 = vpop.eup %1151  ;;  %v870_v55 = vmul.f32 %v838_v51, %v614_v34  ;;  %v901_v47 = vshrl.u32 %v900_v26, 7  ;;  %vm965_vm1 = vcmp.lt.s32.totalorder %v900_v26, 256 }
 0x150   : > { %914 = vmatprep.subr.bf16.mxu1 %v889_v14  ;;  %v888_v40 = vpack.c.bf16 %v867_v19, %v865_v50  ;;  %v1154_v10 = vpop.eup %1153  ;;  %v872_v27 = vmul.f32 %v840_v53, %v616_v28  ;;  %v837_v59 = vadd.f32 1.0, %v1152_v11  ;;  %v950_v38 = vunpack.c.0.s8 %v949_v0 }
 0x151   : > { %v1156_v22 = vpop.eup %1155  ;;  %v839_v45 = vadd.f32 1.0, %v1154_v10  ;;  %v902_v21 = vsub.s32 0, %v901_v47 }
 0x152   : > { %915 = vmatpush1.bf16.msra.mxu1 %v888_v40  ;;  %v1158_v37 = vpop.eup %1157  ;;  %v891_v63 = vpack.c.bf16 %v872_v27, %v870_v55  ;;  %v842_v18 = vadd.f32 1.0, %v1156_v22  ;;  %v869_v6 = vmul.f32 %v837_v59, %v613_v60  ;;  %v953_v30 = vsub.s32 %v950_v38, %v901_v47 }
 0x153   : > { %v1160_v62 = vpop.eup %1159  ;;  %v871_v2 = vmul.f32 %v839_v45, %v615_v61  ;;  %v844_v57 = vadd.f32 1.0, %v1158_v37  ;;  %v903_v3 = vrot.slane %v898_v41, %v902_v21 }
 0x154   : > { %v1162_v7 = vpop.eup %1161  ;;  %916 = vmatprep.subr.bf16.mxu1 %v891_v63  ;;  %v841_v52 = vadd.f32 1.0, %v1160_v62  ;;  %v874_v15 = vmul.f32 %v842_v18, %v618_v9 }
 0x155   : > { %v890_v31 = vpack.c.bf16 %v871_v2, %v869_v6  ;;  %v876_v13 = vmul.f32 %v844_v57, %v620_v5  ;;  %v843_v16 = vadd.f32 1.0, %v1162_v7 }
 0x156   : > { %v873_v4 = vmul.f32 %v841_v52, %v617_v12 }
 0x157   : > { %917 = vmatpush1.bf16.msra.mxu1 %v890_v31  ;;  %v893_v49 = vpack.c.bf16 %v876_v13, %v874_v15  ;;  %v875_v56 = vmul.f32 %v843_v16, %v619_v43 }
 0x159   : > { %918 = vmatprep.subr.bf16.mxu1 %v893_v49  ;;  %v892_v1 = vpack.c.bf16 %v875_v56, %v873_v4 }
 0x15b   : > { %919 = vmatpush1.bf16.msra.mxu1 %v892_v1 }
 0x15e   : > { %937 = vmatmul.mubr.bf16.vlgmr.msra.gmra.mrb[0].mxu1 %v877_v32 }
 0x231   : > { %v938_v54 = vpop.f32.mrb[0].mxu1 }
 0x232   : > { %v939_v23 = vadd.f32 %v938_v54, %v903_v3  ;;  %v940_v25 = vpop.f32.mrb[1].mxu1 }
 0x233   : > { %v941_v58 = vadd.f32 %v940_v25, %v903_v3  ;;  %v942_v36 = vpop.f32.mrb[2].mxu1 }
 0x234   : > { %v943_v33 = vpop.f32.mrb[3].mxu1 }
 0x235   : > { %v947_v35 = vcombine.low %v939_v23, %v941_v58 }
 0x237   : > { %v954_v29 = vrot.slane %v947_v35, %v953_v30 }
 0x239   : > { %v961_v39 = vrot.slane %v954_v29, %v953_v30 }
 0x23b   : > { %967 = vst.msk [vmem:[%s272_s27] sm:$0x3] %vm965_vm1, %v961_v39 }
 0x23c PF: > { %p14_p9 = scmp.ge.s32.totalorder %s1239_s23, 4   ;;  %s1630_s20 = smov %s1181_s21 }
 0x23d   : > { %s1631_s21 = smov %s1248_s26  ;;  %s1632_s22 = smov %s1239_s23 }
 0x23e   :  { %16 = sbr.rel (!%p14_p9) target bundleno = 5 (0x5), region = 113 }

</bundles_post_ra>
